<compile_context>
chip_gen: v7x
topology: tpu7x:2x2x1
jax: 0.10.0
libtpu: 0.0.40
codegen_flags: <defaults>
</compile_context>

<pallas_src>
import functools

import jax
import jax.numpy as jnp
from jax import lax
from jax.experimental import pallas as pl
from jax.experimental.pallas import tpu as pltpu


def _fusion_kernel(x_ref, wsel_ref, bsel_ref, wlr_ref, wg_ref, bg_ref, o_ref,
                   *, k, scale):
    x = x_ref[...]                                         # (TM, D) f32
    tm, d = x.shape

    # ---- LightweightSTG: selector -> hard top-k mask -----------------------
    # Reference applies sigmoid before top-k; sigmoid is strictly monotone and
    # the scores are only used for ordering, so rank directly on the logits.
    s = jnp.dot(x, wsel_ref[...], preferred_element_type=jnp.float32)
    s = s + bsel_ref[...]                                  # (TM, D)

    # Sort-free top-k with torch.topk / lax.top_k tie semantics: element i is
    # kept iff fewer than k elements "beat" it; j beats i iff s_j > s_i, or
    # s_j == s_i and j < i.  Cube laid out (D_j, D_i, TM): TM on lanes (full
    # 128-lane occupancy), j-count reduces over the leading axis (plain VPU
    # adds, no sublane rotates).
    s_t = s.T                                              # (D, TM)  XLU transpose
    s_j = s_t[:, None, :]                                  # (D, 1, TM)  j -> leading axis
    s_i = s_t[None, :, :]                                  # (1, D, TM)  i -> sublane axis
    # Tie-break mask: tiny (D, D, 1) constant; built per grid step (outside
    # any loop, negligible vs the O(TM*D^2) cube).
    jj = lax.broadcasted_iota(jnp.int32, (d, d, 1), 0)
    ii = lax.broadcasted_iota(jnp.int32, (d, d, 1), 1)
    tie_f = (jj < ii).astype(jnp.float32)                  # j wins ties iff j < i
    gt = (s_j > s_i).astype(jnp.float32)                   # (D, D, TM)
    eq = (s_j == s_i).astype(jnp.float32)                  # (D, D, TM)
    beats = gt + tie_f * eq                                # pure f32 VPU; no bool select
    rank_t = jnp.sum(beats, axis=0)                        # (D, TM) leading-axis reduce
    mask = (rank_t < float(k)).astype(x.dtype).T           # (TM, D)  XLU transpose back
    x_sparse = mask * x

    # ---- LowRankInteraction: x + scale * (x * (x @ (U@V))) -----------------
    # U@V is pre-folded in the wrapper into one well-shaped (D, D) weight.
    cross = jnp.dot(x_sparse, wlr_ref[...], preferred_element_type=jnp.float32)
    x_inter = x_sparse + scale * (x_sparse * cross)

    # ---- DynamicResidualFusion: sigmoid gate over x_inter (MXU dot) --------
    gate_pre = jnp.dot(x_inter, wg_ref[...],
                       preferred_element_type=jnp.float32)  # (TM, 1)
    gate = jax.nn.sigmoid(gate_pre + bg_ref[0, 0])
    o_ref[...] = gate * x_inter + (1.0 - gate) * x_sparse


def _chip_defaults():
    """Pick (row tile, vmem request) per TPU generation.

    v7x has only 64 MiB VMEM per TensorCore (and 2 TCs); v5e/v6e have 128 MiB
    and a single TC, so a bigger tile amortizes the ~0.35us per-grid-step
    overhead there.  Falls back to conservative values if the query fails.
    """
    try:
        vmem_cap = pltpu.get_tpu_info().vmem_capacity_bytes
    except Exception:
        vmem_cap = None
    if vmem_cap is None:
        return 256, 40 * 1024 * 1024          # unknown chip: safe everywhere
    if vmem_cap <= 64 * 1024 * 1024:
        return 128, 32 * 1024 * 1024          # v7x
    return 512, 64 * 1024 * 1024              # v5e / v6e


def light_factor_fusion(x2d, params, *, k, scale, tm=None, vmem_limit_bytes=None):
    m, d = x2d.shape
    tm_def, vmem_def = _chip_defaults()
    if tm is None:
        tm = tm_def
    if vmem_limit_bytes is None:
        vmem_limit_bytes = vmem_def

    # Fold the low-rank factors into one (D, D) weight (full f32 precision so
    # it matches the unfused reference); gate weight as a (D, 1) column so the
    # gate reduction runs on the MXU.
    w_lr = jnp.dot(params["U"], params["V"],
                   precision=jax.lax.Precision.HIGHEST,
                   preferred_element_type=jnp.float32)
    wg_col = params["wg"].reshape(d, 1)

    # Row tiling: clamp for tiny inputs; ragged row counts are zero-padded.
    m_pad8 = ((m + 7) // 8) * 8
    tm_eff = min(tm, m_pad8)
    m_pad = ((m_pad8 + tm_eff - 1) // tm_eff) * tm_eff
    if m_pad != m:
        x2d_p = jnp.zeros((m_pad, d), x2d.dtype).at[:m].set(x2d)
    else:
        x2d_p = x2d

    kernel = functools.partial(_fusion_kernel, k=k, scale=scale)
    out = pl.pallas_call(
        kernel,
        out_shape=jax.ShapeDtypeStruct((m_pad, d), x2d.dtype),
        grid=(m_pad // tm_eff,),
        in_specs=[
            pl.BlockSpec((tm_eff, d), lambda i: (i, 0)),        # x rows
            pl.BlockSpec((d, d), lambda i: (0, 0)),             # selector W (in,out)
            pl.BlockSpec((1, d), lambda i: (0, 0)),             # selector bias
            pl.BlockSpec((d, d), lambda i: (0, 0)),             # folded U@V
            pl.BlockSpec((d, 1), lambda i: (0, 0)),             # gate weight column
            pl.BlockSpec(memory_space=pltpu.MemorySpace.SMEM),  # gate bias scalar
        ],
        out_specs=pl.BlockSpec((tm_eff, d), lambda i: (i, 0)),
        compiler_params=pltpu.CompilerParams(
            dimension_semantics=("parallel",),
            vmem_limit_bytes=vmem_limit_bytes),
    )(x2d_p, params["wsel"], params["bsel"], w_lr, wg_col, params["bg"])
    return out[:m]


def _ref_forward(x2d, p, k, scale, *, rank_on_logits=False):
    """Pure-JAX reference mirroring the PyTorch module semantics."""
    hi = jax.lax.Precision.HIGHEST
    logits = jnp.dot(x2d, p["wsel"], precision=hi) + p["bsel"]
    scores = jax.nn.sigmoid(logits)
    # sigmoid is monotone, so ranking on logits selects the same set; the flag
    # only exists to avoid f32 sigmoid-rounding tie artifacts at larger M.
    rank_src = logits if rank_on_logits else scores
    _, idx = jax.lax.top_k(rank_src, k)
    mask = jnp.zeros_like(scores).at[
        jnp.arange(x2d.shape[0])[:, None], idx].set(1.0)
    x_sparse = mask * x2d
    cross = jnp.dot(jnp.dot(x_sparse, p["U"], precision=hi), p["V"], precision=hi)
    x_inter = x_sparse + scale * (x_sparse * cross)
    gate = jax.nn.sigmoid(
        jnp.sum(x_inter * p["wg"], axis=-1, keepdims=True) + p["bg"][0, 0])
    return gate * x_inter + (1.0 - gate) * x_sparse


if __name__ == "__main__":
    INPUT_DIM = 64
    KEEP_RATIO = 0.5
    RANK = max(1, int(0.1 * INPUT_DIM))              # 6
    K = max(1, int(KEEP_RATIO * INPUT_DIM))          # 32
    SCALE = 1.0 / RANK ** 0.5
    B, S = 2, 8                                      # x: (B, S, INPUT_DIM)

    key = jax.random.PRNGKey(0)
    kx, k1, k2, k3, k4, k5, k6, kx2 = jax.random.split(key, 8)
    x = jax.random.normal(kx, (B, S, INPUT_DIM), jnp.float32)
    params = {
        # selector Linear(D, D): weight stored pre-transposed as (in, out)
        "wsel": jax.random.normal(k1, (INPUT_DIM, INPUT_DIM), jnp.float32) * 0.1,
        "bsel": jax.random.normal(k2, (1, INPUT_DIM), jnp.float32) * 0.1,
        # LowRankInteraction params (torch.randn init)
        "U": jax.random.normal(k3, (INPUT_DIM, RANK), jnp.float32),
        "V": jax.random.normal(k4, (RANK, INPUT_DIM), jnp.float32),
        # fusion gate Linear(D, 1): weight as (1, D), bias as (1, 1)
        "wg": jax.random.normal(k5, (1, INPUT_DIM), jnp.float32) * 0.1,
        "bg": jax.random.normal(k6, (1, 1), jnp.float32) * 0.1,
    }

    # ---- small test: faithful (sigmoid-ranked) reference, single tile ------
    x2d = x.reshape(B * S, INPUT_DIM)
    out2d = light_factor_fusion(x2d, params, k=K, scale=SCALE)
    out = out2d.reshape(B, S, INPUT_DIM)
    jax.block_until_ready(out)
    ref = _ref_forward(x2d, params, K, SCALE).reshape(B, S, INPUT_DIM)
    assert out.shape == (B, S, INPUT_DIM)
    assert jnp.allclose(out, ref, atol=1e-3, rtol=1e-3), "mismatch (small test)"

    # ---- larger, non-multiple-of-tile test: exercises padding + the
    #      multi-step pipelined path (tm=128 -> grid=4; also the megacore
    #      "parallel" split on v7x) ------------------------------------------
    M2 = 387
    x2d_big = jax.random.normal(kx2, (M2, INPUT_DIM), jnp.float32)
    out_big = light_factor_fusion(x2d_big, params, k=K, scale=SCALE, tm=128)
    jax.block_until_ready(out_big)
    ref_big = _ref_forward(x2d_big, params, K, SCALE, rank_on_logits=True)
    assert out_big.shape == (M2, INPUT_DIM)
    assert jnp.allclose(out_big, ref_big, atol=1e-3, rtol=1e-3), "mismatch (large test)"

    print("KERNEL_OK")
</pallas_src>

<mosaic_0001>
module attributes {stable_mosaic.version = 11 : i64} {
  func.func @_fusion_kernel(%arg0: i32, %arg1: memref<16x64xf32, #tpu.memory_space<vmem>>, %arg2: memref<64x64xf32, #tpu.memory_space<vmem>>, %arg3: memref<1x64xf32, #tpu.memory_space<vmem>>, %arg4: memref<64x64xf32, #tpu.memory_space<vmem>>, %arg5: memref<64x1xf32, #tpu.memory_space<vmem>>, %arg6: memref<1x1xf32, #tpu.memory_space<smem>>, %arg7: memref<16x64xf32, #tpu.memory_space<vmem>>) attributes {dimension_semantics = [#tpu.dimension_semantics<parallel>], iteration_bounds = array<i64: 1>, scalar_prefetch = 0 : i64, scratch_operands = 0 : i64, tpu.core_type = #tpu.core_type<tc>, window_params = [{transform_indices = @transform_0, window_bounds = array<i64: 16, 64>}, {pipeline_mode = #tpu.pipeline_mode<synchronous>, transform_indices = @transform_1, window_bounds = array<i64: 64, 64>}, {pipeline_mode = #tpu.pipeline_mode<synchronous>, transform_indices = @transform_2, window_bounds = array<i64: 1, 64>}, {pipeline_mode = #tpu.pipeline_mode<synchronous>, transform_indices = @transform_3, window_bounds = array<i64: 64, 64>}, {pipeline_mode = #tpu.pipeline_mode<synchronous>, transform_indices = @transform_4, window_bounds = array<i64: 64, 1>}, {transform_indices = @transform_5, window_bounds = array<i64: 1, 1>}, {transform_indices = @transform_6, window_bounds = array<i64: 16, 64>}]} {
    %c0 = arith.constant 0 : index
    %c0_0 = arith.constant 0 : index
    %0 = vector.load %arg1[%c0, %c0_0] : memref<16x64xf32, #tpu.memory_space<vmem>>, vector<16x64xf32>
    %c0_1 = arith.constant 0 : index
    %c0_2 = arith.constant 0 : index
    %1 = vector.load %arg2[%c0_1, %c0_2] : memref<64x64xf32, #tpu.memory_space<vmem>>, vector<64x64xf32>
    %cst = arith.constant dense<0.000000e+00> : vector<16x64xf32>
    %2 = tpu.matmul %0, %1, %cst {dimension_numbers = #tpu.dot_dimension_numbers<[1], [0], [0], [1], [0, 0, 1, 1], [], []>} : vector<16x64xf32>, vector<64x64xf32>, vector<16x64xf32> -> vector<16x64xf32>
    %c0_3 = arith.constant 0 : index
    %c0_4 = arith.constant 0 : index
    %3 = vector.load %arg3[%c0_3, %c0_4] : memref<1x64xf32, #tpu.memory_space<vmem>>, vector<1x64xf32>
    %4 = vector.broadcast %3 : vector<1x64xf32> to vector<16x64xf32>
    %5 = arith.addf %2, %4 : vector<16x64xf32>
    %6 = tpu.transpose %5, [1, 0] : vector<16x64xf32> -> vector<64x16xf32>
    %7 = vector.shape_cast %6 : vector<64x16xf32> to vector<64x1x16xf32>
    %8 = vector.shape_cast %6 : vector<64x16xf32> to vector<1x64x16xf32>
    %9 = tpu.iota {dimensions = array<i32: 0>} : vector<64x64x1xi32>
    %10 = tpu.iota {dimensions = array<i32: 1>} : vector<64x64x1xi32>
    %11 = arith.cmpi slt, %9, %10 : vector<64x64x1xi32>
    %12 = arith.extui %11 : vector<64x64x1xi1> to vector<64x64x1xi32>
    %13 = arith.sitofp %12 : vector<64x64x1xi32> to vector<64x64x1xf32>
    %14 = vector.broadcast %7 : vector<64x1x16xf32> to vector<64x64x16xf32>
    %15 = vector.broadcast %8 : vector<1x64x16xf32> to vector<64x64x16xf32>
    %16 = arith.cmpf ogt, %14, %15 : vector<64x64x16xf32>
    %17 = arith.extui %16 : vector<64x64x16xi1> to vector<64x64x16xi32>
    %18 = arith.sitofp %17 : vector<64x64x16xi32> to vector<64x64x16xf32>
    %19 = vector.broadcast %7 : vector<64x1x16xf32> to vector<64x64x16xf32>
    %20 = vector.broadcast %8 : vector<1x64x16xf32> to vector<64x64x16xf32>
    %21 = arith.cmpf oeq, %19, %20 : vector<64x64x16xf32>
    %22 = arith.extui %21 : vector<64x64x16xi1> to vector<64x64x16xi32>
    %23 = arith.sitofp %22 : vector<64x64x16xi32> to vector<64x64x16xf32>
    %24 = vector.broadcast %13 : vector<64x64x1xf32> to vector<64x64x16xf32>
    %25 = arith.mulf %24, %23 : vector<64x64x16xf32>
    %26 = arith.addf %18, %25 : vector<64x64x16xf32>
    %cst_5 = arith.constant dense<0.000000e+00> : vector<64x16xf32>
    %27 = vector.multi_reduction <add>, %26, %cst_5 [0] : vector<64x64x16xf32> to vector<64x16xf32>
    %cst_6 = arith.constant 3.200000e+01 : f32
    %28 = vector.broadcast %cst_6 : f32 to vector<64x16xf32>
    %29 = arith.cmpf olt, %27, %28 : vector<64x16xf32>
    %30 = arith.extui %29 : vector<64x16xi1> to vector<64x16xi32>
    %31 = arith.sitofp %30 : vector<64x16xi32> to vector<64x16xf32>
    %32 = tpu.transpose %31, [1, 0] : vector<64x16xf32> -> vector<16x64xf32>
    %33 = arith.mulf %32, %0 : vector<16x64xf32>
    %c0_7 = arith.constant 0 : index
    %c0_8 = arith.constant 0 : index
    %34 = vector.load %arg4[%c0_7, %c0_8] : memref<64x64xf32, #tpu.memory_space<vmem>>, vector<64x64xf32>
    %cst_9 = arith.constant dense<0.000000e+00> : vector<16x64xf32>
    %35 = tpu.matmul %33, %34, %cst_9 {dimension_numbers = #tpu.dot_dimension_numbers<[1], [0], [0], [1], [0, 0, 1, 1], [], []>} : vector<16x64xf32>, vector<64x64xf32>, vector<16x64xf32> -> vector<16x64xf32>
    %36 = arith.mulf %33, %35 : vector<16x64xf32>
    %cst_10 = arith.constant 0.408248305 : f32
    %37 = vector.broadcast %cst_10 : f32 to vector<16x64xf32>
    %38 = arith.mulf %37, %36 : vector<16x64xf32>
    %39 = arith.addf %33, %38 : vector<16x64xf32>
    %c0_11 = arith.constant 0 : index
    %c0_12 = arith.constant 0 : index
    %40 = vector.load %arg5[%c0_11, %c0_12] : memref<64x1xf32, #tpu.memory_space<vmem>>, vector<64x1xf32>
    %cst_13 = arith.constant dense<0.000000e+00> : vector<16x1xf32>
    %41 = tpu.matmul %39, %40, %cst_13 {dimension_numbers = #tpu.dot_dimension_numbers<[1], [0], [0], [1], [0, 0, 1, 1], [], []>} : vector<16x64xf32>, vector<64x1xf32>, vector<16x1xf32> -> vector<16x1xf32>
    %c0_14 = arith.constant 0 : index
    %c0_15 = arith.constant 0 : index
    %42 = memref.load %arg6[%c0_14, %c0_15] : memref<1x1xf32, #tpu.memory_space<smem>>
    %43 = vector.broadcast %42 : f32 to vector<16x1xf32>
    %44 = arith.addf %41, %43 : vector<16x1xf32>
    %45 = arith.negf %44 : vector<16x1xf32>
    %46 = math.exp %45 : vector<16x1xf32>
    %cst_16 = arith.constant 1.000000e+00 : f32
    %47 = vector.broadcast %cst_16 : f32 to vector<16x1xf32>
    %48 = arith.addf %47, %46 : vector<16x1xf32>
    %49 = arith.divf %47, %48 : vector<16x1xf32>
    %50 = vector.broadcast %49 : vector<16x1xf32> to vector<16x64xf32>
    %51 = arith.mulf %50, %39 : vector<16x64xf32>
    %cst_17 = arith.constant 1.000000e+00 : f32
    %52 = vector.broadcast %cst_17 : f32 to vector<16x1xf32>
    %53 = arith.subf %52, %49 : vector<16x1xf32>
    %54 = vector.broadcast %53 : vector<16x1xf32> to vector<16x64xf32>
    %55 = arith.mulf %54, %33 : vector<16x64xf32>
    %56 = arith.addf %51, %55 : vector<16x64xf32>
    %c0_18 = arith.constant 0 : index
    %c0_19 = arith.constant 0 : index
    %57 = vector.load %arg7[%c0_18, %c0_19] : memref<16x64xf32, #tpu.memory_space<vmem>>, vector<16x64xf32>
    tpu.vector_store %arg7[%c0_18, %c0_19], %56 {strides = array<i32>} : memref<16x64xf32, #tpu.memory_space<vmem>>, vector<16x64xf32>,
    return
  }
  func.func @transform_0(%arg0: i32) -> (i32, i32) {
    %c0_i32 = arith.constant 0 : i32
    %c0_i32_0 = arith.constant 0 : i32
    return %arg0, %c0_i32 : i32, i32
  }
  func.func @transform_1(%arg0: i32) -> (i32, i32) {
    %c0_i32 = arith.constant 0 : i32
    %c0_i32_0 = arith.constant 0 : i32
    %c0_i32_1 = arith.constant 0 : i32
    return %c0_i32, %c0_i32_0 : i32, i32
  }
  func.func @transform_2(%arg0: i32) -> (i32, i32) {
    %c0_i32 = arith.constant 0 : i32
    %c0_i32_0 = arith.constant 0 : i32
    %c0_i32_1 = arith.constant 0 : i32
    return %c0_i32, %c0_i32_0 : i32, i32
  }
  func.func @transform_3(%arg0: i32) -> (i32, i32) {
    %c0_i32 = arith.constant 0 : i32
    %c0_i32_0 = arith.constant 0 : i32
    %c0_i32_1 = arith.constant 0 : i32
    return %c0_i32, %c0_i32_0 : i32, i32
  }
  func.func @transform_4(%arg0: i32) -> (i32, i32) {
    %c0_i32 = arith.constant 0 : i32
    %c0_i32_0 = arith.constant 0 : i32
    %c0_i32_1 = arith.constant 0 : i32
    return %c0_i32, %c0_i32_0 : i32, i32
  }
  func.func @transform_5(%arg0: i32) -> (i32, i32) {
    %c0_i32 = arith.constant 0 : i32
    %c0_i32_0 = arith.constant 0 : i32
    %c0_i32_1 = arith.constant 0 : i32
    return %c0_i32, %c0_i32_0 : i32, i32
  }
  func.func @transform_6(%arg0: i32) -> (i32, i32) {
    %c0_i32 = arith.constant 0 : i32
    %c0_i32_0 = arith.constant 0 : i32
    return %arg0, %c0_i32 : i32, i32
  }
}

</mosaic_0001>

<bundles_post_ra>
// kernel: tpu_custom_call.1
= control target key start
LH: loop header
LB: loop body
LE: loop exit
PB: predicated region body
PF: predicated region fallthrough
CT: control target
= control target key end

     0   :  { %12 = vsyncpa [#allocation4], 0  ;;  %s14909_s0 = inlined_call_operand.hbm [shape: f32[16,64], index: 0, kind: input, shape index: {}]   ;;  %s14910_s1 = inlined_call_operand.vmem [shape: f32[64,64], index: 1, kind: input, shape index: {}]   ;;  %s14911_s2 = inlined_call_operand.vmem [shape: f32[1,64], index: 2, kind: input, shape index: {}]   ;;  %s14912_s3 = inlined_call_operand.hbm [shape: f32[64,64], index: 3, kind: input, shape index: {}]   ;;  %s14913_s4 = inlined_call_operand.vmem [shape: f32[64,1], index: 4, kind: input, shape index: {}]   ;;  %s14914_s5 = inlined_call_operand.<no memory space> [shape: f32[1,1], index: 5, kind: input, shape index: {}]   ;;  %s14915_s6 = inlined_call_operand.hbm [shape: f32[16,64], index: 6, kind: output, shape index: {}]  }
   0x1   :  { %13 = vsyncpa [#allocation7], 0 }
   0x2   :  { %14 = vsyncpa [#allocation5], 0  ;;  %s9190_s21 = smov [#allocation3]   ;;  %s9118_s25 = scalar_lea.hbm %s14909_s0, 256 }
   0x3   :  { %s20_s22 = sshll.u32 %s9190_s21, 4  ;;  %p9119_p0 = scmp.ne.s32.totalorder %s14909_s0, %s9118_s25  ;;  %s21_s22 = int_to_ptr.vmem [resolvable:$true] %s20_s22 }
   0x4   :  { %p9122_p1 = scmp.lt.u32.totalorder %s9118_s25, %s14909_s0 }
   0x6   :  { %p9124_p2 = pnand %p9122_p1, %p9119_p0 }
   0x8   :  { %9127 = shalt.err (!%p9124_p2)
}
   0x9   :  { %s9128_s30 = scalar_lea.vmem %s21_s22, 256  ;;  %p9133_p4 = scmp.lt.s32.totalorder %s21_s22, %s21_s22 }
   0xa   :  { %p9129_p3 = scmp.ne.s32.totalorder %s21_s22, %s9128_s30  ;;  %p9134_p5 = scmp.lt.s32.totalorder %s9128_s30, %s9128_s30 }
   0xc   :  { %p9135_p6 = por %p9134_p5, %p9133_p4 }
   0xe   :  { %p9136_p7 = pnand %p9135_p6, %p9129_p3 }
  0x10   :  { %9139 = shalt.err (!%p9136_p7)
}
  0x11   :  { %s9191_s7 = smov 128   ;;  %s9192_s8 = smov 8  }
  0x12   :  { %26 = dma.hbm_to_vmem [thread:$0]  %s14909_s0, 256, %s21_s22, [#allocation4], %s9191_s7, %s9191_s7, %s9192_s8  }
  0x13   :  { %s9193_s11 = smov [#allocation6]   ;;  %s9140_s15 = scalar_lea.hbm %s14912_s3, 1024 }
  0x14   :  { %s36_s12 = sshll.u32 %s9193_s11, 4  ;;  %p9141_p8 = scmp.ne.s32.totalorder %s14912_s3, %s9140_s15  ;;  %s37_s12 = int_to_ptr.vmem [resolvable:$true] %s36_s12 }
  0x15   :  { %p9144_p9 = scmp.lt.u32.totalorder %s9140_s15, %s14912_s3 }
  0x17   :  { %p9146_p10 = pnand %p9144_p9, %p9141_p8 }
  0x19   :  { %9149 = shalt.err (!%p9146_p10)
}
  0x1a   :  { %s9150_s20 = scalar_lea.vmem %s37_s12, 1024  ;;  %p9155_p12 = scmp.lt.s32.totalorder %s37_s12, %s37_s12 }
  0x1b   :  { %p9151_p11 = scmp.ne.s32.totalorder %s37_s12, %s9150_s20  ;;  %p9156_p13 = scmp.lt.s32.totalorder %s9150_s20, %s9150_s20 }
  0x1d   :  { %p9157_p0 = por %p9156_p13, %p9155_p12 }
  0x1f   :  { %p9158_p1 = pnand %p9157_p0, %p9151_p11 }
  0x21   :  { %9161 = shalt.err (!%p9158_p1)
}
  0x22   :  { %42 = dma.hbm_to_vmem [thread:$0]  %s14912_s3, 1024, %s37_s12, [#allocation7], %s9191_s7, %s9191_s7, %s9192_s8  }
  0x23   :  { %9184 = dma.done.wait [#allocation4], 256  }
  0x24   :  { %9185 = vsyncadd [#allocation4], 4294967040 }
  0x25   :  { %9186 = dma.done.wait [#allocation7], 1024  }
  0x26   :  { %9187 = vsyncadd [#allocation7], 4294966272  ;;  %v55_v0 = vld [vmem:[%s14910_s1] sm:$0xff]  ;;  %v56_v1 = vld [vmem:[%s14910_s1 + $0x8] sm:$0xff]  ;;  %vm14996_vm0 = vcmask 523264   ;;  %v196_v24 = vlaneseq  ;;  %vm6545_vm13 = vcmask 130048  }
  0x27   :  { %v57_v2 = vld [vmem:[%s14910_s1 + $0x10] sm:$0xff]  ;;  %v9050_v3 = vpack.c.bf16 %v56_v1, %v55_v0  ;;  %v58_v4 = vld [vmem:[%s14910_s1 + $0x18] sm:$0xff]  ;;  %v59_v6 = vld [vmem:[%s14910_s1 + $0x20] sm:$0xff]  ;;  %v9194_v22 = vmov 1966171168  }
  0x28   :  { %v9054_v5 = vpack.c.bf16 %v58_v4, %v57_v2  ;;  %v60_v7 = vld [vmem:[%s14910_s1 + $0x28] sm:$0xff]  ;;  %v53_v8 = vld [vmem:[#allocation3] sm:$0xff]  ;;  %v61_v10 = vld [vmem:[%s14910_s1 + $0x30] sm:$0xff]  ;;  %v194_v23 = vunpack.c.l.s4 %v9194_v22  ;;  %v9300_v27 = vshrl.u32 %v196_v24, 7 }
  0x29   :  { %9051 = vmatprep.subr.bf16.mxu0 %v9050_v3  ;;  %9009 = vmatprep.mubr.msk.f32.mxu0 %vm14996_vm0, %v53_v8  ;;  %v9058_v9 = vpack.c.bf16 %v60_v7, %v59_v6  ;;  %v62_v11 = vld [vmem:[%s14910_s1 + $0x38] sm:$0xff]  ;;  %v54_v13 = vld [vmem:[#allocation3 + $0x8] sm:$0xff]  ;;  %v7866_v14 = vld [vmem:[%s14911_s2] ss:$0 sm:$0xff] }
  0x2a   :  { %9053 = vmatpush3.bf16.msra.mxu0 %v9050_v3  ;;  %v9062_v12 = vpack.c.bf16 %v62_v11, %v61_v10  ;;  %v195_v26 = vunpack.c.0.s8 %v194_v23  ;;  %15202 = vst [vmem:[#allocation15_spill] sm:$0xff] %v9300_v27  ;;  %v9332_v48 = vsub.s32 0, %v9300_v27  ;;  %vm593_vm1 = vcmp.gt.s32.totalorder %v9300_v27, 0 }
  0x2b   :  { %9055 = vmatprep.subr.bf16.mxu0 %v9054_v5  ;;  %vm601_vm2 = vcmp.gt.s32.totalorder %v9300_v27, 1  ;;  %vm609_vm3 = vcmp.gt.s32.totalorder %v9300_v27, 2  ;;  %vm625_vm4 = vcmp.gt.s32.totalorder %v9300_v27, 4  ;;  %vm617_vm5 = vcmp.gt.s32.totalorder %v9300_v27, 3 }
  0x2c   :  { %v9307_v30 = vsub.s32 %v195_v26, %v9300_v27  ;;  %vm633_vm6 = vcmp.gt.s32.totalorder %v9300_v27, 5  ;;  %vm641_vm7 = vcmp.gt.s32.totalorder %v9300_v27, 6 }
  0x2e   :  { %9057 = vmatpush3.bf16.msra.mxu0 %v9054_v5 }
  0x2f   :  { %9059 = vmatprep.subr.bf16.mxu0 %v9058_v9 }
  0x32   :  { %9061 = vmatpush3.bf16.msra.mxu0 %v9058_v9 }
  0x33   :  { %9063 = vmatprep.subr.bf16.mxu0 %v9062_v12 }
  0x36   :  { %9065 = vmatpush3.bf16.msra.mxu0 %v9062_v12 }
  0x39   :  { %9010 = vmatmul.mubr.msk.f32.vlgmr.msra.gmra.mrb[0].mxu0 %vm14996_vm0, %v54_v13 }
 0x10c   :  { %v9011_v15 = vpop.f32.mrb[0].mxu0 }
 0x10d   :  { %v143_v16 = vpop.f32.mrb[1].mxu0  ;;  %v149_v18 = vadd.f32 %v9011_v15, %v7866_v14 }
 0x10e   :  { %v144_v17 = vadd.f32 %v7866_v14, %v143_v16 }
 0x110   :  { %152 = vxpose.xlu0.b32.start [1/2] (short) (narrow) %v144_v17, 64 }
 0x114   :  { %153 = vxpose.xlu0.b32.end [2/2] (short) (narrow) %v149_v18, 64 }
 0x190   :  { %v9292_v19 = vpop.trf.xlu0 }
 0x194   :  { %v9294_v20 = vpop.trf.xlu0 }
 0x195   :  { %15199 = vst [vmem:[#allocation12_spill] sm:$0xff] %v9294_v20 }
 0x198   :  { %v9296_v21 = vpop.trf.xlu0 }
 0x199   :  { %15200 = vst [vmem:[#allocation13_spill] sm:$0xff] %v9296_v21 }
 0x19c   :  { %v9298_v25 = vpop.trf.xlu0 }
 0x19d   :  { %15201 = vst [vmem:[#allocation14_spill] sm:$0xff] %v9298_v25 }
 0x1a0   :  { %v9302_v28 = vpop.trf.xlu0 }
 0x1a1   :  { %15203 = vst [vmem:[#allocation16_spill] sm:$0xff] %v9302_v28  ;;  %v388_v29 = vcombine.high %v9302_v28, %v9302_v28  ;;  %v395_v32 = vrot.slane %v9302_v28, %v9307_v30 }
 0x1a3   :  { %v402_v33 = vrot.slane %v388_v29, %v9307_v30  ;;  %v403_v38 = vcombine.high %v395_v32, %v395_v32  ;;  %v9322_v39 = vrot.slane %v395_v32, %v9307_v30 }
 0x1a4   :  { %v9309_v31 = vpop.trf.xlu0 }
 0x1a5   :  { %15204 = vst [vmem:[#allocation17_spill] sm:$0xff] %v9309_v31  ;;  %v437_v34 = vcombine.high %v9309_v31, %v9309_v31  ;;  %v444_v35 = vrot.slane %v9309_v31, %v9307_v30  ;;  %v404_v42 = vcombine.high %v402_v33, %v402_v33  ;;  %v418_v49 = vrot.slane %v402_v33, %v9307_v30 }
 0x1a6   :  { %v425_v50 = vrot.slane %v403_v38, %v9307_v30  ;;  %v433_v51 = vcombine.high %v9322_v39, %v9322_v39 }
 0x1a7   :  { %v451_v37 = vrot.slane %v437_v34, %v9307_v30  ;;  %v452_v43 = vcombine.high %v444_v35, %v444_v35  ;;  %v432_v53 = vrot.slane %v404_v42, %v9307_v30  ;;  %v460_v54 = vrot.slane %v444_v35, %v9307_v30 }
 0x1a8   :  { %v9318_v36 = vpop.trf.xlu0  ;;  %v434_v1 = vcombine.high %v418_v49, %v418_v49  ;;  %v435_v2 = vcombine.high %v425_v50, %v425_v50  ;;  %v9357_v26 = vrot.slane %v425_v50, %v9332_v48  ;;  %v9360_v29 = vrot.slane %v433_v51, %v9332_v48 }
 0x1a9   :  { %15205 = vst [vmem:[#allocation18_spill] sm:$0xff] %v9318_v36  ;;  %v486_v40 = vcombine.high %v9318_v36, %v9318_v36  ;;  %v493_v41 = vrot.slane %v9318_v36, %v9307_v30  ;;  %v453_v44 = vcombine.high %v451_v37, %v451_v37  ;;  %v467_v57 = vrot.slane %v451_v37, %v9307_v30 }
 0x1aa   :  { %v474_v58 = vrot.slane %v452_v43, %v9307_v30  ;;  %v436_v5 = vcombine.high %v432_v53, %v432_v53  ;;  %v482_v9 = vcombine.high %v460_v54, %v460_v54  ;;  %15207 = vst [vmem:[#allocation20_spill] sm:$0xff] %v9357_v26  ;;  %15208 = vst [vmem:[#allocation21_spill] sm:$0xff] %v9360_v29 }
 0x1ab   :  { %v500_v45 = vrot.slane %v486_v40, %v9307_v30  ;;  %v501_v47 = vcombine.high %v493_v41, %v493_v41  ;;  %v481_v59 = vrot.slane %v453_v44, %v9307_v30  ;;  %v509_v60 = vrot.slane %v493_v41, %v9307_v30 }
 0x1ac   :  { %v9329_v46 = vpop.trf.xlu0  ;;  %v483_v10 = vcombine.high %v467_v57, %v467_v57  ;;  %v484_v11 = vcombine.high %v474_v58, %v474_v58  ;;  %v9363_v32 = vrot.slane %v435_v2, %v9332_v48  ;;  %v9366_v33 = vrot.slane %v418_v49, %v9332_v48 }
 0x1ad   :  { %15206 = vst [vmem:[#allocation19_spill] sm:$0xff] %v9329_v46  ;;  %v502_v52 = vcombine.high %v500_v45, %v500_v45  ;;  %v535_v55 = vcombine.high %v9329_v46, %v9329_v46  ;;  %v542_v56 = vrot.slane %v9329_v46, %v9307_v30  ;;  %v516_v61 = vrot.slane %v500_v45, %v9307_v30 }
 0x1ae   :  { %v523_v62 = vrot.slane %v501_v47, %v9307_v30  ;;  %v531_v12 = vcombine.high %v509_v60, %v509_v60  ;;  %v485_v13 = vcombine.high %v481_v59, %v481_v59  ;;  %15209 = vst [vmem:[#allocation22_spill] sm:$0xff] %v9363_v32  ;;  %15210 = vst [vmem:[#allocation23_spill] sm:$0xff] %v9366_v33 }
 0x1af   :  { %v549_v63 = vrot.slane %v535_v55, %v9307_v30  ;;  %v550_v0 = vcombine.high %v542_v56, %v542_v56  ;;  %v530_v3 = vrot.slane %v502_v52, %v9307_v30  ;;  %v558_v4 = vrot.slane %v542_v56, %v9307_v30 }
 0x1b0   :  { %v532_v14 = vcombine.high %v516_v61, %v516_v61  ;;  %v533_v15 = vcombine.high %v523_v62, %v523_v62  ;;  %v9369_v34 = vrot.slane %v432_v53, %v9332_v48  ;;  %v9372_v35 = vrot.slane %v434_v1, %v9332_v48 }
 0x1b1   :  { %v551_v6 = vcombine.high %v549_v63, %v549_v63  ;;  %v565_v7 = vrot.slane %v549_v63, %v9307_v30  ;;  %v572_v8 = vrot.slane %v550_v0, %v9307_v30  ;;  %v534_v17 = vcombine.high %v530_v3, %v530_v3 }
 0x1b2   :  { %v580_v18 = vcombine.high %v558_v4, %v558_v4  ;;  %15211 = vst [vmem:[#allocation24_spill] sm:$0xff] %v9369_v34  ;;  %15212 = vst [vmem:[#allocation25_spill] sm:$0xff] %v9372_v35  ;;  %v9375_v37 = vrot.slane %v436_v5, %v9332_v48  ;;  %v9378_v38 = vrot.slane %v460_v54, %v9332_v48 }
 0x1b3   :  { %v579_v16 = vrot.slane %v551_v6, %v9307_v30  ;;  %v581_v22 = vcombine.high %v565_v7, %v565_v7  ;;  %v582_v23 = vcombine.high %v572_v8, %v572_v8  ;;  %v9381_v40 = vrot.slane %v474_v58, %v9332_v48 }
 0x1b4   :  { %15213 = vst [vmem:[#allocation26_spill] sm:$0xff] %v9375_v37  ;;  %15214 = vst [vmem:[#allocation27_spill] sm:$0xff] %v9378_v38  ;;  %v9384_v41 = vrot.slane %v482_v9, %v9332_v48  ;;  %v9387_v42 = vrot.slane %v484_v11, %v9332_v48  ;;  %v9390_v43 = vrot.slane %v467_v57, %v9332_v48 }
 0x1b5   :  { %v583_v24 = vcombine.high %v579_v16, %v579_v16  ;;  %15215 = vst [vmem:[#allocation28_spill] sm:$0xff] %v9381_v40  ;;  %v9393_v44 = vrot.slane %v481_v59, %v9332_v48  ;;  %v9396_v45 = vrot.slane %v483_v10, %v9332_v48  ;;  %v9399_v47 = vrot.slane %v485_v13, %v9332_v48 }
 0x1b6   :  { %15216 = vst [vmem:[#allocation29_spill] sm:$0xff] %v9384_v41  ;;  %15217 = vst [vmem:[#allocation30_spill] sm:$0xff] %v9387_v42  ;;  %v9402_v49 = vrot.slane %v509_v60, %v9332_v48  ;;  %v9405_v50 = vrot.slane %v523_v62, %v9332_v48  ;;  %v9408_v51 = vrot.slane %v531_v12, %v9332_v48 }
 0x1b7   :  { %15218 = vst [vmem:[#allocation31_spill] sm:$0xff] %v9390_v43  ;;  %15219 = vst [vmem:[#allocation32_spill] sm:$0xff] %v9393_v44  ;;  %v9411_v52 = vrot.slane %v533_v15, %v9332_v48  ;;  %v9414_v53 = vrot.slane %v516_v61, %v9332_v48  ;;  %v9417_v54 = vrot.slane %v530_v3, %v9332_v48 }
 0x1b8   :  { %15220 = vst [vmem:[#allocation33_spill] sm:$0xff] %v9396_v45  ;;  %15221 = vst [vmem:[#allocation34_spill] sm:$0xff] %v9399_v47  ;;  %v9420_v55 = vrot.slane %v532_v14, %v9332_v48  ;;  %v9423_v56 = vrot.slane %v534_v17, %v9332_v48  ;;  %v9426_v57 = vrot.slane %v558_v4, %v9332_v48 }
 0x1b9   :  { %15222 = vst [vmem:[#allocation35_spill] sm:$0xff] %v9402_v49  ;;  %15223 = vst [vmem:[#allocation36_spill] sm:$0xff] %v9405_v50  ;;  %v9429_v58 = vrot.slane %v572_v8, %v9332_v48  ;;  %v9432_v59 = vrot.slane %v580_v18, %v9332_v48  ;;  %v9435_v60 = vrot.slane %v582_v23, %v9332_v48 }
 0x1ba   :  { %15224 = vst [vmem:[#allocation37_spill] sm:$0xff] %v9408_v51  ;;  %15225 = vst [vmem:[#allocation38_spill] sm:$0xff] %v9411_v52  ;;  %v9438_v61 = vrot.slane %v565_v7, %v9332_v48  ;;  %v9441_v62 = vrot.slane %v579_v16, %v9332_v48  ;;  %v9444_v63 = vrot.slane %v581_v22, %v9332_v48  ;;  %v14935_v7 = vmov 0.0  }
 0x1bb   :  { %15226 = vst [vmem:[#allocation39_spill] sm:$0xff] %v9414_v53  ;;  %15227 = vst [vmem:[#allocation40_spill] sm:$0xff] %v9417_v54  ;;  %v9447_v0 = vrot.slane %v583_v24, %v9332_v48  ;;  %v192_v1 = vcombine.high %v9292_v19, %v9292_v19  ;;  %v199_v2 = vrot.slane %v9292_v19, %v9307_v30  ;;  %v9463_v8 = vsel %vm593_vm1, 1.0, %v14935_v7 }
 0x1bc   :  { %15228 = vst [vmem:[#allocation41_spill] sm:$0xff] %v9420_v55  ;;  %15229 = vst [vmem:[#allocation42_spill] sm:$0xff] %v9423_v56  ;;  %v241_v4 = vcombine.high %v9294_v20, %v9294_v20  ;;  %v290_v6 = vcombine.high %v9296_v21, %v9296_v21  ;;  %v9466_v9 = vsel %vm601_vm2, 1.0, %v14935_v7  ;;  %v248_v11 = vrot.slane %v9294_v20, %v9307_v30 }
 0x1bd   :  { %15230 = vst [vmem:[#allocation43_spill] sm:$0xff] %v9426_v57  ;;  %15231 = vst [vmem:[#allocation44_spill] sm:$0xff] %v9429_v58  ;;  %v206_v3 = vrot.slane %v192_v1, %v9307_v30  ;;  %v207_v5 = vcombine.high %v199_v2, %v199_v2  ;;  %v215_v10 = vrot.slane %v199_v2, %v9307_v30  ;;  %v9484_v18 = vsel %vm609_vm3, 1.0, %v14935_v7 }
 0x1be   :  { %15232 = vst [vmem:[#allocation45_spill] sm:$0xff] %v9432_v59  ;;  %15233 = vst [vmem:[#allocation46_spill] sm:$0xff] %v9435_v60  ;;  %v339_v12 = vcombine.high %v9298_v25, %v9298_v25  ;;  %v255_v14 = vrot.slane %v241_v4, %v9307_v30  ;;  %v297_v15 = vrot.slane %v9296_v21, %v9307_v30  ;;  %v9490_v24 = vsel %vm617_vm5, 1.0, %v14935_v7 }
 0x1bf   :  { %15234 = vst [vmem:[#allocation47_spill] sm:$0xff] %v9438_v61  ;;  %15235 = vst [vmem:[#allocation48_spill] sm:$0xff] %v9441_v62  ;;  %v208_v13 = vcombine.high %v206_v3, %v206_v3  ;;  %v229_v16 = vrot.slane %v207_v5, %v9307_v30  ;;  %v304_v17 = vrot.slane %v290_v6, %v9307_v30  ;;  %v9495_v1 = vsel %vm625_vm4, 1.0, %v14935_v7 }
 0x1c0   :  { %15236 = vst [vmem:[#allocation49_spill] sm:$0xff] %v9444_v63  ;;  %15237 = vst [vmem:[#allocation50_spill] sm:$0xff] %v9447_v0  ;;  %v222_v22 = vrot.slane %v206_v3, %v9307_v30  ;;  %v346_v23 = vrot.slane %v9298_v25, %v9307_v30  ;;  %v237_v2 = vcombine.high %v215_v10, %v215_v10  ;;  %v9499_v6 = vsel %vm633_vm6, 1.0, %v14935_v7 }
 0x1c1   :  { %v256_v4 = vcombine.high %v248_v11, %v248_v11  ;;  %v353_v5 = vrot.slane %v339_v12, %v9307_v30  ;;  %v236_v3 = vrot.slane %v208_v13, %v9307_v30  ;;  %v257_v46 = vcombine.high %v255_v14, %v255_v14 }
 0x1c2   :  { %v305_v36 = vcombine.high %v297_v15, %v297_v15  ;;  %v9503_v31 = vsel %vm641_vm7, 1.0, %v14935_v7  ;;  %v239_v28 = vcombine.high %v229_v16, %v229_v16  ;;  %v264_v25 = vrot.slane %v248_v11, %v9307_v30 }
 0x1c3   :  { %v306_v21 = vcombine.high %v304_v17, %v304_v17  ;;  %v9507_v20 = vrot.slane %v215_v10, %v9332_v48  ;;  %v238_v27 = vcombine.high %v222_v22, %v222_v22  ;;  %v271_v12 = vrot.slane %v255_v14, %v9307_v30 }
 0x1c4   :  { %v354_v0 = vcombine.high %v346_v23, %v346_v23  ;;  %v9511_v63 = vrot.slane %v229_v16, %v9332_v48  ;;  %v278_v13 = vrot.slane %v256_v4, %v9307_v30  ;;  %v313_v62 = vrot.slane %v297_v15, %v9307_v30 }
 0x1c5   :  { %v355_v7 = vcombine.high %v353_v5, %v353_v5  ;;  %v9516_v61 = vrot.slane %v237_v2, %v9332_v48  ;;  %v240_v11 = vcombine.high %v236_v3, %v236_v3  ;;  %v285_v60 = vrot.slane %v257_v46, %v9307_v30 }
 0x1c6   :  { %v320_v10 = vrot.slane %v304_v17, %v9307_v30  ;;  %v327_v59 = vrot.slane %v305_v36, %v9307_v30  ;;  %v286_v14 = vcombine.high %v264_v25, %v264_v25  ;;  %v334_v58 = vrot.slane %v306_v21, %v9307_v30 }
 0x1c7   :  { %v9523_v16 = vrot.slane %v239_v28, %v9332_v48  ;;  %v9526_v4 = vrot.slane %v222_v22, %v9332_v48  ;;  %v287_v15 = vcombine.high %v271_v12, %v271_v12  ;;  %v362_v2 = vrot.slane %v346_v23, %v9307_v30 }
 0x1c8   :  { %v369_v57 = vrot.slane %v353_v5, %v9307_v30  ;;  %v376_v46 = vrot.slane %v354_v0, %v9307_v30  ;;  %v288_v56 = vcombine.high %v278_v13, %v278_v13  ;;  %v335_v17 = vcombine.high %v313_v62, %v313_v62 }
 0x1c9   :  { %v383_v36 = vrot.slane %v355_v7, %v9307_v30  ;;  %v9533_v55 = vrot.slane %v236_v3, %v9332_v48  ;;  %v289_v21 = vcombine.high %v285_v60, %v285_v60  ;;  %v336_v28 = vcombine.high %v320_v10, %v320_v10 }
 0x1ca   :  { %v337_v54 = vcombine.high %v327_v59, %v327_v59  ;;  %v9536_v22 = vrot.slane %v238_v27, %v9332_v48  ;;  %v338_v53 = vcombine.high %v334_v58, %v334_v58  ;;  %v9539_v23 = vrot.slane %v240_v11, %v9332_v48 }
 0x1cb   :  { %v9542_v5 = vrot.slane %v264_v25, %v9332_v48  ;;  %v9545_v0 = vrot.slane %v278_v13, %v9332_v48  ;;  %v384_v30 = vcombine.high %v362_v2, %v362_v2  ;;  %v385_v7 = vcombine.high %v369_v57, %v369_v57 }
 0x1cc   :  { %v386_v3 = vcombine.high %v376_v46, %v376_v46  ;;  %v9548_v52 = vrot.slane %v286_v14, %v9332_v48  ;;  %v387_v51 = vcombine.high %v383_v36, %v383_v36  ;;  %v9551_v27 = vrot.slane %v288_v56, %v9332_v48 }
 0x1cd   :  { %v9554_v50 = vrot.slane %v271_v12, %v9332_v48  ;;  %v9557_v11 = vrot.slane %v285_v60, %v9332_v48  ;;  %v9560_v25 = vrot.slane %v287_v15, %v9332_v48  ;;  %v9563_v13 = vrot.slane %v289_v21, %v9332_v48 }
 0x1ce   :  { %15238 = vst [vmem:[#allocation51_spill] sm:$0xff] %v9548_v52  ;;  %15239 = vst [vmem:[#allocation52_spill] sm:$0xff] %v9551_v27  ;;  %vm3985_vm8 = vcmp.eq.f32.partialorder %v9507_v20, %v9292_v19  ;;  %vm3993_vm9 = vcmp.eq.f32.partialorder %v9511_v63, %v9292_v19  ;;  %v9570_v56 = vrot.slane %v313_v62, %v9332_v48 }
 0x1cf   :  { %15240 = vst [vmem:[#allocation53_spill] sm:$0xff] %v9554_v50  ;;  %15241 = vst [vmem:[#allocation54_spill] sm:$0xff] %v9557_v11  ;;  %v9573_v12 = vrot.slane %v327_v59, %v9332_v48  ;;  %v9576_v60 = vrot.slane %v335_v17, %v9332_v48  ;;  %v9579_v14 = vrot.slane %v337_v54, %v9332_v48  ;;  %v15253_v54 = vmov 0.0  }
 0x1d0   :  { %15242 = vst [vmem:[#allocation55_spill] sm:$0xff] %v9560_v25  ;;  %15243 = vst [vmem:[#allocation56_spill] sm:$0xff] %v9563_v13  ;;  %v9582_v15 = vrot.slane %v320_v10, %v9332_v48  ;;  %v9585_v21 = vrot.slane %v334_v58, %v9332_v48  ;;  %v9588_v49 = vrot.slane %v336_v28, %v9332_v48  ;;  %v8437_v17 = vsel %vm3985_vm8, 1.0, %v15253_v54 }
 0x1d1   :  { %15244 = vst [vmem:[#allocation57_spill] sm:$0xff] %v9570_v56  ;;  %15245 = vst [vmem:[#allocation58_spill] sm:$0xff] %v9573_v12  ;;  %vm4001_vm10 = vcmp.eq.f32.partialorder %v9516_v61, %v9292_v19  ;;  %v9593_v59 = vrot.slane %v338_v53, %v9332_v48  ;;  %v9596_v62 = vrot.slane %v362_v2, %v9332_v48  ;;  %v8445_v10 = vsel %vm3993_vm9, 1.0, %v15253_v54 }
 0x1d2   :  { %15246 = vst [vmem:[#allocation59_spill] sm:$0xff] %v9576_v60  ;;  %15247 = vst [vmem:[#allocation60_spill] sm:$0xff] %v9579_v14  ;;  %v9601_v47 = vrot.slane %v376_v46, %v9332_v48  ;;  %v9604_v58 = vrot.slane %v384_v30, %v9332_v48  ;;  %v9607_v28 = vrot.slane %v386_v3, %v9332_v48  ;;  %v8453_v46 = vsel %vm4001_vm10, 1.0, %v15253_v54 }
 0x1d3   :  { %15248 = vst [vmem:[#allocation61_spill] sm:$0xff] %v9582_v15  ;;  %15249 = vst [vmem:[#allocation62_spill] sm:$0xff] %v9585_v21  ;;  %vm4009_vm11 = vcmp.eq.f32.partialorder %v9523_v16, %v9292_v19  ;;  %v9612_v53 = vrot.slane %v369_v57, %v9332_v48  ;;  %v9615_v2 = vrot.slane %v383_v36, %v9332_v48 }
 0x1d4   :  { %15250 = vst [vmem:[#allocation63_spill] sm:$0xff] %v9588_v49  ;;  %15251 = vst [vmem:[#allocation64_spill] sm:$0xff] %v9593_v59  ;;  %vm2449_vm12 = vcmp.gt.f32.partialorder %v9507_v20, %v9292_v19  ;;  %vm2457_vm14 = vcmp.gt.f32.partialorder %v9511_v63, %v9292_v19  ;;  %vm4017_vm15 = vcmp.eq.f32.partialorder %v9526_v4, %v9292_v19  ;;  %v8461_v44 = vsel %vm4009_vm11, 1.0, %v15253_v54 }
 0x1d5   :  { %15252 = vst [vmem:[#allocation65_spill] sm:$0xff] %v9596_v62  ;;  %15254 = vst [vmem:[#allocation66_spill] sm:$0xff] %v9601_v47  ;;  %v5521_v30 = vmul.f32 %v8437_v17, %v9463_v8  ;;  %v5529_v57 = vmul.f32 %v8445_v10, %v9466_v9  ;;  %v9627_v3 = vrot.slane %v385_v7, %v9332_v48 }
 0x1d6   :  { %15255 = vst [vmem:[#allocation67_spill] sm:$0xff] %v9604_v58  ;;  %15256 = vst [vmem:[#allocation68_spill] sm:$0xff] %v9607_v28  ;;  %v9630_v36 = vrot.slane %v387_v51, %v9332_v48  ;;  %v9634_v45 = vrot.slane %v9322_v39, %v9332_v48  ;;  %vm2465_vm1 = vcmp.gt.f32.partialorder %v9516_v61, %v9292_v19  ;;  %v7925_v39 = vsel %vm2449_vm12, 1.0, %v15253_v54 }
 0x1d7   :  { %15257 = vst [vmem:[#allocation69_spill] sm:$0xff] %v9612_v53  ;;  %15258 = vst [vmem:[#allocation70_spill] sm:$0xff] %v9615_v2  ;;  %vm2473_vm2 = vcmp.gt.f32.partialorder %v9523_v16, %v9292_v19  ;;  %vm4025_vm3 = vcmp.eq.f32.partialorder %v9533_v55, %v9292_v19  ;;  %v5537_v8 = vmul.f32 %v8453_v46, %v9484_v18  ;;  %v7933_v48 = vsel %vm2457_vm14, 1.0, %v15253_v54 }
 0x1d8   :  { %15259 = vst [vmem:[#allocation71_spill] sm:$0xff] %v9627_v3  ;;  %15260 = vst [vmem:[#allocation72_spill] sm:$0xff] %v9630_v36  ;;  %vm2481_vm4 = vcmp.gt.f32.partialorder %v9526_v4, %v9292_v19  ;;  %v8469_v51 = vsel %vm4017_vm15, 1.0, %v15253_v54  ;;  %vm4033_vm5 = vcmp.eq.f32.partialorder %v9536_v22, %v9292_v19  ;;  %v5545_v9 = vmul.f32 %v8461_v44, %v9490_v24 }
 0x1d9   :  { %15261 = vst [vmem:[#allocation73_spill] sm:$0xff] %v9634_v45  ;;  %v6033_v7 = vadd.f32 %v7925_v39, %v5521_v30  ;;  %v6041_v17 = vadd.f32 %v7933_v48, %v5529_v57  ;;  %vm2489_vm6 = vcmp.gt.f32.partialorder %v9533_v55, %v9292_v19  ;;  %vm2497_vm7 = vcmp.gt.f32.partialorder %v9536_v22, %v9292_v19 }
 0x1da   :  { %v7941_v18 = vsel %vm2465_vm1, 1.0, %v15253_v54  ;;  %v8477_v10 = vsel %vm4025_vm3, 1.0, %v15253_v54  ;;  %vm2505_vm8 = vcmp.gt.f32.partialorder %v9539_v23, %v9292_v19  ;;  %vm4041_vm9 = vcmp.eq.f32.partialorder %v9539_v23, %v9292_v19 }
 0x1db   :  { %v5553_v44 = vmul.f32 %v8469_v51, %v9495_v1  ;;  %v6049_v24 = vadd.f32 %v7941_v18, %v5537_v8  ;;  %vm2513_vm10 = vcmp.gt.f32.partialorder %v9542_v5, %v9292_v19  ;;  %v7949_v46 = vsel %vm2473_vm2, 1.0, %v15253_v54 }
 0x1dc   :  { %vm4049_vm11 = vcmp.eq.f32.partialorder %v9542_v5, %v9292_v19  ;;  %v8485_v30 = vsel %vm4033_vm5, 1.0, %v15253_v54  ;;  %v5561_v57 = vmul.f32 %v8477_v10, %v9499_v6  ;;  %v6057_v39 = vadd.f32 %v7949_v46, %v5545_v9 }
 0x1dd   :  { %v6546_v48 = vsel %vm6545_vm13, %v6033_v7, 0.0  ;;  %v6547_v1 = vsel %vm6545_vm13, %v6041_v17, 0.0  ;;  %vm2521_vm12 = vcmp.gt.f32.partialorder %v9545_v0, %v9292_v19  ;;  %v7957_v8 = vsel %vm2481_vm4, 1.0, %v15253_v54 }
 0x1de   :  { %v8493_v51 = vsel %vm4041_vm9, 1.0, %v15253_v54  ;;  %v6548_v18 = vadd.f32 %v6547_v1, %v6546_v48  ;;  %vm4057_vm14 = vcmp.eq.f32.partialorder %v9545_v0, %v9292_v19  ;;  %v5569_v6 = vmul.f32 %v8485_v30, %v9503_v31 }
 0x1df   :  { %v6065_v9 = vadd.f32 %v7957_v8, %v5553_v44  ;;  %v6549_v7 = vsel %vm6545_vm13, %v6049_v24, 0.0  ;;  %vm2529_vm15 = vcmp.gt.f32.partialorder %v9548_v52, %v9292_v19  ;;  %v7965_v17 = vsel %vm2489_vm6, 1.0, %v15253_v54 }
 0x1e0   :  { %v8501_v10 = vsel %vm4049_vm11, 1.0, %v15253_v54  ;;  %v6550_v46 = vadd.f32 %v6549_v7, %v6548_v18  ;;  %vm4065_vm1 = vcmp.eq.f32.partialorder %v9548_v52, %v9292_v19  ;;  %v5577_v31 = vmul.f32 0.0, %v8493_v51 }
 0x1e1   :  { %v6073_v44 = vadd.f32 %v7965_v17, %v5561_v57  ;;  %v6551_v24 = vsel %vm6545_vm13, %v6057_v39, 0.0  ;;  %vm2537_vm2 = vcmp.gt.f32.partialorder %v9551_v27, %v9292_v19  ;;  %v7973_v30 = vsel %vm2497_vm7, 1.0, %v15253_v54 }
 0x1e2   :  { %v8509_v48 = vsel %vm4057_vm14, 1.0, %v15253_v54  ;;  %v6552_v1 = vadd.f32 %v6551_v24, %v6550_v46  ;;  %vm4073_vm3 = vcmp.eq.f32.partialorder %v9551_v27, %v9292_v19  ;;  %v5585_v8 = vmul.f32 0.0, %v8501_v10 }
 0x1e3   :  { %v6081_v18 = vadd.f32 %v7973_v30, %v5569_v6  ;;  %v6553_v57 = vsel %vm6545_vm13, %v6065_v9, 0.0  ;;  %vm2545_vm4 = vcmp.gt.f32.partialorder %v9554_v50, %v9292_v19  ;;  %v7981_v39 = vsel %vm2505_vm8, 1.0, %v15253_v54 }
 0x1e4   :  { %v8517_v51 = vsel %vm4065_vm1, 1.0, %v15253_v54  ;;  %v6554_v7 = vadd.f32 %v6553_v57, %v6552_v1  ;;  %vm4081_vm5 = vcmp.eq.f32.partialorder %v9554_v50, %v9292_v19  ;;  %v5593_v17 = vmul.f32 0.0, %v8509_v48 }
 0x1e5   :  { %v6089_v46 = vadd.f32 %v7981_v39, %v5577_v31  ;;  %v6555_v6 = vsel %vm6545_vm13, %v6073_v44, 0.0  ;;  %vm2553_vm6 = vcmp.gt.f32.partialorder %v9557_v11, %v9292_v19  ;;  %v7989_v9 = vsel %vm2513_vm10, 1.0, %v15253_v54 }
 0x1e6   :  { %v8525_v10 = vsel %vm4073_vm3, 1.0, %v15253_v54  ;;  %v6556_v24 = vadd.f32 %v6555_v6, %v6554_v7  ;;  %vm4089_vm7 = vcmp.eq.f32.partialorder %v9557_v11, %v9292_v19  ;;  %v5601_v30 = vmul.f32 0.0, %v8517_v51 }
 0x1e7   :  { %v6097_v1 = vadd.f32 %v7989_v9, %v5585_v8  ;;  %v6557_v31 = vsel %vm6545_vm13, %v6081_v18, 0.0  ;;  %vm2561_vm8 = vcmp.gt.f32.partialorder %v9560_v25, %v9292_v19  ;;  %v7997_v44 = vsel %vm2521_vm12, 1.0, %v15253_v54 }
 0x1e8   :  { %v8533_v48 = vsel %vm4081_vm5, 1.0, %v15253_v54  ;;  %v6558_v57 = vadd.f32 %v6557_v31, %v6556_v24  ;;  %vm4097_vm9 = vcmp.eq.f32.partialorder %v9560_v25, %v9292_v19  ;;  %v5609_v39 = vmul.f32 0.0, %v8525_v10 }
 0x1e9   :  { %v6105_v7 = vadd.f32 %v7997_v44, %v5593_v17  ;;  %v6559_v8 = vsel %vm6545_vm13, %v6089_v46, 0.0  ;;  %vm2569_vm10 = vcmp.gt.f32.partialorder %v9563_v13, %v9292_v19  ;;  %v8005_v18 = vsel %vm2529_vm15, 1.0, %v15253_v54 }
 0x1ea   :  { %v8541_v51 = vsel %vm4089_vm7, 1.0, %v15253_v54  ;;  %v6560_v6 = vadd.f32 %v6559_v8, %v6558_v57  ;;  %vm4105_vm11 = vcmp.eq.f32.partialorder %v9563_v13, %v9292_v19  ;;  %v5617_v9 = vmul.f32 0.0, %v8533_v48 }
 0x1eb   :  { %v6113_v24 = vadd.f32 %v8005_v18, %v5601_v30  ;;  %v6561_v17 = vsel %vm6545_vm13, %v6097_v1, 0.0  ;;  %vm2577_vm12 = vcmp.gt.f32.partialorder %v9570_v56, %v9292_v19  ;;  %v8013_v46 = vsel %vm2537_vm2, 1.0, %v15253_v54 }
 0x1ec   :  { %v8549_v10 = vsel %vm4097_vm9, 1.0, %v15253_v54  ;;  %v6562_v31 = vadd.f32 %v6561_v17, %v6560_v6  ;;  %vm4113_vm14 = vcmp.eq.f32.partialorder %v9570_v56, %v9292_v19  ;;  %v5625_v44 = vmul.f32 0.0, %v8541_v51 }
 0x1ed   :  { %v6121_v57 = vadd.f32 %v8013_v46, %v5609_v39  ;;  %v6563_v30 = vsel %vm6545_vm13, %v6105_v7, 0.0  ;;  %vm2585_vm15 = vcmp.gt.f32.partialorder %v9573_v12, %v9292_v19  ;;  %v8021_v1 = vsel %vm2545_vm4, 1.0, %v15253_v54 }
 0x1ee   :  { %v8557_v48 = vsel %vm4105_vm11, 1.0, %v15253_v54  ;;  %v6564_v8 = vadd.f32 %v6563_v30, %v6562_v31  ;;  %vm4121_vm1 = vcmp.eq.f32.partialorder %v9573_v12, %v9292_v19  ;;  %v5633_v18 = vmul.f32 0.0, %v8549_v10 }
 0x1ef   :  { %v6129_v6 = vadd.f32 %v8021_v1, %v5617_v9  ;;  %v6565_v39 = vsel %vm6545_vm13, %v6113_v24, 0.0  ;;  %vm2593_vm2 = vcmp.gt.f32.partialorder %v9576_v60, %v9292_v19  ;;  %v8029_v7 = vsel %vm2553_vm6, 1.0, %v15253_v54 }
 0x1f0   :  { %v8565_v51 = vsel %vm4113_vm14, 1.0, %v15253_v54  ;;  %v6566_v17 = vadd.f32 %v6565_v39, %v6564_v8  ;;  %vm4129_vm3 = vcmp.eq.f32.partialorder %v9576_v60, %v9292_v19  ;;  %v5641_v46 = vmul.f32 0.0, %v8557_v48 }
 0x1f1   :  { %v6137_v31 = vadd.f32 %v8029_v7, %v5625_v44  ;;  %v6567_v9 = vsel %vm6545_vm13, %v6121_v57, 0.0  ;;  %vm2601_vm4 = vcmp.gt.f32.partialorder %v9579_v14, %v9292_v19  ;;  %v8037_v24 = vsel %vm2561_vm8, 1.0, %v15253_v54 }
 0x1f2   :  { %v8573_v10 = vsel %vm4121_vm1, 1.0, %v15253_v54  ;;  %v6568_v30 = vadd.f32 %v6567_v9, %v6566_v17  ;;  %vm4137_vm5 = vcmp.eq.f32.partialorder %v9579_v14, %v9292_v19  ;;  %v5649_v1 = vmul.f32 0.0, %v8565_v51 }
 0x1f3   :  { %v6145_v8 = vadd.f32 %v8037_v24, %v5633_v18  ;;  %v6569_v44 = vsel %vm6545_vm13, %v6129_v6, 0.0  ;;  %vm2609_vm6 = vcmp.gt.f32.partialorder %v9582_v15, %v9292_v19  ;;  %v8045_v57 = vsel %vm2569_vm10, 1.0, %v15253_v54 }
 0x1f4   :  { %v8581_v48 = vsel %vm4129_vm3, 1.0, %v15253_v54  ;;  %v6570_v39 = vadd.f32 %v6569_v44, %v6568_v30  ;;  %vm4145_vm7 = vcmp.eq.f32.partialorder %v9582_v15, %v9292_v19  ;;  %v5657_v7 = vmul.f32 0.0, %v8573_v10 }
 0x1f5   :  { %v6153_v17 = vadd.f32 %v8045_v57, %v5641_v46  ;;  %v6571_v18 = vsel %vm6545_vm13, %v6137_v31, 0.0  ;;  %vm2617_vm8 = vcmp.gt.f32.partialorder %v9585_v21, %v9292_v19  ;;  %v8053_v6 = vsel %vm2577_vm12, 1.0, %v15253_v54 }
 0x1f6   :  { %v8589_v51 = vsel %vm4137_vm5, 1.0, %v15253_v54  ;;  %v6572_v9 = vadd.f32 %v6571_v18, %v6570_v39  ;;  %vm4153_vm9 = vcmp.eq.f32.partialorder %v9585_v21, %v9292_v19  ;;  %v5665_v24 = vmul.f32 0.0, %v8581_v48 }
 0x1f7   :  { %v6161_v30 = vadd.f32 %v8053_v6, %v5649_v1  ;;  %v6573_v46 = vsel %vm6545_vm13, %v6145_v8, 0.0  ;;  %vm2625_vm10 = vcmp.gt.f32.partialorder %v9588_v49, %v9292_v19  ;;  %v8061_v31 = vsel %vm2585_vm15, 1.0, %v15253_v54 }
 0x1f8   :  { %v8597_v10 = vsel %vm4145_vm7, 1.0, %v15253_v54  ;;  %v6574_v44 = vadd.f32 %v6573_v46, %v6572_v9  ;;  %vm4161_vm11 = vcmp.eq.f32.partialorder %v9588_v49, %v9292_v19  ;;  %v5673_v57 = vmul.f32 0.0, %v8589_v51 }
 0x1f9   :  { %v6169_v39 = vadd.f32 %v8061_v31, %v5657_v7  ;;  %v6575_v1 = vsel %vm6545_vm13, %v6153_v17, 0.0  ;;  %vm2633_vm12 = vcmp.gt.f32.partialorder %v9593_v59, %v9292_v19  ;;  %v8069_v8 = vsel %vm2593_vm2, 1.0, %v15253_v54 }
 0x1fa   :  { %v8605_v48 = vsel %vm4153_vm9, 1.0, %v15253_v54  ;;  %v6576_v18 = vadd.f32 %v6575_v1, %v6574_v44  ;;  %vm4169_vm14 = vcmp.eq.f32.partialorder %v9593_v59, %v9292_v19  ;;  %v5681_v6 = vmul.f32 0.0, %v8597_v10 }
 0x1fb   :  { %v6177_v9 = vadd.f32 %v8069_v8, %v5665_v24  ;;  %v6577_v7 = vsel %vm6545_vm13, %v6161_v30, 0.0  ;;  %vm2641_vm15 = vcmp.gt.f32.partialorder %v9596_v62, %v9292_v19  ;;  %v8077_v17 = vsel %vm2601_vm4, 1.0, %v15253_v54 }
 0x1fc   :  { %v8613_v51 = vsel %vm4161_vm11, 1.0, %v15253_v54  ;;  %v6578_v46 = vadd.f32 %v6577_v7, %v6576_v18  ;;  %vm4177_vm1 = vcmp.eq.f32.partialorder %v9596_v62, %v9292_v19  ;;  %v5689_v31 = vmul.f32 0.0, %v8605_v48 }
 0x1fd   :  { %v6185_v44 = vadd.f32 %v8077_v17, %v5673_v57  ;;  %v6579_v24 = vsel %vm6545_vm13, %v6169_v39, 0.0  ;;  %vm2649_vm2 = vcmp.gt.f32.partialorder %v9601_v47, %v9292_v19  ;;  %v8085_v30 = vsel %vm2609_vm6, 1.0, %v15253_v54 }
 0x1fe   :  { %v8621_v10 = vsel %vm4169_vm14, 1.0, %v15253_v54  ;;  %v6580_v1 = vadd.f32 %v6579_v24, %v6578_v46  ;;  %vm4185_vm3 = vcmp.eq.f32.partialorder %v9601_v47, %v9292_v19  ;;  %v5697_v8 = vmul.f32 0.0, %v8613_v51 }
 0x1ff   :  { %v6193_v18 = vadd.f32 %v8085_v30, %v5681_v6  ;;  %v6581_v57 = vsel %vm6545_vm13, %v6177_v9, 0.0  ;;  %vm2657_vm4 = vcmp.gt.f32.partialorder %v9604_v58, %v9292_v19  ;;  %v8093_v39 = vsel %vm2617_vm8, 1.0, %v15253_v54 }
 0x200   :  { %v8629_v48 = vsel %vm4177_vm1, 1.0, %v15253_v54  ;;  %v6582_v7 = vadd.f32 %v6581_v57, %v6580_v1  ;;  %vm4193_vm5 = vcmp.eq.f32.partialorder %v9604_v58, %v9292_v19  ;;  %v5705_v17 = vmul.f32 0.0, %v8621_v10 }
 0x201   :  { %v6201_v46 = vadd.f32 %v8093_v39, %v5689_v31  ;;  %v6583_v6 = vsel %vm6545_vm13, %v6185_v44, 0.0  ;;  %vm2665_vm6 = vcmp.gt.f32.partialorder %v9607_v28, %v9292_v19  ;;  %v8101_v9 = vsel %vm2625_vm10, 1.0, %v15253_v54 }
 0x202   :  { %v8637_v51 = vsel %vm4185_vm3, 1.0, %v15253_v54  ;;  %v6584_v24 = vadd.f32 %v6583_v6, %v6582_v7  ;;  %vm4201_vm7 = vcmp.eq.f32.partialorder %v9607_v28, %v9292_v19  ;;  %v5713_v30 = vmul.f32 0.0, %v8629_v48 }
 0x203   :  { %v6209_v1 = vadd.f32 %v8101_v9, %v5697_v8  ;;  %v6585_v31 = vsel %vm6545_vm13, %v6193_v18, 0.0  ;;  %vm2673_vm8 = vcmp.gt.f32.partialorder %v9612_v53, %v9292_v19  ;;  %v8109_v44 = vsel %vm2633_vm12, 1.0, %v15253_v54 }
 0x204   :  { %v8645_v10 = vsel %vm4193_vm5, 1.0, %v15253_v54  ;;  %v6586_v57 = vadd.f32 %v6585_v31, %v6584_v24  ;;  %vm4209_vm9 = vcmp.eq.f32.partialorder %v9612_v53, %v9292_v19  ;;  %v5721_v39 = vmul.f32 0.0, %v8637_v51 }
 0x205   :  { %v6217_v7 = vadd.f32 %v8109_v44, %v5705_v17  ;;  %v6587_v8 = vsel %vm6545_vm13, %v6201_v46, 0.0  ;;  %vm2681_vm10 = vcmp.gt.f32.partialorder %v9615_v2, %v9292_v19  ;;  %v8117_v18 = vsel %vm2641_vm15, 1.0, %v15253_v54 }
 0x206   :  { %v8653_v48 = vsel %vm4201_vm7, 1.0, %v15253_v54  ;;  %v6588_v6 = vadd.f32 %v6587_v8, %v6586_v57  ;;  %vm4217_vm11 = vcmp.eq.f32.partialorder %v9615_v2, %v9292_v19  ;;  %v5729_v9 = vmul.f32 0.0, %v8645_v10 }
 0x207   :  { %v6225_v24 = vadd.f32 %v8117_v18, %v5713_v30  ;;  %v6589_v17 = vsel %vm6545_vm13, %v6209_v1, 0.0  ;;  %vm2689_vm12 = vcmp.gt.f32.partialorder %v9627_v3, %v9292_v19  ;;  %v8125_v46 = vsel %vm2649_vm2, 1.0, %v15253_v54 }
 0x208   :  { %v8661_v51 = vsel %vm4209_vm9, 1.0, %v15253_v54  ;;  %v6590_v31 = vadd.f32 %v6589_v17, %v6588_v6  ;;  %vm4225_vm14 = vcmp.eq.f32.partialorder %v9627_v3, %v9292_v19  ;;  %v5737_v44 = vmul.f32 0.0, %v8653_v48 }
 0x209   :  { %v6233_v57 = vadd.f32 %v8125_v46, %v5721_v39  ;;  %v6591_v30 = vsel %vm6545_vm13, %v6217_v7, 0.0  ;;  %vm2697_vm15 = vcmp.gt.f32.partialorder %v9630_v36, %v9292_v19  ;;  %v8133_v1 = vsel %vm2657_vm4, 1.0, %v15253_v54 }
 0x20a   :  { %v8669_v10 = vsel %vm4217_vm11, 1.0, %v15253_v54  ;;  %v6592_v8 = vadd.f32 %v6591_v30, %v6590_v31  ;;  %vm4233_vm1 = vcmp.eq.f32.partialorder %v9630_v36, %v9292_v19  ;;  %v5745_v18 = vmul.f32 0.0, %v8661_v51 }
 0x20b   :  { %v6241_v6 = vadd.f32 %v8133_v1, %v5729_v9  ;;  %v6593_v39 = vsel %vm6545_vm13, %v6225_v24, 0.0  ;;  %vm2705_vm2 = vcmp.gt.f32.partialorder %v9634_v45, %v9292_v19  ;;  %v8141_v7 = vsel %vm2665_vm6, 1.0, %v15253_v54 }
 0x20c   :  { %v8677_v48 = vsel %vm4225_vm14, 1.0, %v15253_v54  ;;  %v6594_v17 = vadd.f32 %v6593_v39, %v6592_v8  ;;  %vm4241_vm3 = vcmp.eq.f32.partialorder %v9634_v45, %v9292_v19  ;;  %v5753_v46 = vmul.f32 0.0, %v8669_v10 }
 0x20d   :  { %v6249_v31 = vadd.f32 %v8141_v7, %v5737_v44  ;;  %v6595_v9 = vsel %vm6545_vm13, %v6233_v57, 0.0  ;;  %vm2713_vm4 = vcmp.gt.f32.partialorder %v9357_v26, %v9292_v19  ;;  %v8149_v24 = vsel %vm2673_vm8, 1.0, %v15253_v54 }
 0x20e   :  { %v8685_v51 = vsel %vm4233_vm1, 1.0, %v15253_v54  ;;  %v6596_v30 = vadd.f32 %v6595_v9, %v6594_v17  ;;  %vm4249_vm5 = vcmp.eq.f32.partialorder %v9357_v26, %v9292_v19  ;;  %v5761_v1 = vmul.f32 0.0, %v8677_v48 }
 0x20f   :  { %v6257_v8 = vadd.f32 %v8149_v24, %v5745_v18  ;;  %v6597_v44 = vsel %vm6545_vm13, %v6241_v6, 0.0  ;;  %vm2721_vm6 = vcmp.gt.f32.partialorder %v9360_v29, %v9292_v19  ;;  %v8157_v57 = vsel %vm2681_vm10, 1.0, %v15253_v54 }
 0x210   :  { %v8693_v10 = vsel %vm4241_vm3, 1.0, %v15253_v54  ;;  %v6598_v39 = vadd.f32 %v6597_v44, %v6596_v30  ;;  %vm4257_vm7 = vcmp.eq.f32.partialorder %v9360_v29, %v9292_v19  ;;  %v5769_v7 = vmul.f32 0.0, %v8685_v51 }
 0x211   :  { %v6265_v17 = vadd.f32 %v8157_v57, %v5753_v46  ;;  %v6599_v18 = vsel %vm6545_vm13, %v6249_v31, 0.0  ;;  %vm2729_vm8 = vcmp.gt.f32.partialorder %v9363_v32, %v9292_v19  ;;  %v8165_v6 = vsel %vm2689_vm12, 1.0, %v15253_v54 }
 0x212   :  { %v8701_v48 = vsel %vm4249_vm5, 1.0, %v15253_v54  ;;  %v6600_v9 = vadd.f32 %v6599_v18, %v6598_v39  ;;  %vm4265_vm9 = vcmp.eq.f32.partialorder %v9363_v32, %v9292_v19  ;;  %v5777_v24 = vmul.f32 0.0, %v8693_v10 }
 0x213   :  { %v6273_v30 = vadd.f32 %v8165_v6, %v5761_v1  ;;  %v6601_v46 = vsel %vm6545_vm13, %v6257_v8, 0.0  ;;  %vm2737_vm10 = vcmp.gt.f32.partialorder %v9366_v33, %v9292_v19  ;;  %v8173_v31 = vsel %vm2697_vm15, 1.0, %v15253_v54 }
 0x214   :  { %v8709_v51 = vsel %vm4257_vm7, 1.0, %v15253_v54  ;;  %v6602_v44 = vadd.f32 %v6601_v46, %v6600_v9  ;;  %vm4273_vm11 = vcmp.eq.f32.partialorder %v9366_v33, %v9292_v19  ;;  %v5785_v57 = vmul.f32 0.0, %v8701_v48 }
 0x215   :  { %v6281_v39 = vadd.f32 %v8173_v31, %v5769_v7  ;;  %v6603_v1 = vsel %vm6545_vm13, %v6265_v17, 0.0  ;;  %vm2745_vm12 = vcmp.gt.f32.partialorder %v9369_v34, %v9292_v19  ;;  %v8181_v8 = vsel %vm2705_vm2, 1.0, %v15253_v54 }
 0x216   :  { %v8717_v10 = vsel %vm4265_vm9, 1.0, %v15253_v54  ;;  %v6604_v18 = vadd.f32 %v6603_v1, %v6602_v44  ;;  %vm4281_vm14 = vcmp.eq.f32.partialorder %v9369_v34, %v9292_v19  ;;  %v5793_v6 = vmul.f32 0.0, %v8709_v51 }
 0x217   :  { %v6289_v9 = vadd.f32 %v8181_v8, %v5777_v24  ;;  %v6605_v7 = vsel %vm6545_vm13, %v6273_v30, 0.0  ;;  %vm2753_vm15 = vcmp.gt.f32.partialorder %v9372_v35, %v9292_v19  ;;  %v8189_v17 = vsel %vm2713_vm4, 1.0, %v15253_v54 }
 0x218   :  { %v8725_v48 = vsel %vm4273_vm11, 1.0, %v15253_v54  ;;  %v6606_v46 = vadd.f32 %v6605_v7, %v6604_v18  ;;  %vm4289_vm1 = vcmp.eq.f32.partialorder %v9372_v35, %v9292_v19  ;;  %v5801_v31 = vmul.f32 0.0, %v8717_v10 }
 0x219   :  { %v6297_v44 = vadd.f32 %v8189_v17, %v5785_v57  ;;  %v6607_v24 = vsel %vm6545_vm13, %v6281_v39, 0.0  ;;  %vm2761_vm2 = vcmp.gt.f32.partialorder %v9375_v37, %v9292_v19  ;;  %v8197_v30 = vsel %vm2721_vm6, 1.0, %v15253_v54 }
 0x21a   :  { %v8733_v51 = vsel %vm4281_vm14, 1.0, %v15253_v54  ;;  %v6608_v1 = vadd.f32 %v6607_v24, %v6606_v46  ;;  %vm4297_vm3 = vcmp.eq.f32.partialorder %v9375_v37, %v9292_v19  ;;  %v5809_v8 = vmul.f32 0.0, %v8725_v48 }
 0x21b   :  { %v6305_v18 = vadd.f32 %v8197_v30, %v5793_v6  ;;  %v6609_v57 = vsel %vm6545_vm13, %v6289_v9, 0.0  ;;  %vm2769_vm4 = vcmp.gt.f32.partialorder %v9378_v38, %v9292_v19  ;;  %v8205_v39 = vsel %vm2729_vm8, 1.0, %v15253_v54 }
 0x21c   :  { %v8741_v10 = vsel %vm4289_vm1, 1.0, %v15253_v54  ;;  %v6610_v7 = vadd.f32 %v6609_v57, %v6608_v1  ;;  %vm4305_vm5 = vcmp.eq.f32.partialorder %v9378_v38, %v9292_v19  ;;  %v5817_v17 = vmul.f32 0.0, %v8733_v51 }
 0x21d   :  { %v6313_v46 = vadd.f32 %v8205_v39, %v5801_v31  ;;  %v6611_v6 = vsel %vm6545_vm13, %v6297_v44, 0.0  ;;  %vm2777_vm6 = vcmp.gt.f32.partialorder %v9381_v40, %v9292_v19  ;;  %v8213_v9 = vsel %vm2737_vm10, 1.0, %v15253_v54 }
 0x21e   :  { %v8749_v48 = vsel %vm4297_vm3, 1.0, %v15253_v54  ;;  %v6612_v24 = vadd.f32 %v6611_v6, %v6610_v7  ;;  %vm4313_vm7 = vcmp.eq.f32.partialorder %v9381_v40, %v9292_v19  ;;  %v5825_v30 = vmul.f32 0.0, %v8741_v10 }
 0x21f   :  { %v6321_v1 = vadd.f32 %v8213_v9, %v5809_v8  ;;  %v6613_v31 = vsel %vm6545_vm13, %v6305_v18, 0.0  ;;  %vm2785_vm8 = vcmp.gt.f32.partialorder %v9384_v41, %v9292_v19  ;;  %v8221_v44 = vsel %vm2745_vm12, 1.0, %v15253_v54 }
 0x220   :  { %v8757_v51 = vsel %vm4305_vm5, 1.0, %v15253_v54  ;;  %v6614_v57 = vadd.f32 %v6613_v31, %v6612_v24  ;;  %vm4321_vm9 = vcmp.eq.f32.partialorder %v9384_v41, %v9292_v19  ;;  %v5833_v39 = vmul.f32 0.0, %v8749_v48 }
 0x221   :  { %v6329_v7 = vadd.f32 %v8221_v44, %v5817_v17  ;;  %v6615_v8 = vsel %vm6545_vm13, %v6313_v46, 0.0  ;;  %vm2793_vm10 = vcmp.gt.f32.partialorder %v9387_v42, %v9292_v19  ;;  %v8229_v18 = vsel %vm2753_vm15, 1.0, %v15253_v54 }
 0x222   :  { %v8765_v10 = vsel %vm4313_vm7, 1.0, %v15253_v54  ;;  %v6616_v6 = vadd.f32 %v6615_v8, %v6614_v57  ;;  %vm4329_vm11 = vcmp.eq.f32.partialorder %v9387_v42, %v9292_v19  ;;  %v5841_v9 = vmul.f32 0.0, %v8757_v51 }
 0x223   :  { %v6337_v24 = vadd.f32 %v8229_v18, %v5825_v30  ;;  %v6617_v17 = vsel %vm6545_vm13, %v6321_v1, 0.0  ;;  %vm2801_vm12 = vcmp.gt.f32.partialorder %v9390_v43, %v9292_v19  ;;  %v8237_v46 = vsel %vm2761_vm2, 1.0, %v15253_v54  ;;  %v15262_v1 = vld [vmem:[#allocation32_spill] sm:$0xff] }
 0x224   :  { %v8773_v48 = vsel %vm4321_vm9, 1.0, %v15253_v54  ;;  %v6618_v31 = vadd.f32 %v6617_v17, %v6616_v6  ;;  %vm4337_vm14 = vcmp.eq.f32.partialorder %v9390_v43, %v9292_v19  ;;  %v5849_v44 = vmul.f32 0.0, %v8765_v10 }
 0x225   :  { %v6345_v57 = vadd.f32 %v8237_v46, %v5833_v39  ;;  %v6619_v30 = vsel %vm6545_vm13, %v6329_v7, 0.0  ;;  %vm2809_vm15 = vcmp.gt.f32.partialorder %v15262_v1, %v9292_v19  ;;  %v8245_v51 = vsel %vm2769_vm4, 1.0, %v15253_v54  ;;  %v15263_v7 = vld [vmem:[#allocation33_spill] sm:$0xff] }
 0x226   :  { %v8781_v8 = vsel %vm4329_vm11, 1.0, %v15253_v54  ;;  %v6620_v18 = vadd.f32 %v6619_v30, %v6618_v31  ;;  %vm4345_vm1 = vcmp.eq.f32.partialorder %v15262_v1, %v9292_v19  ;;  %v5857_v6 = vmul.f32 0.0, %v8773_v48 }
 0x227   :  { %v6353_v17 = vadd.f32 %v8245_v51, %v5841_v9  ;;  %v6621_v39 = vsel %vm6545_vm13, %v6337_v24, 0.0  ;;  %vm2817_vm2 = vcmp.gt.f32.partialorder %v15263_v7, %v9292_v19  ;;  %v8253_v10 = vsel %vm2777_vm6, 1.0, %v15253_v54  ;;  %v15264_v24 = vld [vmem:[#allocation34_spill] sm:$0xff] }
 0x228   :  { %v8789_v46 = vsel %vm4337_vm14, 1.0, %v15253_v54  ;;  %v6622_v38 = vadd.f32 %v6621_v39, %v6620_v18  ;;  %vm4353_vm3 = vcmp.eq.f32.partialorder %v15263_v7, %v9292_v19  ;;  %v5865_v31 = vmul.f32 0.0, %v8781_v8 }
 0x229   :  { %v6361_v30 = vadd.f32 %v8253_v10, %v5849_v44  ;;  %v6623_v9 = vsel %vm6545_vm13, %v6345_v57, 0.0  ;;  %vm2825_vm4 = vcmp.gt.f32.partialorder %v15264_v24, %v9292_v19  ;;  %v8261_v48 = vsel %vm2785_vm8, 1.0, %v15253_v54  ;;  %v15265_v57 = vld [vmem:[#allocation35_spill] sm:$0xff] }
 0x22a   :  { %v8797_v51 = vsel %vm4345_vm1, 1.0, %v15253_v54  ;;  %v6624_v40 = vadd.f32 %v6623_v9, %v6622_v38  ;;  %vm4361_vm5 = vcmp.eq.f32.partialorder %v15264_v24, %v9292_v19  ;;  %v5873_v18 = vmul.f32 0.0, %v8789_v46 }
 0x22b   :  { %v6369_v39 = vadd.f32 %v8261_v48, %v5857_v6  ;;  %v6625_v44 = vsel %vm6545_vm13, %v6353_v17, 0.0  ;;  %vm2833_vm6 = vcmp.gt.f32.partialorder %v15265_v57, %v9292_v19  ;;  %v8269_v8 = vsel %vm2793_vm10, 1.0, %v15253_v54  ;;  %v15266_v17 = vld [vmem:[#allocation36_spill] sm:$0xff] }
 0x22c   :  { %v8805_v10 = vsel %vm4353_vm3, 1.0, %v15253_v54  ;;  %v6626_v41 = vadd.f32 %v6625_v44, %v6624_v40  ;;  %vm4369_vm7 = vcmp.eq.f32.partialorder %v15265_v57, %v9292_v19  ;;  %v5881_v38 = vmul.f32 0.0, %v8797_v51 }
 0x22d   :  { %v6377_v9 = vadd.f32 %v8269_v8, %v5865_v31  ;;  %v6627_v6 = vsel %vm6545_vm13, %v6361_v30, 0.0  ;;  %vm2841_vm8 = vcmp.gt.f32.partialorder %v15266_v17, %v9292_v19  ;;  %v8277_v46 = vsel %vm2801_vm12, 1.0, %v15253_v54  ;;  %v15267_v30 = vld [vmem:[#allocation37_spill] sm:$0xff] }
 0x22e   :  { %v8813_v48 = vsel %vm4361_vm5, 1.0, %v15253_v54  ;;  %v6628_v42 = vadd.f32 %v6627_v6, %v6626_v41  ;;  %vm4377_vm9 = vcmp.eq.f32.partialorder %v15266_v17, %v9292_v19  ;;  %v5889_v40 = vmul.f32 0.0, %v8805_v10  ;;  %v15268_v41 = vld [vmem:[#allocation38_spill] sm:$0xff]  ;;  %v15269_v6 = vld [vmem:[#allocation39_spill] sm:$0xff] }
 0x22f   :  { %v6385_v44 = vadd.f32 %v8277_v46, %v5873_v18  ;;  %v6629_v31 = vsel %vm6545_vm13, %v6369_v39, 0.0  ;;  %vm2849_vm10 = vcmp.gt.f32.partialorder %v15267_v30, %v9292_v19  ;;  %v8285_v51 = vsel %vm2809_vm15, 1.0, %v15253_v54 }
 0x230   :  { %v8821_v8 = vsel %vm4369_vm7, 1.0, %v15253_v54  ;;  %v6630_v43 = vadd.f32 %v6629_v31, %v6628_v42  ;;  %vm2857_vm11 = vcmp.gt.f32.partialorder %v15268_v41, %v9292_v19  ;;  %vm4385_vm12 = vcmp.eq.f32.partialorder %v15267_v30, %v9292_v19 }
 0x231   :  { %v5897_v18 = vmul.f32 0.0, %v8813_v48  ;;  %v6393_v10 = vadd.f32 %v8285_v51, %v5881_v38  ;;  %v6631_v39 = vsel %vm6545_vm13, %v6377_v9, 0.0  ;;  %vm2865_vm14 = vcmp.gt.f32.partialorder %v15269_v6, %v9292_v19  ;;  %v15270_v9 = vld [vmem:[#allocation40_spill] sm:$0xff] }
 0x232   :  { %v8293_v46 = vsel %vm2817_vm2, 1.0, %v15253_v54  ;;  %v8829_v42 = vsel %vm4377_vm9, 1.0, %v15253_v54  ;;  %v6632_v31 = vadd.f32 %v6631_v39, %v6630_v43  ;;  %vm4393_vm15 = vcmp.eq.f32.partialorder %v15268_v41, %v9292_v19  ;;  %v15275_v41 = vld [vmem:[#allocation45_spill] sm:$0xff] }
 0x233   :  { %v5905_v1 = vmul.f32 0.0, %v8821_v8  ;;  %v6401_v37 = vadd.f32 %v8293_v46, %v5889_v40  ;;  %v6633_v38 = vsel %vm6545_vm13, %v6385_v44, 0.0  ;;  %vm2873_vm1 = vcmp.gt.f32.partialorder %v15270_v9, %v9292_v19  ;;  %v15271_v44 = vld [vmem:[#allocation41_spill] sm:$0xff] }
 0x234   :  { %v8301_v48 = vsel %vm2825_vm4, 1.0, %v15253_v54  ;;  %v8837_v51 = vsel %vm4385_vm12, 1.0, %v15253_v54  ;;  %v6634_v7 = vadd.f32 %v6633_v38, %v6632_v31  ;;  %vm4401_vm2 = vcmp.eq.f32.partialorder %v15269_v6, %v9292_v19 }
 0x235   :  { %v5913_v43 = vmul.f32 0.0, %v8829_v42  ;;  %v6409_v39 = vadd.f32 %v8301_v48, %v5897_v18  ;;  %v6635_v40 = vsel %vm6545_vm13, %v6393_v10, 0.0  ;;  %vm2881_vm3 = vcmp.gt.f32.partialorder %v15271_v44, %v9292_v19  ;;  %v15272_v10 = vld [vmem:[#allocation42_spill] sm:$0xff] }
 0x236   :  { %v8309_v8 = vsel %vm2833_vm6, 1.0, %v15253_v54  ;;  %v8845_v46 = vsel %vm4393_vm15, 1.0, %v15253_v54  ;;  %v6636_v24 = vadd.f32 %v6635_v40, %v6634_v7  ;;  %vm4409_vm4 = vcmp.eq.f32.partialorder %v15270_v9, %v9292_v19  ;;  %v15277_v9 = vld [vmem:[#allocation47_spill] sm:$0xff] }
 0x237   :  { %v5921_v31 = vmul.f32 0.0, %v8837_v51  ;;  %v6417_v38 = vadd.f32 %v8309_v8, %v5905_v1  ;;  %v6637_v18 = vsel %vm6545_vm13, %v6401_v37, 0.0  ;;  %vm2889_vm5 = vcmp.gt.f32.partialorder %v15272_v10, %v9292_v19  ;;  %v15273_v37 = vld [vmem:[#allocation43_spill] sm:$0xff] }
 0x238   :  { %v8317_v42 = vsel %vm2841_vm8, 1.0, %v15253_v54  ;;  %v8853_v48 = vsel %vm4401_vm2, 1.0, %v15253_v54  ;;  %v6638_v57 = vadd.f32 %v6637_v18, %v6636_v24  ;;  %vm4417_vm6 = vcmp.eq.f32.partialorder %v15271_v44, %v9292_v19 }
 0x239   :  { %v5929_v7 = vmul.f32 0.0, %v8845_v46  ;;  %v6425_v40 = vadd.f32 %v8317_v42, %v5913_v43  ;;  %v6639_v1 = vsel %vm6545_vm13, %v6409_v39, 0.0  ;;  %vm2897_vm7 = vcmp.gt.f32.partialorder %v15273_v37, %v9292_v19 }
 0x23a   :  { %v8325_v51 = vsel %vm2849_vm10, 1.0, %v15253_v54  ;;  %v8861_v8 = vsel %vm4409_vm4, 1.0, %v15253_v54  ;;  %v6640_v17 = vadd.f32 %v6639_v1, %v6638_v57  ;;  %vm4425_vm8 = vcmp.eq.f32.partialorder %v15272_v10, %v9292_v19  ;;  %v15274_v1 = vld [vmem:[#allocation44_spill] sm:$0xff] }
 0x23b   :  { %v5937_v24 = vmul.f32 0.0, %v8853_v48  ;;  %v6433_v18 = vadd.f32 %v8325_v51, %v5921_v31  ;;  %v6641_v43 = vsel %vm6545_vm13, %v6417_v38, 0.0  ;;  %v8333_v39 = vsel %vm2857_vm11, 1.0, %v15253_v54 }
 0x23c   :  { %v8341_v46 = vsel %vm2865_vm14, 1.0, %v15253_v54  ;;  %v8869_v42 = vsel %vm4417_vm6, 1.0, %v15253_v54  ;;  %v6642_v57 = vadd.f32 %v6641_v43, %v6640_v17  ;;  %vm2905_vm9 = vcmp.gt.f32.partialorder %v15274_v1, %v9292_v19 }
 0x23d   :  { %vm4433_vm10 = vcmp.eq.f32.partialorder %v15273_v37, %v9292_v19  ;;  %v5945_v31 = vmul.f32 0.0, %v8861_v8  ;;  %v6441_v38 = vadd.f32 %v8333_v39, %v5929_v7  ;;  %v6643_v48 = vsel %vm6545_vm13, %v6425_v40, 0.0  ;;  %v15276_v39 = vld [vmem:[#allocation46_spill] sm:$0xff] }
 0x23e   :  { %v8349_v51 = vsel %vm2873_vm1, 1.0, %v15253_v54  ;;  %v8357_v17 = vsel %vm2881_vm3, 1.0, %v15253_v54  ;;  %v8877_v43 = vsel %vm4425_vm8, 1.0, %v15253_v54  ;;  %v6644_v6 = vadd.f32 %v6643_v48, %v6642_v57 }
 0x23f   :  { %vm2913_vm11 = vcmp.gt.f32.partialorder %v15275_v41, %v9292_v19  ;;  %vm4441_vm12 = vcmp.eq.f32.partialorder %v15274_v1, %v9292_v19  ;;  %v5953_v7 = vmul.f32 0.0, %v8869_v42  ;;  %v6449_v40 = vadd.f32 %v8341_v46, %v5937_v24  ;;  %v15278_v46 = vld [vmem:[#allocation48_spill] sm:$0xff]  ;;  %v15279_v42 = vld [vmem:[#allocation49_spill] sm:$0xff] }
 0x240   :  { %v6645_v8 = vsel %vm6545_vm13, %v6433_v18, 0.0  ;;  %vm2921_vm14 = vcmp.gt.f32.partialorder %v15276_v39, %v9292_v19  ;;  %vm2929_vm15 = vcmp.gt.f32.partialorder %v15277_v9, %v9292_v19  ;;  %v8365_v57 = vsel %vm2889_vm5, 1.0, %v15253_v54 }
 0x241   :  { %vm4449_vm1 = vcmp.eq.f32.partialorder %v15275_v41, %v9292_v19  ;;  %v8885_v24 = vsel %vm4433_vm10, 1.0, %v15253_v54  ;;  %v6646_v18 = vadd.f32 %v6645_v8, %v6644_v6  ;;  %vm2937_vm2 = vcmp.gt.f32.partialorder %v15278_v46, %v9292_v19 }
 0x242   :  { %vm2945_vm3 = vcmp.gt.f32.partialorder %v15279_v42, %v9292_v19  ;;  %vm4457_vm4 = vcmp.eq.f32.partialorder %v15276_v39, %v9292_v19  ;;  %v5961_v48 = vmul.f32 0.0, %v8877_v43  ;;  %v6457_v10 = vadd.f32 %v8349_v51, %v5945_v31  ;;  %v15280_v51 = vld [vmem:[#allocation50_spill] sm:$0xff] }
 0x243   :  { %v6647_v44 = vsel %vm6545_vm13, %v6441_v38, 0.0  ;;  %vm4465_vm5 = vcmp.eq.f32.partialorder %v15277_v9, %v9292_v19  ;;  %vm4473_vm6 = vcmp.eq.f32.partialorder %v15278_v46, %v9292_v19  ;;  %v8893_v6 = vsel %vm4441_vm12, 1.0, %v15253_v54  ;;  %v15281_v46 = vld [vmem:[#allocation15_spill] sm:$0xff] }
 0x244   :  { %v6648_v8 = vadd.f32 %v6647_v44, %v6646_v18  ;;  %vm4481_vm8 = vcmp.eq.f32.partialorder %v15279_v42, %v9292_v19  ;;  %v5969_v30 = vmul.f32 0.0, %v8885_v24  ;;  %v6465_v43 = vadd.f32 %v8357_v17, %v5953_v7 }
 0x245   :  { %v6649_v31 = vsel %vm6545_vm13, %v6449_v40, 0.0  ;;  %v8373_v38 = vsel %vm2897_vm7, 1.0, %v15253_v54  ;;  %vm4489_vm10 = vcmp.eq.f32.partialorder %v15280_v51, %v9292_v19  ;;  %v8901_v44 = vsel %vm4449_vm1, 1.0, %v15253_v54 }
 0x246   :  { %v6650_v18 = vadd.f32 %v6649_v31, %v6648_v8  ;;  %v8909_v17 = vsel %vm4457_vm4, 1.0, %v15253_v54  ;;  %v5977_v7 = vmul.f32 0.0, %v8893_v6  ;;  %v6473_v40 = vadd.f32 %v8365_v57, %v5961_v48 }
 0x247   :  { %v6651_v24 = vsel %vm6545_vm13, %v6457_v10, 0.0  ;;  %v8917_v37 = vsel %vm4465_vm5, 1.0, %v15253_v54  ;;  %v8925_v35 = vsel %vm4473_vm6, 1.0, %v15253_v54  ;;  %v8933_v8 = vsel %vm4481_vm8, 1.0, %v15253_v54 }
 0x248   :  { %v6652_v31 = vadd.f32 %v6651_v24, %v6650_v18  ;;  %v8941_v34 = vsel %vm4489_vm10, 1.0, %v15253_v54  ;;  %v5985_v33 = vmul.f32 0.0, %v8901_v44  ;;  %v6481_v6 = vadd.f32 %v8373_v38, %v5969_v30 }
 0x249   :  { %v6653_v57 = vsel %vm6545_vm13, %v6465_v43, 0.0  ;;  %vm2953_vm7 = vcmp.gt.f32.partialorder %v15280_v51, %v9292_v19  ;;  %v8381_v10 = vsel %vm2905_vm9, 1.0, %v15253_v54  ;;  %v5993_v48 = vmul.f32 0.0, %v8909_v17 }
 0x24a   :  { %v6654_v32 = vadd.f32 %v6653_v57, %v6652_v31  ;;  %v6001_v29 = vmul.f32 0.0, %v8917_v37  ;;  %v6009_v26 = vmul.f32 0.0, %v8925_v35  ;;  %v6489_v45 = vadd.f32 %v8381_v10, %v5977_v7 }
 0x24b   :  { %v6655_v18 = vsel %vm6545_vm13, %v6473_v40, 0.0  ;;  %v8389_v30 = vsel %vm2913_vm11, 1.0, %v15253_v54  ;;  %v6017_v43 = vmul.f32 0.0, %v8933_v8  ;;  %v6025_v38 = vmul.f32 0.0, %v8941_v34 }
 0x24c   :  { %v6656_v44 = vadd.f32 %v6655_v18, %v6654_v32  ;;  %v8397_v24 = vsel %vm2921_vm14, 1.0, %v15253_v54  ;;  %v8405_v35 = vsel %vm2929_vm15, 1.0, %v15253_v54  ;;  %v6497_v37 = vadd.f32 %v8389_v30, %v5985_v33 }
 0x24d   :  { %v6657_v17 = vsel %vm6545_vm13, %v6481_v6, 0.0  ;;  %v8413_v7 = vsel %vm2937_vm2, 1.0, %v15253_v54  ;;  %v8421_v32 = vsel %vm2945_vm3, 1.0, %v15253_v54  ;;  %v8429_v34 = vsel %vm2953_vm7, 1.0, %v15253_v54 }
 0x24e   :  { %v6658_v40 = vadd.f32 %v6657_v17, %v6656_v44  ;;  %v6505_v8 = vadd.f32 %v8397_v24, %v5993_v48  ;;  %v6513_v33 = vadd.f32 %v8405_v35, %v6001_v29  ;;  %v6521_v31 = vadd.f32 %v8413_v7, %v6009_v26 }
 0x24f   :  { %v6659_v6 = vsel %vm6545_vm13, %v6489_v45, 0.0  ;;  %v6529_v57 = vadd.f32 %v8421_v32, %v6017_v43  ;;  %v6537_v10 = vadd.f32 %v8429_v34, %v6025_v38  ;;  %v6661_v30 = vsel %vm6545_vm13, %v6497_v37, 0.0  ;;  %v15282_v45 = vld [vmem:[#allocation12_spill] sm:$0xff] }
 0x250   :  { %v6660_v18 = vadd.f32 %v6659_v6, %v6658_v40  ;;  %v586_v9 = vadd.s32 8, %v15281_v46  ;;  %v6663_v39 = vsel %vm6545_vm13, %v6505_v8, 0.0  ;;  %v6665_v41 = vsel %vm6545_vm13, %v6513_v33, 0.0 }
 0x251   :  { %v6667_v19 = vsel %vm6545_vm13, %v6521_v31, 0.0  ;;  %v6669_v29 = vsel %vm6545_vm13, %v6529_v57, 0.0  ;;  %v6671_v26 = vsel %vm6545_vm13, %v6537_v10, 0.0  ;;  %vm2450_vm9 = vcmp.gt.f32.partialorder %v9507_v20, %v15282_v45 }
 0x252   :  { %v6662_v42 = vadd.f32 %v6661_v30, %v6660_v18  ;;  %vm658_vm11 = vcmp.gt.s32.totalorder %v586_v9, 8  ;;  %vm2458_vm12 = vcmp.gt.f32.partialorder %v9511_v63, %v15282_v45  ;;  %vm2466_vm14 = vcmp.gt.f32.partialorder %v9516_v61, %v15282_v45 }
 0x253   :  { %vm2474_vm15 = vcmp.gt.f32.partialorder %v9523_v16, %v15282_v45  ;;  %vm666_vm1 = vcmp.gt.s32.totalorder %v586_v9, 9  ;;  %vm674_vm2 = vcmp.gt.s32.totalorder %v586_v9, 10  ;;  %vm2482_vm3 = vcmp.gt.f32.partialorder %v9526_v4, %v15282_v45 }
 0x254   :  { %v6664_v44 = vadd.f32 %v6663_v39, %v6662_v42  ;;  %vm682_vm4 = vcmp.gt.s32.totalorder %v586_v9, 11  ;;  %vm690_vm5 = vcmp.gt.s32.totalorder %v586_v9, 12  ;;  %vm3986_vm6 = vcmp.eq.f32.partialorder %v9507_v20, %v15282_v45 }
 0x255   :  { %vm3994_vm8 = vcmp.eq.f32.partialorder %v9511_v63, %v15282_v45  ;;  %vm698_vm10 = vcmp.gt.s32.totalorder %v586_v9, 13  ;;  %vm706_vm7 = vcmp.gt.s32.totalorder %v586_v9, 14  ;;  %v7876_v42 = vsel %vm658_vm11, 1.0, %v15253_v54 }
 0x256   :  { %v6666_v48 = vadd.f32 %v6665_v41, %v6664_v44  ;;  %v10296_v41 = vsel %vm666_vm1, 1.0, %v15253_v54  ;;  %v10299_v43 = vsel %vm674_vm2, 1.0, %v15253_v54  ;;  %v7926_v38 = vsel %vm2450_vm9, 1.0, %v15253_v54 }
 0x257   :  { %vm4002_vm0 = vcmp.eq.f32.partialorder %v9516_v61, %v15282_v45  ;;  %v7934_v35 = vsel %vm2458_vm12, 1.0, %v15253_v54  ;;  %v8438_v37 = vsel %vm3986_vm6, 1.0, %v15253_v54  ;;  %v8446_v17 = vsel %vm3994_vm8, 1.0, %v15253_v54 }
 0x258   :  { %v6668_v39 = vadd.f32 %v6667_v19, %v6666_v48  ;;  %v10315_v7 = vsel %vm682_vm4, 1.0, %v15253_v54  ;;  %v10319_v32 = vsel %vm690_vm5, 1.0, %v15253_v54  ;;  %v10322_v34 = vsel %vm698_vm10, 1.0, %v15253_v54 }
 0x259   :  { %vm4010_vm9 = vcmp.eq.f32.partialorder %v9523_v16, %v15282_v45  ;;  %v10327_v8 = vsel %vm706_vm7, 1.0, %v15253_v54  ;;  %v7942_v33 = vsel %vm2466_vm14, 1.0, %v15253_v54  ;;  %v8454_v31 = vsel %vm4002_vm0, 1.0, %v15253_v54 }
 0x25a   :  { %v6670_v24 = vadd.f32 %v6669_v29, %v6668_v39  ;;  %vm2490_vm11 = vcmp.gt.f32.partialorder %v9533_v55, %v15282_v45  ;;  %vm4018_vm12 = vcmp.eq.f32.partialorder %v9526_v4, %v15282_v45  ;;  %v6034_v9 = vadd.f32 %v8438_v37, %v7926_v38 }
 0x25b   :  { %v6042_v6 = vadd.f32 %v8446_v17, %v7934_v35  ;;  %vm2498_vm2 = vcmp.gt.f32.partialorder %v9536_v22, %v15282_v45  ;;  %v7950_v57 = vsel %vm2474_vm15, 1.0, %v15253_v54  ;;  %v8462_v10 = vsel %vm4010_vm9, 1.0, %v15253_v54 }
 0x25c   :  { %v6672_v40 = vadd.f32 %v6671_v26, %v6670_v24  ;;  %vm2506_vm0 = vcmp.gt.f32.partialorder %v9539_v23, %v15282_v45  ;;  %vm4026_vm14 = vcmp.eq.f32.partialorder %v9533_v55, %v15282_v45  ;;  %v6050_v30 = vadd.f32 %v8454_v31, %v7942_v33 }
 0x25d   :  { %vm2514_vm4 = vcmp.gt.f32.partialorder %v9542_v5, %v15282_v45  ;;  %v7958_v19 = vsel %vm2482_vm3, 1.0, %v15253_v54  ;;  %vm4034_vm15 = vcmp.eq.f32.partialorder %v9536_v22, %v15282_v45  ;;  %v8470_v44 = vsel %vm4018_vm12, 1.0, %v15253_v54 }
 0x25e   :  { %vm7562_vm1 = vcmp.lt.f32.partialorder %v6672_v40, 32.0  ;;  %vm4050_vm5 = vcmp.eq.f32.partialorder %v9542_v5, %v15282_v45  ;;  %v6058_v29 = vadd.f32 %v8462_v10, %v7950_v57  ;;  %v6673_v26 = vsel %vm6545_vm13, %v6034_v9, 0.0 }
 0x25f   :  { %v8949_v18 = vsel %vm7562_vm1, 1.0, %v15253_v54  ;;  %v6674_v48 = vsel %vm6545_vm13, %v6042_v6, 0.0  ;;  %vm2522_vm6 = vcmp.gt.f32.partialorder %v9545_v0, %v15282_v45  ;;  %v7966_v39 = vsel %vm2490_vm11, 1.0, %v15253_v54 }
 0x260   :  { %7586 = vxpose.xlu1.b32.start [1/8] (short) (narrow) %v8949_v18, 16  ;;  %v8478_v38 = vsel %vm4026_vm14, 1.0, %v15253_v54  ;;  %v6675_v24 = vadd.f32 %v6674_v48, %v6673_v26  ;;  %vm4042_vm3 = vcmp.eq.f32.partialorder %v9539_v23, %v15282_v45  ;;  %vm4058_vm8 = vcmp.eq.f32.partialorder %v9545_v0, %v15282_v45 }
 0x261   :  { %v6066_v35 = vadd.f32 %v8470_v44, %v7958_v19  ;;  %v6676_v37 = vsel %vm6545_vm13, %v6050_v30, 0.0  ;;  %v7974_v17 = vsel %vm2498_vm2, 1.0, %v15253_v54  ;;  %v8486_v40 = vsel %vm4034_vm15, 1.0, %v15253_v54 }
 0x262   :  { %v8502_v33 = vsel %vm4050_vm5, 1.0, %v15253_v54  ;;  %v6677_v31 = vadd.f32 %v6676_v37, %v6675_v24  ;;  %vm2530_vm10 = vcmp.gt.f32.partialorder %v9548_v52, %v15282_v45  ;;  %vm4066_vm7 = vcmp.eq.f32.partialorder %v9548_v52, %v15282_v45 }
 0x263   :  { %v6074_v9 = vadd.f32 %v8478_v38, %v7966_v39  ;;  %v6678_v6 = vsel %vm6545_vm13, %v6058_v29, 0.0  ;;  %v7982_v57 = vsel %vm2506_vm0, 1.0, %v15253_v54  ;;  %v8494_v10 = vsel %vm4042_vm3, 1.0, %v15253_v54 }
 0x264   :  { %v8510_v18 = vsel %vm4058_vm8, 1.0, %v15253_v54  ;;  %v6679_v30 = vadd.f32 %v6678_v6, %v6677_v31  ;;  %vm4074_vm9 = vcmp.eq.f32.partialorder %v9551_v27, %v15282_v45  ;;  %v5586_v19 = vmul.f32 %v8502_v33, %v7876_v42 }
 0x265   :  { %v6082_v44 = vadd.f32 %v8486_v40, %v7974_v17  ;;  %v6680_v26 = vsel %vm6545_vm13, %v6066_v35, 0.0  ;;  %vm2538_vm11 = vcmp.gt.f32.partialorder %v9551_v27, %v15282_v45  ;;  %v7990_v29 = vsel %vm2514_vm4, 1.0, %v15253_v54 }
 0x266   :  { %v8518_v48 = vsel %vm4066_vm7, 1.0, %v15253_v54  ;;  %v6681_v39 = vadd.f32 %v6680_v26, %v6679_v30  ;;  %vm4082_vm12 = vcmp.eq.f32.partialorder %v9554_v50, %v15282_v45  ;;  %v5594_v38 = vmul.f32 %v8510_v18, %v10296_v41 }
 0x267   :  { %v6090_v42 = vadd.f32 %v8494_v10, %v7982_v57  ;;  %v6682_v24 = vsel %vm6545_vm13, %v6074_v9, 0.0  ;;  %vm2546_vm1 = vcmp.gt.f32.partialorder %v9554_v50, %v15282_v45  ;;  %v7998_v35 = vsel %vm2522_vm6, 1.0, %v15253_v54 }
 0x268   :  { %v8526_v37 = vsel %vm4074_vm9, 1.0, %v15253_v54  ;;  %v6683_v17 = vadd.f32 %v6682_v24, %v6681_v39  ;;  %vm4090_vm2 = vcmp.eq.f32.partialorder %v9557_v11, %v15282_v45  ;;  %v5602_v40 = vmul.f32 %v8518_v48, %v10299_v43 }
 0x269   :  { %v6098_v41 = vadd.f32 %v7990_v29, %v5586_v19  ;;  %v6684_v33 = vsel %vm6545_vm13, %v6082_v44, 0.0  ;;  %vm2554_vm0 = vcmp.gt.f32.partialorder %v9557_v11, %v15282_v45  ;;  %v8006_v31 = vsel %vm2530_vm10, 1.0, %v15253_v54 }
 0x26a   :  { %v8534_v9 = vsel %vm4082_vm12, 1.0, %v15253_v54  ;;  %v6685_v6 = vadd.f32 %v6684_v33, %v6683_v17  ;;  %vm4098_vm14 = vcmp.eq.f32.partialorder %v9560_v25, %v15282_v45  ;;  %v5610_v57 = vmul.f32 %v8526_v37, %v10315_v7 }
 0x26b   :  { %v6106_v43 = vadd.f32 %v7998_v35, %v5594_v38  ;;  %v6686_v10 = vsel %vm6545_vm13, %v6090_v42, 0.0  ;;  %vm2562_vm4 = vcmp.gt.f32.partialorder %v9560_v25, %v15282_v45  ;;  %vm2570_vm15 = vcmp.gt.f32.partialorder %v9563_v13, %v15282_v45 }
 0x26c   :  { %v8542_v18 = vsel %vm4090_vm2, 1.0, %v15253_v54  ;;  %v6687_v30 = vadd.f32 %v6686_v10, %v6685_v6  ;;  %vm4106_vm5 = vcmp.eq.f32.partialorder %v9563_v13, %v15282_v45  ;;  %v5618_v19 = vmul.f32 %v8534_v9, %v10319_v32 }
 0x26d   :  { %v6114_v44 = vadd.f32 %v8006_v31, %v5602_v40  ;;  %v6688_v7 = vsel %vm6545_vm13, %v6098_v41, 0.0  ;;  %v8014_v26 = vsel %vm2538_vm11, 1.0, %v15253_v54  ;;  %v8022_v29 = vsel %vm2546_vm1, 1.0, %v15253_v54 }
 0x26e   :  { %v8550_v48 = vsel %vm4098_vm14, 1.0, %v15253_v54  ;;  %v6689_v39 = vadd.f32 %v6688_v7, %v6687_v30  ;;  %vm4114_vm6 = vcmp.eq.f32.partialorder %v9570_v56, %v15282_v45  ;;  %v5626_v32 = vmul.f32 %v8542_v18, %v10322_v34 }
 0x26f   :  { %v6122_v38 = vadd.f32 %v8014_v26, %v5610_v57  ;;  %v6690_v42 = vsel %vm6545_vm13, %v6106_v43, 0.0  ;;  %vm2578_vm3 = vcmp.gt.f32.partialorder %v9570_v56, %v15282_v45  ;;  %vm2586_vm8 = vcmp.gt.f32.partialorder %v9573_v12, %v15282_v45 }
 0x270   :  { %v8558_v24 = vsel %vm4106_vm5, 1.0, %v15253_v54  ;;  %v6691_v35 = vadd.f32 %v6690_v42, %v6689_v39  ;;  %vm4122_vm10 = vcmp.eq.f32.partialorder %v9573_v12, %v15282_v45  ;;  %v5634_v37 = vmul.f32 %v8550_v48, %v10327_v8 }
 0x271   :  { %v6130_v17 = vadd.f32 %v8022_v29, %v5618_v19  ;;  %v6692_v34 = vsel %vm6545_vm13, %v6114_v44, 0.0  ;;  %vm2594_vm7 = vcmp.gt.f32.partialorder %v9576_v60, %v15282_v45  ;;  %v8030_v40 = vsel %vm2554_vm0, 1.0, %v15253_v54 }
 0x272   :  { %v8566_v41 = vsel %vm4114_vm6, 1.0, %v15253_v54  ;;  %v6693_v33 = vadd.f32 %v6692_v34, %v6691_v35  ;;  %vm4130_vm9 = vcmp.eq.f32.partialorder %v9576_v60, %v15282_v45  ;;  %v5642_v31 = vmul.f32 0.0, %v8558_v24 }
 0x273   :  { %v6138_v9 = vadd.f32 %v8030_v40, %v5626_v32  ;;  %v6694_v8 = vsel %vm6545_vm13, %v6122_v38, 0.0  ;;  %vm2602_vm11 = vcmp.gt.f32.partialorder %v9579_v14, %v15282_v45  ;;  %v8038_v6 = vsel %vm2562_vm4, 1.0, %v15253_v54 }
 0x274   :  { %v8574_v57 = vsel %vm4122_vm10, 1.0, %v15253_v54  ;;  %v6695_v43 = vadd.f32 %v6694_v8, %v6693_v33  ;;  %vm4138_vm12 = vcmp.eq.f32.partialorder %v9579_v14, %v15282_v45  ;;  %v5650_v10 = vmul.f32 0.0, %v8566_v41 }
 0x275   :  { %v6146_v18 = vadd.f32 %v8038_v6, %v5634_v37  ;;  %v6696_v30 = vsel %vm6545_vm13, %v6130_v17, 0.0  ;;  %vm2610_vm1 = vcmp.gt.f32.partialorder %v9582_v15, %v15282_v45  ;;  %v8046_v19 = vsel %vm2570_vm15, 1.0, %v15253_v54 }
 0x276   :  { %v8582_v44 = vsel %vm4130_vm9, 1.0, %v15253_v54  ;;  %v6697_v7 = vadd.f32 %v6696_v30, %v6695_v43  ;;  %vm4146_vm2 = vcmp.eq.f32.partialorder %v9582_v15, %v15282_v45  ;;  %v5658_v26 = vmul.f32 0.0, %v8574_v57 }
 0x277   :  { %v6154_v29 = vadd.f32 %v8046_v19, %v5642_v31  ;;  %v6698_v48 = vsel %vm6545_vm13, %v6138_v9, 0.0  ;;  %vm2618_vm0 = vcmp.gt.f32.partialorder %v9585_v21, %v15282_v45  ;;  %v8054_v39 = vsel %vm2578_vm3, 1.0, %v15253_v54 }
 0x278   :  { %v8590_v32 = vsel %vm4138_vm12, 1.0, %v15253_v54  ;;  %v6699_v38 = vadd.f32 %v6698_v48, %v6697_v7  ;;  %vm4154_vm14 = vcmp.eq.f32.partialorder %v9585_v21, %v15282_v45  ;;  %v5666_v42 = vmul.f32 0.0, %v8582_v44 }
 0x279   :  { %v6162_v24 = vadd.f32 %v8054_v39, %v5650_v10  ;;  %v6700_v35 = vsel %vm6545_vm13, %v6146_v18, 0.0  ;;  %vm2626_vm4 = vcmp.gt.f32.partialorder %v9588_v49, %v15282_v45  ;;  %v8062_v37 = vsel %vm2586_vm8, 1.0, %v15253_v54 }
 0x27a   :  { %v8598_v17 = vsel %vm4146_vm2, 1.0, %v15253_v54  ;;  %v6701_v34 = vadd.f32 %v6700_v35, %v6699_v38  ;;  %vm4162_vm15 = vcmp.eq.f32.partialorder %v9588_v49, %v15282_v45  ;;  %v5674_v40 = vmul.f32 0.0, %v8590_v32 }
 0x27b   :  { %v6170_v41 = vadd.f32 %v8062_v37, %v5658_v26  ;;  %v6702_v33 = vsel %vm6545_vm13, %v6154_v29, 0.0  ;;  %vm2634_vm5 = vcmp.gt.f32.partialorder %v9593_v59, %v15282_v45  ;;  %v8070_v31 = vsel %vm2594_vm7, 1.0, %v15253_v54 }
 0x27c   :  { %v8606_v9 = vsel %vm4154_vm14, 1.0, %v15253_v54  ;;  %v6703_v8 = vadd.f32 %v6702_v33, %v6701_v34  ;;  %vm4170_vm6 = vcmp.eq.f32.partialorder %v9593_v59, %v15282_v45  ;;  %v5682_v6 = vmul.f32 0.0, %v8598_v17 }
 0x27d   :  { %v6178_v57 = vadd.f32 %v8070_v31, %v5666_v42  ;;  %v6704_v43 = vsel %vm6545_vm13, %v6162_v24, 0.0  ;;  %vm2642_vm3 = vcmp.gt.f32.partialorder %v9596_v62, %v15282_v45  ;;  %v8078_v10 = vsel %vm2602_vm11, 1.0, %v15253_v54 }
 0x27e   :  { %v8614_v18 = vsel %vm4162_vm15, 1.0, %v15253_v54  ;;  %v6705_v30 = vadd.f32 %v6704_v43, %v6703_v8  ;;  %vm4178_vm8 = vcmp.eq.f32.partialorder %v9596_v62, %v15282_v45  ;;  %v5690_v19 = vmul.f32 0.0, %v8606_v9 }
 0x27f   :  { %v6186_v44 = vadd.f32 %v8078_v10, %v5674_v40  ;;  %v6706_v7 = vsel %vm6545_vm13, %v6170_v41, 0.0  ;;  %vm2650_vm10 = vcmp.gt.f32.partialorder %v9601_v47, %v15282_v45  ;;  %v8086_v26 = vsel %vm2610_vm1, 1.0, %v15253_v54 }
 0x280   :  { %v8622_v29 = vsel %vm4170_vm6, 1.0, %v15253_v54  ;;  %v6707_v48 = vadd.f32 %v6706_v7, %v6705_v30  ;;  %vm4186_vm7 = vcmp.eq.f32.partialorder %v9601_v47, %v15282_v45  ;;  %v5698_v39 = vmul.f32 0.0, %v8614_v18 }
 0x281   :  { %v6194_v32 = vadd.f32 %v8086_v26, %v5682_v6  ;;  %v6708_v38 = vsel %vm6545_vm13, %v6178_v57, 0.0  ;;  %vm2658_vm9 = vcmp.gt.f32.partialorder %v9604_v58, %v15282_v45  ;;  %v8094_v42 = vsel %vm2618_vm0, 1.0, %v15253_v54 }
 0x282   :  { %v8630_v24 = vsel %vm4178_vm8, 1.0, %v15253_v54  ;;  %v6709_v35 = vadd.f32 %v6708_v38, %v6707_v48  ;;  %vm4194_vm11 = vcmp.eq.f32.partialorder %v9604_v58, %v15282_v45  ;;  %v5706_v37 = vmul.f32 0.0, %v8622_v29 }
 0x283   :  { %v6202_v17 = vadd.f32 %v8094_v42, %v5690_v19  ;;  %v6710_v34 = vsel %vm6545_vm13, %v6186_v44, 0.0  ;;  %vm2666_vm12 = vcmp.gt.f32.partialorder %v9607_v28, %v15282_v45  ;;  %v8102_v40 = vsel %vm2626_vm4, 1.0, %v15253_v54 }
 0x284   :  { %v8638_v41 = vsel %vm4186_vm7, 1.0, %v15253_v54  ;;  %v6711_v33 = vadd.f32 %v6710_v34, %v6709_v35  ;;  %vm4202_vm1 = vcmp.eq.f32.partialorder %v9607_v28, %v15282_v45  ;;  %v5714_v31 = vmul.f32 0.0, %v8630_v24 }
 0x285   :  { %v6210_v9 = vadd.f32 %v8102_v40, %v5698_v39  ;;  %v6712_v8 = vsel %vm6545_vm13, %v6194_v32, 0.0  ;;  %vm2674_vm2 = vcmp.gt.f32.partialorder %v9612_v53, %v15282_v45  ;;  %v8110_v6 = vsel %vm2634_vm5, 1.0, %v15253_v54 }
 0x286   :  { %v8646_v57 = vsel %vm4194_vm11, 1.0, %v15253_v54  ;;  %v6713_v43 = vadd.f32 %v6712_v8, %v6711_v33  ;;  %vm4210_vm0 = vcmp.eq.f32.partialorder %v9612_v53, %v15282_v45  ;;  %v5722_v10 = vmul.f32 0.0, %v8638_v41 }
 0x287   :  { %v6218_v18 = vadd.f32 %v8110_v6, %v5706_v37  ;;  %v6714_v30 = vsel %vm6545_vm13, %v6202_v17, 0.0  ;;  %vm2682_vm14 = vcmp.gt.f32.partialorder %v9615_v2, %v15282_v45  ;;  %v8118_v19 = vsel %vm2642_vm3, 1.0, %v15253_v54 }
 0x288   :  { %v8654_v44 = vsel %vm4202_vm1, 1.0, %v15253_v54  ;;  %v6715_v7 = vadd.f32 %v6714_v30, %v6713_v43  ;;  %vm4218_vm4 = vcmp.eq.f32.partialorder %v9615_v2, %v15282_v45  ;;  %v5730_v26 = vmul.f32 0.0, %v8646_v57 }
 0x289   :  { %v6226_v29 = vadd.f32 %v8118_v19, %v5714_v31  ;;  %v6716_v48 = vsel %vm6545_vm13, %v6210_v9, 0.0  ;;  %vm2690_vm15 = vcmp.gt.f32.partialorder %v9627_v3, %v15282_v45  ;;  %v8126_v39 = vsel %vm2650_vm10, 1.0, %v15253_v54  ;;  %v15283_v31 = vld [vmem:[#allocation73_spill] sm:$0xff] }
 0x28a   :  { %v8662_v32 = vsel %vm4210_vm0, 1.0, %v15253_v54  ;;  %v6717_v38 = vadd.f32 %v6716_v48, %v6715_v7  ;;  %vm4226_vm5 = vcmp.eq.f32.partialorder %v9627_v3, %v15282_v45  ;;  %v5738_v42 = vmul.f32 0.0, %v8654_v44  ;;  %v15285_v48 = vld [vmem:[#allocation21_spill] sm:$0xff] }
 0x28b   :  { %v6234_v24 = vadd.f32 %v8126_v39, %v5722_v10  ;;  %v6718_v35 = vsel %vm6545_vm13, %v6218_v18, 0.0  ;;  %vm2698_vm6 = vcmp.gt.f32.partialorder %v9630_v36, %v15282_v45  ;;  %v8134_v37 = vsel %vm2658_vm9, 1.0, %v15253_v54  ;;  %v15284_v18 = vld [vmem:[#allocation20_spill] sm:$0xff] }
 0x28c   :  { %v8670_v17 = vsel %vm4218_vm4, 1.0, %v15253_v54  ;;  %v6719_v34 = vadd.f32 %v6718_v35, %v6717_v38  ;;  %vm4234_vm3 = vcmp.eq.f32.partialorder %v9630_v36, %v15282_v45  ;;  %v5746_v40 = vmul.f32 0.0, %v8662_v32 }
 0x28d   :  { %v6242_v41 = vadd.f32 %v8134_v37, %v5730_v26  ;;  %v6720_v33 = vsel %vm6545_vm13, %v6226_v29, 0.0  ;;  %vm2706_vm8 = vcmp.gt.f32.partialorder %v15283_v31, %v15282_v45  ;;  %v8142_v9 = vsel %vm2666_vm12, 1.0, %v15253_v54  ;;  %v15286_v37 = vld [vmem:[#allocation22_spill] sm:$0xff] }
 0x28e   :  { %v8678_v8 = vsel %vm4226_vm5, 1.0, %v15253_v54  ;;  %v6721_v6 = vadd.f32 %v6720_v33, %v6719_v34  ;;  %vm4242_vm10 = vcmp.eq.f32.partialorder %v15283_v31, %v15282_v45  ;;  %v5754_v57 = vmul.f32 0.0, %v8670_v17 }
 0x28f   :  { %v6250_v43 = vadd.f32 %v8142_v9, %v5738_v42  ;;  %v6722_v10 = vsel %vm6545_vm13, %v6234_v24, 0.0  ;;  %vm2714_vm7 = vcmp.gt.f32.partialorder %v15284_v18, %v15282_v45  ;;  %v8150_v30 = vsel %vm2674_vm2, 1.0, %v15253_v54 }
 0x290   :  { %v8686_v19 = vsel %vm4234_vm3, 1.0, %v15253_v54  ;;  %v6723_v44 = vadd.f32 %v6722_v10, %v6721_v6  ;;  %vm4250_vm9 = vcmp.eq.f32.partialorder %v15284_v18, %v15282_v45  ;;  %v5762_v7 = vmul.f32 0.0, %v8678_v8  ;;  %v15287_v8 = vld [vmem:[#allocation23_spill] sm:$0xff] }
 0x291   :  { %v6258_v26 = vadd.f32 %v8150_v30, %v5746_v40  ;;  %v6724_v29 = vsel %vm6545_vm13, %v6242_v41, 0.0  ;;  %vm2722_vm11 = vcmp.gt.f32.partialorder %v15285_v48, %v15282_v45  ;;  %v8158_v39 = vsel %vm2682_vm14, 1.0, %v15253_v54 }
 0x292   :  { %v8694_v32 = vsel %vm4242_vm10, 1.0, %v15253_v54  ;;  %v6725_v38 = vadd.f32 %v6724_v29, %v6723_v44  ;;  %vm4258_vm12 = vcmp.eq.f32.partialorder %v15285_v48, %v15282_v45  ;;  %v5770_v42 = vmul.f32 0.0, %v8686_v19  ;;  %v15288_v44 = vld [vmem:[#allocation24_spill] sm:$0xff] }
 0x293   :  { %v6266_v24 = vadd.f32 %v8158_v39, %v5754_v57  ;;  %v6726_v35 = vsel %vm6545_vm13, %v6250_v43, 0.0  ;;  %vm2730_vm1 = vcmp.gt.f32.partialorder %v15286_v37, %v15282_v45  ;;  %v8166_v17 = vsel %vm2690_vm15, 1.0, %v15253_v54 }
 0x294   :  { %v8702_v34 = vsel %vm4250_vm9, 1.0, %v15253_v54  ;;  %v6727_v40 = vadd.f32 %v6726_v35, %v6725_v38  ;;  %vm4266_vm2 = vcmp.eq.f32.partialorder %v15286_v37, %v15282_v45  ;;  %v5778_v41 = vmul.f32 0.0, %v8694_v32 }
 0x295   :  { %v6274_v33 = vadd.f32 %v8166_v17, %v5762_v7  ;;  %v6728_v9 = vsel %vm6545_vm13, %v6258_v26, 0.0  ;;  %vm2738_vm0 = vcmp.gt.f32.partialorder %v15287_v8, %v15282_v45  ;;  %v8174_v6 = vsel %vm2698_vm6, 1.0, %v15253_v54 }
 0x296   :  { %v8710_v57 = vsel %vm4258_vm12, 1.0, %v15253_v54  ;;  %v6729_v43 = vadd.f32 %v6728_v9, %v6727_v40  ;;  %vm4274_vm14 = vcmp.eq.f32.partialorder %v15287_v8, %v15282_v45  ;;  %v5786_v10 = vmul.f32 0.0, %v8702_v34 }
 0x297   :  { %v6282_v30 = vadd.f32 %v8174_v6, %v5770_v42  ;;  %v6730_v19 = vsel %vm6545_vm13, %v6266_v24, 0.0  ;;  %vm2746_vm4 = vcmp.gt.f32.partialorder %v15288_v44, %v15282_v45  ;;  %v8182_v7 = vsel %vm2706_vm8, 1.0, %v15253_v54  ;;  %v15289_v42 = vld [vmem:[#allocation25_spill] sm:$0xff] }
 0x298   :  { %v8718_v26 = vsel %vm4266_vm2, 1.0, %v15253_v54  ;;  %v6731_v29 = vadd.f32 %v6730_v19, %v6729_v43  ;;  %vm4282_vm15 = vcmp.eq.f32.partialorder %v15288_v44, %v15282_v45  ;;  %v5794_v39 = vmul.f32 0.0, %v8710_v57 }
 0x299   :  { %v6290_v32 = vadd.f32 %v8182_v7, %v5778_v41  ;;  %v6732_v38 = vsel %vm6545_vm13, %v6274_v33, 0.0  ;;  %vm2754_vm5 = vcmp.gt.f32.partialorder %v15289_v42, %v15282_v45  ;;  %v8190_v24 = vsel %vm2714_vm7, 1.0, %v15253_v54  ;;  %v15290_v33 = vld [vmem:[#allocation26_spill] sm:$0xff] }
 0x29a   :  { %v8726_v35 = vsel %vm4274_vm14, 1.0, %v15253_v54  ;;  %v6733_v17 = vadd.f32 %v6732_v38, %v6731_v29  ;;  %vm4290_vm6 = vcmp.eq.f32.partialorder %v15289_v42, %v15282_v45  ;;  %v5802_v34 = vmul.f32 0.0, %v8718_v26 }
 0x29b   :  { %v6298_v40 = vadd.f32 %v8190_v24, %v5786_v10  ;;  %v6734_v41 = vsel %vm6545_vm13, %v6282_v30, 0.0  ;;  %vm2762_vm3 = vcmp.gt.f32.partialorder %v15290_v33, %v15282_v45  ;;  %v8198_v9 = vsel %vm2722_vm11, 1.0, %v15253_v54  ;;  %v15291_v30 = vld [vmem:[#allocation27_spill] sm:$0xff] }
 0x29c   :  { %v8734_v6 = vsel %vm4282_vm15, 1.0, %v15253_v54  ;;  %v6735_v57 = vadd.f32 %v6734_v41, %v6733_v17  ;;  %vm4298_vm8 = vcmp.eq.f32.partialorder %v15290_v33, %v15282_v45  ;;  %v5810_v43 = vmul.f32 0.0, %v8726_v35 }
 0x29d   :  { %v6306_v19 = vadd.f32 %v8198_v9, %v5794_v39  ;;  %v6736_v10 = vsel %vm6545_vm13, %v6290_v32, 0.0  ;;  %vm2770_vm10 = vcmp.gt.f32.partialorder %v15291_v30, %v15282_v45  ;;  %v8206_v7 = vsel %vm2730_vm1, 1.0, %v15253_v54  ;;  %v15292_v32 = vld [vmem:[#allocation28_spill] sm:$0xff] }
 0x29e   :  { %v8742_v26 = vsel %vm4290_vm6, 1.0, %v15253_v54  ;;  %v6737_v29 = vadd.f32 %v6736_v10, %v6735_v57  ;;  %vm4306_vm7 = vcmp.eq.f32.partialorder %v15291_v30, %v15282_v45  ;;  %v5818_v38 = vmul.f32 0.0, %v8734_v6 }
 0x29f   :  { %v6314_v24 = vadd.f32 %v8206_v7, %v5802_v34  ;;  %v6738_v39 = vsel %vm6545_vm13, %v6298_v40, 0.0  ;;  %vm2778_vm9 = vcmp.gt.f32.partialorder %v15292_v32, %v15282_v45  ;;  %v8214_v35 = vsel %vm2738_vm0, 1.0, %v15253_v54  ;;  %v15293_v40 = vld [vmem:[#allocation29_spill] sm:$0xff] }
 0x2a0   :  { %v8750_v17 = vsel %vm4298_vm8, 1.0, %v15253_v54  ;;  %v6739_v41 = vadd.f32 %v6738_v39, %v6737_v29  ;;  %vm4314_vm11 = vcmp.eq.f32.partialorder %v15292_v32, %v15282_v45  ;;  %v5826_v9 = vmul.f32 0.0, %v8742_v26 }
 0x2a1   :  { %v6322_v57 = vadd.f32 %v8214_v35, %v5810_v43  ;;  %v6740_v34 = vsel %vm6545_vm13, %v6306_v19, 0.0  ;;  %vm2786_vm12 = vcmp.gt.f32.partialorder %v15293_v40, %v15282_v45  ;;  %v8222_v6 = vsel %vm2746_vm4, 1.0, %v15253_v54  ;;  %v15294_v19 = vld [vmem:[#allocation30_spill] sm:$0xff] }
 0x2a2   :  { %v8758_v10 = vsel %vm4306_vm7, 1.0, %v15253_v54  ;;  %v6741_v7 = vadd.f32 %v6740_v34, %v6739_v41  ;;  %vm4322_vm1 = vcmp.eq.f32.partialorder %v15293_v40, %v15282_v45  ;;  %v5834_v29 = vmul.f32 0.0, %v8750_v17 }
 0x2a3   :  { %v6330_v39 = vadd.f32 %v8222_v6, %v5818_v38  ;;  %v6742_v43 = vsel %vm6545_vm13, %v6314_v24, 0.0  ;;  %vm2794_vm2 = vcmp.gt.f32.partialorder %v15294_v19, %v15282_v45  ;;  %v8230_v26 = vsel %vm2754_vm5, 1.0, %v15253_v54  ;;  %v15295_v24 = vld [vmem:[#allocation31_spill] sm:$0xff] }
 0x2a4   :  { %v8766_v35 = vsel %vm4314_vm11, 1.0, %v15253_v54  ;;  %v6743_v44 = vadd.f32 %v6742_v43, %v6741_v7  ;;  %vm4330_vm0 = vcmp.eq.f32.partialorder %v15294_v19, %v15282_v45  ;;  %v5842_v41 = vmul.f32 0.0, %v8758_v10 }
 0x2a5   :  { %v6338_v34 = vadd.f32 %v8230_v26, %v5826_v9  ;;  %v6744_v38 = vsel %vm6545_vm13, %v6322_v57, 0.0  ;;  %vm2802_vm14 = vcmp.gt.f32.partialorder %v15295_v24, %v15282_v45  ;;  %v8238_v17 = vsel %vm2762_vm3, 1.0, %v15253_v54  ;;  %v15296_v57 = vld [vmem:[#allocation32_spill] sm:$0xff] }
 0x2a6   :  { %v8774_v6 = vsel %vm4322_vm1, 1.0, %v15253_v54  ;;  %v6745_v42 = vadd.f32 %v6744_v38, %v6743_v44  ;;  %vm4338_vm4 = vcmp.eq.f32.partialorder %v15295_v24, %v15282_v45  ;;  %v5850_v7 = vmul.f32 0.0, %v8766_v35 }
 0x2a7   :  { %v6346_v43 = vadd.f32 %v8238_v17, %v5834_v29  ;;  %v6746_v9 = vsel %vm6545_vm13, %v6330_v39, 0.0  ;;  %vm2810_vm15 = vcmp.gt.f32.partialorder %v15296_v57, %v15282_v45  ;;  %v8246_v10 = vsel %vm2770_vm10, 1.0, %v15253_v54  ;;  %v15297_v39 = vld [vmem:[#allocation33_spill] sm:$0xff] }
 0x2a8   :  { %v8782_v26 = vsel %vm4330_vm0, 1.0, %v15253_v54  ;;  %v6747_v33 = vadd.f32 %v6746_v9, %v6745_v42  ;;  %vm4346_vm5 = vcmp.eq.f32.partialorder %v15296_v57, %v15282_v45  ;;  %v5858_v44 = vmul.f32 0.0, %v8774_v6 }
 0x2a9   :  { %v6354_v38 = vadd.f32 %v8246_v10, %v5842_v41  ;;  %v6748_v29 = vsel %vm6545_vm13, %v6338_v34, 0.0  ;;  %vm2818_vm6 = vcmp.gt.f32.partialorder %v15297_v39, %v15282_v45  ;;  %v8254_v35 = vsel %vm2778_vm9, 1.0, %v15253_v54  ;;  %v15298_v34 = vld [vmem:[#allocation34_spill] sm:$0xff] }
 0x2aa   :  { %v8790_v17 = vsel %vm4338_vm4, 1.0, %v15253_v54  ;;  %v6749_v30 = vadd.f32 %v6748_v29, %v6747_v33  ;;  %vm4354_vm3 = vcmp.eq.f32.partialorder %v15297_v39, %v15282_v45  ;;  %v5866_v42 = vmul.f32 0.0, %v8782_v26 }
 0x2ab   :  { %v6362_v9 = vadd.f32 %v8254_v35, %v5850_v7  ;;  %v6750_v41 = vsel %vm6545_vm13, %v6346_v43, 0.0  ;;  %vm2826_vm8 = vcmp.gt.f32.partialorder %v15298_v34, %v15282_v45  ;;  %v8262_v6 = vsel %vm2786_vm12, 1.0, %v15253_v54  ;;  %v15299_v43 = vld [vmem:[#allocation35_spill] sm:$0xff] }
 0x2ac   :  { %v8798_v10 = vsel %vm4346_vm5, 1.0, %v15253_v54  ;;  %v6751_v32 = vadd.f32 %v6750_v41, %v6749_v30  ;;  %vm4362_vm10 = vcmp.eq.f32.partialorder %v15298_v34, %v15282_v45  ;;  %v5874_v33 = vmul.f32 0.0, %v8790_v17 }
 0x2ad   :  { %v6370_v29 = vadd.f32 %v8262_v6, %v5858_v44  ;;  %v6752_v7 = vsel %vm6545_vm13, %v6354_v38, 0.0  ;;  %vm2834_vm7 = vcmp.gt.f32.partialorder %v15299_v43, %v15282_v45  ;;  %v8270_v26 = vsel %vm2794_vm2, 1.0, %v15253_v54  ;;  %v15300_v38 = vld [vmem:[#allocation36_spill] sm:$0xff] }
 0x2ae   :  { %v8806_v35 = vsel %vm4354_vm3, 1.0, %v15253_v54  ;;  %v6753_v40 = vadd.f32 %v6752_v7, %v6751_v32  ;;  %vm4370_vm9 = vcmp.eq.f32.partialorder %v15299_v43, %v15282_v45  ;;  %v5882_v30 = vmul.f32 0.0, %v8798_v10 }
 0x2af   :  { %v6378_v41 = vadd.f32 %v8270_v26, %v5866_v42  ;;  %v6754_v44 = vsel %vm6545_vm13, %v6362_v9, 0.0  ;;  %vm2842_vm11 = vcmp.gt.f32.partialorder %v15300_v38, %v15282_v45  ;;  %v8278_v17 = vsel %vm2802_vm14, 1.0, %v15253_v54  ;;  %v15301_v9 = vld [vmem:[#allocation37_spill] sm:$0xff] }
 0x2b0   :  { %v8814_v6 = vsel %vm4362_vm10, 1.0, %v15253_v54  ;;  %v6755_v19 = vadd.f32 %v6754_v44, %v6753_v40  ;;  %vm4378_vm12 = vcmp.eq.f32.partialorder %v15300_v38, %v15282_v45  ;;  %v5890_v32 = vmul.f32 0.0, %v8806_v35 }
 0x2b1   :  { %v6386_v7 = vadd.f32 %v8278_v17, %v5874_v33  ;;  %v6756_v42 = vsel %vm6545_vm13, %v6370_v29, 0.0  ;;  %vm2850_vm1 = vcmp.gt.f32.partialorder %v15301_v9, %v15282_v45  ;;  %v8286_v10 = vsel %vm2810_vm15, 1.0, %v15253_v54  ;;  %v15302_v29 = vld [vmem:[#allocation38_spill] sm:$0xff] }
 0x2b2   :  { %v8822_v26 = vsel %vm4370_vm9, 1.0, %v15253_v54  ;;  %v6757_v24 = vadd.f32 %v6756_v42, %v6755_v19  ;;  %vm4386_vm2 = vcmp.eq.f32.partialorder %v15301_v9, %v15282_v45  ;;  %v5898_v40 = vmul.f32 0.0, %v8814_v6 }
 0x2b3   :  { %v6394_v44 = vadd.f32 %v8286_v10, %v5882_v30  ;;  %v6758_v33 = vsel %vm6545_vm13, %v6378_v41, 0.0  ;;  %vm2858_vm0 = vcmp.gt.f32.partialorder %v15302_v29, %v15282_v45  ;;  %v8294_v35 = vsel %vm2818_vm6, 1.0, %v15253_v54  ;;  %v15303_v41 = vld [vmem:[#allocation39_spill] sm:$0xff] }
 0x2b4   :  { %v8830_v17 = vsel %vm4378_vm12, 1.0, %v15253_v54  ;;  %v6759_v57 = vadd.f32 %v6758_v33, %v6757_v24  ;;  %vm4394_vm14 = vcmp.eq.f32.partialorder %v15302_v29, %v15282_v45  ;;  %v5906_v19 = vmul.f32 0.0, %v8822_v26 }
 0x2b5   :  { %v6402_v42 = vadd.f32 %v8294_v35, %v5890_v32  ;;  %v6760_v30 = vsel %vm6545_vm13, %v6386_v7, 0.0  ;;  %vm2866_vm4 = vcmp.gt.f32.partialorder %v15303_v41, %v15282_v45  ;;  %v8302_v6 = vsel %vm2826_vm8, 1.0, %v15253_v54  ;;  %v15304_v7 = vld [vmem:[#allocation40_spill] sm:$0xff] }
 0x2b6   :  { %v8838_v10 = vsel %vm4386_vm2, 1.0, %v15253_v54  ;;  %v6761_v39 = vadd.f32 %v6760_v30, %v6759_v57  ;;  %vm4402_vm15 = vcmp.eq.f32.partialorder %v15303_v41, %v15282_v45  ;;  %v5914_v24 = vmul.f32 0.0, %v8830_v17  ;;  %v15309_v41 = vld [vmem:[#allocation46_spill] sm:$0xff] }
 0x2b7   :  { %v6410_v33 = vadd.f32 %v8302_v6, %v5898_v40  ;;  %v6762_v32 = vsel %vm6545_vm13, %v6394_v44, 0.0  ;;  %vm2874_vm5 = vcmp.gt.f32.partialorder %v15304_v7, %v15282_v45  ;;  %v8310_v26 = vsel %vm2834_vm7, 1.0, %v15253_v54  ;;  %v15305_v44 = vld [vmem:[#allocation41_spill] sm:$0xff] }
 0x2b8   :  { %v8846_v35 = vsel %vm4394_vm14, 1.0, %v15253_v54  ;;  %v6763_v34 = vadd.f32 %v6762_v32, %v6761_v39  ;;  %vm4410_vm6 = vcmp.eq.f32.partialorder %v15304_v7, %v15282_v45  ;;  %v5922_v57 = vmul.f32 0.0, %v8838_v10  ;;  %v15311_v7 = vld [vmem:[#allocation48_spill] sm:$0xff] }
 0x2b9   :  { %v6418_v30 = vadd.f32 %v8310_v26, %v5906_v19  ;;  %v6764_v40 = vsel %vm6545_vm13, %v6402_v42, 0.0  ;;  %vm2882_vm3 = vcmp.gt.f32.partialorder %v15305_v44, %v15282_v45  ;;  %v8318_v17 = vsel %vm2842_vm11, 1.0, %v15253_v54  ;;  %v15306_v42 = vld [vmem:[#allocation42_spill] sm:$0xff] }
 0x2ba   :  { %v8854_v6 = vsel %vm4402_vm15, 1.0, %v15253_v54  ;;  %v6765_v43 = vadd.f32 %v6764_v40, %v6763_v34  ;;  %vm4418_vm8 = vcmp.eq.f32.partialorder %v15305_v44, %v15282_v45  ;;  %v5930_v39 = vmul.f32 0.0, %v8846_v35 }
 0x2bb   :  { %v6426_v32 = vadd.f32 %v8318_v17, %v5914_v24  ;;  %v6766_v19 = vsel %vm6545_vm13, %v6410_v33, 0.0  ;;  %vm2890_vm10 = vcmp.gt.f32.partialorder %v15306_v42, %v15282_v45  ;;  %v8326_v10 = vsel %vm2850_vm1, 1.0, %v15253_v54  ;;  %v15307_v33 = vld [vmem:[#allocation43_spill] sm:$0xff] }
 0x2bc   :  { %v8862_v26 = vsel %vm4410_vm6, 1.0, %v15253_v54  ;;  %v6767_v38 = vadd.f32 %v6766_v19, %v6765_v43  ;;  %vm4426_vm7 = vcmp.eq.f32.partialorder %v15306_v42, %v15282_v45  ;;  %v5938_v34 = vmul.f32 0.0, %v8854_v6 }
 0x2bd   :  { %v6434_v40 = vadd.f32 %v8326_v10, %v5922_v57  ;;  %v6768_v24 = vsel %vm6545_vm13, %v6418_v30, 0.0  ;;  %vm2898_vm9 = vcmp.gt.f32.partialorder %v15307_v33, %v15282_v45  ;;  %v8334_v35 = vsel %vm2858_vm0, 1.0, %v15253_v54 }
 0x2be   :  { %v8870_v17 = vsel %vm4418_vm8, 1.0, %v15253_v54  ;;  %v6769_v9 = vadd.f32 %v6768_v24, %v6767_v38  ;;  %vm4434_vm11 = vcmp.eq.f32.partialorder %v15307_v33, %v15282_v45  ;;  %v5946_v43 = vmul.f32 0.0, %v8862_v26  ;;  %v15308_v38 = vld [vmem:[#allocation45_spill] sm:$0xff] }
 0x2bf   :  { %v6442_v19 = vadd.f32 %v8334_v35, %v5930_v39  ;;  %v6770_v57 = vsel %vm6545_vm13, %v6426_v32, 0.0  ;;  %vm2906_vm12 = vcmp.gt.f32.partialorder %v15274_v1, %v15282_v45  ;;  %v8342_v30 = vsel %vm2866_vm4, 1.0, %v15253_v54 }
 0x2c0   :  { %v8878_v6 = vsel %vm4426_vm7, 1.0, %v15253_v54  ;;  %v6771_v10 = vadd.f32 %v6770_v57, %v6769_v9  ;;  %vm2914_vm1 = vcmp.gt.f32.partialorder %v15308_v38, %v15282_v45  ;;  %vm4442_vm2 = vcmp.eq.f32.partialorder %v15274_v1, %v15282_v45 }
 0x2c1   :  { %v5954_v39 = vmul.f32 0.0, %v8870_v17  ;;  %v6450_v26 = vadd.f32 %v8342_v30, %v5938_v34  ;;  %v6772_v32 = vsel %vm6545_vm13, %v6434_v40, 0.0  ;;  %v8350_v24 = vsel %vm2874_vm5, 1.0, %v15253_v54  ;;  %v15310_v34 = vld [vmem:[#allocation47_spill] sm:$0xff] }
 0x2c2   :  { %v8358_v9 = vsel %vm2882_vm3, 1.0, %v15253_v54  ;;  %v8886_v35 = vsel %vm4434_vm11, 1.0, %v15253_v54  ;;  %v6773_v57 = vadd.f32 %v6772_v32, %v6771_v10  ;;  %vm2922_vm0 = vcmp.gt.f32.partialorder %v15309_v41, %v15282_v45 }
 0x2c3   :  { %vm2930_vm14 = vcmp.gt.f32.partialorder %v15310_v34, %v15282_v45  ;;  %vm4450_vm4 = vcmp.eq.f32.partialorder %v15308_v38, %v15282_v45  ;;  %v5962_v40 = vmul.f32 0.0, %v8878_v6  ;;  %v6458_v17 = vadd.f32 %v8350_v24, %v5946_v43  ;;  %v15312_v43 = vld [vmem:[#allocation49_spill] sm:$0xff] }
 0x2c4   :  { %v6774_v30 = vsel %vm6545_vm13, %v6442_v19, 0.0  ;;  %vm2938_vm15 = vcmp.gt.f32.partialorder %v15311_v7, %v15282_v45  ;;  %v8366_v10 = vsel %vm2890_vm10, 1.0, %v15253_v54  ;;  %vm4458_vm5 = vcmp.eq.f32.partialorder %v15309_v41, %v15282_v45 }
 0x2c5   :  { %v8894_v32 = vsel %vm4442_vm2, 1.0, %v15253_v54  ;;  %v6775_v6 = vadd.f32 %v6774_v30, %v6773_v57  ;;  %vm2946_vm6 = vcmp.gt.f32.partialorder %v15312_v43, %v15282_v45  ;;  %vm4466_vm3 = vcmp.eq.f32.partialorder %v15310_v34, %v15282_v45 }
 0x2c6   :  { %v5970_v19 = vmul.f32 0.0, %v8886_v35  ;;  %v6466_v24 = vadd.f32 %v8358_v9, %v5954_v39  ;;  %v6776_v42 = vsel %vm6545_vm13, %v6450_v26, 0.0  ;;  %vm4474_vm8 = vcmp.eq.f32.partialorder %v15311_v7, %v15282_v45 }
 0x2c7   :  { %vm4482_vm10 = vcmp.eq.f32.partialorder %v15312_v43, %v15282_v45  ;;  %v8902_v57 = vsel %vm4450_vm4, 1.0, %v15253_v54  ;;  %v6777_v30 = vadd.f32 %v6776_v42, %v6775_v6  ;;  %vm4490_vm7 = vcmp.eq.f32.partialorder %v15280_v51, %v15282_v45 }
 0x2c8   :  { %v5978_v44 = vmul.f32 0.0, %v8894_v32  ;;  %v6474_v35 = vadd.f32 %v8366_v10, %v5962_v40  ;;  %v6778_v39 = vsel %vm6545_vm13, %v6458_v17, 0.0  ;;  %v8374_v26 = vsel %vm2898_vm9, 1.0, %v15253_v54 }
 0x2c9   :  { %v8910_v9 = vsel %vm4458_vm5, 1.0, %v15253_v54  ;;  %v8918_v29 = vsel %vm4466_vm3, 1.0, %v15253_v54  ;;  %v6779_v42 = vadd.f32 %v6778_v39, %v6777_v30  ;;  %v8926_v6 = vsel %vm4474_vm8, 1.0, %v15253_v54 }
 0x2ca   :  { %v5986_v8 = vmul.f32 0.0, %v8902_v57  ;;  %v6482_v32 = vadd.f32 %v8374_v26, %v5970_v19  ;;  %v6780_v40 = vsel %vm6545_vm13, %v6466_v24, 0.0  ;;  %v8382_v17 = vsel %vm2906_vm12, 1.0, %v15253_v54 }
 0x2cb   :  { %v8934_v10 = vsel %vm4482_vm10, 1.0, %v15253_v54  ;;  %v8942_v33 = vsel %vm4490_vm7, 1.0, %v15253_v54  ;;  %v6781_v37 = vadd.f32 %v6780_v40, %v6779_v42  ;;  %v5994_v30 = vmul.f32 0.0, %v8910_v9 }
 0x2cc   :  { %v6002_v39 = vmul.f32 0.0, %v8918_v29  ;;  %v6490_v48 = vadd.f32 %v8382_v17, %v5978_v44  ;;  %v6782_v19 = vsel %vm6545_vm13, %v6474_v35, 0.0  ;;  %vm2954_vm9 = vcmp.gt.f32.partialorder %v15280_v51, %v15282_v45 }
 0x2cd   :  { %v8390_v24 = vsel %vm2914_vm1, 1.0, %v15253_v54  ;;  %v6010_v57 = vmul.f32 0.0, %v8926_v6  ;;  %v6783_v26 = vadd.f32 %v6782_v19, %v6781_v37  ;;  %v6018_v1 = vmul.f32 0.0, %v8934_v10 }
 0x2ce   :  { %v6026_v18 = vmul.f32 0.0, %v8942_v33  ;;  %v6498_v31 = vadd.f32 %v8390_v24, %v5986_v8  ;;  %v6784_v42 = vsel %vm6545_vm13, %v6482_v32, 0.0  ;;  %v8398_v29 = vsel %vm2922_vm0, 1.0, %v15253_v54 }
 0x2cf   :  { %v8406_v44 = vsel %vm2930_vm14, 1.0, %v15253_v54  ;;  %v6785_v35 = vadd.f32 %v6784_v42, %v6783_v26  ;;  %v8414_v37 = vsel %vm2938_vm15, 1.0, %v15253_v54  ;;  %v6506_v33 = vadd.f32 %v8398_v29, %v5994_v30 }
 0x2d0   :  { %v6514_v8 = vadd.f32 %v8406_v44, %v6002_v39  ;;  %v6786_v9 = vsel %vm6545_vm13, %v6490_v48, 0.0  ;;  %v8422_v6 = vsel %vm2946_vm6, 1.0, %v15253_v54  ;;  %v8430_v32 = vsel %vm2954_vm9, 1.0, %v15253_v54  ;;  %v15313_v44 = vld [vmem:[#allocation13_spill] sm:$0xff] }
 0x2d1   :  { %v6522_v40 = vadd.f32 %v8414_v37, %v6010_v57  ;;  %v6787_v17 = vadd.f32 %v6786_v9, %v6785_v35  ;;  %v6530_v10 = vadd.f32 %v8422_v6, %v6018_v1  ;;  %v6538_v19 = vadd.f32 %v8430_v32, %v6026_v18 }
 0x2d2   :  { %v6788_v24 = vsel %vm6545_vm13, %v6498_v31, 0.0  ;;  %v6790_v39 = vsel %vm6545_vm13, %v6506_v33, 0.0  ;;  %v6792_v48 = vsel %vm6545_vm13, %v6514_v8, 0.0  ;;  %v10958_v26 = vadd.s32 16, %v15281_v46 }
 0x2d3   :  { %v6789_v30 = vadd.f32 %v6788_v24, %v6787_v17  ;;  %v6794_v29 = vsel %vm6545_vm13, %v6522_v40, 0.0  ;;  %vm2451_vm11 = vcmp.gt.f32.partialorder %v9507_v20, %v15313_v44  ;;  %vm3987_vm12 = vcmp.eq.f32.partialorder %v9507_v20, %v15313_v44 }
 0x2d4   :  { %v6796_v1 = vsel %vm6545_vm13, %v6530_v10, 0.0  ;;  %v6798_v45 = vsel %vm6545_vm13, %v6538_v19, 0.0  ;;  %vm2459_vm1 = vcmp.gt.f32.partialorder %v9511_v63, %v15313_v44  ;;  %vm3995_vm2 = vcmp.eq.f32.partialorder %v9511_v63, %v15313_v44 }
 0x2d5   :  { %v6791_v42 = vadd.f32 %v6790_v39, %v6789_v30  ;;  %vm2467_vm0 = vcmp.gt.f32.partialorder %v9516_v61, %v15313_v44  ;;  %vm2475_vm14 = vcmp.gt.f32.partialorder %v9523_v16, %v15313_v44  ;;  %vm2483_vm4 = vcmp.gt.f32.partialorder %v9526_v4, %v15313_v44 }
 0x2d6   :  { %vm723_vm15 = vcmp.gt.s32.totalorder %v10958_v26, 16  ;;  %v7927_v18 = vsel %vm2451_vm11, 1.0, %v15253_v54  ;;  %vm4003_vm5 = vcmp.eq.f32.partialorder %v9516_v61, %v15313_v44  ;;  %v8439_v57 = vsel %vm3987_vm12, 1.0, %v15253_v54 }
 0x2d7   :  { %v6793_v31 = vadd.f32 %v6792_v48, %v6791_v42  ;;  %vm731_vm6 = vcmp.gt.s32.totalorder %v10958_v26, 17  ;;  %v7935_v37 = vsel %vm2459_vm1, 1.0, %v15253_v54  ;;  %v8447_v33 = vsel %vm3995_vm2, 1.0, %v15253_v54 }
 0x2d8   :  { %vm739_vm3 = vcmp.gt.s32.totalorder %v10958_v26, 18  ;;  %vm747_vm8 = vcmp.gt.s32.totalorder %v10958_v26, 19  ;;  %vm755_vm10 = vcmp.gt.s32.totalorder %v10958_v26, 20  ;;  %vm4011_vm7 = vcmp.eq.f32.partialorder %v9523_v16, %v15313_v44 }
 0x2d9   :  { %v6795_v35 = vadd.f32 %v6794_v29, %v6793_v31  ;;  %v7943_v9 = vsel %vm2467_vm0, 1.0, %v15253_v54  ;;  %v8455_v6 = vsel %vm4003_vm5, 1.0, %v15253_v54  ;;  %v6035_v32 = vadd.f32 %v8439_v57, %v7927_v18 }
 0x2da   :  { %vm763_vm9 = vcmp.gt.s32.totalorder %v10958_v26, 21  ;;  %v10999_v40 = vsel %vm723_vm15, 1.0, %v15253_v54  ;;  %vm4019_vm11 = vcmp.eq.f32.partialorder %v9526_v4, %v15313_v44  ;;  %v6043_v17 = vadd.f32 %v8447_v33, %v7935_v37 }
 0x2db   :  { %v6797_v8 = vadd.f32 %v6796_v1, %v6795_v35  ;;  %v11006_v19 = vsel %vm731_vm6, 1.0, %v15253_v54  ;;  %v7951_v24 = vsel %vm2475_vm14, 1.0, %v15253_v54  ;;  %v8463_v30 = vsel %vm4011_vm7, 1.0, %v15253_v54 }
 0x2dc   :  { %vm771_vm12 = vcmp.gt.s32.totalorder %v10958_v26, 22  ;;  %vm2491_vm1 = vcmp.gt.f32.partialorder %v9533_v55, %v15313_v44  ;;  %vm2499_vm2 = vcmp.gt.f32.partialorder %v9536_v22, %v15313_v44  ;;  %vm4027_vm0 = vcmp.eq.f32.partialorder %v9533_v55, %v15313_v44 }
 0x2dd   :  { %v6799_v10 = vadd.f32 %v6798_v45, %v6797_v8  ;;  %v6051_v39 = vadd.f32 %v8455_v6, %v7943_v9  ;;  %v7959_v48 = vsel %vm2483_vm4, 1.0, %v15253_v54  ;;  %v8471_v42 = vsel %vm4019_vm11, 1.0, %v15253_v54 }
 0x2de   :  { %v6800_v29 = vsel %vm6545_vm13, %v6035_v32, 0.0  ;;  %vm4035_vm14 = vcmp.eq.f32.partialorder %v9536_v22, %v15313_v44  ;;  %v6059_v45 = vadd.f32 %v8463_v30, %v7951_v24  ;;  %v6801_v31 = vsel %vm6545_vm13, %v6043_v17, 0.0 }
 0x2df   :  { %vm7563_vm15 = vcmp.lt.f32.partialorder %v6799_v10, 32.0  ;;  %v11033_v18 = vsel %vm739_vm3, 1.0, %v15253_v54  ;;  %v7967_v57 = vsel %vm2491_vm1, 1.0, %v15253_v54  ;;  %v8479_v35 = vsel %vm4027_vm0, 1.0, %v15253_v54 }
 0x2e0   :  { %v8950_v1 = vsel %vm7563_vm15, 1.0, %v15253_v54  ;;  %v6802_v37 = vadd.f32 %v6801_v31, %v6800_v29  ;;  %vm2507_vm4 = vcmp.gt.f32.partialorder %v9539_v23, %v15313_v44  ;;  %vm4043_vm5 = vcmp.eq.f32.partialorder %v9539_v23, %v15313_v44 }
 0x2e1   :  { %7587 = vxpose.xlu1.b32.cont [2/8] (short) (narrow) %v8950_v1, 16  ;;  %v6067_v33 = vadd.f32 %v8471_v42, %v7959_v48  ;;  %v6803_v8 = vsel %vm6545_vm13, %v6051_v39, 0.0  ;;  %v11045_v9 = vsel %vm747_vm8, 1.0, %v15253_v54  ;;  %v7975_v6 = vsel %vm2499_vm2, 1.0, %v15253_v54 }
 0x2e2   :  { %v8487_v32 = vsel %vm4035_vm14, 1.0, %v15253_v54  ;;  %v6804_v17 = vadd.f32 %v6803_v8, %v6802_v37  ;;  %vm2515_vm6 = vcmp.gt.f32.partialorder %v9542_v5, %v15313_v44  ;;  %vm4051_vm3 = vcmp.eq.f32.partialorder %v9542_v5, %v15313_v44 }
 0x2e3   :  { %v6075_v10 = vadd.f32 %v8479_v35, %v7967_v57  ;;  %v6805_v24 = vsel %vm6545_vm13, %v6059_v45, 0.0  ;;  %v11060_v30 = vsel %vm755_vm10, 1.0, %v15253_v54  ;;  %v7983_v39 = vsel %vm2507_vm4, 1.0, %v15253_v54 }
 0x2e4   :  { %v8495_v48 = vsel %vm4043_vm5, 1.0, %v15253_v54  ;;  %v6806_v42 = vadd.f32 %v6805_v24, %v6804_v17  ;;  %vm2523_vm8 = vcmp.gt.f32.partialorder %v9545_v0, %v15313_v44  ;;  %vm4059_vm7 = vcmp.eq.f32.partialorder %v9545_v0, %v15313_v44 }
 0x2e5   :  { %v6083_v29 = vadd.f32 %v8487_v32, %v7975_v6  ;;  %v6807_v1 = vsel %vm6545_vm13, %v6067_v33, 0.0  ;;  %v11072_v45 = vsel %vm763_vm9, 1.0, %v15253_v54  ;;  %v7991_v31 = vsel %vm2515_vm6, 1.0, %v15253_v54 }
 0x2e6   :  { %v8503_v57 = vsel %vm4051_vm3, 1.0, %v15253_v54  ;;  %v6808_v35 = vadd.f32 %v6807_v1, %v6806_v42  ;;  %vm2531_vm10 = vcmp.gt.f32.partialorder %v9548_v52, %v15313_v44  ;;  %vm4067_vm11 = vcmp.eq.f32.partialorder %v9548_v52, %v15313_v44 }
 0x2e7   :  { %v6091_v37 = vadd.f32 %v8495_v48, %v7983_v39  ;;  %v6809_v8 = vsel %vm6545_vm13, %v6075_v10, 0.0  ;;  %v11084_v33 = vsel %vm771_vm12, 1.0, %v15253_v54  ;;  %v7999_v6 = vsel %vm2523_vm8, 1.0, %v15253_v54 }
 0x2e8   :  { %v8511_v32 = vsel %vm4059_vm7, 1.0, %v15253_v54  ;;  %v6810_v17 = vadd.f32 %v6809_v8, %v6808_v35  ;;  %vm2539_vm9 = vcmp.gt.f32.partialorder %v9551_v27, %v15313_v44  ;;  %vm4075_vm1 = vcmp.eq.f32.partialorder %v9551_v27, %v15313_v44 }
 0x2e9   :  { %v6099_v24 = vadd.f32 %v8503_v57, %v7991_v31  ;;  %v6811_v39 = vsel %vm6545_vm13, %v6083_v29, 0.0  ;;  %vm2547_vm2 = vcmp.gt.f32.partialorder %v9554_v50, %v15313_v44  ;;  %v8007_v26 = vsel %vm2531_vm10, 1.0, %v15253_v54 }
 0x2ea   :  { %v8519_v10 = vsel %vm4067_vm11, 1.0, %v15253_v54  ;;  %v6812_v48 = vadd.f32 %v6811_v39, %v6810_v17  ;;  %vm2555_vm12 = vcmp.gt.f32.partialorder %v9557_v11, %v15313_v44  ;;  %vm4083_vm0 = vcmp.eq.f32.partialorder %v9554_v50, %v15313_v44 }
 0x2eb   :  { %v6107_v42 = vadd.f32 %v8511_v32, %v7999_v6  ;;  %v6813_v1 = vsel %vm6545_vm13, %v6091_v37, 0.0  ;;  %vm2563_vm15 = vcmp.gt.f32.partialorder %v9560_v25, %v15313_v44  ;;  %v8015_v29 = vsel %vm2539_vm9, 1.0, %v15253_v54 }
 0x2ec   :  { %v8527_v31 = vsel %vm4075_vm1, 1.0, %v15253_v54  ;;  %v6814_v57 = vadd.f32 %v6813_v1, %v6812_v48  ;;  %vm2571_vm14 = vcmp.gt.f32.partialorder %v9563_v13, %v15313_v44  ;;  %vm4091_vm4 = vcmp.eq.f32.partialorder %v9557_v11, %v15313_v44 }
 0x2ed   :  { %v6115_v35 = vadd.f32 %v8519_v10, %v8007_v26  ;;  %v6815_v8 = vsel %vm6545_vm13, %v6099_v24, 0.0  ;;  %vm2579_vm5 = vcmp.gt.f32.partialorder %v9570_v56, %v15313_v44  ;;  %v8023_v37 = vsel %vm2547_vm2, 1.0, %v15253_v54 }
 0x2ee   :  { %v8535_v6 = vsel %vm4083_vm0, 1.0, %v15253_v54  ;;  %v6816_v32 = vadd.f32 %v6815_v8, %v6814_v57  ;;  %vm4099_vm6 = vcmp.eq.f32.partialorder %v9560_v25, %v15313_v44  ;;  %vm4115_vm3 = vcmp.eq.f32.partialorder %v9570_v56, %v15313_v44 }
 0x2ef   :  { %v6123_v17 = vadd.f32 %v8527_v31, %v8015_v29  ;;  %v6817_v24 = vsel %vm6545_vm13, %v6107_v42, 0.0  ;;  %vm2587_vm8 = vcmp.gt.f32.partialorder %v9573_v12, %v15313_v44  ;;  %v8031_v39 = vsel %vm2555_vm12, 1.0, %v15253_v54 }
 0x2f0   :  { %v8543_v26 = vsel %vm4091_vm4, 1.0, %v15253_v54  ;;  %v6818_v10 = vadd.f32 %v6817_v24, %v6816_v32  ;;  %vm4107_vm7 = vcmp.eq.f32.partialorder %v9563_v13, %v15313_v44  ;;  %vm4123_vm10 = vcmp.eq.f32.partialorder %v9573_v12, %v15313_v44 }
 0x2f1   :  { %v6131_v48 = vadd.f32 %v8535_v6, %v8023_v37  ;;  %v6819_v42 = vsel %vm6545_vm13, %v6115_v35, 0.0  ;;  %v8039_v1 = vsel %vm2563_vm15, 1.0, %v15253_v54  ;;  %v8551_v29 = vsel %vm4099_vm6, 1.0, %v15253_v54 }
 0x2f2   :  { %v8567_v31 = vsel %vm4115_vm3, 1.0, %v15253_v54  ;;  %v6820_v57 = vadd.f32 %v6819_v42, %v6818_v10  ;;  %vm2595_vm11 = vcmp.gt.f32.partialorder %v9576_v60, %v15313_v44  ;;  %vm4131_vm9 = vcmp.eq.f32.partialorder %v9576_v60, %v15313_v44 }
 0x2f3   :  { %v6139_v8 = vadd.f32 %v8543_v26, %v8031_v39  ;;  %v6821_v37 = vsel %vm6545_vm13, %v6123_v17, 0.0  ;;  %v8047_v35 = vsel %vm2571_vm14, 1.0, %v15253_v54  ;;  %v8559_v6 = vsel %vm4107_vm7, 1.0, %v15253_v54 }
 0x2f4   :  { %v8575_v32 = vsel %vm4123_vm10, 1.0, %v15253_v54  ;;  %v6822_v24 = vadd.f32 %v6821_v37, %v6820_v57  ;;  %vm4139_vm1 = vcmp.eq.f32.partialorder %v9579_v14, %v15313_v44  ;;  %v5651_v10 = vmul.f32 %v8567_v31, %v10999_v40 }
 0x2f5   :  { %v6147_v42 = vadd.f32 %v8551_v29, %v8039_v1  ;;  %v6823_v39 = vsel %vm6545_vm13, %v6131_v48, 0.0  ;;  %vm2603_vm2 = vcmp.gt.f32.partialorder %v9579_v14, %v15313_v44  ;;  %v8055_v17 = vsel %vm2579_vm5, 1.0, %v15253_v54 }
 0x2f6   :  { %v8583_v26 = vsel %vm4131_vm9, 1.0, %v15253_v54  ;;  %v6824_v13 = vadd.f32 %v6823_v39, %v6822_v24  ;;  %vm4147_vm12 = vcmp.eq.f32.partialorder %v9582_v15, %v15313_v44  ;;  %v5659_v57 = vmul.f32 %v8575_v32, %v11006_v19 }
 0x2f7   :  { %v6155_v40 = vadd.f32 %v8559_v6, %v8047_v35  ;;  %v6825_v1 = vsel %vm6545_vm13, %v6139_v8, 0.0  ;;  %vm2611_vm0 = vcmp.gt.f32.partialorder %v9582_v15, %v15313_v44  ;;  %v8063_v48 = vsel %vm2587_vm8, 1.0, %v15253_v54 }
 0x2f8   :  { %v8591_v29 = vsel %vm4139_vm1, 1.0, %v15253_v54  ;;  %v6826_v31 = vadd.f32 %v6825_v1, %v6824_v13  ;;  %vm4155_vm15 = vcmp.eq.f32.partialorder %v9585_v21, %v15313_v44  ;;  %v5667_v37 = vmul.f32 %v8583_v26, %v11033_v18 }
 0x2f9   :  { %v6163_v19 = vadd.f32 %v8055_v17, %v5651_v10  ;;  %v6827_v35 = vsel %vm6545_vm13, %v6147_v42, 0.0  ;;  %vm2619_vm14 = vcmp.gt.f32.partialorder %v9585_v21, %v15313_v44  ;;  %v8071_v8 = vsel %vm2595_vm11, 1.0, %v15253_v54 }
 0x2fa   :  { %v8599_v6 = vsel %vm4147_vm12, 1.0, %v15253_v54  ;;  %v6828_v32 = vadd.f32 %v6827_v35, %v6826_v31  ;;  %vm4163_vm4 = vcmp.eq.f32.partialorder %v9588_v49, %v15313_v44  ;;  %v5675_v13 = vmul.f32 %v8591_v29, %v11045_v9 }
 0x2fb   :  { %v6171_v18 = vadd.f32 %v8063_v48, %v5659_v57  ;;  %v6829_v24 = vsel %vm6545_vm13, %v6155_v40, 0.0  ;;  %vm2627_vm5 = vcmp.gt.f32.partialorder %v9588_v49, %v15313_v44  ;;  %vm2635_vm6 = vcmp.gt.f32.partialorder %v9593_v59, %v15313_v44 }
 0x2fc   :  { %v8607_v10 = vsel %vm4155_vm15, 1.0, %v15253_v54  ;;  %v6830_v42 = vadd.f32 %v6829_v24, %v6828_v32  ;;  %vm4171_vm3 = vcmp.eq.f32.partialorder %v9593_v59, %v15313_v44  ;;  %v5683_v39 = vmul.f32 %v8599_v6, %v11060_v30 }
 0x2fd   :  { %v6179_v17 = vadd.f32 %v8071_v8, %v5667_v37  ;;  %v6831_v9 = vsel %vm6545_vm13, %v6163_v19, 0.0  ;;  %v8079_v26 = vsel %vm2603_vm2, 1.0, %v15253_v54  ;;  %v8087_v57 = vsel %vm2611_vm0, 1.0, %v15253_v54 }
 0x2fe   :  { %v8615_v40 = vsel %vm4163_vm4, 1.0, %v15253_v54  ;;  %v6832_v1 = vadd.f32 %v6831_v9, %v6830_v42  ;;  %vm4179_vm8 = vcmp.eq.f32.partialorder %v9596_v62, %v15313_v44  ;;  %v5691_v30 = vmul.f32 %v8607_v10, %v11072_v45 }
 0x2ff   :  { %v6187_v48 = vadd.f32 %v8079_v26, %v5675_v13  ;;  %v6833_v29 = vsel %vm6545_vm13, %v6171_v18, 0.0  ;;  %vm2643_vm7 = vcmp.gt.f32.partialorder %v9596_v62, %v15313_v44  ;;  %vm2651_vm10 = vcmp.gt.f32.partialorder %v9601_v47, %v15313_v44 }
 0x300   :  { %v8623_v31 = vsel %vm4171_vm3, 1.0, %v15253_v54  ;;  %v6834_v37 = vadd.f32 %v6833_v29, %v6832_v1  ;;  %vm4187_vm11 = vcmp.eq.f32.partialorder %v9601_v47, %v15313_v44  ;;  %v5699_v19 = vmul.f32 %v8615_v40, %v11084_v33 }
 0x301   :  { %v6195_v35 = vadd.f32 %v8087_v57, %v5683_v39  ;;  %v6835_v45 = vsel %vm6545_vm13, %v6179_v17, 0.0  ;;  %vm2659_vm9 = vcmp.gt.f32.partialorder %v9604_v58, %v15313_v44  ;;  %v8095_v8 = vsel %vm2619_vm14, 1.0, %v15253_v54 }
 0x302   :  { %v8631_v6 = vsel %vm4179_vm8, 1.0, %v15253_v54  ;;  %v6836_v32 = vadd.f32 %v6835_v45, %v6834_v37  ;;  %vm4195_vm1 = vcmp.eq.f32.partialorder %v9604_v58, %v15313_v44  ;;  %v5707_v13 = vmul.f32 0.0, %v8623_v31 }
 0x303   :  { %v6203_v18 = vadd.f32 %v8095_v8, %v5691_v30  ;;  %v6837_v33 = vsel %vm6545_vm13, %v6187_v48, 0.0  ;;  %vm2667_vm2 = vcmp.gt.f32.partialorder %v9607_v28, %v15313_v44  ;;  %v8103_v24 = vsel %vm2627_vm5, 1.0, %v15253_v54 }
 0x304   :  { %v8639_v10 = vsel %vm4187_vm11, 1.0, %v15253_v54  ;;  %v6838_v42 = vadd.f32 %v6837_v33, %v6836_v32  ;;  %vm4203_vm12 = vcmp.eq.f32.partialorder %v9607_v28, %v15313_v44  ;;  %v5715_v39 = vmul.f32 0.0, %v8631_v6 }
 0x305   :  { %v6211_v17 = vadd.f32 %v8103_v24, %v5699_v19  ;;  %v6839_v9 = vsel %vm6545_vm13, %v6195_v35, 0.0  ;;  %vm2675_vm0 = vcmp.gt.f32.partialorder %v9612_v53, %v15313_v44  ;;  %v8111_v26 = vsel %vm2635_vm6, 1.0, %v15253_v54 }
 0x306   :  { %v8647_v57 = vsel %vm4195_vm1, 1.0, %v15253_v54  ;;  %v6840_v40 = vadd.f32 %v6839_v9, %v6838_v42  ;;  %vm4211_vm15 = vcmp.eq.f32.partialorder %v9612_v53, %v15313_v44  ;;  %v5723_v1 = vmul.f32 0.0, %v8639_v10 }
 0x307   :  { %v6219_v30 = vadd.f32 %v8111_v26, %v5707_v13  ;;  %v6841_v48 = vsel %vm6545_vm13, %v6203_v18, 0.0  ;;  %vm2683_vm14 = vcmp.gt.f32.partialorder %v9615_v2, %v15313_v44  ;;  %v8119_v29 = vsel %vm2643_vm7, 1.0, %v15253_v54  ;;  %v15314_v26 = vld [vmem:[#allocation73_spill] sm:$0xff] }
 0x308   :  { %v8655_v31 = vsel %vm4203_vm12, 1.0, %v15253_v54  ;;  %v6842_v37 = vadd.f32 %v6841_v48, %v6840_v40  ;;  %vm4219_vm4 = vcmp.eq.f32.partialorder %v9615_v2, %v15313_v44  ;;  %v5731_v19 = vmul.f32 0.0, %v8647_v57 }
 0x309   :  { %v6227_v35 = vadd.f32 %v8119_v29, %v5715_v39  ;;  %v6843_v45 = vsel %vm6545_vm13, %v6211_v17, 0.0  ;;  %vm2691_vm5 = vcmp.gt.f32.partialorder %v9627_v3, %v15313_v44  ;;  %v8127_v8 = vsel %vm2651_vm10, 1.0, %v15253_v54 }
 0x30a   :  { %v8663_v6 = vsel %vm4211_vm15, 1.0, %v15253_v54  ;;  %v6844_v32 = vadd.f32 %v6843_v45, %v6842_v37  ;;  %vm4227_vm6 = vcmp.eq.f32.partialorder %v9627_v3, %v15313_v44  ;;  %v5739_v13 = vmul.f32 0.0, %v8655_v31  ;;  %v15315_v31 = vld [vmem:[#allocation20_spill] sm:$0xff] }
 0x30b   :  { %v6235_v18 = vadd.f32 %v8127_v8, %v5723_v1  ;;  %v6845_v33 = vsel %vm6545_vm13, %v6219_v30, 0.0  ;;  %vm2699_vm3 = vcmp.gt.f32.partialorder %v9630_v36, %v15313_v44  ;;  %v8135_v24 = vsel %vm2659_vm9, 1.0, %v15253_v54 }
 0x30c   :  { %v8671_v10 = vsel %vm4219_vm4, 1.0, %v15253_v54  ;;  %v6846_v42 = vadd.f32 %v6845_v33, %v6844_v32  ;;  %vm4235_vm8 = vcmp.eq.f32.partialorder %v9630_v36, %v15313_v44  ;;  %v5747_v39 = vmul.f32 0.0, %v8663_v6  ;;  %v15316_v32 = vld [vmem:[#allocation21_spill] sm:$0xff] }
 0x30d   :  { %v6243_v17 = vadd.f32 %v8135_v24, %v5731_v19  ;;  %v6847_v9 = vsel %vm6545_vm13, %v6227_v35, 0.0  ;;  %vm2707_vm7 = vcmp.gt.f32.partialorder %v15314_v26, %v15313_v44  ;;  %v8143_v57 = vsel %vm2667_vm2, 1.0, %v15253_v54 }
 0x30e   :  { %v8679_v40 = vsel %vm4227_vm6, 1.0, %v15253_v54  ;;  %v6848_v1 = vadd.f32 %v6847_v9, %v6846_v42  ;;  %vm4243_vm10 = vcmp.eq.f32.partialorder %v15314_v26, %v15313_v44  ;;  %v5755_v30 = vmul.f32 0.0, %v8671_v10 }
 0x30f   :  { %v6251_v48 = vadd.f32 %v8143_v57, %v5739_v13  ;;  %v6849_v29 = vsel %vm6545_vm13, %v6235_v18, 0.0  ;;  %vm2715_vm11 = vcmp.gt.f32.partialorder %v15315_v31, %v15313_v44  ;;  %v8151_v37 = vsel %vm2675_vm0, 1.0, %v15253_v54 }
 0x310   :  { %v8687_v19 = vsel %vm4235_vm8, 1.0, %v15253_v54  ;;  %v6850_v35 = vadd.f32 %v6849_v29, %v6848_v1  ;;  %vm4251_vm9 = vcmp.eq.f32.partialorder %v15315_v31, %v15313_v44  ;;  %v5763_v45 = vmul.f32 0.0, %v8679_v40 }
 0x311   :  { %v6259_v8 = vadd.f32 %v8151_v37, %v5747_v39  ;;  %v6851_v6 = vsel %vm6545_vm13, %v6243_v17, 0.0  ;;  %vm2723_vm1 = vcmp.gt.f32.partialorder %v15316_v32, %v15313_v44  ;;  %v8159_v13 = vsel %vm2683_vm14, 1.0, %v15253_v54  ;;  %v15317_v39 = vld [vmem:[#allocation22_spill] sm:$0xff] }
 0x312   :  { %v8695_v18 = vsel %vm4243_vm10, 1.0, %v15253_v54  ;;  %v6852_v33 = vadd.f32 %v6851_v6, %v6850_v35  ;;  %vm4259_vm2 = vcmp.eq.f32.partialorder %v15316_v32, %v15313_v44  ;;  %v5771_v24 = vmul.f32 0.0, %v8687_v19 }
 0x313   :  { %v6267_v10 = vadd.f32 %v8159_v13, %v5755_v30  ;;  %v6853_v42 = vsel %vm6545_vm13, %v6251_v48, 0.0  ;;  %vm2731_vm12 = vcmp.gt.f32.partialorder %v15317_v39, %v15313_v44  ;;  %v8167_v17 = vsel %vm2691_vm5, 1.0, %v15253_v54  ;;  %v15318_v48 = vld [vmem:[#allocation23_spill] sm:$0xff] }
 0x314   :  { %v8703_v9 = vsel %vm4251_vm9, 1.0, %v15253_v54  ;;  %v6854_v57 = vadd.f32 %v6853_v42, %v6852_v33  ;;  %vm4267_vm0 = vcmp.eq.f32.partialorder %v15317_v39, %v15313_v44  ;;  %v5779_v40 = vmul.f32 0.0, %v8695_v18 }
 0x315   :  { %v6275_v1 = vadd.f32 %v8167_v17, %v5763_v45  ;;  %v6855_v30 = vsel %vm6545_vm13, %v6259_v8, 0.0  ;;  %vm2739_vm15 = vcmp.gt.f32.partialorder %v15318_v48, %v15313_v44  ;;  %v8175_v29 = vsel %vm2699_vm3, 1.0, %v15253_v54  ;;  %v15319_v8 = vld [vmem:[#allocation24_spill] sm:$0xff] }
 0x316   :  { %v8711_v37 = vsel %vm4259_vm2, 1.0, %v15253_v54  ;;  %v6856_v19 = vadd.f32 %v6855_v30, %v6854_v57  ;;  %vm4275_vm14 = vcmp.eq.f32.partialorder %v15318_v48, %v15313_v44  ;;  %v5787_v35 = vmul.f32 0.0, %v8703_v9 }
 0x317   :  { %v6283_v6 = vadd.f32 %v8175_v29, %v5771_v24  ;;  %v6857_v45 = vsel %vm6545_vm13, %v6267_v10, 0.0  ;;  %vm2747_vm4 = vcmp.gt.f32.partialorder %v15319_v8, %v15313_v44  ;;  %v8183_v13 = vsel %vm2707_vm7, 1.0, %v15253_v54  ;;  %v15320_v10 = vld [vmem:[#allocation25_spill] sm:$0xff] }
 0x318   :  { %v8719_v18 = vsel %vm4267_vm0, 1.0, %v15253_v54  ;;  %v6858_v33 = vadd.f32 %v6857_v45, %v6856_v19  ;;  %vm4283_vm5 = vcmp.eq.f32.partialorder %v15319_v8, %v15313_v44  ;;  %v5795_v42 = vmul.f32 0.0, %v8711_v37 }
 0x319   :  { %v6291_v17 = vadd.f32 %v8183_v13, %v5779_v40  ;;  %v6859_v24 = vsel %vm6545_vm13, %v6275_v1, 0.0  ;;  %vm2755_vm6 = vcmp.gt.f32.partialorder %v15320_v10, %v15313_v44  ;;  %v8191_v9 = vsel %vm2715_vm11, 1.0, %v15253_v54  ;;  %v15321_v1 = vld [vmem:[#allocation26_spill] sm:$0xff] }
 0x31a   :  { %v8727_v57 = vsel %vm4275_vm14, 1.0, %v15253_v54  ;;  %v6860_v30 = vadd.f32 %v6859_v24, %v6858_v33  ;;  %vm4291_vm3 = vcmp.eq.f32.partialorder %v15320_v10, %v15313_v44  ;;  %v5803_v29 = vmul.f32 0.0, %v8719_v18 }
 0x31b   :  { %v6299_v19 = vadd.f32 %v8191_v9, %v5787_v35  ;;  %v6861_v40 = vsel %vm6545_vm13, %v6283_v6, 0.0  ;;  %vm2763_vm8 = vcmp.gt.f32.partialorder %v15321_v1, %v15313_v44  ;;  %v8199_v37 = vsel %vm2723_vm1, 1.0, %v15253_v54  ;;  %v15322_v6 = vld [vmem:[#allocation27_spill] sm:$0xff] }
 0x31c   :  { %v8735_v45 = vsel %vm4283_vm5, 1.0, %v15253_v54  ;;  %v6862_v13 = vadd.f32 %v6861_v40, %v6860_v30  ;;  %vm4299_vm7 = vcmp.eq.f32.partialorder %v15321_v1, %v15313_v44  ;;  %v5811_v33 = vmul.f32 0.0, %v8727_v57 }
 0x31d   :  { %v6307_v24 = vadd.f32 %v8199_v37, %v5795_v42  ;;  %v6863_v35 = vsel %vm6545_vm13, %v6291_v17, 0.0  ;;  %vm2771_vm10 = vcmp.gt.f32.partialorder %v15322_v6, %v15313_v44  ;;  %v8207_v18 = vsel %vm2731_vm12, 1.0, %v15253_v54  ;;  %v15323_v17 = vld [vmem:[#allocation28_spill] sm:$0xff] }
 0x31e   :  { %v8743_v9 = vsel %vm4291_vm3, 1.0, %v15253_v54  ;;  %v6864_v32 = vadd.f32 %v6863_v35, %v6862_v13  ;;  %vm4307_vm11 = vcmp.eq.f32.partialorder %v15322_v6, %v15313_v44  ;;  %v5819_v30 = vmul.f32 0.0, %v8735_v45 }
 0x31f   :  { %v6315_v40 = vadd.f32 %v8207_v18, %v5803_v29  ;;  %v6865_v42 = vsel %vm6545_vm13, %v6299_v19, 0.0  ;;  %vm2779_vm9 = vcmp.gt.f32.partialorder %v15323_v17, %v15313_v44  ;;  %v8215_v57 = vsel %vm2739_vm15, 1.0, %v15253_v54  ;;  %v15324_v19 = vld [vmem:[#allocation29_spill] sm:$0xff] }
 0x320   :  { %v8751_v37 = vsel %vm4299_vm7, 1.0, %v15253_v54  ;;  %v6866_v39 = vadd.f32 %v6865_v42, %v6864_v32  ;;  %vm4315_vm1 = vcmp.eq.f32.partialorder %v15323_v17, %v15313_v44  ;;  %v5827_v13 = vmul.f32 0.0, %v8743_v9 }
 0x321   :  { %v6323_v35 = vadd.f32 %v8215_v57, %v5811_v33  ;;  %v6867_v29 = vsel %vm6545_vm13, %v6307_v24, 0.0  ;;  %vm2787_vm2 = vcmp.gt.f32.partialorder %v15324_v19, %v15313_v44  ;;  %v8223_v45 = vsel %vm2747_vm4, 1.0, %v15253_v54  ;;  %v15325_v24 = vld [vmem:[#allocation30_spill] sm:$0xff] }
 0x322   :  { %v8759_v18 = vsel %vm4307_vm11, 1.0, %v15253_v54  ;;  %v6868_v48 = vadd.f32 %v6867_v29, %v6866_v39  ;;  %vm4323_vm12 = vcmp.eq.f32.partialorder %v15324_v19, %v15313_v44  ;;  %v5835_v32 = vmul.f32 0.0, %v8751_v37 }
 0x323   :  { %v6331_v42 = vadd.f32 %v8223_v45, %v5819_v30  ;;  %v6869_v33 = vsel %vm6545_vm13, %v6315_v40, 0.0  ;;  %vm2795_vm0 = vcmp.gt.f32.partialorder %v15325_v24, %v15313_v44  ;;  %v8231_v9 = vsel %vm2755_vm6, 1.0, %v15253_v54  ;;  %v15326_v40 = vld [vmem:[#allocation31_spill] sm:$0xff] }
 0x324   :  { %v8767_v57 = vsel %vm4315_vm1, 1.0, %v15253_v54  ;;  %v6870_v8 = vadd.f32 %v6869_v33, %v6868_v48  ;;  %vm4331_vm15 = vcmp.eq.f32.partialorder %v15325_v24, %v15313_v44  ;;  %v5843_v39 = vmul.f32 0.0, %v8759_v18 }
 0x325   :  { %v6339_v29 = vadd.f32 %v8231_v9, %v5827_v13  ;;  %v6871_v30 = vsel %vm6545_vm13, %v6323_v35, 0.0  ;;  %vm2803_vm14 = vcmp.gt.f32.partialorder %v15326_v40, %v15313_v44  ;;  %v8239_v37 = vsel %vm2763_vm8, 1.0, %v15253_v54  ;;  %v15327_v35 = vld [vmem:[#allocation32_spill] sm:$0xff] }
 0x326   :  { %v8775_v45 = vsel %vm4323_vm12, 1.0, %v15253_v54  ;;  %v6872_v10 = vadd.f32 %v6871_v30, %v6870_v8  ;;  %vm4339_vm4 = vcmp.eq.f32.partialorder %v15326_v40, %v15313_v44  ;;  %v5851_v48 = vmul.f32 0.0, %v8767_v57 }
 0x327   :  { %v6347_v33 = vadd.f32 %v8239_v37, %v5835_v32  ;;  %v6873_v13 = vsel %vm6545_vm13, %v6331_v42, 0.0  ;;  %vm2811_vm5 = vcmp.gt.f32.partialorder %v15327_v35, %v15313_v44  ;;  %v8247_v18 = vsel %vm2771_vm10, 1.0, %v15253_v54  ;;  %v15328_v42 = vld [vmem:[#allocation33_spill] sm:$0xff] }
 0x328   :  { %v8783_v9 = vsel %vm4331_vm15, 1.0, %v15253_v54  ;;  %v6874_v1 = vadd.f32 %v6873_v13, %v6872_v10  ;;  %vm4347_vm6 = vcmp.eq.f32.partialorder %v15327_v35, %v15313_v44  ;;  %v5859_v8 = vmul.f32 0.0, %v8775_v45 }
 0x329   :  { %v6355_v30 = vadd.f32 %v8247_v18, %v5843_v39  ;;  %v6875_v32 = vsel %vm6545_vm13, %v6339_v29, 0.0  ;;  %vm2819_vm3 = vcmp.gt.f32.partialorder %v15328_v42, %v15313_v44  ;;  %v8255_v57 = vsel %vm2779_vm9, 1.0, %v15253_v54  ;;  %v15329_v29 = vld [vmem:[#allocation34_spill] sm:$0xff] }
 0x32a   :  { %v8791_v37 = vsel %vm4339_vm4, 1.0, %v15253_v54  ;;  %v6876_v6 = vadd.f32 %v6875_v32, %v6874_v1  ;;  %vm4355_vm8 = vcmp.eq.f32.partialorder %v15328_v42, %v15313_v44  ;;  %v5867_v10 = vmul.f32 0.0, %v8783_v9 }
 0x32b   :  { %v6363_v13 = vadd.f32 %v8255_v57, %v5851_v48  ;;  %v6877_v39 = vsel %vm6545_vm13, %v6347_v33, 0.0  ;;  %vm2827_vm7 = vcmp.gt.f32.partialorder %v15329_v29, %v15313_v44  ;;  %v8263_v45 = vsel %vm2787_vm2, 1.0, %v15253_v54  ;;  %v15330_v33 = vld [vmem:[#allocation35_spill] sm:$0xff] }
 0x32c   :  { %v8799_v18 = vsel %vm4347_vm6, 1.0, %v15253_v54  ;;  %v6878_v17 = vadd.f32 %v6877_v39, %v6876_v6  ;;  %vm4363_vm10 = vcmp.eq.f32.partialorder %v15329_v29, %v15313_v44  ;;  %v5875_v1 = vmul.f32 0.0, %v8791_v37 }
 0x32d   :  { %v6371_v32 = vadd.f32 %v8263_v45, %v5859_v8  ;;  %v6879_v48 = vsel %vm6545_vm13, %v6355_v30, 0.0  ;;  %vm2835_vm11 = vcmp.gt.f32.partialorder %v15330_v33, %v15313_v44  ;;  %v8271_v9 = vsel %vm2795_vm0, 1.0, %v15253_v54  ;;  %v15331_v30 = vld [vmem:[#allocation36_spill] sm:$0xff] }
 0x32e   :  { %v8807_v57 = vsel %vm4355_vm8, 1.0, %v15253_v54  ;;  %v6880_v19 = vadd.f32 %v6879_v48, %v6878_v17  ;;  %vm4371_vm9 = vcmp.eq.f32.partialorder %v15330_v33, %v15313_v44  ;;  %v5883_v6 = vmul.f32 0.0, %v8799_v18 }
 0x32f   :  { %v6379_v39 = vadd.f32 %v8271_v9, %v5867_v10  ;;  %v6881_v8 = vsel %vm6545_vm13, %v6363_v13, 0.0  ;;  %vm2843_vm1 = vcmp.gt.f32.partialorder %v15331_v30, %v15313_v44  ;;  %v8279_v37 = vsel %vm2803_vm14, 1.0, %v15253_v54  ;;  %v15332_v13 = vld [vmem:[#allocation37_spill] sm:$0xff] }
 0x330   :  { %v8815_v45 = vsel %vm4363_vm10, 1.0, %v15253_v54  ;;  %v6882_v24 = vadd.f32 %v6881_v8, %v6880_v19  ;;  %vm4379_vm2 = vcmp.eq.f32.partialorder %v15331_v30, %v15313_v44  ;;  %v5891_v17 = vmul.f32 0.0, %v8807_v57 }
 0x331   :  { %v6387_v48 = vadd.f32 %v8279_v37, %v5875_v1  ;;  %v6883_v10 = vsel %vm6545_vm13, %v6371_v32, 0.0  ;;  %vm2851_vm12 = vcmp.gt.f32.partialorder %v15332_v13, %v15313_v44  ;;  %v8287_v18 = vsel %vm2811_vm5, 1.0, %v15253_v54  ;;  %v15333_v32 = vld [vmem:[#allocation38_spill] sm:$0xff] }
 0x332   :  { %v8823_v9 = vsel %vm4371_vm9, 1.0, %v15253_v54  ;;  %v6884_v40 = vadd.f32 %v6883_v10, %v6882_v24  ;;  %vm4387_vm0 = vcmp.eq.f32.partialorder %v15332_v13, %v15313_v44  ;;  %v5899_v19 = vmul.f32 0.0, %v8815_v45 }
 0x333   :  { %v6395_v8 = vadd.f32 %v8287_v18, %v5883_v6  ;;  %v6885_v1 = vsel %vm6545_vm13, %v6379_v39, 0.0  ;;  %vm2859_vm15 = vcmp.gt.f32.partialorder %v15333_v32, %v15313_v44  ;;  %v8295_v57 = vsel %vm2819_vm3, 1.0, %v15253_v54  ;;  %v15334_v39 = vld [vmem:[#allocation39_spill] sm:$0xff] }
 0x334   :  { %v8831_v37 = vsel %vm4379_vm2, 1.0, %v15253_v54  ;;  %v6886_v35 = vadd.f32 %v6885_v1, %v6884_v40  ;;  %vm4395_vm14 = vcmp.eq.f32.partialorder %v15333_v32, %v15313_v44  ;;  %v5907_v24 = vmul.f32 0.0, %v8823_v9 }
 0x335   :  { %v6403_v10 = vadd.f32 %v8295_v57, %v5891_v17  ;;  %v6887_v6 = vsel %vm6545_vm13, %v6387_v48, 0.0  ;;  %vm2867_vm4 = vcmp.gt.f32.partialorder %v15334_v39, %v15313_v44  ;;  %v8303_v45 = vsel %vm2827_vm7, 1.0, %v15253_v54  ;;  %v15335_v48 = vld [vmem:[#allocation40_spill] sm:$0xff] }
 0x336   :  { %v8839_v18 = vsel %vm4387_vm0, 1.0, %v15253_v54  ;;  %v6888_v42 = vadd.f32 %v6887_v6, %v6886_v35  ;;  %vm4403_vm5 = vcmp.eq.f32.partialorder %v15334_v39, %v15313_v44  ;;  %v5915_v40 = vmul.f32 0.0, %v8831_v37 }
 0x337   :  { %v6411_v1 = vadd.f32 %v8303_v45, %v5899_v19  ;;  %v6889_v17 = vsel %vm6545_vm13, %v6395_v8, 0.0  ;;  %vm2875_vm6 = vcmp.gt.f32.partialorder %v15335_v48, %v15313_v44  ;;  %v8311_v9 = vsel %vm2835_vm11, 1.0, %v15253_v54  ;;  %v15336_v8 = vld [vmem:[#allocation41_spill] sm:$0xff] }
 0x338   :  { %v8847_v57 = vsel %vm4395_vm14, 1.0, %v15253_v54  ;;  %v6890_v29 = vadd.f32 %v6889_v17, %v6888_v42  ;;  %vm4411_vm3 = vcmp.eq.f32.partialorder %v15335_v48, %v15313_v44  ;;  %v5923_v35 = vmul.f32 0.0, %v8839_v18 }
 0x339   :  { %v6419_v6 = vadd.f32 %v8311_v9, %v5907_v24  ;;  %v6891_v19 = vsel %vm6545_vm13, %v6403_v10, 0.0  ;;  %vm2883_vm8 = vcmp.gt.f32.partialorder %v15336_v8, %v15313_v44  ;;  %v8319_v37 = vsel %vm2843_vm1, 1.0, %v15253_v54  ;;  %v15337_v10 = vld [vmem:[#allocation42_spill] sm:$0xff] }
 0x33a   :  { %v8855_v45 = vsel %vm4403_vm5, 1.0, %v15253_v54  ;;  %v6892_v33 = vadd.f32 %v6891_v19, %v6890_v29  ;;  %vm4419_vm7 = vcmp.eq.f32.partialorder %v15336_v8, %v15313_v44  ;;  %v5931_v42 = vmul.f32 0.0, %v8847_v57 }
 0x33b   :  { %v6427_v17 = vadd.f32 %v8319_v37, %v5915_v40  ;;  %v6893_v24 = vsel %vm6545_vm13, %v6411_v1, 0.0  ;;  %vm2891_vm10 = vcmp.gt.f32.partialorder %v15337_v10, %v15313_v44  ;;  %v8327_v18 = vsel %vm2851_vm12, 1.0, %v15253_v54  ;;  %v15338_v1 = vld [vmem:[#allocation43_spill] sm:$0xff] }
 0x33c   :  { %v8863_v9 = vsel %vm4411_vm3, 1.0, %v15253_v54  ;;  %v6894_v30 = vadd.f32 %v6893_v24, %v6892_v33  ;;  %vm4427_vm11 = vcmp.eq.f32.partialorder %v15337_v10, %v15313_v44  ;;  %v5939_v29 = vmul.f32 0.0, %v8855_v45 }
 0x33d   :  { %v6435_v19 = vadd.f32 %v8327_v18, %v5923_v35  ;;  %v6895_v40 = vsel %vm6545_vm13, %v6419_v6, 0.0  ;;  %vm2899_vm9 = vcmp.gt.f32.partialorder %v15338_v1, %v15313_v44  ;;  %v8335_v57 = vsel %vm2859_vm15, 1.0, %v15253_v54  ;;  %v15339_v6 = vld [vmem:[#allocation44_spill] sm:$0xff] }
 0x33e   :  { %v8871_v37 = vsel %vm4419_vm7, 1.0, %v15253_v54  ;;  %v6896_v13 = vadd.f32 %v6895_v40, %v6894_v30  ;;  %vm4435_vm1 = vcmp.eq.f32.partialorder %v15338_v1, %v15313_v44  ;;  %v5947_v33 = vmul.f32 0.0, %v8863_v9 }
 0x33f   :  { %v6443_v24 = vadd.f32 %v8335_v57, %v5931_v42  ;;  %v6897_v35 = vsel %vm6545_vm13, %v6427_v17, 0.0  ;;  %vm2907_vm2 = vcmp.gt.f32.partialorder %v15339_v6, %v15313_v44  ;;  %v8343_v45 = vsel %vm2867_vm4, 1.0, %v15253_v54 }
 0x340   :  { %v8879_v18 = vsel %vm4427_vm11, 1.0, %v15253_v54  ;;  %v6898_v32 = vadd.f32 %v6897_v35, %v6896_v13  ;;  %vm4443_vm12 = vcmp.eq.f32.partialorder %v15339_v6, %v15313_v44  ;;  %v5955_v30 = vmul.f32 0.0, %v8871_v37 }
 0x341   :  { %v6451_v40 = vadd.f32 %v8343_v45, %v5939_v29  ;;  %v6899_v42 = vsel %vm6545_vm13, %v6435_v19, 0.0  ;;  %vm2915_vm0 = vcmp.gt.f32.partialorder %v15308_v38, %v15313_v44  ;;  %v8351_v17 = vsel %vm2875_vm6, 1.0, %v15253_v54 }
 0x342   :  { %v8887_v9 = vsel %vm4435_vm1, 1.0, %v15253_v54  ;;  %v6900_v57 = vadd.f32 %v6899_v42, %v6898_v32  ;;  %vm2923_vm15 = vcmp.gt.f32.partialorder %v15309_v41, %v15313_v44  ;;  %vm2931_vm14 = vcmp.gt.f32.partialorder %v15310_v34, %v15313_v44 }
 0x343   :  { %vm4451_vm4 = vcmp.eq.f32.partialorder %v15308_v38, %v15313_v44  ;;  %v5963_v13 = vmul.f32 0.0, %v8879_v18  ;;  %v6459_v29 = vadd.f32 %v8351_v17, %v5947_v33  ;;  %v6901_v19 = vsel %vm6545_vm13, %v6443_v24, 0.0 }
 0x344   :  { %v8359_v37 = vsel %vm2883_vm8, 1.0, %v15253_v54  ;;  %v8367_v32 = vsel %vm2891_vm10, 1.0, %v15253_v54  ;;  %v8895_v35 = vsel %vm4443_vm12, 1.0, %v15253_v54  ;;  %v6902_v45 = vadd.f32 %v6901_v19, %v6900_v57 }
 0x345   :  { %vm4459_vm5 = vcmp.eq.f32.partialorder %v15309_v41, %v15313_v44  ;;  %v5971_v33 = vmul.f32 0.0, %v8887_v9  ;;  %v6467_v24 = vadd.f32 %v8359_v37, %v5955_v30  ;;  %v6903_v18 = vsel %vm6545_vm13, %v6451_v40, 0.0 }
 0x346   :  { %v8375_v42 = vsel %vm2899_vm9, 1.0, %v15253_v54  ;;  %vm4467_vm6 = vcmp.eq.f32.partialorder %v15310_v34, %v15313_v44  ;;  %v8903_v17 = vsel %vm4451_vm4, 1.0, %v15253_v54  ;;  %v6904_v10 = vadd.f32 %v6903_v18, %v6902_v45 }
 0x347   :  { %vm4475_vm3 = vcmp.eq.f32.partialorder %v15311_v7, %v15313_v44  ;;  %v5979_v57 = vmul.f32 0.0, %v8895_v35  ;;  %v6475_v19 = vadd.f32 %v8367_v32, %v5963_v13  ;;  %v6905_v30 = vsel %vm6545_vm13, %v6459_v29, 0.0 }
 0x348   :  { %vm4483_vm8 = vcmp.eq.f32.partialorder %v15312_v43, %v15313_v44  ;;  %vm4491_vm7 = vcmp.eq.f32.partialorder %v15280_v51, %v15313_v44  ;;  %v8911_v40 = vsel %vm4459_vm5, 1.0, %v15253_v54  ;;  %v6906_v9 = vadd.f32 %v6905_v30, %v6904_v10 }
 0x349   :  { %v8919_v37 = vsel %vm4467_vm6, 1.0, %v15253_v54  ;;  %v5987_v1 = vmul.f32 0.0, %v8903_v17  ;;  %v6483_v45 = vadd.f32 %v8375_v42, %v5971_v33  ;;  %v6907_v18 = vsel %vm6545_vm13, %v6467_v24, 0.0 }
 0x34a   :  { %vm2939_vm10 = vcmp.gt.f32.partialorder %v15311_v7, %v15313_v44  ;;  %v8383_v13 = vsel %vm2907_vm2, 1.0, %v15253_v54  ;;  %v8927_v29 = vsel %vm4475_vm3, 1.0, %v15253_v54  ;;  %v6908_v32 = vadd.f32 %v6907_v18, %v6906_v9 }
 0x34b   :  { %v8391_v10 = vsel %vm2915_vm0, 1.0, %v15253_v54  ;;  %v5995_v35 = vmul.f32 0.0, %v8911_v40  ;;  %v6491_v33 = vadd.f32 %v8383_v13, %v5979_v57  ;;  %v6909_v24 = vsel %vm6545_vm13, %v6475_v19, 0.0 }
 0x34c   :  { %v8935_v42 = vsel %vm4483_vm8, 1.0, %v15253_v54  ;;  %v8943_v17 = vsel %vm4491_vm7, 1.0, %v15253_v54  ;;  %v6003_v30 = vmul.f32 0.0, %v8919_v37  ;;  %v6910_v9 = vadd.f32 %v6909_v24, %v6908_v32 }
 0x34d   :  { %vm2947_vm11 = vcmp.gt.f32.partialorder %v15312_v43, %v15313_v44  ;;  %v6011_v18 = vmul.f32 0.0, %v8927_v29  ;;  %v6499_v40 = vadd.f32 %v8391_v10, %v5987_v1  ;;  %v6911_v57 = vsel %vm6545_vm13, %v6483_v45, 0.0 }
 0x34e   :  { %vm2955_vm9 = vcmp.gt.f32.partialorder %v15280_v51, %v15313_v44  ;;  %v8399_v19 = vsel %vm2923_vm15, 1.0, %v15253_v54  ;;  %v8407_v37 = vsel %vm2931_vm14, 1.0, %v15253_v54  ;;  %v6912_v13 = vadd.f32 %v6911_v57, %v6910_v9  ;;  %v15340_v9 = vld [vmem:[#allocation14_spill] sm:$0xff] }
 0x34f   :  { %v6019_v32 = vmul.f32 0.0, %v8935_v42  ;;  %v6027_v24 = vmul.f32 0.0, %v8943_v17  ;;  %v6507_v29 = vadd.f32 %v8399_v19, %v5995_v35  ;;  %v6913_v1 = vsel %vm6545_vm13, %v6491_v33, 0.0 }
 0x350   :  { %v8415_v45 = vsel %vm2939_vm10, 1.0, %v15253_v54  ;;  %v8423_v10 = vsel %vm2947_vm11, 1.0, %v15253_v54  ;;  %v6515_v51 = vadd.f32 %v8407_v37, %v6003_v30  ;;  %v6914_v43 = vadd.f32 %v6913_v1, %v6912_v13 }
 0x351   :  { %v8431_v41 = vsel %vm2955_vm9, 1.0, %v15253_v54  ;;  %v6523_v38 = vadd.f32 %v8415_v45, %v6011_v18  ;;  %v6915_v34 = vsel %vm6545_vm13, %v6499_v40, 0.0  ;;  %vm2452_vm1 = vcmp.gt.f32.partialorder %v9507_v20, %v15340_v9 }
 0x352   :  { %v6916_v35 = vadd.f32 %v6915_v34, %v6914_v43  ;;  %vm2460_vm2 = vcmp.gt.f32.partialorder %v9511_v63, %v15340_v9  ;;  %vm3988_vm12 = vcmp.eq.f32.partialorder %v9507_v20, %v15340_v9  ;;  %vm3996_vm0 = vcmp.eq.f32.partialorder %v9511_v63, %v15340_v9 }
 0x353   :  { %v6531_v44 = vadd.f32 %v8423_v10, %v6019_v32  ;;  %v6539_v33 = vadd.f32 %v8431_v41, %v6027_v24  ;;  %v6917_v42 = vsel %vm6545_vm13, %v6507_v29, 0.0  ;;  %v6919_v30 = vsel %vm6545_vm13, %v6515_v51, 0.0 }
 0x354   :  { %v6918_v17 = vadd.f32 %v6917_v42, %v6916_v35  ;;  %vm2468_vm15 = vcmp.gt.f32.partialorder %v9516_v61, %v15340_v9  ;;  %vm4004_vm14 = vcmp.eq.f32.partialorder %v9516_v61, %v15340_v9  ;;  %v7928_v34 = vsel %vm2452_vm1, 1.0, %v15253_v54 }
 0x355   :  { %v7936_v43 = vsel %vm2460_vm2, 1.0, %v15253_v54  ;;  %v8440_v18 = vsel %vm3988_vm12, 1.0, %v15253_v54  ;;  %v8448_v40 = vsel %vm3996_vm0, 1.0, %v15253_v54  ;;  %v6921_v57 = vsel %vm6545_vm13, %v6523_v38, 0.0 }
 0x356   :  { %v6920_v41 = vadd.f32 %v6919_v30, %v6918_v17  ;;  %vm2476_vm4 = vcmp.gt.f32.partialorder %v9523_v16, %v15340_v9  ;;  %vm4012_vm5 = vcmp.eq.f32.partialorder %v9523_v16, %v15340_v9  ;;  %v6923_v51 = vsel %vm6545_vm13, %v6531_v44, 0.0 }
 0x357   :  { %vm2484_vm6 = vcmp.gt.f32.partialorder %v9526_v4, %v15340_v9  ;;  %v7944_v19 = vsel %vm2468_vm15, 1.0, %v15253_v54  ;;  %v8456_v37 = vsel %vm4004_vm14, 1.0, %v15253_v54  ;;  %vm4020_vm3 = vcmp.eq.f32.partialorder %v9526_v4, %v15340_v9 }
 0x358   :  { %v6922_v13 = vadd.f32 %v6921_v57, %v6920_v41  ;;  %v6036_v38 = vadd.f32 %v8440_v18, %v7928_v34  ;;  %v6044_v32 = vadd.f32 %v8448_v40, %v7936_v43  ;;  %v6925_v24 = vsel %vm6545_vm13, %v6539_v33, 0.0 }
 0x359   :  { %v11659_v29 = vadd.s32 24, %v15281_v46  ;;  %v7952_v1 = vsel %vm2476_vm4, 1.0, %v15253_v54  ;;  %v8464_v45 = vsel %vm4012_vm5, 1.0, %v15253_v54  ;;  %vm2492_vm8 = vcmp.gt.f32.partialorder %v9533_v55, %v15340_v9 }
 0x35a   :  { %v6924_v10 = vadd.f32 %v6923_v51, %v6922_v13  ;;  %vm4028_vm7 = vcmp.eq.f32.partialorder %v9533_v55, %v15340_v9  ;;  %v6052_v35 = vadd.f32 %v8456_v37, %v7944_v19  ;;  %vm2500_vm10 = vcmp.gt.f32.partialorder %v9536_v22, %v15340_v9 }
 0x35b   :  { %v7960_v44 = vsel %vm2484_vm6, 1.0, %v15253_v54  ;;  %vm4036_vm11 = vcmp.eq.f32.partialorder %v9536_v22, %v15340_v9  ;;  %v8472_v33 = vsel %vm4020_vm3, 1.0, %v15253_v54  ;;  %v6060_v17 = vadd.f32 %v8464_v45, %v7952_v1 }
 0x35c   :  { %v6926_v42 = vadd.f32 %v6925_v24, %v6924_v10  ;;  %v6927_v30 = vsel %vm6545_vm13, %v6036_v38, 0.0  ;;  %v6928_v34 = vsel %vm6545_vm13, %v6044_v32, 0.0  ;;  %vm2508_vm9 = vcmp.gt.f32.partialorder %v9539_v23, %v15340_v9 }
 0x35d   :  { %v7968_v43 = vsel %vm2492_vm8, 1.0, %v15253_v54  ;;  %v8480_v18 = vsel %vm4028_vm7, 1.0, %v15253_v54  ;;  %v6929_v40 = vadd.f32 %v6928_v34, %v6927_v30  ;;  %vm788_vm2 = vcmp.gt.s32.totalorder %v11659_v29, 24 }
 0x35e   :  { %vm7564_vm1 = vcmp.lt.f32.partialorder %v6926_v42, 32.0  ;;  %vm4044_vm12 = vcmp.eq.f32.partialorder %v9539_v23, %v15340_v9  ;;  %v6068_v41 = vadd.f32 %v8472_v33, %v7960_v44  ;;  %v6930_v57 = vsel %vm6545_vm13, %v6052_v35, 0.0 }
 0x35f   :  { %v8951_v51 = vsel %vm7564_vm1, 1.0, %v15253_v54  ;;  %v7976_v19 = vsel %vm2500_vm10, 1.0, %v15253_v54  ;;  %v8488_v37 = vsel %vm4036_vm11, 1.0, %v15253_v54  ;;  %v6931_v13 = vadd.f32 %v6930_v57, %v6929_v40 }
 0x360   :  { %7588 = vxpose.xlu1.b32.cont [3/8] (short) (narrow) %v8951_v51, 16  ;;  %vm2516_vm0 = vcmp.gt.f32.partialorder %v9542_v5, %v15340_v9  ;;  %vm4052_vm15 = vcmp.eq.f32.partialorder %v9542_v5, %v15340_v9  ;;  %v6076_v38 = vadd.f32 %v8480_v18, %v7968_v43  ;;  %v6932_v32 = vsel %vm6545_vm13, %v6060_v17, 0.0 }
 0x361   :  { %vm796_vm14 = vcmp.gt.s32.totalorder %v11659_v29, 25  ;;  %v7984_v24 = vsel %vm2508_vm9, 1.0, %v15253_v54  ;;  %v8496_v1 = vsel %vm4044_vm12, 1.0, %v15253_v54  ;;  %v6933_v45 = vadd.f32 %v6932_v32, %v6931_v13 }
 0x362   :  { %vm2524_vm4 = vcmp.gt.f32.partialorder %v9545_v0, %v15340_v9  ;;  %vm4060_vm5 = vcmp.eq.f32.partialorder %v9545_v0, %v15340_v9  ;;  %v6084_v10 = vadd.f32 %v8488_v37, %v7976_v19  ;;  %v6934_v35 = vsel %vm6545_vm13, %v6068_v41, 0.0 }
 0x363   :  { %vm804_vm6 = vcmp.gt.s32.totalorder %v11659_v29, 26  ;;  %v7992_v44 = vsel %vm2516_vm0, 1.0, %v15253_v54  ;;  %v8504_v33 = vsel %vm4052_vm15, 1.0, %v15253_v54  ;;  %v6935_v42 = vadd.f32 %v6934_v35, %v6933_v45 }
 0x364   :  { %vm2532_vm3 = vcmp.gt.f32.partialorder %v9548_v52, %v15340_v9  ;;  %vm4068_vm8 = vcmp.eq.f32.partialorder %v9548_v52, %v15340_v9  ;;  %v6092_v17 = vadd.f32 %v8496_v1, %v7984_v24  ;;  %v6936_v30 = vsel %vm6545_vm13, %v6076_v38, 0.0 }
 0x365   :  { %vm812_vm7 = vcmp.gt.s32.totalorder %v11659_v29, 27  ;;  %v8000_v34 = vsel %vm2524_vm4, 1.0, %v15253_v54  ;;  %v8512_v43 = vsel %vm4060_vm5, 1.0, %v15253_v54  ;;  %v6937_v18 = vadd.f32 %v6936_v30, %v6935_v42 }
 0x366   :  { %vm2540_vm10 = vcmp.gt.f32.partialorder %v9551_v27, %v15340_v9  ;;  %vm4076_vm11 = vcmp.eq.f32.partialorder %v9551_v27, %v15340_v9  ;;  %v6100_v40 = vadd.f32 %v8504_v33, %v7992_v44  ;;  %v6938_v41 = vsel %vm6545_vm13, %v6084_v10, 0.0 }
 0x367   :  { %vm820_vm9 = vcmp.gt.s32.totalorder %v11659_v29, 28  ;;  %v8008_v57 = vsel %vm2532_vm3, 1.0, %v15253_v54  ;;  %v8520_v51 = vsel %vm4068_vm8, 1.0, %v15253_v54  ;;  %v6939_v19 = vadd.f32 %v6938_v41, %v6937_v18  ;;  %v15341_v41 = vld [vmem:[#allocation56_spill] sm:$0xff] }
 0x368   :  { %vm828_vm1 = vcmp.gt.s32.totalorder %v11659_v29, 29  ;;  %vm2548_vm12 = vcmp.gt.f32.partialorder %v9554_v50, %v15340_v9  ;;  %vm4084_vm0 = vcmp.eq.f32.partialorder %v9554_v50, %v15340_v9  ;;  %v6108_v37 = vadd.f32 %v8512_v43, %v8000_v34 }
 0x369   :  { %v6940_v13 = vsel %vm6545_vm13, %v6092_v17, 0.0  ;;  %v11739_v38 = vsel %vm788_vm2, 1.0, %v15253_v54  ;;  %v8016_v32 = vsel %vm2540_vm10, 1.0, %v15253_v54  ;;  %v8528_v24 = vsel %vm4076_vm11, 1.0, %v15253_v54 }
 0x36a   :  { %v6941_v1 = vadd.f32 %v6940_v13, %v6939_v19  ;;  %vm836_vm15 = vcmp.gt.s32.totalorder %v11659_v29, 30  ;;  %vm2556_vm4 = vcmp.gt.f32.partialorder %v9557_v11, %v15340_v9  ;;  %vm4092_vm5 = vcmp.eq.f32.partialorder %v9557_v11, %v15340_v9 }
 0x36b   :  { %v6116_v45 = vadd.f32 %v8520_v51, %v8008_v57  ;;  %v6942_v10 = vsel %vm6545_vm13, %v6100_v40, 0.0  ;;  %v11752_v35 = vsel %vm796_vm14, 1.0, %v15253_v54  ;;  %v8024_v44 = vsel %vm2548_vm12, 1.0, %v15253_v54 }
 0x36c   :  { %v8536_v33 = vsel %vm4084_vm0, 1.0, %v15253_v54  ;;  %v6943_v42 = vadd.f32 %v6942_v10, %v6941_v1  ;;  %vm2564_vm2 = vcmp.gt.f32.partialorder %v9560_v25, %v15340_v9  ;;  %vm4100_vm3 = vcmp.eq.f32.partialorder %v9560_v25, %v15340_v9 }
 0x36d   :  { %v6124_v17 = vadd.f32 %v8528_v24, %v8016_v32  ;;  %v6944_v30 = vsel %vm6545_vm13, %v6108_v37, 0.0  ;;  %v11764_v34 = vsel %vm804_vm6, 1.0, %v15253_v54  ;;  %v8032_v43 = vsel %vm2556_vm4, 1.0, %v15253_v54 }
 0x36e   :  { %v8544_v18 = vsel %vm4092_vm5, 1.0, %v15253_v54  ;;  %v6945_v40 = vadd.f32 %v6944_v30, %v6943_v42  ;;  %vm2572_vm14 = vcmp.gt.f32.partialorder %v15341_v41, %v15340_v9  ;;  %vm4108_vm8 = vcmp.eq.f32.partialorder %v15341_v41, %v15340_v9 }
 0x36f   :  { %v6132_v57 = vadd.f32 %v8536_v33, %v8024_v44  ;;  %v6946_v51 = vsel %vm6545_vm13, %v6116_v45, 0.0  ;;  %v11776_v19 = vsel %vm812_vm7, 1.0, %v15253_v54  ;;  %v8040_v37 = vsel %vm2564_vm2, 1.0, %v15253_v54 }
 0x370   :  { %v8552_v13 = vsel %vm4100_vm3, 1.0, %v15253_v54  ;;  %v6947_v32 = vadd.f32 %v6946_v51, %v6945_v40  ;;  %vm2580_vm6 = vcmp.gt.f32.partialorder %v9570_v56, %v15340_v9  ;;  %vm4116_vm10 = vcmp.eq.f32.partialorder %v9570_v56, %v15340_v9 }
 0x371   :  { %v6140_v24 = vadd.f32 %v8544_v18, %v8032_v43  ;;  %v6948_v1 = vsel %vm6545_vm13, %v6124_v17, 0.0  ;;  %v11788_v45 = vsel %vm820_vm9, 1.0, %v15253_v54  ;;  %v8048_v10 = vsel %vm2572_vm14, 1.0, %v15253_v54 }
 0x372   :  { %v8560_v44 = vsel %vm4108_vm8, 1.0, %v15253_v54  ;;  %v6949_v33 = vadd.f32 %v6948_v1, %v6947_v32  ;;  %vm2588_vm7 = vcmp.gt.f32.partialorder %v9573_v12, %v15340_v9  ;;  %vm4124_vm11 = vcmp.eq.f32.partialorder %v9573_v12, %v15340_v9 }
 0x373   :  { %v6148_v42 = vadd.f32 %v8552_v13, %v8040_v37  ;;  %v6950_v30 = vsel %vm6545_vm13, %v6132_v57, 0.0  ;;  %v11800_v17 = vsel %vm828_vm1, 1.0, %v15253_v54  ;;  %v8056_v43 = vsel %vm2580_vm6, 1.0, %v15253_v54 }
 0x374   :  { %v8568_v18 = vsel %vm4116_vm10, 1.0, %v15253_v54  ;;  %v6951_v40 = vadd.f32 %v6950_v30, %v6949_v33  ;;  %vm2596_vm9 = vcmp.gt.f32.partialorder %v9576_v60, %v15340_v9  ;;  %vm4132_vm12 = vcmp.eq.f32.partialorder %v9576_v60, %v15340_v9 }
 0x375   :  { %v6156_v51 = vadd.f32 %v8560_v44, %v8048_v10  ;;  %v6952_v37 = vsel %vm6545_vm13, %v6140_v24, 0.0  ;;  %v11812_v57 = vsel %vm836_vm15, 1.0, %v15253_v54  ;;  %v8064_v13 = vsel %vm2588_vm7, 1.0, %v15253_v54 }
 0x376   :  { %v8576_v32 = vsel %vm4124_vm11, 1.0, %v15253_v54  ;;  %v6953_v1 = vadd.f32 %v6952_v37, %v6951_v40  ;;  %vm2604_vm1 = vcmp.gt.f32.partialorder %v9579_v14, %v15340_v9  ;;  %vm4140_vm0 = vcmp.eq.f32.partialorder %v9579_v14, %v15340_v9 }
 0x377   :  { %v6164_v33 = vadd.f32 %v8568_v18, %v8056_v43  ;;  %v6954_v10 = vsel %vm6545_vm13, %v6148_v42, 0.0  ;;  %vm2612_vm4 = vcmp.gt.f32.partialorder %v9582_v15, %v15340_v9  ;;  %v8072_v29 = vsel %vm2596_vm9, 1.0, %v15253_v54 }
 0x378   :  { %v8584_v24 = vsel %vm4132_vm12, 1.0, %v15253_v54  ;;  %v6955_v44 = vadd.f32 %v6954_v10, %v6953_v1  ;;  %vm2620_vm15 = vcmp.gt.f32.partialorder %v9585_v21, %v15340_v9  ;;  %vm4148_vm5 = vcmp.eq.f32.partialorder %v9582_v15, %v15340_v9 }
 0x379   :  { %v6172_v30 = vadd.f32 %v8576_v32, %v8064_v13  ;;  %v6956_v40 = vsel %vm6545_vm13, %v6156_v51, 0.0  ;;  %vm2628_vm2 = vcmp.gt.f32.partialorder %v9588_v49, %v15340_v9  ;;  %v8080_v42 = vsel %vm2604_vm1, 1.0, %v15253_v54 }
 0x37a   :  { %v8592_v43 = vsel %vm4140_vm0, 1.0, %v15253_v54  ;;  %v6957_v18 = vadd.f32 %v6956_v40, %v6955_v44  ;;  %vm2636_vm3 = vcmp.gt.f32.partialorder %v9593_v59, %v15340_v9  ;;  %vm4156_vm14 = vcmp.eq.f32.partialorder %v9585_v21, %v15340_v9 }
 0x37b   :  { %v6180_v37 = vadd.f32 %v8584_v24, %v8072_v29  ;;  %v6958_v1 = vsel %vm6545_vm13, %v6164_v33, 0.0  ;;  %vm2644_vm8 = vcmp.gt.f32.partialorder %v9596_v62, %v15340_v9  ;;  %v8088_v51 = vsel %vm2612_vm4, 1.0, %v15253_v54 }
 0x37c   :  { %v8600_v13 = vsel %vm4148_vm5, 1.0, %v15253_v54  ;;  %v6959_v32 = vadd.f32 %v6958_v1, %v6957_v18  ;;  %vm4164_vm6 = vcmp.eq.f32.partialorder %v9588_v49, %v15340_v9  ;;  %vm4180_vm10 = vcmp.eq.f32.partialorder %v9596_v62, %v15340_v9 }
 0x37d   :  { %v6188_v10 = vadd.f32 %v8592_v43, %v8080_v42  ;;  %v6960_v33 = vsel %vm6545_vm13, %v6172_v30, 0.0  ;;  %vm2652_vm7 = vcmp.gt.f32.partialorder %v9601_v47, %v15340_v9  ;;  %v8096_v29 = vsel %vm2620_vm15, 1.0, %v15253_v54 }
 0x37e   :  { %v8608_v24 = vsel %vm4156_vm14, 1.0, %v15253_v54  ;;  %v6961_v44 = vadd.f32 %v6960_v33, %v6959_v32  ;;  %vm4172_vm11 = vcmp.eq.f32.partialorder %v9593_v59, %v15340_v9  ;;  %vm4188_vm9 = vcmp.eq.f32.partialorder %v9601_v47, %v15340_v9 }
 0x37f   :  { %v6196_v40 = vadd.f32 %v8600_v13, %v8088_v51  ;;  %v6962_v30 = vsel %vm6545_vm13, %v6180_v37, 0.0  ;;  %v8104_v42 = vsel %vm2628_vm2, 1.0, %v15253_v54  ;;  %v8616_v43 = vsel %vm4164_vm6, 1.0, %v15253_v54 }
 0x380   :  { %v8632_v18 = vsel %vm4180_vm10, 1.0, %v15253_v54  ;;  %v6963_v1 = vadd.f32 %v6962_v30, %v6961_v44  ;;  %vm2660_vm12 = vcmp.gt.f32.partialorder %v9604_v58, %v15340_v9  ;;  %vm4196_vm1 = vcmp.eq.f32.partialorder %v9604_v58, %v15340_v9 }
 0x381   :  { %v6204_v32 = vadd.f32 %v8608_v24, %v8096_v29  ;;  %v6964_v51 = vsel %vm6545_vm13, %v6188_v10, 0.0  ;;  %v8112_v37 = vsel %vm2636_vm3, 1.0, %v15253_v54  ;;  %v8624_v13 = vsel %vm4172_vm11, 1.0, %v15253_v54 }
 0x382   :  { %v8640_v33 = vsel %vm4188_vm9, 1.0, %v15253_v54  ;;  %v6965_v49 = vadd.f32 %v6964_v51, %v6963_v1  ;;  %vm4204_vm0 = vcmp.eq.f32.partialorder %v9607_v28, %v15340_v9  ;;  %v5716_v44 = vmul.f32 %v8632_v18, %v11739_v38 }
 0x383   :  { %v6212_v30 = vadd.f32 %v8616_v43, %v8104_v42  ;;  %v6966_v29 = vsel %vm6545_vm13, %v6196_v40, 0.0  ;;  %vm2668_vm4 = vcmp.gt.f32.partialorder %v9607_v28, %v15340_v9  ;;  %v8120_v10 = vsel %vm2644_vm8, 1.0, %v15253_v54 }
 0x384   :  { %v8648_v24 = vsel %vm4196_vm1, 1.0, %v15253_v54  ;;  %v6967_v59 = vadd.f32 %v6966_v29, %v6965_v49  ;;  %vm4212_vm15 = vcmp.eq.f32.partialorder %v9612_v53, %v15340_v9  ;;  %v5724_v1 = vmul.f32 %v8640_v33, %v11752_v35 }
 0x385   :  { %v6220_v38 = vadd.f32 %v8624_v13, %v8112_v37  ;;  %v6968_v42 = vsel %vm6545_vm13, %v6204_v32, 0.0  ;;  %vm2676_vm5 = vcmp.gt.f32.partialorder %v9612_v53, %v15340_v9  ;;  %v8128_v40 = vsel %vm2652_vm7, 1.0, %v15253_v54 }
 0x386   :  { %v8656_v43 = vsel %vm4204_vm0, 1.0, %v15253_v54  ;;  %v6969_v18 = vadd.f32 %v6968_v42, %v6967_v59  ;;  %vm4220_vm2 = vcmp.eq.f32.partialorder %v9615_v2, %v15340_v9  ;;  %v5732_v49 = vmul.f32 %v8648_v24, %v11764_v34 }
 0x387   :  { %v6228_v35 = vadd.f32 %v8120_v10, %v5716_v44  ;;  %v6970_v51 = vsel %vm6545_vm13, %v6212_v30, 0.0  ;;  %vm2684_vm3 = vcmp.gt.f32.partialorder %v9615_v2, %v15340_v9  ;;  %v8136_v32 = vsel %vm2660_vm12, 1.0, %v15253_v54 }
 0x388   :  { %v8664_v37 = vsel %vm4212_vm15, 1.0, %v15253_v54  ;;  %v6971_v13 = vadd.f32 %v6970_v51, %v6969_v18  ;;  %vm4228_vm14 = vcmp.eq.f32.partialorder %v9627_v3, %v15340_v9  ;;  %v5740_v59 = vmul.f32 %v8656_v43, %v11776_v19 }
 0x389   :  { %v6236_v34 = vadd.f32 %v8128_v40, %v5724_v1  ;;  %v6972_v33 = vsel %vm6545_vm13, %v6220_v38, 0.0  ;;  %vm2692_vm8 = vcmp.gt.f32.partialorder %v9627_v3, %v15340_v9  ;;  %vm2700_vm6 = vcmp.gt.f32.partialorder %v9630_v36, %v15340_v9 }
 0x38a   :  { %v8672_v44 = vsel %vm4220_vm2, 1.0, %v15253_v54  ;;  %v6973_v30 = vadd.f32 %v6972_v33, %v6971_v13  ;;  %vm4236_vm10 = vcmp.eq.f32.partialorder %v9630_v36, %v15340_v9  ;;  %v5748_v29 = vmul.f32 %v8664_v37, %v11788_v45 }
 0x38b   :  { %v6244_v10 = vadd.f32 %v8136_v32, %v5732_v49  ;;  %v6974_v19 = vsel %vm6545_vm13, %v6228_v35, 0.0  ;;  %v8144_v24 = vsel %vm2668_vm4, 1.0, %v15253_v54  ;;  %v8152_v1 = vsel %vm2676_vm5, 1.0, %v15253_v54  ;;  %v15342_v32 = vld [vmem:[#allocation21_spill] sm:$0xff] }
 0x38c   :  { %v8680_v38 = vsel %vm4228_vm14, 1.0, %v15253_v54  ;;  %v6975_v42 = vadd.f32 %v6974_v19, %v6973_v30  ;;  %vm4244_vm7 = vcmp.eq.f32.partialorder %v15314_v26, %v15340_v9  ;;  %v5756_v45 = vmul.f32 %v8672_v44, %v11800_v17  ;;  %v15343_v44 = vld [vmem:[#allocation22_spill] sm:$0xff] }
 0x38d   :  { %v6252_v40 = vadd.f32 %v8144_v24, %v5740_v59  ;;  %v6976_v43 = vsel %vm6545_vm13, %v6236_v34, 0.0  ;;  %vm2708_vm11 = vcmp.gt.f32.partialorder %v15314_v26, %v15340_v9  ;;  %vm2716_vm9 = vcmp.gt.f32.partialorder %v15315_v31, %v15340_v9 }
 0x38e   :  { %v8688_v18 = vsel %vm4236_vm10, 1.0, %v15253_v54  ;;  %v6977_v49 = vadd.f32 %v6976_v43, %v6975_v42  ;;  %vm4252_vm12 = vcmp.eq.f32.partialorder %v15315_v31, %v15340_v9  ;;  %v5764_v35 = vmul.f32 %v8680_v38, %v11812_v57  ;;  %v15344_v38 = vld [vmem:[#allocation23_spill] sm:$0xff] }
 0x38f   :  { %v6260_v51 = vadd.f32 %v8152_v1, %v5748_v29  ;;  %v6978_v17 = vsel %vm6545_vm13, %v6244_v10, 0.0  ;;  %vm2724_vm1 = vcmp.gt.f32.partialorder %v15342_v32, %v15340_v9  ;;  %v8160_v37 = vsel %vm2684_vm3, 1.0, %v15253_v54 }
 0x390   :  { %v8696_v13 = vsel %vm4244_vm7, 1.0, %v15253_v54  ;;  %v6979_v59 = vadd.f32 %v6978_v17, %v6977_v49  ;;  %vm4260_vm0 = vcmp.eq.f32.partialorder %v15342_v32, %v15340_v9  ;;  %v5772_v34 = vmul.f32 0.0, %v8688_v18 }
 0x391   :  { %v6268_v33 = vadd.f32 %v8160_v37, %v5756_v45  ;;  %v6980_v57 = vsel %vm6545_vm13, %v6252_v40, 0.0  ;;  %vm2732_vm4 = vcmp.gt.f32.partialorder %v15343_v44, %v15340_v9  ;;  %v8168_v30 = vsel %vm2692_vm8, 1.0, %v15253_v54 }
 0x392   :  { %v8704_v29 = vsel %vm4252_vm12, 1.0, %v15253_v54  ;;  %v6981_v10 = vadd.f32 %v6980_v57, %v6979_v59  ;;  %vm4268_vm15 = vcmp.eq.f32.partialorder %v15343_v44, %v15340_v9  ;;  %v5780_v19 = vmul.f32 0.0, %v8696_v13 }
 0x393   :  { %v6276_v24 = vadd.f32 %v8168_v30, %v5764_v35  ;;  %v6982_v1 = vsel %vm6545_vm13, %v6260_v51, 0.0  ;;  %vm2740_vm5 = vcmp.gt.f32.partialorder %v15344_v38, %v15340_v9  ;;  %v8176_v42 = vsel %vm2700_vm6, 1.0, %v15253_v54  ;;  %v15345_v35 = vld [vmem:[#allocation24_spill] sm:$0xff] }
 0x394   :  { %v8712_v45 = vsel %vm4260_vm0, 1.0, %v15253_v54  ;;  %v6983_v40 = vadd.f32 %v6982_v1, %v6981_v10  ;;  %vm4276_vm2 = vcmp.eq.f32.partialorder %v15344_v38, %v15340_v9  ;;  %v5788_v43 = vmul.f32 0.0, %v8704_v29 }
 0x395   :  { %v6284_v18 = vadd.f32 %v8176_v42, %v5772_v34  ;;  %v6984_v49 = vsel %vm6545_vm13, %v6268_v33, 0.0  ;;  %vm2748_vm3 = vcmp.gt.f32.partialorder %v15345_v35, %v15340_v9  ;;  %v8184_v51 = vsel %vm2708_vm11, 1.0, %v15253_v54  ;;  %v15346_v33 = vld [vmem:[#allocation25_spill] sm:$0xff] }
 0x396   :  { %v8720_v17 = vsel %vm4268_vm15, 1.0, %v15253_v54  ;;  %v6985_v37 = vadd.f32 %v6984_v49, %v6983_v40  ;;  %vm4284_vm14 = vcmp.eq.f32.partialorder %v15345_v35, %v15340_v9  ;;  %v5796_v13 = vmul.f32 0.0, %v8712_v45 }
 0x397   :  { %v6292_v59 = vadd.f32 %v8184_v51, %v5780_v19  ;;  %v6986_v34 = vsel %vm6545_vm13, %v6276_v24, 0.0  ;;  %vm2756_vm8 = vcmp.gt.f32.partialorder %v15346_v33, %v15340_v9  ;;  %v8192_v57 = vsel %vm2716_vm9, 1.0, %v15253_v54  ;;  %v15347_v24 = vld [vmem:[#allocation26_spill] sm:$0xff] }
 0x398   :  { %v8728_v30 = vsel %vm4276_vm2, 1.0, %v15253_v54  ;;  %v6987_v29 = vadd.f32 %v6986_v34, %v6985_v37  ;;  %vm4292_vm6 = vcmp.eq.f32.partialorder %v15346_v33, %v15340_v9  ;;  %v5804_v10 = vmul.f32 0.0, %v8720_v17 }
 0x399   :  { %v6300_v1 = vadd.f32 %v8192_v57, %v5788_v43  ;;  %v6988_v19 = vsel %vm6545_vm13, %v6284_v18, 0.0  ;;  %vm2764_vm10 = vcmp.gt.f32.partialorder %v15347_v24, %v15340_v9  ;;  %v8200_v42 = vsel %vm2724_vm1, 1.0, %v15253_v54  ;;  %v15348_v18 = vld [vmem:[#allocation27_spill] sm:$0xff] }
 0x39a   :  { %v8736_v45 = vsel %vm4284_vm14, 1.0, %v15253_v54  ;;  %v6989_v40 = vadd.f32 %v6988_v19, %v6987_v29  ;;  %vm4300_vm7 = vcmp.eq.f32.partialorder %v15347_v24, %v15340_v9  ;;  %v5812_v49 = vmul.f32 0.0, %v8728_v30 }
 0x39b   :  { %v6308_v51 = vadd.f32 %v8200_v42, %v5796_v13  ;;  %v6990_v43 = vsel %vm6545_vm13, %v6292_v59, 0.0  ;;  %vm2772_vm11 = vcmp.gt.f32.partialorder %v15348_v18, %v15340_v9  ;;  %v8208_v17 = vsel %vm2732_vm4, 1.0, %v15253_v54  ;;  %v15349_v59 = vld [vmem:[#allocation28_spill] sm:$0xff] }
 0x39c   :  { %v8744_v37 = vsel %vm4292_vm6, 1.0, %v15253_v54  ;;  %v6991_v34 = vadd.f32 %v6990_v43, %v6989_v40  ;;  %vm4308_vm9 = vcmp.eq.f32.partialorder %v15348_v18, %v15340_v9  ;;  %v5820_v57 = vmul.f32 0.0, %v8736_v45 }
 0x39d   :  { %v6316_v29 = vadd.f32 %v8208_v17, %v5804_v10  ;;  %v6992_v13 = vsel %vm6545_vm13, %v6300_v1, 0.0  ;;  %vm2780_vm12 = vcmp.gt.f32.partialorder %v15349_v59, %v15340_v9  ;;  %v8216_v30 = vsel %vm2740_vm5, 1.0, %v15253_v54  ;;  %v15350_v1 = vld [vmem:[#allocation29_spill] sm:$0xff] }
 0x39e   :  { %v8752_v19 = vsel %vm4300_vm7, 1.0, %v15253_v54  ;;  %v6993_v42 = vadd.f32 %v6992_v13, %v6991_v34  ;;  %vm4316_vm1 = vcmp.eq.f32.partialorder %v15349_v59, %v15340_v9  ;;  %v5828_v40 = vmul.f32 0.0, %v8744_v37 }
 0x39f   :  { %v6324_v43 = vadd.f32 %v8216_v30, %v5812_v49  ;;  %v6994_v10 = vsel %vm6545_vm13, %v6308_v51, 0.0  ;;  %vm2788_vm0 = vcmp.gt.f32.partialorder %v15350_v1, %v15340_v9  ;;  %v8224_v45 = vsel %vm2748_vm3, 1.0, %v15253_v54  ;;  %v15351_v51 = vld [vmem:[#allocation30_spill] sm:$0xff] }
 0x3a0   :  { %v8760_v17 = vsel %vm4308_vm9, 1.0, %v15253_v54  ;;  %v6995_v38 = vadd.f32 %v6994_v10, %v6993_v42  ;;  %vm4324_vm4 = vcmp.eq.f32.partialorder %v15350_v1, %v15340_v9  ;;  %v5836_v34 = vmul.f32 0.0, %v8752_v19 }
 0x3a1   :  { %v6332_v13 = vadd.f32 %v8224_v45, %v5820_v57  ;;  %v6996_v49 = vsel %vm6545_vm13, %v6316_v29, 0.0  ;;  %vm2796_vm15 = vcmp.gt.f32.partialorder %v15351_v51, %v15340_v9  ;;  %v8232_v37 = vsel %vm2756_vm8, 1.0, %v15253_v54  ;;  %v15352_v29 = vld [vmem:[#allocation31_spill] sm:$0xff] }
 0x3a2   :  { %v8768_v30 = vsel %vm4316_vm1, 1.0, %v15253_v54  ;;  %v6997_v35 = vadd.f32 %v6996_v49, %v6995_v38  ;;  %vm4332_vm5 = vcmp.eq.f32.partialorder %v15351_v51, %v15340_v9  ;;  %v5844_v42 = vmul.f32 0.0, %v8760_v17 }
 0x3a3   :  { %v6340_v10 = vadd.f32 %v8232_v37, %v5828_v40  ;;  %v6998_v57 = vsel %vm6545_vm13, %v6324_v43, 0.0  ;;  %vm2804_vm2 = vcmp.gt.f32.partialorder %v15352_v29, %v15340_v9  ;;  %v8240_v19 = vsel %vm2764_vm10, 1.0, %v15253_v54  ;;  %v15353_v43 = vld [vmem:[#allocation32_spill] sm:$0xff] }
 0x3a4   :  { %v8776_v45 = vsel %vm4324_vm4, 1.0, %v15253_v54  ;;  %v6999_v33 = vadd.f32 %v6998_v57, %v6997_v35  ;;  %vm4340_vm3 = vcmp.eq.f32.partialorder %v15352_v29, %v15340_v9  ;;  %v5852_v38 = vmul.f32 0.0, %v8768_v30 }
 0x3a5   :  { %v6348_v49 = vadd.f32 %v8240_v19, %v5836_v34  ;;  %v7000_v40 = vsel %vm6545_vm13, %v6332_v13, 0.0  ;;  %vm2812_vm14 = vcmp.gt.f32.partialorder %v15353_v43, %v15340_v9  ;;  %v8248_v17 = vsel %vm2772_vm11, 1.0, %v15253_v54  ;;  %v15354_v13 = vld [vmem:[#allocation33_spill] sm:$0xff] }
 0x3a6   :  { %v8784_v37 = vsel %vm4332_vm5, 1.0, %v15253_v54  ;;  %v7001_v24 = vadd.f32 %v7000_v40, %v6999_v33  ;;  %vm4348_vm8 = vcmp.eq.f32.partialorder %v15353_v43, %v15340_v9  ;;  %v5860_v35 = vmul.f32 0.0, %v8776_v45 }
 0x3a7   :  { %v6356_v57 = vadd.f32 %v8248_v17, %v5844_v42  ;;  %v7002_v34 = vsel %vm6545_vm13, %v6340_v10, 0.0  ;;  %vm2820_vm6 = vcmp.gt.f32.partialorder %v15354_v13, %v15340_v9  ;;  %v8256_v30 = vsel %vm2780_vm12, 1.0, %v15253_v54  ;;  %v15355_v10 = vld [vmem:[#allocation34_spill] sm:$0xff] }
 0x3a8   :  { %v8792_v19 = vsel %vm4340_vm3, 1.0, %v15253_v54  ;;  %v7003_v18 = vadd.f32 %v7002_v34, %v7001_v24  ;;  %vm4356_vm10 = vcmp.eq.f32.partialorder %v15354_v13, %v15340_v9  ;;  %v5868_v33 = vmul.f32 0.0, %v8784_v37 }
 0x3a9   :  { %v6364_v40 = vadd.f32 %v8256_v30, %v5852_v38  ;;  %v7004_v42 = vsel %vm6545_vm13, %v6348_v49, 0.0  ;;  %vm2828_vm7 = vcmp.gt.f32.partialorder %v15355_v10, %v15340_v9  ;;  %v8264_v45 = vsel %vm2788_vm0, 1.0, %v15253_v54  ;;  %v15356_v49 = vld [vmem:[#allocation35_spill] sm:$0xff] }
 0x3aa   :  { %v8800_v17 = vsel %vm4348_vm8, 1.0, %v15253_v54  ;;  %v7005_v59 = vadd.f32 %v7004_v42, %v7003_v18  ;;  %vm4364_vm11 = vcmp.eq.f32.partialorder %v15355_v10, %v15340_v9  ;;  %v5876_v24 = vmul.f32 0.0, %v8792_v19 }
 0x3ab   :  { %v6372_v34 = vadd.f32 %v8264_v45, %v5860_v35  ;;  %v7006_v38 = vsel %vm6545_vm13, %v6356_v57, 0.0  ;;  %vm2836_vm9 = vcmp.gt.f32.partialorder %v15356_v49, %v15340_v9  ;;  %v8272_v37 = vsel %vm2796_vm15, 1.0, %v15253_v54  ;;  %v15357_v57 = vld [vmem:[#allocation36_spill] sm:$0xff] }
 0x3ac   :  { %v8808_v30 = vsel %vm4356_vm10, 1.0, %v15253_v54  ;;  %v7007_v1 = vadd.f32 %v7006_v38, %v7005_v59  ;;  %vm4372_vm12 = vcmp.eq.f32.partialorder %v15356_v49, %v15340_v9  ;;  %v5884_v18 = vmul.f32 0.0, %v8800_v17 }
 0x3ad   :  { %v6380_v42 = vadd.f32 %v8272_v37, %v5868_v33  ;;  %v7008_v35 = vsel %vm6545_vm13, %v6364_v40, 0.0  ;;  %vm2844_vm1 = vcmp.gt.f32.partialorder %v15357_v57, %v15340_v9  ;;  %v8280_v19 = vsel %vm2804_vm2, 1.0, %v15253_v54  ;;  %v15358_v40 = vld [vmem:[#allocation37_spill] sm:$0xff] }
 0x3ae   :  { %v8816_v45 = vsel %vm4364_vm11, 1.0, %v15253_v54  ;;  %v7009_v51 = vadd.f32 %v7008_v35, %v7007_v1  ;;  %vm4380_vm0 = vcmp.eq.f32.partialorder %v15357_v57, %v15340_v9  ;;  %v5892_v59 = vmul.f32 0.0, %v8808_v30 }
 0x3af   :  { %v6388_v38 = vadd.f32 %v8280_v19, %v5876_v24  ;;  %v7010_v33 = vsel %vm6545_vm13, %v6372_v34, 0.0  ;;  %vm2852_vm4 = vcmp.gt.f32.partialorder %v15358_v40, %v15340_v9  ;;  %v8288_v17 = vsel %vm2812_vm14, 1.0, %v15253_v54  ;;  %v15359_v34 = vld [vmem:[#allocation38_spill] sm:$0xff] }
 0x3b0   :  { %v8824_v37 = vsel %vm4372_vm12, 1.0, %v15253_v54  ;;  %v7011_v29 = vadd.f32 %v7010_v33, %v7009_v51  ;;  %vm4388_vm15 = vcmp.eq.f32.partialorder %v15358_v40, %v15340_v9  ;;  %v5900_v1 = vmul.f32 0.0, %v8816_v45 }
 0x3b1   :  { %v6396_v35 = vadd.f32 %v8288_v17, %v5884_v18  ;;  %v7012_v24 = vsel %vm6545_vm13, %v6380_v42, 0.0  ;;  %vm2860_vm5 = vcmp.gt.f32.partialorder %v15359_v34, %v15340_v9  ;;  %v8296_v30 = vsel %vm2820_vm6, 1.0, %v15253_v54 }
 0x3b2   :  { %v8832_v19 = vsel %vm4380_vm0, 1.0, %v15253_v54  ;;  %v7013_v43 = vadd.f32 %v7012_v24, %v7011_v29  ;;  %vm4396_vm2 = vcmp.eq.f32.partialorder %v15359_v34, %v15340_v9  ;;  %v5908_v51 = vmul.f32 0.0, %v8824_v37 }
 0x3b3   :  { %v6404_v33 = vadd.f32 %v8296_v30, %v5892_v59  ;;  %v7014_v18 = vsel %vm6545_vm13, %v6388_v38, 0.0  ;;  %vm2868_vm3 = vcmp.gt.f32.partialorder %v15334_v39, %v15340_v9  ;;  %v8304_v42 = vsel %vm2828_vm7, 1.0, %v15253_v54 }
 0x3b4   :  { %v8840_v45 = vsel %vm4388_vm15, 1.0, %v15253_v54  ;;  %v7015_v17 = vadd.f32 %v7014_v18, %v7013_v43  ;;  %vm4404_vm14 = vcmp.eq.f32.partialorder %v15334_v39, %v15340_v9  ;;  %v5916_v29 = vmul.f32 0.0, %v8832_v19  ;;  %v15365_v39 = vld [vmem:[#allocation49_spill] sm:$0xff] }
 0x3b5   :  { %v6412_v24 = vadd.f32 %v8304_v42, %v5900_v1  ;;  %v7016_v59 = vsel %vm6545_vm13, %v6396_v35, 0.0  ;;  %vm2876_vm8 = vcmp.gt.f32.partialorder %v15335_v48, %v15340_v9  ;;  %v8312_v38 = vsel %vm2836_vm9, 1.0, %v15253_v54 }
 0x3b6   :  { %v8848_v37 = vsel %vm4396_vm2, 1.0, %v15253_v54  ;;  %v7017_v30 = vadd.f32 %v7016_v59, %v7015_v17  ;;  %vm4412_vm6 = vcmp.eq.f32.partialorder %v15335_v48, %v15340_v9  ;;  %v5924_v43 = vmul.f32 0.0, %v8840_v45 }
 0x3b7   :  { %v6420_v18 = vadd.f32 %v8312_v38, %v5908_v51  ;;  %v7018_v1 = vsel %vm6545_vm13, %v6404_v33, 0.0  ;;  %vm2884_vm10 = vcmp.gt.f32.partialorder %v15336_v8, %v15340_v9  ;;  %v8320_v35 = vsel %vm2844_vm1, 1.0, %v15253_v54  ;;  %v15360_v33 = vld [vmem:[#allocation42_spill] sm:$0xff] }
 0x3b8   :  { %v8856_v19 = vsel %vm4404_vm14, 1.0, %v15253_v54  ;;  %v7019_v42 = vadd.f32 %v7018_v1, %v7017_v30  ;;  %vm4420_vm7 = vcmp.eq.f32.partialorder %v15336_v8, %v15340_v9  ;;  %v5932_v17 = vmul.f32 0.0, %v8848_v37 }
 0x3b9   :  { %v6428_v59 = vadd.f32 %v8320_v35, %v5916_v29  ;;  %v7020_v51 = vsel %vm6545_vm13, %v6412_v24, 0.0  ;;  %vm2892_vm11 = vcmp.gt.f32.partialorder %v15360_v33, %v15340_v9  ;;  %v8328_v45 = vsel %vm2852_vm4, 1.0, %v15253_v54  ;;  %v15361_v24 = vld [vmem:[#allocation43_spill] sm:$0xff] }
 0x3ba   :  { %v8864_v38 = vsel %vm4412_vm6, 1.0, %v15253_v54  ;;  %v7021_v57 = vadd.f32 %v7020_v51, %v7019_v42  ;;  %vm4428_vm9 = vcmp.eq.f32.partialorder %v15360_v33, %v15340_v9  ;;  %v5940_v30 = vmul.f32 0.0, %v8856_v19 }
 0x3bb   :  { %v6436_v1 = vadd.f32 %v8328_v45, %v5924_v43  ;;  %v7022_v29 = vsel %vm6545_vm13, %v6420_v18, 0.0  ;;  %vm2900_vm12 = vcmp.gt.f32.partialorder %v15361_v24, %v15340_v9  ;;  %v8336_v37 = vsel %vm2860_vm5, 1.0, %v15253_v54 }
 0x3bc   :  { %v8872_v35 = vsel %vm4420_vm7, 1.0, %v15253_v54  ;;  %v7023_v40 = vadd.f32 %v7022_v29, %v7021_v57  ;;  %vm4436_vm1 = vcmp.eq.f32.partialorder %v15361_v24, %v15340_v9  ;;  %v5948_v42 = vmul.f32 0.0, %v8864_v38  ;;  %v15362_v57 = vld [vmem:[#allocation45_spill] sm:$0xff]  ;;  %v15363_v29 = vld [vmem:[#allocation46_spill] sm:$0xff] }
 0x3bd   :  { %v6444_v51 = vadd.f32 %v8336_v37, %v5932_v17  ;;  %v7024_v43 = vsel %vm6545_vm13, %v6428_v59, 0.0  ;;  %vm2908_vm0 = vcmp.gt.f32.partialorder %v15339_v6, %v15340_v9  ;;  %v8344_v18 = vsel %vm2868_vm3, 1.0, %v15253_v54  ;;  %v15364_v37 = vld [vmem:[#allocation47_spill] sm:$0xff] }
 0x3be   :  { %v8880_v19 = vsel %vm4428_vm9, 1.0, %v15253_v54  ;;  %v7025_v45 = vadd.f32 %v7024_v43, %v7023_v40  ;;  %vm2916_vm4 = vcmp.gt.f32.partialorder %v15362_v57, %v15340_v9  ;;  %vm4444_vm15 = vcmp.eq.f32.partialorder %v15339_v6, %v15340_v9 }
 0x3bf   :  { %v5956_v17 = vmul.f32 0.0, %v8872_v35  ;;  %v6452_v38 = vadd.f32 %v8344_v18, %v5940_v30  ;;  %v7026_v59 = vsel %vm6545_vm13, %v6436_v1, 0.0  ;;  %vm2924_vm5 = vcmp.gt.f32.partialorder %v15363_v29, %v15340_v9 }
 0x3c0   :  { %vm2932_vm2 = vcmp.gt.f32.partialorder %v15364_v37, %v15340_v9  ;;  %v8352_v40 = vsel %vm2876_vm8, 1.0, %v15253_v54  ;;  %v8360_v43 = vsel %vm2884_vm10, 1.0, %v15253_v54  ;;  %v8888_v30 = vsel %vm4436_vm1, 1.0, %v15253_v54 }
 0x3c1   :  { %v7027_v1 = vadd.f32 %v7026_v59, %v7025_v45  ;;  %vm2940_vm3 = vcmp.gt.f32.partialorder %v15311_v7, %v15340_v9  ;;  %vm4452_vm14 = vcmp.eq.f32.partialorder %v15362_v57, %v15340_v9  ;;  %v5964_v35 = vmul.f32 0.0, %v8880_v19 }
 0x3c2   :  { %v6460_v18 = vadd.f32 %v8352_v40, %v5948_v42  ;;  %v7028_v48 = vsel %vm6545_vm13, %v6444_v51, 0.0  ;;  %vm2948_vm8 = vcmp.gt.f32.partialorder %v15365_v39, %v15340_v9  ;;  %v8368_v8 = vsel %vm2892_vm11, 1.0, %v15253_v54 }
 0x3c3   :  { %vm4460_vm6 = vcmp.eq.f32.partialorder %v15363_v29, %v15340_v9  ;;  %v8896_v45 = vsel %vm4444_vm15, 1.0, %v15253_v54  ;;  %v7029_v19 = vadd.f32 %v7028_v48, %v7027_v1  ;;  %vm4468_vm10 = vcmp.eq.f32.partialorder %v15364_v37, %v15340_v9  ;;  %v15367_v37 = vld [vmem:[#allocation16_spill] sm:$0xff] }
 0x3c4   :  { %v5972_v42 = vmul.f32 0.0, %v8888_v30  ;;  %v6468_v51 = vadd.f32 %v8360_v43, %v5956_v17  ;;  %v7030_v59 = vsel %vm6545_vm13, %v6452_v38, 0.0  ;;  %v8376_v40 = vsel %vm2900_vm12, 1.0, %v15253_v54  ;;  %v15366_v38 = vld [vmem:[#allocation50_spill] sm:$0xff] }
 0x3c5   :  { %vm4476_vm7 = vcmp.eq.f32.partialorder %v15311_v7, %v15340_v9  ;;  %v8904_v33 = vsel %vm4452_vm14, 1.0, %v15253_v54  ;;  %v7031_v34 = vadd.f32 %v7030_v59, %v7029_v19  ;;  %vm4484_vm11 = vcmp.eq.f32.partialorder %v15365_v39, %v15340_v9 }
 0x3c6   :  { %v5980_v48 = vmul.f32 0.0, %v8896_v45  ;;  %v6476_v1 = vadd.f32 %v8368_v8, %v5964_v35  ;;  %v7032_v17 = vsel %vm6545_vm13, %v6460_v18, 0.0  ;;  %vm4492_vm9 = vcmp.eq.f32.partialorder %v15366_v38, %v15340_v9 }
 0x3c7   :  { %v8912_v43 = vsel %vm4460_vm6, 1.0, %v15253_v54  ;;  %v8920_v30 = vsel %vm4468_vm10, 1.0, %v15253_v54  ;;  %v7033_v24 = vadd.f32 %v7032_v17, %v7031_v34  ;;  %v8928_v19 = vsel %vm4476_vm7, 1.0, %v15253_v54 }
 0x3c8   :  { %v5988_v59 = vmul.f32 0.0, %v8904_v33  ;;  %v6484_v49 = vadd.f32 %v8376_v40, %v5972_v42  ;;  %v7034_v45 = vsel %vm6545_vm13, %v6468_v51, 0.0  ;;  %vm2956_vm12 = vcmp.gt.f32.partialorder %v15366_v38, %v15340_v9 }
 0x3c9   :  { %v8384_v8 = vsel %vm2908_vm0, 1.0, %v15253_v54  ;;  %v8936_v35 = vsel %vm4484_vm11, 1.0, %v15253_v54  ;;  %v7035_v18 = vadd.f32 %v7034_v45, %v7033_v24  ;;  %v8944_v10 = vsel %vm4492_vm9, 1.0, %v15253_v54 }
 0x3ca   :  { %v5996_v34 = vmul.f32 0.0, %v8912_v43  ;;  %v6492_v17 = vadd.f32 %v8384_v8, %v5980_v48  ;;  %v7036_v33 = vsel %vm6545_vm13, %v6476_v1, 0.0  ;;  %v8392_v42 = vsel %vm2916_vm4, 1.0, %v15253_v54 }
 0x3cb   :  { %v6004_v51 = vmul.f32 0.0, %v8920_v30  ;;  %v6012_v40 = vmul.f32 0.0, %v8928_v19  ;;  %v7037_v13 = vadd.f32 %v7036_v33, %v7035_v18  ;;  %v8400_v6 = vsel %vm2924_vm5, 1.0, %v15253_v54 }
 0x3cc   :  { %v8408_v24 = vsel %vm2932_vm2, 1.0, %v15253_v54  ;;  %v6500_v48 = vadd.f32 %v8392_v42, %v5988_v59  ;;  %v7038_v1 = vsel %vm6545_vm13, %v6484_v49, 0.0  ;;  %v8416_v43 = vsel %vm2940_vm3, 1.0, %v15253_v54 }
 0x3cd   :  { %v6020_v30 = vmul.f32 0.0, %v8936_v35  ;;  %v6028_v19 = vmul.f32 0.0, %v8944_v10  ;;  %v7039_v45 = vadd.f32 %v7038_v1, %v7037_v13  ;;  %v8424_v8 = vsel %vm2948_vm8, 1.0, %v15253_v54 }
 0x3ce   :  { %v8432_v59 = vsel %vm2956_vm12, 1.0, %v15253_v54  ;;  %v6508_v18 = vadd.f32 %v8400_v6, %v5996_v34  ;;  %v7040_v49 = vsel %vm6545_vm13, %v6492_v17, 0.0  ;;  %v6516_v33 = vadd.f32 %v8408_v24, %v6004_v51 }
 0x3cf   :  { %v6524_v42 = vadd.f32 %v8416_v43, %v6012_v40  ;;  %v7041_v7 = vadd.f32 %v7040_v49, %v7039_v45  ;;  %vm2453_vm1 = vcmp.gt.f32.partialorder %v9507_v20, %v15367_v37  ;;  %v7042_v13 = vsel %vm6545_vm13, %v6500_v48, 0.0 }
 0x3d0   :  { %vm2461_vm0 = vcmp.gt.f32.partialorder %v9511_v63, %v15367_v37  ;;  %vm3989_vm4 = vcmp.eq.f32.partialorder %v9507_v20, %v15367_v37  ;;  %vm3997_vm15 = vcmp.eq.f32.partialorder %v9511_v63, %v15367_v37  ;;  %v6532_v6 = vadd.f32 %v8424_v8, %v6020_v30 }
 0x3d1   :  { %v6540_v9 = vadd.f32 %v8432_v59, %v6028_v19  ;;  %v7043_v10 = vadd.f32 %v7042_v13, %v7041_v7  ;;  %v7044_v35 = vsel %vm6545_vm13, %v6508_v18, 0.0  ;;  %vm2469_vm5 = vcmp.gt.f32.partialorder %v9516_v61, %v15367_v37 }
 0x3d2   :  { %v7929_v34 = vsel %vm2453_vm1, 1.0, %v15253_v54  ;;  %vm4005_vm2 = vcmp.eq.f32.partialorder %v9516_v61, %v15367_v37  ;;  %v7937_v51 = vsel %vm2461_vm0, 1.0, %v15253_v54  ;;  %v8441_v40 = vsel %vm3989_vm4, 1.0, %v15253_v54 }
 0x3d3   :  { %v7045_v17 = vadd.f32 %v7044_v35, %v7043_v10  ;;  %v8449_v24 = vsel %vm3997_vm15, 1.0, %v15253_v54  ;;  %v7046_v48 = vsel %vm6545_vm13, %v6516_v33, 0.0  ;;  %v7048_v7 = vsel %vm6545_vm13, %v6524_v42, 0.0 }
 0x3d4   :  { %vm2477_vm3 = vcmp.gt.f32.partialorder %v9523_v16, %v15367_v37  ;;  %vm4013_vm14 = vcmp.eq.f32.partialorder %v9523_v16, %v15367_v37  ;;  %v7050_v43 = vsel %vm6545_vm13, %v6532_v6, 0.0  ;;  %v7945_v30 = vsel %vm2469_vm5, 1.0, %v15253_v54 }
 0x3d5   :  { %v7047_v1 = vadd.f32 %v7046_v48, %v7045_v17  ;;  %v8457_v19 = vsel %vm4005_vm2, 1.0, %v15253_v54  ;;  %vm2485_vm8 = vcmp.gt.f32.partialorder %v9526_v4, %v15367_v37  ;;  %vm4021_vm6 = vcmp.eq.f32.partialorder %v9526_v4, %v15367_v37 }
 0x3d6   :  { %v6037_v45 = vadd.f32 %v8441_v40, %v7929_v34  ;;  %v6045_v8 = vadd.f32 %v8449_v24, %v7937_v51  ;;  %v7052_v18 = vsel %vm6545_vm13, %v6540_v9, 0.0  ;;  %v7953_v49 = vsel %vm2477_vm3, 1.0, %v15253_v54 }
 0x3d7   :  { %v7049_v59 = vadd.f32 %v7048_v7, %v7047_v1  ;;  %v8465_v33 = vsel %vm4013_vm14, 1.0, %v15253_v54  ;;  %vm2493_vm10 = vcmp.gt.f32.partialorder %v9533_v55, %v15367_v37  ;;  %vm2501_vm7 = vcmp.gt.f32.partialorder %v9536_v22, %v15367_v37 }
 0x3d8   :  { %vm4029_vm11 = vcmp.eq.f32.partialorder %v9533_v55, %v15367_v37  ;;  %v6053_v42 = vadd.f32 %v8457_v19, %v7945_v30  ;;  %vm2509_vm9 = vcmp.gt.f32.partialorder %v9539_v23, %v15367_v37  ;;  %v7961_v6 = vsel %vm2485_vm8, 1.0, %v15253_v54 }
 0x3d9   :  { %v7051_v13 = vadd.f32 %v7050_v43, %v7049_v59  ;;  %v8473_v9 = vsel %vm4021_vm6, 1.0, %v15253_v54  ;;  %vm4037_vm12 = vcmp.eq.f32.partialorder %v9536_v22, %v15367_v37  ;;  %v6061_v10 = vadd.f32 %v8465_v33, %v7953_v49 }
 0x3da   :  { %v7054_v35 = vsel %vm6545_vm13, %v6037_v45, 0.0  ;;  %v7055_v34 = vsel %vm6545_vm13, %v6045_v8, 0.0  ;;  %v7969_v51 = vsel %vm2493_vm10, 1.0, %v15253_v54  ;;  %v8481_v40 = vsel %vm4029_vm11, 1.0, %v15253_v54 }
 0x3db   :  { %v7053_v17 = vadd.f32 %v7052_v18, %v7051_v13  ;;  %v7056_v24 = vadd.f32 %v7055_v34, %v7054_v35  ;;  %vm2517_vm1 = vcmp.gt.f32.partialorder %v9542_v5, %v15367_v37  ;;  %vm4045_vm0 = vcmp.eq.f32.partialorder %v9539_v23, %v15367_v37 }
 0x3dc   :  { %v6069_v48 = vadd.f32 %v8473_v9, %v7961_v6  ;;  %v7057_v7 = vsel %vm6545_vm13, %v6053_v42, 0.0  ;;  %v7977_v1 = vsel %vm2501_vm7, 1.0, %v15253_v54  ;;  %v8489_v43 = vsel %vm4037_vm12, 1.0, %v15253_v54 }
 0x3dd   :  { %vm7565_vm4 = vcmp.lt.f32.partialorder %v7053_v17, 32.0  ;;  %v7058_v30 = vadd.f32 %v7057_v7, %v7056_v24  ;;  %vm4053_vm15 = vcmp.eq.f32.partialorder %v9542_v5, %v15367_v37  ;;  %v6077_v45 = vadd.f32 %v8481_v40, %v7969_v51 }
 0x3de   :  { %v8952_v19 = vsel %vm7565_vm4, 1.0, %v15253_v54  ;;  %v7059_v8 = vsel %vm6545_vm13, %v6061_v10, 0.0  ;;  %v7985_v59 = vsel %vm2509_vm9, 1.0, %v15253_v54  ;;  %v8497_v18 = vsel %vm4045_vm0, 1.0, %v15253_v54 }
 0x3df   :  { %7589 = vxpose.xlu1.b32.cont [4/8] (short) (narrow) %v8952_v19, 16  ;;  %v7060_v49 = vadd.f32 %v7059_v8, %v7058_v30  ;;  %vm2525_vm5 = vcmp.gt.f32.partialorder %v9545_v0, %v15367_v37  ;;  %vm4061_vm2 = vcmp.eq.f32.partialorder %v9545_v0, %v15367_v37  ;;  %v6085_v33 = vadd.f32 %v8489_v43, %v7977_v1 }
 0x3e0   :  { %v7061_v42 = vsel %vm6545_vm13, %v6069_v48, 0.0  ;;  %v7993_v13 = vsel %vm2517_vm1, 1.0, %v15253_v54  ;;  %v8505_v6 = vsel %vm4053_vm15, 1.0, %v15253_v54  ;;  %vm2533_vm3 = vcmp.gt.f32.partialorder %v9548_v52, %v15367_v37 }
 0x3e1   :  { %v7062_v9 = vadd.f32 %v7061_v42, %v7060_v49  ;;  %vm4069_vm14 = vcmp.eq.f32.partialorder %v9548_v52, %v15367_v37  ;;  %v6093_v10 = vadd.f32 %v8497_v18, %v7985_v59  ;;  %v7063_v35 = vsel %vm6545_vm13, %v6077_v45, 0.0 }
 0x3e2   :  { %v8001_v34 = vsel %vm2525_vm5, 1.0, %v15253_v54  ;;  %v8513_v17 = vsel %vm4061_vm2, 1.0, %v15253_v54  ;;  %vm2541_vm8 = vcmp.gt.f32.partialorder %v9551_v27, %v15367_v37  ;;  %vm4077_vm6 = vcmp.eq.f32.partialorder %v9551_v27, %v15367_v37 }
 0x3e3   :  { %v7064_v51 = vadd.f32 %v7063_v35, %v7062_v9  ;;  %v6101_v40 = vadd.f32 %v8505_v6, %v7993_v13  ;;  %v7065_v24 = vsel %vm6545_vm13, %v6085_v33, 0.0  ;;  %v8009_v48 = vsel %vm2533_vm3, 1.0, %v15253_v54 }
 0x3e4   :  { %v8521_v7 = vsel %vm4069_vm14, 1.0, %v15253_v54  ;;  %vm2549_vm10 = vcmp.gt.f32.partialorder %v9554_v50, %v15367_v37  ;;  %vm4085_vm7 = vcmp.eq.f32.partialorder %v9554_v50, %v15367_v37  ;;  %v6109_v43 = vadd.f32 %v8513_v17, %v8001_v34 }
 0x3e5   :  { %v7066_v1 = vadd.f32 %v7065_v24, %v7064_v51  ;;  %v7067_v30 = vsel %vm6545_vm13, %v6093_v10, 0.0  ;;  %v8017_v19 = vsel %vm2541_vm8, 1.0, %v15253_v54  ;;  %v8529_v45 = vsel %vm4077_vm6, 1.0, %v15253_v54 }
 0x3e6   :  { %vm2557_vm11 = vcmp.gt.f32.partialorder %v9557_v11, %v15367_v37  ;;  %vm4093_vm9 = vcmp.eq.f32.partialorder %v9557_v11, %v15367_v37  ;;  %v6117_v59 = vadd.f32 %v8521_v7, %v8009_v48  ;;  %v7069_v18 = vsel %vm6545_vm13, %v6101_v40, 0.0 }
 0x3e7   :  { %v7068_v8 = vadd.f32 %v7067_v30, %v7066_v1  ;;  %v12386_v49 = vadd.s32 32, %v15281_v46  ;;  %v8025_v33 = vsel %vm2549_vm10, 1.0, %v15253_v54  ;;  %v8537_v42 = vsel %vm4085_vm7, 1.0, %v15253_v54 }
 0x3e8   :  { %vm2565_vm12 = vcmp.gt.f32.partialorder %v9560_v25, %v15367_v37  ;;  %vm4101_vm1 = vcmp.eq.f32.partialorder %v9560_v25, %v15367_v37  ;;  %v6125_v6 = vadd.f32 %v8529_v45, %v8017_v19  ;;  %v7071_v9 = vsel %vm6545_vm13, %v6109_v43, 0.0 }
 0x3e9   :  { %v7070_v13 = vadd.f32 %v7069_v18, %v7068_v8  ;;  %v8033_v10 = vsel %vm2557_vm11, 1.0, %v15253_v54  ;;  %v8545_v35 = vsel %vm4093_vm9, 1.0, %v15253_v54  ;;  %vm2573_vm0 = vcmp.gt.f32.partialorder %v15341_v41, %v15367_v37 }
 0x3ea   :  { %vm4109_vm4 = vcmp.eq.f32.partialorder %v15341_v41, %v15367_v37  ;;  %v6133_v17 = vadd.f32 %v8537_v42, %v8025_v33  ;;  %v7073_v51 = vsel %vm6545_vm13, %v6117_v59, 0.0  ;;  %vm853_vm15 = vcmp.gt.s32.totalorder %v12386_v49, 32 }
 0x3eb   :  { %v7072_v34 = vadd.f32 %v7071_v9, %v7070_v13  ;;  %v8041_v40 = vsel %vm2565_vm12, 1.0, %v15253_v54  ;;  %v8553_v24 = vsel %vm4101_vm1, 1.0, %v15253_v54  ;;  %vm2581_vm5 = vcmp.gt.f32.partialorder %v9570_v56, %v15367_v37 }
 0x3ec   :  { %vm4117_vm2 = vcmp.eq.f32.partialorder %v9570_v56, %v15367_v37  ;;  %v6141_v7 = vadd.f32 %v8545_v35, %v8033_v10  ;;  %v7075_v1 = vsel %vm6545_vm13, %v6125_v6, 0.0  ;;  %vm861_vm3 = vcmp.gt.s32.totalorder %v12386_v49, 33 }
 0x3ed   :  { %v7074_v48 = vadd.f32 %v7073_v51, %v7072_v34  ;;  %v8049_v43 = vsel %vm2573_vm0, 1.0, %v15253_v54  ;;  %v8561_v30 = vsel %vm4109_vm4, 1.0, %v15253_v54  ;;  %vm2589_vm14 = vcmp.gt.f32.partialorder %v9573_v12, %v15367_v37 }
 0x3ee   :  { %vm4125_vm8 = vcmp.eq.f32.partialorder %v9573_v12, %v15367_v37  ;;  %v6149_v45 = vadd.f32 %v8553_v24, %v8041_v40  ;;  %v7077_v8 = vsel %vm6545_vm13, %v6133_v17, 0.0  ;;  %vm869_vm6 = vcmp.gt.s32.totalorder %v12386_v49, 34 }
 0x3ef   :  { %v7076_v19 = vadd.f32 %v7075_v1, %v7074_v48  ;;  %v8057_v59 = vsel %vm2581_vm5, 1.0, %v15253_v54  ;;  %v8569_v18 = vsel %vm4117_vm2, 1.0, %v15253_v54  ;;  %vm2597_vm10 = vcmp.gt.f32.partialorder %v9576_v60, %v15367_v37 }
 0x3f0   :  { %vm4133_vm7 = vcmp.eq.f32.partialorder %v9576_v60, %v15367_v37  ;;  %v6157_v42 = vadd.f32 %v8561_v30, %v8049_v43  ;;  %v7079_v13 = vsel %vm6545_vm13, %v6141_v7, 0.0  ;;  %vm877_vm11 = vcmp.gt.s32.totalorder %v12386_v49, 35 }
 0x3f1   :  { %v7078_v33 = vadd.f32 %v7077_v8, %v7076_v19  ;;  %v8065_v6 = vsel %vm2589_vm14, 1.0, %v15253_v54  ;;  %v8577_v9 = vsel %vm4125_vm8, 1.0, %v15253_v54  ;;  %vm2605_vm9 = vcmp.gt.f32.partialorder %v9579_v14, %v15367_v37 }
 0x3f2   :  { %vm4141_vm12 = vcmp.eq.f32.partialorder %v9579_v14, %v15367_v37  ;;  %v6165_v35 = vadd.f32 %v8569_v18, %v8057_v59  ;;  %v7081_v34 = vsel %vm6545_vm13, %v6149_v45, 0.0  ;;  %vm885_vm1 = vcmp.gt.s32.totalorder %v12386_v49, 36 }
 0x3f3   :  { %v7080_v10 = vadd.f32 %v7079_v13, %v7078_v33  ;;  %v8073_v17 = vsel %vm2597_vm10, 1.0, %v15253_v54  ;;  %v8585_v51 = vsel %vm4133_vm7, 1.0, %v15253_v54  ;;  %vm893_vm0 = vcmp.gt.s32.totalorder %v12386_v49, 37 }
 0x3f4   :  { %vm2613_vm4 = vcmp.gt.f32.partialorder %v9582_v15, %v15367_v37  ;;  %vm4149_vm5 = vcmp.eq.f32.partialorder %v9582_v15, %v15367_v37  ;;  %v6173_v24 = vadd.f32 %v8577_v9, %v8065_v6  ;;  %v7083_v48 = vsel %vm6545_vm13, %v6157_v42, 0.0  ;;  %v15368_v42 = vld [vmem:[#allocation63_spill] sm:$0xff] }
 0x3f5   :  { %v7082_v40 = vadd.f32 %v7081_v34, %v7080_v10  ;;  %v12446_v7 = vsel %vm853_vm15, 1.0, %v15253_v54  ;;  %v8081_v1 = vsel %vm2605_vm9, 1.0, %v15253_v54  ;;  %v8593_v43 = vsel %vm4141_vm12, 1.0, %v15253_v54 }
 0x3f6   :  { %vm901_vm2 = vcmp.gt.s32.totalorder %v12386_v49, 38  ;;  %vm2621_vm14 = vcmp.gt.f32.partialorder %v9585_v21, %v15367_v37  ;;  %vm4157_vm8 = vcmp.eq.f32.partialorder %v9585_v21, %v15367_v37  ;;  %v6181_v19 = vadd.f32 %v8585_v51, %v8073_v17  ;;  %v15369_v17 = vld [vmem:[#allocation64_spill] sm:$0xff] }
 0x3f7   :  { %v7084_v30 = vadd.f32 %v7083_v48, %v7082_v40  ;;  %v7085_v45 = vsel %vm6545_vm13, %v6165_v35, 0.0  ;;  %v12459_v8 = vsel %vm861_vm3, 1.0, %v15253_v54  ;;  %v8089_v59 = vsel %vm2613_vm4, 1.0, %v15253_v54 }
 0x3f8   :  { %v8601_v18 = vsel %vm4149_vm5, 1.0, %v15253_v54  ;;  %vm2629_vm15 = vcmp.gt.f32.partialorder %v15368_v42, %v15367_v37  ;;  %vm4165_vm10 = vcmp.eq.f32.partialorder %v15368_v42, %v15367_v37  ;;  %v6189_v13 = vadd.f32 %v8593_v43, %v8081_v1 }
 0x3f9   :  { %v7086_v33 = vadd.f32 %v7085_v45, %v7084_v30  ;;  %v7087_v6 = vsel %vm6545_vm13, %v6173_v24, 0.0  ;;  %v12471_v9 = vsel %vm869_vm6, 1.0, %v15253_v54  ;;  %v8097_v10 = vsel %vm2621_vm14, 1.0, %v15253_v54 }
 0x3fa   :  { %v8609_v35 = vsel %vm4157_vm8, 1.0, %v15253_v54  ;;  %vm2637_vm3 = vcmp.gt.f32.partialorder %v15369_v17, %v15367_v37  ;;  %vm4173_vm7 = vcmp.eq.f32.partialorder %v15369_v17, %v15367_v37  ;;  %v6197_v51 = vadd.f32 %v8601_v18, %v8089_v59 }
 0x3fb   :  { %v7088_v34 = vadd.f32 %v7087_v6, %v7086_v33  ;;  %v7089_v40 = vsel %vm6545_vm13, %v6181_v19, 0.0  ;;  %v12483_v24 = vsel %vm877_vm11, 1.0, %v15253_v54  ;;  %v8105_v48 = vsel %vm2629_vm15, 1.0, %v15253_v54 }
 0x3fc   :  { %v8617_v1 = vsel %vm4165_vm10, 1.0, %v15253_v54  ;;  %vm2645_vm6 = vcmp.gt.f32.partialorder %v9596_v62, %v15367_v37  ;;  %vm4181_vm9 = vcmp.eq.f32.partialorder %v9596_v62, %v15367_v37  ;;  %v6205_v30 = vadd.f32 %v8609_v35, %v8097_v10 }
 0x3fd   :  { %v7090_v43 = vadd.f32 %v7089_v40, %v7088_v34  ;;  %v7091_v45 = vsel %vm6545_vm13, %v6189_v13, 0.0  ;;  %v12495_v19 = vsel %vm885_vm1, 1.0, %v15253_v54  ;;  %v8113_v59 = vsel %vm2637_vm3, 1.0, %v15253_v54 }
 0x3fe   :  { %v8625_v18 = vsel %vm4173_vm7, 1.0, %v15253_v54  ;;  %vm2653_vm11 = vcmp.gt.f32.partialorder %v9601_v47, %v15367_v37  ;;  %vm4189_vm12 = vcmp.eq.f32.partialorder %v9601_v47, %v15367_v37  ;;  %v6213_v6 = vadd.f32 %v8617_v1, %v8105_v48 }
 0x3ff   :  { %v7092_v33 = vadd.f32 %v7091_v45, %v7090_v43  ;;  %v7093_v10 = vsel %vm6545_vm13, %v6197_v51, 0.0  ;;  %v12507_v13 = vsel %vm893_vm0, 1.0, %v15253_v54  ;;  %v8121_v35 = vsel %vm2645_vm6, 1.0, %v15253_v54 }
 0x400   :  { %v8633_v34 = vsel %vm4181_vm9, 1.0, %v15253_v54  ;;  %vm2661_vm1 = vcmp.gt.f32.partialorder %v9604_v58, %v15367_v37  ;;  %vm4197_vm4 = vcmp.eq.f32.partialorder %v9604_v58, %v15367_v37  ;;  %v6221_v43 = vadd.f32 %v8625_v18, %v8113_v59 }
 0x401   :  { %v7094_v40 = vadd.f32 %v7093_v10, %v7092_v33  ;;  %v7095_v48 = vsel %vm6545_vm13, %v6205_v30, 0.0  ;;  %v12519_v51 = vsel %vm901_vm2, 1.0, %v15253_v54  ;;  %v8129_v1 = vsel %vm2653_vm11, 1.0, %v15253_v54 }
 0x402   :  { %v8641_v45 = vsel %vm4189_vm12, 1.0, %v15253_v54  ;;  %vm2669_vm0 = vcmp.gt.f32.partialorder %v9607_v28, %v15367_v37  ;;  %vm4205_vm5 = vcmp.eq.f32.partialorder %v9607_v28, %v15367_v37  ;;  %v6229_v33 = vadd.f32 %v8633_v34, %v8121_v35 }
 0x403   :  { %v7096_v47 = vadd.f32 %v7095_v48, %v7094_v40  ;;  %v7097_v59 = vsel %vm6545_vm13, %v6213_v6, 0.0  ;;  %vm2677_vm14 = vcmp.gt.f32.partialorder %v9612_v53, %v15367_v37  ;;  %v8137_v49 = vsel %vm2661_vm1, 1.0, %v15253_v54 }
 0x404   :  { %v8649_v30 = vsel %vm4197_vm4, 1.0, %v15253_v54  ;;  %vm2685_vm2 = vcmp.gt.f32.partialorder %v9615_v2, %v15367_v37  ;;  %vm4213_vm8 = vcmp.eq.f32.partialorder %v9612_v53, %v15367_v37  ;;  %v6237_v10 = vadd.f32 %v8641_v45, %v8129_v1 }
 0x405   :  { %v7098_v18 = vadd.f32 %v7097_v59, %v7096_v47  ;;  %v7099_v40 = vsel %vm6545_vm13, %v6221_v43, 0.0  ;;  %vm2693_vm15 = vcmp.gt.f32.partialorder %v9627_v3, %v15367_v37  ;;  %v8145_v6 = vsel %vm2669_vm0, 1.0, %v15253_v54 }
 0x406   :  { %v8657_v35 = vsel %vm4205_vm5, 1.0, %v15253_v54  ;;  %vm2701_vm10 = vcmp.gt.f32.partialorder %v9630_v36, %v15367_v37  ;;  %vm4221_vm3 = vcmp.eq.f32.partialorder %v9615_v2, %v15367_v37  ;;  %v6245_v47 = vadd.f32 %v8649_v30, %v8137_v49 }
 0x407   :  { %v7100_v34 = vadd.f32 %v7099_v40, %v7098_v18  ;;  %v7101_v48 = vsel %vm6545_vm13, %v6229_v33, 0.0  ;;  %vm2709_vm7 = vcmp.gt.f32.partialorder %v15314_v26, %v15367_v37  ;;  %v8153_v43 = vsel %vm2677_vm14, 1.0, %v15253_v54 }
 0x408   :  { %v8665_v1 = vsel %vm4213_vm8, 1.0, %v15253_v54  ;;  %vm4229_vm6 = vcmp.eq.f32.partialorder %v9627_v3, %v15367_v37  ;;  %vm4245_vm9 = vcmp.eq.f32.partialorder %v15314_v26, %v15367_v37  ;;  %v6253_v59 = vadd.f32 %v8657_v35, %v8145_v6 }
 0x409   :  { %v7102_v45 = vadd.f32 %v7101_v48, %v7100_v34  ;;  %v7103_v33 = vsel %vm6545_vm13, %v6237_v10, 0.0  ;;  %vm2717_vm11 = vcmp.gt.f32.partialorder %v15315_v31, %v15367_v37  ;;  %v8161_v49 = vsel %vm2685_vm2, 1.0, %v15253_v54 }
 0x40a   :  { %v8673_v30 = vsel %vm4221_vm3, 1.0, %v15253_v54  ;;  %vm4237_vm12 = vcmp.eq.f32.partialorder %v9630_v36, %v15367_v37  ;;  %vm4253_vm1 = vcmp.eq.f32.partialorder %v15315_v31, %v15367_v37  ;;  %v6261_v40 = vadd.f32 %v8665_v1, %v8153_v43 }
 0x40b   :  { %v7104_v18 = vadd.f32 %v7103_v33, %v7102_v45  ;;  %v7105_v10 = vsel %vm6545_vm13, %v6245_v47, 0.0  ;;  %v8169_v6 = vsel %vm2693_vm15, 1.0, %v15253_v54  ;;  %v8681_v35 = vsel %vm4229_vm6, 1.0, %v15253_v54 }
 0x40c   :  { %v8697_v34 = vsel %vm4245_vm9, 1.0, %v15253_v54  ;;  %vm2725_vm4 = vcmp.gt.f32.partialorder %v15342_v32, %v15367_v37  ;;  %vm4261_vm0 = vcmp.eq.f32.partialorder %v15342_v32, %v15367_v37  ;;  %v6269_v45 = vadd.f32 %v8673_v30, %v8161_v49 }
 0x40d   :  { %v7106_v48 = vadd.f32 %v7105_v10, %v7104_v18  ;;  %v7107_v43 = vsel %vm6545_vm13, %v6253_v59, 0.0  ;;  %v8177_v47 = vsel %vm2701_vm10, 1.0, %v15253_v54  ;;  %v8689_v1 = vsel %vm4237_vm12, 1.0, %v15253_v54 }
 0x40e   :  { %v8705_v33 = vsel %vm4253_vm1, 1.0, %v15253_v54  ;;  %vm4269_vm5 = vcmp.eq.f32.partialorder %v15343_v44, %v15367_v37  ;;  %v5781_v18 = vmul.f32 %v8697_v34, %v12446_v7  ;;  %v6277_v10 = vadd.f32 %v8681_v35, %v8169_v6 }
 0x40f   :  { %v7108_v3 = vadd.f32 %v7107_v43, %v7106_v48  ;;  %v7109_v49 = vsel %vm6545_vm13, %v6261_v40, 0.0  ;;  %vm2733_vm14 = vcmp.gt.f32.partialorder %v15343_v44, %v15367_v37  ;;  %v8185_v59 = vsel %vm2709_vm7, 1.0, %v15253_v54  ;;  %v15370_v48 = vld [vmem:[#allocation23_spill] sm:$0xff] }
 0x410   :  { %v8713_v30 = vsel %vm4261_vm0, 1.0, %v15253_v54  ;;  %vm4277_vm2 = vcmp.eq.f32.partialorder %v15370_v48, %v15367_v37  ;;  %v5789_v43 = vmul.f32 %v8705_v33, %v12459_v8  ;;  %v6285_v7 = vadd.f32 %v8689_v1, %v8177_v47  ;;  %v15390_v44 = vld [vmem:[#allocation43_spill] sm:$0xff] }
 0x411   :  { %v7110_v36 = vadd.f32 %v7109_v49, %v7108_v3  ;;  %v7111_v6 = vsel %vm6545_vm13, %v6269_v45, 0.0  ;;  %vm2741_vm8 = vcmp.gt.f32.partialorder %v15370_v48, %v15367_v37  ;;  %v8193_v40 = vsel %vm2717_vm11, 1.0, %v15253_v54  ;;  %v15371_v3 = vld [vmem:[#allocation24_spill] sm:$0xff]  ;;  %v15388_v48 = vld [vmem:[#allocation41_spill] sm:$0xff] }
 0x412   :  { %v8721_v35 = vsel %vm4269_vm5, 1.0, %v15253_v54  ;;  %vm4285_vm15 = vcmp.eq.f32.partialorder %v15371_v3, %v15367_v37  ;;  %v5797_v49 = vmul.f32 %v8713_v30, %v12471_v9  ;;  %v6293_v8 = vadd.f32 %v8185_v59, %v5781_v18 }
 0x413   :  { %v7112_v34 = vadd.f32 %v7111_v6, %v7110_v36  ;;  %v7113_v47 = vsel %vm6545_vm13, %v6277_v10, 0.0  ;;  %vm2749_vm10 = vcmp.gt.f32.partialorder %v15371_v3, %v15367_v37  ;;  %v8201_v45 = vsel %vm2725_vm4, 1.0, %v15253_v54  ;;  %v15372_v36 = vld [vmem:[#allocation25_spill] sm:$0xff]  ;;  %v15373_v10 = vld [vmem:[#allocation26_spill] sm:$0xff]  ;;  %v15386_v3 = vld [vmem:[#allocation39_spill] sm:$0xff] }
 0x414   :  { %v8729_v1 = vsel %vm4277_vm2, 1.0, %v15253_v54  ;;  %vm4293_vm3 = vcmp.eq.f32.partialorder %v15372_v36, %v15367_v37  ;;  %v5805_v6 = vmul.f32 %v8721_v35, %v12483_v24  ;;  %v6301_v9 = vadd.f32 %v8193_v40, %v5789_v43 }
 0x415   :  { %v7114_v33 = vadd.f32 %v7113_v47, %v7112_v34  ;;  %v7115_v18 = vsel %vm6545_vm13, %v6285_v7, 0.0  ;;  %vm2757_vm7 = vcmp.gt.f32.partialorder %v15372_v36, %v15367_v37  ;;  %vm2765_vm6 = vcmp.gt.f32.partialorder %v15373_v10, %v15367_v37 }
 0x416   :  { %v8737_v59 = vsel %vm4285_vm15, 1.0, %v15253_v54  ;;  %vm4301_vm9 = vcmp.eq.f32.partialorder %v15373_v10, %v15367_v37  ;;  %v5813_v34 = vmul.f32 %v8729_v1, %v12495_v19  ;;  %v6309_v47 = vadd.f32 %v8201_v45, %v5797_v49  ;;  %v15375_v45 = vld [vmem:[#allocation28_spill] sm:$0xff] }
 0x417   :  { %v7116_v30 = vadd.f32 %v7115_v18, %v7114_v33  ;;  %v7117_v24 = vsel %vm6545_vm13, %v6293_v8, 0.0  ;;  %v8209_v43 = vsel %vm2733_vm14, 1.0, %v15253_v54  ;;  %v8217_v7 = vsel %vm2741_vm8, 1.0, %v15253_v54  ;;  %v15374_v33 = vld [vmem:[#allocation27_spill] sm:$0xff] }
 0x418   :  { %v8745_v40 = vsel %vm4293_vm3, 1.0, %v15253_v54  ;;  %vm4309_vm11 = vcmp.eq.f32.partialorder %v15374_v33, %v15367_v37  ;;  %v5821_v19 = vmul.f32 %v8737_v59, %v12507_v13  ;;  %v6317_v49 = vadd.f32 %v8209_v43, %v5805_v6  ;;  %v15376_v6 = vld [vmem:[#allocation29_spill] sm:$0xff] }
 0x419   :  { %v7118_v35 = vadd.f32 %v7117_v24, %v7116_v30  ;;  %v7119_v8 = vsel %vm6545_vm13, %v6301_v9, 0.0  ;;  %vm2773_vm12 = vcmp.gt.f32.partialorder %v15374_v33, %v15367_v37  ;;  %vm2781_vm1 = vcmp.gt.f32.partialorder %v15375_v45, %v15367_v37 }
 0x41a   :  { %v8753_v1 = vsel %vm4301_vm9, 1.0, %v15253_v54  ;;  %vm4317_vm4 = vcmp.eq.f32.partialorder %v15375_v45, %v15367_v37  ;;  %v5829_v30 = vmul.f32 %v8745_v40, %v12519_v51  ;;  %v6325_v24 = vadd.f32 %v8217_v7, %v5813_v34  ;;  %v15377_v34 = vld [vmem:[#allocation30_spill] sm:$0xff] }
 0x41b   :  { %v7120_v18 = vadd.f32 %v7119_v8, %v7118_v35  ;;  %v7121_v13 = vsel %vm6545_vm13, %v6309_v47, 0.0  ;;  %vm2789_vm0 = vcmp.gt.f32.partialorder %v15376_v6, %v15367_v37  ;;  %v8225_v9 = vsel %vm2749_vm10, 1.0, %v15253_v54 }
 0x41c   :  { %v8761_v59 = vsel %vm4309_vm11, 1.0, %v15253_v54  ;;  %vm4325_vm5 = vcmp.eq.f32.partialorder %v15376_v6, %v15367_v37  ;;  %v5837_v35 = vmul.f32 0.0, %v8753_v1  ;;  %v6333_v8 = vadd.f32 %v8225_v9, %v5821_v19  ;;  %v15384_v6 = vld [vmem:[#allocation37_spill] sm:$0xff] }
 0x41d   :  { %v7122_v43 = vadd.f32 %v7121_v13, %v7120_v18  ;;  %v7123_v51 = vsel %vm6545_vm13, %v6317_v49, 0.0  ;;  %vm2797_vm14 = vcmp.gt.f32.partialorder %v15377_v34, %v15367_v37  ;;  %v8233_v47 = vsel %vm2757_vm7, 1.0, %v15253_v54  ;;  %v15378_v49 = vld [vmem:[#allocation31_spill] sm:$0xff] }
 0x41e   :  { %v8769_v7 = vsel %vm4317_vm4, 1.0, %v15253_v54  ;;  %vm4333_vm2 = vcmp.eq.f32.partialorder %v15377_v34, %v15367_v37  ;;  %v5845_v18 = vmul.f32 0.0, %v8761_v59  ;;  %v6341_v13 = vadd.f32 %v8233_v47, %v5829_v30 }
 0x41f   :  { %v7124_v40 = vadd.f32 %v7123_v51, %v7122_v43  ;;  %v7125_v19 = vsel %vm6545_vm13, %v6325_v24, 0.0  ;;  %vm2805_vm8 = vcmp.gt.f32.partialorder %v15378_v49, %v15367_v37  ;;  %v8241_v1 = vsel %vm2765_vm6, 1.0, %v15253_v54  ;;  %v15379_v24 = vld [vmem:[#allocation32_spill] sm:$0xff] }
 0x420   :  { %v8777_v9 = vsel %vm4325_vm5, 1.0, %v15253_v54  ;;  %vm4341_vm15 = vcmp.eq.f32.partialorder %v15378_v49, %v15367_v37  ;;  %v5853_v43 = vmul.f32 0.0, %v8769_v7  ;;  %v6349_v51 = vadd.f32 %v8241_v1, %v5837_v35 }
 0x421   :  { %v7126_v36 = vadd.f32 %v7125_v19, %v7124_v40  ;;  %v7127_v30 = vsel %vm6545_vm13, %v6333_v8, 0.0  ;;  %vm2813_vm10 = vcmp.gt.f32.partialorder %v15379_v24, %v15367_v37  ;;  %v8249_v59 = vsel %vm2773_vm12, 1.0, %v15253_v54  ;;  %v15380_v8 = vld [vmem:[#allocation33_spill] sm:$0xff] }
 0x422   :  { %v8785_v47 = vsel %vm4333_vm2, 1.0, %v15253_v54  ;;  %vm4349_vm3 = vcmp.eq.f32.partialorder %v15379_v24, %v15367_v37  ;;  %v5861_v40 = vmul.f32 0.0, %v8777_v9  ;;  %v6357_v19 = vadd.f32 %v8249_v59, %v5845_v18 }
 0x423   :  { %v7128_v10 = vadd.f32 %v7127_v30, %v7126_v36  ;;  %v7129_v35 = vsel %vm6545_vm13, %v6341_v13, 0.0  ;;  %vm2821_vm7 = vcmp.gt.f32.partialorder %v15380_v8, %v15367_v37  ;;  %v8257_v7 = vsel %vm2781_vm1, 1.0, %v15253_v54  ;;  %v15381_v13 = vld [vmem:[#allocation34_spill] sm:$0xff] }
 0x424   :  { %v8793_v1 = vsel %vm4341_vm15, 1.0, %v15253_v54  ;;  %vm4357_vm6 = vcmp.eq.f32.partialorder %v15380_v8, %v15367_v37  ;;  %v5869_v36 = vmul.f32 0.0, %v8785_v47  ;;  %v6365_v30 = vadd.f32 %v8257_v7, %v5853_v43 }
 0x425   :  { %v7130_v33 = vadd.f32 %v7129_v35, %v7128_v10  ;;  %v7131_v18 = vsel %vm6545_vm13, %v6349_v51, 0.0  ;;  %vm2829_vm9 = vcmp.gt.f32.partialorder %v15381_v13, %v15367_v37  ;;  %v8265_v9 = vsel %vm2789_vm0, 1.0, %v15253_v54  ;;  %v15382_v10 = vld [vmem:[#allocation35_spill] sm:$0xff]  ;;  %v15383_v35 = vld [vmem:[#allocation36_spill] sm:$0xff] }
 0x426   :  { %v8801_v59 = vsel %vm4349_vm3, 1.0, %v15253_v54  ;;  %vm2837_vm11 = vcmp.gt.f32.partialorder %v15382_v10, %v15367_v37  ;;  %vm4365_vm12 = vcmp.eq.f32.partialorder %v15381_v13, %v15367_v37  ;;  %v5877_v43 = vmul.f32 0.0, %v8793_v1 }
 0x427   :  { %v7132_v45 = vadd.f32 %v7131_v18, %v7130_v33  ;;  %v6373_v47 = vadd.f32 %v8265_v9, %v5861_v40  ;;  %v7133_v51 = vsel %vm6545_vm13, %v6357_v19, 0.0  ;;  %vm2845_vm1 = vcmp.gt.f32.partialorder %v15383_v35, %v15367_v37  ;;  %v15385_v9 = vld [vmem:[#allocation38_spill] sm:$0xff] }
 0x428   :  { %v8273_v7 = vsel %vm2797_vm14, 1.0, %v15253_v54  ;;  %v8809_v33 = vsel %vm4357_vm6, 1.0, %v15253_v54  ;;  %vm2853_vm4 = vcmp.gt.f32.partialorder %v15384_v6, %v15367_v37  ;;  %vm4373_vm0 = vcmp.eq.f32.partialorder %v15382_v10, %v15367_v37 }
 0x429   :  { %v7134_v18 = vadd.f32 %v7133_v51, %v7132_v45  ;;  %v5885_v40 = vmul.f32 0.0, %v8801_v59  ;;  %v6381_v1 = vadd.f32 %v8273_v7, %v5869_v36  ;;  %v7135_v19 = vsel %vm6545_vm13, %v6365_v30, 0.0  ;;  %v15387_v7 = vld [vmem:[#allocation40_spill] sm:$0xff] }
 0x42a   :  { %vm2861_vm5 = vcmp.gt.f32.partialorder %v15385_v9, %v15367_v37  ;;  %v8281_v34 = vsel %vm2805_vm8, 1.0, %v15253_v54  ;;  %v8817_v45 = vsel %vm4365_vm12, 1.0, %v15253_v54  ;;  %vm2869_vm14 = vcmp.gt.f32.partialorder %v15386_v3, %v15367_v37 }
 0x42b   :  { %v7136_v51 = vadd.f32 %v7135_v19, %v7134_v18  ;;  %vm4381_vm2 = vcmp.eq.f32.partialorder %v15383_v35, %v15367_v37  ;;  %v5893_v36 = vmul.f32 0.0, %v8809_v33  ;;  %v6389_v59 = vadd.f32 %v8281_v34, %v5877_v43  ;;  %v15389_v33 = vld [vmem:[#allocation42_spill] sm:$0xff] }
 0x42c   :  { %v7137_v30 = vsel %vm6545_vm13, %v6373_v47, 0.0  ;;  %vm2877_vm15 = vcmp.gt.f32.partialorder %v15387_v7, %v15367_v37  ;;  %v8289_v49 = vsel %vm2813_vm10, 1.0, %v15253_v54  ;;  %v8825_v18 = vsel %vm4373_vm0, 1.0, %v15253_v54 }
 0x42d   :  { %v7138_v19 = vadd.f32 %v7137_v30, %v7136_v51  ;;  %vm2885_vm8 = vcmp.gt.f32.partialorder %v15388_v48, %v15367_v37  ;;  %vm4389_vm3 = vcmp.eq.f32.partialorder %v15384_v6, %v15367_v37  ;;  %v5901_v34 = vmul.f32 0.0, %v8817_v45  ;;  %v15391_v45 = vld [vmem:[#allocation44_spill] sm:$0xff] }
 0x42e   :  { %v6397_v43 = vadd.f32 %v8289_v49, %v5885_v40  ;;  %v7139_v47 = vsel %vm6545_vm13, %v6381_v1, 0.0  ;;  %vm2893_vm6 = vcmp.gt.f32.partialorder %v15389_v33, %v15367_v37  ;;  %v8297_v24 = vsel %vm2821_vm7, 1.0, %v15253_v54 }
 0x42f   :  { %v8833_v51 = vsel %vm4381_vm2, 1.0, %v15253_v54  ;;  %v7140_v30 = vadd.f32 %v7139_v47, %v7138_v19  ;;  %vm2901_vm10 = vcmp.gt.f32.partialorder %v15390_v44, %v15367_v37  ;;  %vm4397_vm12 = vcmp.eq.f32.partialorder %v15385_v9, %v15367_v37 }
 0x430   :  { %v5909_v49 = vmul.f32 0.0, %v8825_v18  ;;  %v6405_v40 = vadd.f32 %v8297_v24, %v5893_v36  ;;  %v7141_v1 = vsel %vm6545_vm13, %v6389_v59, 0.0  ;;  %vm2909_vm0 = vcmp.gt.f32.partialorder %v15391_v45, %v15367_v37 }
 0x431   :  { %v8305_v8 = vsel %vm2829_vm9, 1.0, %v15253_v54  ;;  %v8841_v19 = vsel %vm4389_vm3, 1.0, %v15253_v54  ;;  %v7142_v47 = vadd.f32 %v7141_v1, %v7140_v30  ;;  %vm4405_vm7 = vcmp.eq.f32.partialorder %v15386_v3, %v15367_v37 }
 0x432   :  { %v5917_v32 = vmul.f32 0.0, %v8833_v51  ;;  %v6413_v31 = vadd.f32 %v8305_v8, %v5901_v34  ;;  %v7143_v24 = vsel %vm6545_vm13, %v6397_v43, 0.0  ;;  %v8313_v36 = vsel %vm2837_vm11, 1.0, %v15253_v54 }
 0x433   :  { %v8321_v59 = vsel %vm2845_vm1, 1.0, %v15253_v54  ;;  %v8849_v18 = vsel %vm4397_vm12, 1.0, %v15253_v54  ;;  %v7144_v30 = vadd.f32 %v7143_v24, %v7142_v47  ;;  %vm4413_vm9 = vcmp.eq.f32.partialorder %v15387_v7, %v15367_v37 }
 0x434   :  { %v5925_v51 = vmul.f32 0.0, %v8841_v19  ;;  %v6421_v8 = vadd.f32 %v8313_v36, %v5909_v49  ;;  %v7145_v34 = vsel %vm6545_vm13, %v6405_v40, 0.0  ;;  %v8329_v43 = vsel %vm2853_vm4, 1.0, %v15253_v54 }
 0x435   :  { %v8337_v1 = vsel %vm2861_vm5, 1.0, %v15253_v54  ;;  %v8857_v35 = vsel %vm4405_vm7, 1.0, %v15253_v54  ;;  %v7146_v47 = vadd.f32 %v7145_v34, %v7144_v30  ;;  %vm4421_vm11 = vcmp.eq.f32.partialorder %v15388_v48, %v15367_v37  ;;  %v15393_v48 = vld [vmem:[#allocation48_spill] sm:$0xff] }
 0x436   :  { %v5933_v19 = vmul.f32 0.0, %v8849_v18  ;;  %v6429_v49 = vadd.f32 %v8321_v59, %v5917_v32  ;;  %v7147_v40 = vsel %vm6545_vm13, %v6413_v31, 0.0  ;;  %v8345_v24 = vsel %vm2869_vm14, 1.0, %v15253_v54 }
 0x437   :  { %v8353_v36 = vsel %vm2877_vm15, 1.0, %v15253_v54  ;;  %v8865_v9 = vsel %vm4413_vm9, 1.0, %v15253_v54  ;;  %v7148_v30 = vadd.f32 %v7147_v40, %v7146_v47  ;;  %vm2917_vm1 = vcmp.gt.f32.partialorder %v15362_v57, %v15367_v37 }
 0x438   :  { %vm4429_vm4 = vcmp.eq.f32.partialorder %v15389_v33, %v15367_v37  ;;  %v5941_v31 = vmul.f32 0.0, %v8857_v35  ;;  %v6437_v32 = vadd.f32 %v8329_v43, %v5925_v51  ;;  %v7149_v59 = vsel %vm6545_vm13, %v6421_v8, 0.0  ;;  %v15392_v43 = vld [vmem:[#allocation47_spill] sm:$0xff] }
 0x439   :  { %v8361_v18 = vsel %vm2885_vm8, 1.0, %v15253_v54  ;;  %v8369_v34 = vsel %vm2893_vm6, 1.0, %v15253_v54  ;;  %v8873_v47 = vsel %vm4421_vm11, 1.0, %v15253_v54  ;;  %v7150_v40 = vadd.f32 %v7149_v59, %v7148_v30 }
 0x43a   :  { %vm2925_vm5 = vcmp.gt.f32.partialorder %v15363_v29, %v15367_v37  ;;  %vm4437_vm14 = vcmp.eq.f32.partialorder %v15390_v44, %v15367_v37  ;;  %v5949_v35 = vmul.f32 0.0, %v8865_v9  ;;  %v6445_v51 = vadd.f32 %v8337_v1, %v5933_v19 }
 0x43b   :  { %v7151_v8 = vsel %vm6545_vm13, %v6429_v49, 0.0  ;;  %vm2933_vm2 = vcmp.gt.f32.partialorder %v15392_v43, %v15367_v37  ;;  %vm2941_vm15 = vcmp.gt.f32.partialorder %v15393_v48, %v15367_v37  ;;  %v8377_v30 = vsel %vm2901_vm10, 1.0, %v15253_v54 }
 0x43c   :  { %v8385_v59 = vsel %vm2909_vm0, 1.0, %v15253_v54  ;;  %v8881_v9 = vsel %vm4429_vm4, 1.0, %v15253_v54  ;;  %v7152_v1 = vadd.f32 %v7151_v8, %v7150_v40  ;;  %vm4445_vm8 = vcmp.eq.f32.partialorder %v15391_v45, %v15367_v37 }
 0x43d   :  { %v5957_v19 = vmul.f32 0.0, %v8873_v47  ;;  %v6453_v49 = vadd.f32 %v8345_v24, %v5941_v31  ;;  %v7153_v7 = vsel %vm6545_vm13, %v6437_v32, 0.0  ;;  %vm2949_vm3 = vcmp.gt.f32.partialorder %v15365_v39, %v15367_v37 }
 0x43e   :  { %vm2957_vm6 = vcmp.gt.f32.partialorder %v15366_v38, %v15367_v37  ;;  %vm4453_vm10 = vcmp.eq.f32.partialorder %v15362_v57, %v15367_v37  ;;  %vm4461_vm12 = vcmp.eq.f32.partialorder %v15363_v29, %v15367_v37  ;;  %v8889_v47 = vsel %vm4437_vm14, 1.0, %v15253_v54 }
 0x43f   :  { %v7154_v24 = vadd.f32 %v7153_v7, %v7152_v1  ;;  %vm4469_vm0 = vcmp.eq.f32.partialorder %v15392_v43, %v15367_v37  ;;  %v5965_v31 = vmul.f32 0.0, %v8881_v9  ;;  %v6461_v32 = vadd.f32 %v8353_v36, %v5949_v35 }
 0x440   :  { %v7155_v40 = vsel %vm6545_vm13, %v6445_v51, 0.0  ;;  %vm4477_vm7 = vcmp.eq.f32.partialorder %v15393_v48, %v15367_v37  ;;  %vm4485_vm9 = vcmp.eq.f32.partialorder %v15365_v39, %v15367_v37  ;;  %v8897_v8 = vsel %vm4445_vm8, 1.0, %v15253_v54 }
 0x441   :  { %v7156_v44 = vadd.f32 %v7155_v40, %v7154_v24  ;;  %v8905_v7 = vsel %vm4453_vm10, 1.0, %v15253_v54  ;;  %v5973_v1 = vmul.f32 0.0, %v8889_v47  ;;  %v6469_v33 = vadd.f32 %v8361_v18, %v5957_v19 }
 0x442   :  { %v7157_v36 = vsel %vm6545_vm13, %v6453_v49, 0.0  ;;  %vm4493_vm11 = vcmp.eq.f32.partialorder %v15366_v38, %v15367_v37  ;;  %v8913_v35 = vsel %vm4461_vm12, 1.0, %v15253_v54  ;;  %v8921_v51 = vsel %vm4469_vm0, 1.0, %v15253_v54 }
 0x443   :  { %v7158_v9 = vadd.f32 %v7157_v36, %v7156_v44  ;;  %v8929_v45 = vsel %vm4477_vm7, 1.0, %v15253_v54  ;;  %v5981_v24 = vmul.f32 0.0, %v8897_v8  ;;  %v6477_v40 = vadd.f32 %v8369_v34, %v5965_v31 }
 0x444   :  { %v7159_v47 = vsel %vm6545_vm13, %v6461_v32, 0.0  ;;  %v8393_v18 = vsel %vm2917_vm1, 1.0, %v15253_v54  ;;  %v8937_v19 = vsel %vm4485_vm9, 1.0, %v15253_v54  ;;  %v5989_v49 = vmul.f32 0.0, %v8905_v7 }
 0x445   :  { %v7160_v3 = vadd.f32 %v7159_v47, %v7158_v9  ;;  %v8945_v44 = vsel %vm4493_vm11, 1.0, %v15253_v54  ;;  %v5997_v36 = vmul.f32 0.0, %v8913_v35  ;;  %v6485_v6 = vadd.f32 %v8377_v30, %v5973_v1 }
 0x446   :  { %v7161_v34 = vsel %vm6545_vm13, %v6469_v33, 0.0  ;;  %v8401_v31 = vsel %vm2925_vm5, 1.0, %v15253_v54  ;;  %v6005_v32 = vmul.f32 0.0, %v8921_v51  ;;  %v6013_v8 = vmul.f32 0.0, %v8929_v45 }
 0x447   :  { %v7162_v57 = vadd.f32 %v7161_v34, %v7160_v3  ;;  %v8409_v7 = vsel %vm2933_vm2, 1.0, %v15253_v54  ;;  %v8417_v30 = vsel %vm2941_vm15, 1.0, %v15253_v54  ;;  %v6493_v1 = vadd.f32 %v8385_v59, %v5981_v24 }
 0x448   :  { %v7163_v33 = vsel %vm6545_vm13, %v6477_v40, 0.0  ;;  %v6021_v35 = vmul.f32 0.0, %v8937_v19  ;;  %v6029_v9 = vmul.f32 0.0, %v8945_v44  ;;  %v6501_v47 = vadd.f32 %v8393_v18, %v5989_v49  ;;  %v15394_v19 = vld [vmem:[#allocation17_spill] sm:$0xff] }
 0x449   :  { %v7164_v29 = vadd.f32 %v7163_v33, %v7162_v57  ;;  %v8425_v3 = vsel %vm2949_vm3, 1.0, %v15253_v54  ;;  %v8433_v45 = vsel %vm2957_vm6, 1.0, %v15253_v54  ;;  %v6509_v51 = vadd.f32 %v8401_v31, %v5997_v36 }
 0x44a   :  { %v7165_v34 = vsel %vm6545_vm13, %v6485_v6, 0.0  ;;  %v6517_v59 = vadd.f32 %v8409_v7, %v6005_v32  ;;  %v6525_v24 = vadd.f32 %v8417_v30, %v6013_v8  ;;  %vm2454_vm1 = vcmp.gt.f32.partialorder %v9507_v20, %v15394_v19 }
 0x44b   :  { %v7166_v40 = vadd.f32 %v7165_v34, %v7164_v29  ;;  %v7167_v57 = vsel %vm6545_vm13, %v6493_v1, 0.0  ;;  %vm2462_vm4 = vcmp.gt.f32.partialorder %v9511_v63, %v15394_v19  ;;  %vm3990_vm5 = vcmp.eq.f32.partialorder %v9507_v20, %v15394_v19 }
 0x44c   :  { %vm3998_vm14 = vcmp.eq.f32.partialorder %v9511_v63, %v15394_v19  ;;  %v6533_v37 = vadd.f32 %v8425_v3, %v6021_v35  ;;  %v6541_v18 = vadd.f32 %v8433_v45, %v6029_v9  ;;  %v7169_v49 = vsel %vm6545_vm13, %v6501_v47, 0.0 }
 0x44d   :  { %v7168_v6 = vadd.f32 %v7167_v57, %v7166_v40  ;;  %v7171_v29 = vsel %vm6545_vm13, %v6509_v51, 0.0  ;;  %vm2470_vm2 = vcmp.gt.f32.partialorder %v9516_v61, %v15394_v19  ;;  %v7930_v44 = vsel %vm2454_vm1, 1.0, %v15253_v54 }
 0x44e   :  { %vm4006_vm15 = vcmp.eq.f32.partialorder %v9516_v61, %v15394_v19  ;;  %v7938_v31 = vsel %vm2462_vm4, 1.0, %v15253_v54  ;;  %v8442_v32 = vsel %vm3990_vm5, 1.0, %v15253_v54  ;;  %v8450_v8 = vsel %vm3998_vm14, 1.0, %v15253_v54 }
 0x44f   :  { %v7170_v36 = vadd.f32 %v7169_v49, %v7168_v6  ;;  %v7173_v7 = vsel %vm6545_vm13, %v6517_v59, 0.0  ;;  %v7175_v30 = vsel %vm6545_vm13, %v6525_v24, 0.0  ;;  %vm2478_vm8 = vcmp.gt.f32.partialorder %v9523_v16, %v15394_v19 }
 0x450   :  { %vm4014_vm3 = vcmp.eq.f32.partialorder %v9523_v16, %v15394_v19  ;;  %v7177_v33 = vsel %vm6545_vm13, %v6533_v37, 0.0  ;;  %v7946_v35 = vsel %vm2470_vm2, 1.0, %v15253_v54  ;;  %v8458_v9 = vsel %vm4006_vm15, 1.0, %v15253_v54 }
 0x451   :  { %v7172_v1 = vadd.f32 %v7171_v29, %v7170_v36  ;;  %vm2486_vm6 = vcmp.gt.f32.partialorder %v9526_v4, %v15394_v19  ;;  %vm4022_vm10 = vcmp.eq.f32.partialorder %v9526_v4, %v15394_v19  ;;  %v6038_v47 = vadd.f32 %v8442_v32, %v7930_v44 }
 0x452   :  { %v6046_v3 = vadd.f32 %v8450_v8, %v7938_v31  ;;  %v7179_v51 = vsel %vm6545_vm13, %v6541_v18, 0.0  ;;  %v7954_v34 = vsel %vm2478_vm8, 1.0, %v15253_v54  ;;  %v8466_v59 = vsel %vm4014_vm3, 1.0, %v15253_v54 }
 0x453   :  { %v7174_v45 = vadd.f32 %v7173_v7, %v7172_v1  ;;  %vm2494_vm12 = vcmp.gt.f32.partialorder %v9533_v55, %v15394_v19  ;;  %vm2502_vm0 = vcmp.gt.f32.partialorder %v9536_v22, %v15394_v19  ;;  %vm4030_vm7 = vcmp.eq.f32.partialorder %v9533_v55, %v15394_v19 }
 0x454   :  { %v6054_v24 = vadd.f32 %v8458_v9, %v7946_v35  ;;  %vm2510_vm9 = vcmp.gt.f32.partialorder %v9539_v23, %v15394_v19  ;;  %v7962_v57 = vsel %vm2486_vm6, 1.0, %v15253_v54  ;;  %v8474_v37 = vsel %vm4022_vm10, 1.0, %v15253_v54 }
 0x455   :  { %v7176_v40 = vadd.f32 %v7175_v30, %v7174_v45  ;;  %vm4038_vm11 = vcmp.eq.f32.partialorder %v9536_v22, %v15394_v19  ;;  %v6062_v18 = vadd.f32 %v8466_v59, %v7954_v34  ;;  %v7181_v6 = vsel %vm6545_vm13, %v6038_v47, 0.0 }
 0x456   :  { %v7182_v49 = vsel %vm6545_vm13, %v6046_v3, 0.0  ;;  %v7970_v44 = vsel %vm2494_vm12, 1.0, %v15253_v54  ;;  %v8482_v36 = vsel %vm4030_vm7, 1.0, %v15253_v54  ;;  %vm2518_vm1 = vcmp.gt.f32.partialorder %v9542_v5, %v15394_v19 }
 0x457   :  { %v7178_v29 = vadd.f32 %v7177_v33, %v7176_v40  ;;  %v7183_v31 = vadd.f32 %v7182_v49, %v7181_v6  ;;  %vm4046_vm4 = vcmp.eq.f32.partialorder %v9539_v23, %v15394_v19  ;;  %v6070_v32 = vadd.f32 %v8474_v37, %v7962_v57 }
 0x458   :  { %v7184_v8 = vsel %vm6545_vm13, %v6054_v24, 0.0  ;;  %v7978_v30 = vsel %vm2502_vm0, 1.0, %v15253_v54  ;;  %v8490_v1 = vsel %vm4038_vm11, 1.0, %v15253_v54  ;;  %vm2526_vm5 = vcmp.gt.f32.partialorder %v9545_v0, %v15394_v19 }
 0x459   :  { %v7180_v7 = vadd.f32 %v7179_v51, %v7178_v29  ;;  %v7185_v33 = vadd.f32 %v7184_v8, %v7183_v31  ;;  %vm4054_vm14 = vcmp.eq.f32.partialorder %v9542_v5, %v15394_v19  ;;  %v6078_v35 = vadd.f32 %v8482_v36, %v7970_v44 }
 0x45a   :  { %v7186_v9 = vsel %vm6545_vm13, %v6062_v18, 0.0  ;;  %v7986_v47 = vsel %vm2510_vm9, 1.0, %v15253_v54  ;;  %v8498_v3 = vsel %vm4046_vm4, 1.0, %v15253_v54  ;;  %vm4062_vm15 = vcmp.eq.f32.partialorder %v9545_v0, %v15394_v19 }
 0x45b   :  { %vm7566_vm2 = vcmp.lt.f32.partialorder %v7180_v7, 32.0  ;;  %v7187_v45 = vadd.f32 %v7186_v9, %v7185_v33  ;;  %v6086_v34 = vadd.f32 %v8490_v1, %v7978_v30  ;;  %v7188_v59 = vsel %vm6545_vm13, %v6070_v32, 0.0 }
 0x45c   :  { %v8953_v51 = vsel %vm7566_vm2, 1.0, %v15253_v54  ;;  %v7994_v24 = vsel %vm2518_vm1, 1.0, %v15253_v54  ;;  %v8506_v40 = vsel %vm4054_vm14, 1.0, %v15253_v54  ;;  %vm2534_vm8 = vcmp.gt.f32.partialorder %v9548_v52, %v15394_v19 }
 0x45d   :  { %7590 = vxpose.xlu1.b32.cont [5/8] (short) (narrow) %v8953_v51, 16  ;;  %v7189_v57 = vadd.f32 %v7188_v59, %v7187_v45  ;;  %vm4070_vm3 = vcmp.eq.f32.partialorder %v9548_v52, %v15394_v19  ;;  %v6094_v37 = vadd.f32 %v8498_v3, %v7986_v47  ;;  %v7190_v18 = vsel %vm6545_vm13, %v6078_v35, 0.0 }
 0x45e   :  { %v8002_v6 = vsel %vm2526_vm5, 1.0, %v15253_v54  ;;  %v8514_v49 = vsel %vm4062_vm15, 1.0, %v15253_v54  ;;  %vm2542_vm6 = vcmp.gt.f32.partialorder %v9551_v27, %v15394_v19  ;;  %vm4078_vm10 = vcmp.eq.f32.partialorder %v9551_v27, %v15394_v19 }
 0x45f   :  { %v7191_v29 = vadd.f32 %v7190_v18, %v7189_v57  ;;  %v6102_v44 = vadd.f32 %v8506_v40, %v7994_v24  ;;  %v7192_v36 = vsel %vm6545_vm13, %v6086_v34, 0.0  ;;  %v8010_v31 = vsel %vm2534_vm8, 1.0, %v15253_v54 }
 0x460   :  { %v8522_v32 = vsel %vm4070_vm3, 1.0, %v15253_v54  ;;  %vm2550_vm12 = vcmp.gt.f32.partialorder %v9554_v50, %v15394_v19  ;;  %vm4086_vm0 = vcmp.eq.f32.partialorder %v9554_v50, %v15394_v19  ;;  %v6110_v7 = vadd.f32 %v8514_v49, %v8002_v6 }
 0x461   :  { %v7193_v8 = vadd.f32 %v7192_v36, %v7191_v29  ;;  %v7194_v30 = vsel %vm6545_vm13, %v6094_v37, 0.0  ;;  %v8018_v1 = vsel %vm2542_vm6, 1.0, %v15253_v54  ;;  %v8530_v33 = vsel %vm4078_vm10, 1.0, %v15253_v54 }
 0x462   :  { %vm2558_vm7 = vcmp.gt.f32.partialorder %v9557_v11, %v15394_v19  ;;  %vm4094_vm9 = vcmp.eq.f32.partialorder %v9557_v11, %v15394_v19  ;;  %v6118_v9 = vadd.f32 %v8522_v32, %v8010_v31  ;;  %v7196_v47 = vsel %vm6545_vm13, %v6102_v44, 0.0 }
 0x463   :  { %v7195_v35 = vadd.f32 %v7194_v30, %v7193_v8  ;;  %v8026_v3 = vsel %vm2550_vm12, 1.0, %v15253_v54  ;;  %v8538_v45 = vsel %vm4086_vm0, 1.0, %v15253_v54  ;;  %vm2566_vm11 = vcmp.gt.f32.partialorder %v9560_v25, %v15394_v19 }
 0x464   :  { %vm4102_vm1 = vcmp.eq.f32.partialorder %v9560_v25, %v15394_v19  ;;  %v6126_v34 = vadd.f32 %v8530_v33, %v8018_v1  ;;  %v7198_v59 = vsel %vm6545_vm13, %v6110_v7, 0.0  ;;  %v8034_v24 = vsel %vm2558_vm7, 1.0, %v15253_v54 }
 0x465   :  { %v7197_v51 = vadd.f32 %v7196_v47, %v7195_v35  ;;  %v8546_v40 = vsel %vm4094_vm9, 1.0, %v15253_v54  ;;  %vm2574_vm4 = vcmp.gt.f32.partialorder %v15341_v41, %v15394_v19  ;;  %vm4110_vm5 = vcmp.eq.f32.partialorder %v15341_v41, %v15394_v19 }
 0x466   :  { %v6134_v37 = vadd.f32 %v8538_v45, %v8026_v3  ;;  %v7200_v18 = vsel %vm6545_vm13, %v6118_v9, 0.0  ;;  %v8042_v6 = vsel %vm2566_vm11, 1.0, %v15253_v54  ;;  %v8554_v49 = vsel %vm4102_vm1, 1.0, %v15253_v54 }
 0x467   :  { %v7199_v57 = vadd.f32 %v7198_v59, %v7197_v51  ;;  %vm2582_vm14 = vcmp.gt.f32.partialorder %v9570_v56, %v15394_v19  ;;  %vm4118_vm2 = vcmp.eq.f32.partialorder %v9570_v56, %v15394_v19  ;;  %v6142_v44 = vadd.f32 %v8546_v40, %v8034_v24 }
 0x468   :  { %v7202_v36 = vsel %vm6545_vm13, %v6126_v34, 0.0  ;;  %v8050_v31 = vsel %vm2574_vm4, 1.0, %v15253_v54  ;;  %v8562_v32 = vsel %vm4110_vm5, 1.0, %v15253_v54  ;;  %vm2590_vm15 = vcmp.gt.f32.partialorder %v9573_v12, %v15394_v19 }
 0x469   :  { %v7201_v29 = vadd.f32 %v7200_v18, %v7199_v57  ;;  %vm4126_vm8 = vcmp.eq.f32.partialorder %v9573_v12, %v15394_v19  ;;  %v6150_v7 = vadd.f32 %v8554_v49, %v8042_v6  ;;  %v7204_v30 = vsel %vm6545_vm13, %v6134_v37, 0.0 }
 0x46a   :  { %v8058_v1 = vsel %vm2582_vm14, 1.0, %v15253_v54  ;;  %v8570_v33 = vsel %vm4118_vm2, 1.0, %v15253_v54  ;;  %vm2598_vm3 = vcmp.gt.f32.partialorder %v9576_v60, %v15394_v19  ;;  %vm4134_vm6 = vcmp.eq.f32.partialorder %v9576_v60, %v15394_v19 }
 0x46b   :  { %v7203_v8 = vadd.f32 %v7202_v36, %v7201_v29  ;;  %v6158_v9 = vadd.f32 %v8562_v32, %v8050_v31  ;;  %v7206_v47 = vsel %vm6545_vm13, %v6142_v44, 0.0  ;;  %v8066_v3 = vsel %vm2590_vm15, 1.0, %v15253_v54 }
 0x46c   :  { %v8578_v45 = vsel %vm4126_vm8, 1.0, %v15253_v54  ;;  %vm2606_vm10 = vcmp.gt.f32.partialorder %v9579_v14, %v15394_v19  ;;  %vm4142_vm12 = vcmp.eq.f32.partialorder %v9579_v14, %v15394_v19  ;;  %v6166_v34 = vadd.f32 %v8570_v33, %v8058_v1 }
 0x46d   :  { %v7205_v35 = vadd.f32 %v7204_v30, %v7203_v8  ;;  %v7208_v59 = vsel %vm6545_vm13, %v6150_v7, 0.0  ;;  %v8074_v24 = vsel %vm2598_vm3, 1.0, %v15253_v54  ;;  %v8586_v40 = vsel %vm4134_vm6, 1.0, %v15253_v54 }
 0x46e   :  { %vm2614_vm0 = vcmp.gt.f32.partialorder %v9582_v15, %v15394_v19  ;;  %vm4150_vm7 = vcmp.eq.f32.partialorder %v9582_v15, %v15394_v19  ;;  %v6174_v37 = vadd.f32 %v8578_v45, %v8066_v3  ;;  %v7210_v18 = vsel %vm6545_vm13, %v6158_v9, 0.0 }
 0x46f   :  { %v7207_v51 = vadd.f32 %v7206_v47, %v7205_v35  ;;  %v13071_v6 = vadd.s32 40, %v15281_v46  ;;  %v8082_v49 = vsel %vm2606_vm10, 1.0, %v15253_v54  ;;  %v8594_v29 = vsel %vm4142_vm12, 1.0, %v15253_v54 }
 0x470   :  { %vm2622_vm9 = vcmp.gt.f32.partialorder %v9585_v21, %v15394_v19  ;;  %vm4158_vm11 = vcmp.eq.f32.partialorder %v9585_v21, %v15394_v19  ;;  %v6182_v36 = vadd.f32 %v8586_v40, %v8074_v24  ;;  %v7212_v31 = vsel %vm6545_vm13, %v6166_v34, 0.0 }
 0x471   :  { %v7209_v57 = vadd.f32 %v7208_v59, %v7207_v51  ;;  %v8090_v32 = vsel %vm2614_vm0, 1.0, %v15253_v54  ;;  %v8602_v8 = vsel %vm4150_vm7, 1.0, %v15253_v54  ;;  %vm2630_vm1 = vcmp.gt.f32.partialorder %v15368_v42, %v15394_v19 }
 0x472   :  { %vm4166_vm4 = vcmp.eq.f32.partialorder %v15368_v42, %v15394_v19  ;;  %v6190_v30 = vadd.f32 %v8594_v29, %v8082_v49  ;;  %v7214_v1 = vsel %vm6545_vm13, %v6174_v37, 0.0  ;;  %vm918_vm5 = vcmp.gt.s32.totalorder %v13071_v6, 40 }
 0x473   :  { %v7211_v44 = vadd.f32 %v7210_v18, %v7209_v57  ;;  %v8098_v33 = vsel %vm2622_vm9, 1.0, %v15253_v54  ;;  %v8610_v35 = vsel %vm4158_vm11, 1.0, %v15253_v54  ;;  %vm2638_vm14 = vcmp.gt.f32.partialorder %v15369_v17, %v15394_v19  ;;  %v15395_v18 = vld [vmem:[#allocation66_spill] sm:$0xff] }
 0x474   :  { %vm4174_vm2 = vcmp.eq.f32.partialorder %v15369_v17, %v15394_v19  ;;  %v6198_v47 = vadd.f32 %v8602_v8, %v8090_v32  ;;  %v7216_v3 = vsel %vm6545_vm13, %v6182_v36, 0.0  ;;  %vm926_vm15 = vcmp.gt.s32.totalorder %v13071_v6, 41 }
 0x475   :  { %v7213_v7 = vadd.f32 %v7212_v31, %v7211_v44  ;;  %v8106_v45 = vsel %vm2630_vm1, 1.0, %v15253_v54  ;;  %v8618_v51 = vsel %vm4166_vm4, 1.0, %v15253_v54  ;;  %vm2646_vm8 = vcmp.gt.f32.partialorder %v9596_v62, %v15394_v19 }
 0x476   :  { %vm4182_vm3 = vcmp.eq.f32.partialorder %v9596_v62, %v15394_v19  ;;  %v6206_v59 = vadd.f32 %v8610_v35, %v8098_v33  ;;  %v7218_v24 = vsel %vm6545_vm13, %v6190_v30, 0.0  ;;  %vm934_vm6 = vcmp.gt.s32.totalorder %v13071_v6, 42  ;;  %v15417_v62 = vld [vmem:[#allocation41_spill] sm:$0xff] }
 0x477   :  { %v7215_v9 = vadd.f32 %v7214_v1, %v7213_v7  ;;  %v8114_v40 = vsel %vm2638_vm14, 1.0, %v15253_v54  ;;  %v8626_v57 = vsel %vm4174_vm2, 1.0, %v15253_v54  ;;  %vm2654_vm10 = vcmp.gt.f32.partialorder %v15395_v18, %v15394_v19 }
 0x478   :  { %vm4190_vm12 = vcmp.eq.f32.partialorder %v15395_v18, %v15394_v19  ;;  %v6214_v49 = vadd.f32 %v8618_v51, %v8106_v45  ;;  %v7220_v29 = vsel %vm6545_vm13, %v6198_v47, 0.0  ;;  %vm942_vm0 = vcmp.gt.s32.totalorder %v13071_v6, 43  ;;  %v15412_v18 = vld [vmem:[#allocation36_spill] sm:$0xff] }
 0x479   :  { %v7217_v34 = vadd.f32 %v7216_v3, %v7215_v9  ;;  %v8122_v44 = vsel %vm2646_vm8, 1.0, %v15253_v54  ;;  %v8634_v36 = vsel %vm4182_vm3, 1.0, %v15253_v54  ;;  %vm2662_vm7 = vcmp.gt.f32.partialorder %v9604_v58, %v15394_v19 }
 0x47a   :  { %vm4198_vm9 = vcmp.eq.f32.partialorder %v9604_v58, %v15394_v19  ;;  %v6222_v32 = vadd.f32 %v8626_v57, %v8114_v40  ;;  %v7222_v8 = vsel %vm6545_vm13, %v6206_v59, 0.0  ;;  %vm950_vm11 = vcmp.gt.s32.totalorder %v13071_v6, 44  ;;  %v15411_v58 = vld [vmem:[#allocation33_spill] sm:$0xff] }
 0x47b   :  { %v7219_v37 = vadd.f32 %v7218_v24, %v7217_v34  ;;  %v8130_v7 = vsel %vm2654_vm10, 1.0, %v15253_v54  ;;  %v8642_v30 = vsel %vm4190_vm12, 1.0, %v15253_v54  ;;  %vm958_vm1 = vcmp.gt.s32.totalorder %v13071_v6, 45 }
 0x47c   :  { %vm2670_vm4 = vcmp.gt.f32.partialorder %v9607_v28, %v15394_v19  ;;  %vm4206_vm14 = vcmp.eq.f32.partialorder %v9607_v28, %v15394_v19  ;;  %v6230_v33 = vadd.f32 %v8634_v36, %v8122_v44  ;;  %v7224_v35 = vsel %vm6545_vm13, %v6214_v49, 0.0  ;;  %v15410_v28 = vld [vmem:[#allocation32_spill] sm:$0xff] }
 0x47d   :  { %v7221_v31 = vadd.f32 %v7220_v29, %v7219_v37  ;;  %v13131_v9 = vsel %vm918_vm5, 1.0, %v15253_v54  ;;  %v8138_v47 = vsel %vm2662_vm7, 1.0, %v15253_v54  ;;  %v8650_v3 = vsel %vm4198_vm9, 1.0, %v15253_v54 }
 0x47e   :  { %vm966_vm2 = vcmp.gt.s32.totalorder %v13071_v6, 46  ;;  %vm2678_vm8 = vcmp.gt.f32.partialorder %v9612_v53, %v15394_v19  ;;  %vm4214_vm3 = vcmp.eq.f32.partialorder %v9612_v53, %v15394_v19  ;;  %v6238_v51 = vadd.f32 %v8642_v30, %v8130_v7  ;;  %v15409_v53 = vld [vmem:[#allocation31_spill] sm:$0xff] }
 0x47f   :  { %v7223_v1 = vadd.f32 %v7222_v8, %v7221_v31  ;;  %v7226_v34 = vsel %vm6545_vm13, %v6222_v32, 0.0  ;;  %v13144_v59 = vsel %vm926_vm15, 1.0, %v15253_v54  ;;  %v8146_v24 = vsel %vm2670_vm4, 1.0, %v15253_v54  ;;  %v15396_v32 = vld [vmem:[#allocation71_spill] sm:$0xff] }
 0x480   :  { %v8658_v40 = vsel %vm4206_vm14, 1.0, %v15253_v54  ;;  %vm2686_vm5 = vcmp.gt.f32.partialorder %v9615_v2, %v15394_v19  ;;  %vm4222_vm10 = vcmp.eq.f32.partialorder %v9615_v2, %v15394_v19  ;;  %v6246_v37 = vadd.f32 %v8650_v3, %v8138_v47  ;;  %v15397_v47 = vld [vmem:[#allocation72_spill] sm:$0xff] }
 0x481   :  { %v7225_v45 = vadd.f32 %v7224_v35, %v7223_v1  ;;  %v7228_v49 = vsel %vm6545_vm13, %v6230_v33, 0.0  ;;  %v13156_v29 = vsel %vm934_vm6, 1.0, %v15253_v54  ;;  %v8154_v44 = vsel %vm2678_vm8, 1.0, %v15253_v54 }
 0x482   :  { %v8666_v36 = vsel %vm4214_vm3, 1.0, %v15253_v54  ;;  %vm2694_vm15 = vcmp.gt.f32.partialorder %v15396_v32, %v15394_v19  ;;  %vm4230_vm12 = vcmp.eq.f32.partialorder %v15396_v32, %v15394_v19  ;;  %v6254_v8 = vadd.f32 %v8658_v40, %v8146_v24  ;;  %v15403_v32 = vld [vmem:[#allocation25_spill] sm:$0xff] }
 0x483   :  { %v7227_v57 = vadd.f32 %v7226_v34, %v7225_v45  ;;  %v7230_v7 = vsel %vm6545_vm13, %v6238_v51, 0.0  ;;  %v13168_v30 = vsel %vm942_vm0, 1.0, %v15253_v54  ;;  %v8162_v1 = vsel %vm2686_vm5, 1.0, %v15253_v54 }
 0x484   :  { %v8674_v33 = vsel %vm4222_vm10, 1.0, %v15253_v54  ;;  %vm2702_vm6 = vcmp.gt.f32.partialorder %v15397_v47, %v15394_v19  ;;  %vm4238_vm7 = vcmp.eq.f32.partialorder %v15397_v47, %v15394_v19  ;;  %v6262_v3 = vadd.f32 %v8666_v36, %v8154_v44  ;;  %v15401_v47 = vld [vmem:[#allocation23_spill] sm:$0xff] }
 0x485   :  { %v7229_v31 = vadd.f32 %v7228_v49, %v7227_v57  ;;  %v7232_v45 = vsel %vm6545_vm13, %v6246_v37, 0.0  ;;  %v13180_v51 = vsel %vm950_vm11, 1.0, %v15253_v54  ;;  %v8170_v34 = vsel %vm2694_vm15, 1.0, %v15253_v54 }
 0x486   :  { %v8682_v24 = vsel %vm4230_vm12, 1.0, %v15253_v54  ;;  %vm2710_vm0 = vcmp.gt.f32.partialorder %v15314_v26, %v15394_v19  ;;  %vm4246_vm9 = vcmp.eq.f32.partialorder %v15314_v26, %v15394_v19  ;;  %v6270_v57 = vadd.f32 %v8674_v33, %v8162_v1 }
 0x487   :  { %v7231_v35 = vadd.f32 %v7230_v7, %v7229_v31  ;;  %v7234_v49 = vsel %vm6545_vm13, %v6254_v8, 0.0  ;;  %v13192_v37 = vsel %vm958_vm1, 1.0, %v15253_v54  ;;  %v8178_v44 = vsel %vm2702_vm6, 1.0, %v15253_v54  ;;  %v15398_v7 = vld [vmem:[#allocation20_spill] sm:$0xff] }
 0x488   :  { %v8690_v36 = vsel %vm4238_vm7, 1.0, %v15253_v54  ;;  %vm2718_vm11 = vcmp.gt.f32.partialorder %v15398_v7, %v15394_v19  ;;  %vm4254_vm4 = vcmp.eq.f32.partialorder %v15398_v7, %v15394_v19  ;;  %v7236_v1 = vsel %vm6545_vm13, %v6262_v3, 0.0  ;;  %v15400_v3 = vld [vmem:[#allocation22_spill] sm:$0xff] }
 0x489   :  { %v7233_v40 = vadd.f32 %v7232_v45, %v7231_v35  ;;  %v6278_v35 = vadd.f32 %v8682_v24, %v8170_v34  ;;  %v13204_v8 = vsel %vm966_vm2, 1.0, %v15253_v54  ;;  %v8186_v33 = vsel %vm2710_vm0, 1.0, %v15253_v54 }
 0x48a   :  { %v8698_v45 = vsel %vm4246_vm9, 1.0, %v15253_v54  ;;  %v7238_v34 = vsel %vm6545_vm13, %v6270_v57, 0.0  ;;  %vm2734_vm8 = vcmp.gt.f32.partialorder %v15400_v3, %v15394_v19  ;;  %v8194_v6 = vsel %vm2718_vm11, 1.0, %v15253_v54 }
 0x48b   :  { %v7235_v31 = vadd.f32 %v7234_v49, %v7233_v40  ;;  %v15399_v40 = vld [vmem:[#allocation21_spill] sm:$0xff]  ;;  %v6286_v49 = vadd.f32 %v8690_v36, %v8178_v44  ;;  %v8706_v24 = vsel %vm4254_vm4, 1.0, %v15253_v54  ;;  %vm2742_vm2 = vcmp.gt.f32.partialorder %v15401_v47, %v15394_v19  ;;  %v15402_v44 = vld [vmem:[#allocation24_spill] sm:$0xff] }
 0x48c   :  { %vm2726_vm1 = vcmp.gt.f32.partialorder %v15399_v40, %v15394_v19  ;;  %vm4262_vm14 = vcmp.eq.f32.partialorder %v15399_v40, %v15394_v19  ;;  %vm4270_vm3 = vcmp.eq.f32.partialorder %v15400_v3, %v15394_v19  ;;  %vm2750_vm5 = vcmp.gt.f32.partialorder %v15402_v44, %v15394_v19 }
 0x48d   :  { %v7237_v26 = vadd.f32 %v7236_v1, %v7235_v31  ;;  %v6294_v31 = vadd.f32 %v8698_v45, %v8186_v33  ;;  %v7240_v1 = vsel %vm6545_vm13, %v6278_v35, 0.0  ;;  %v8202_v57 = vsel %vm2726_vm1, 1.0, %v15253_v54  ;;  %v15404_v33 = vld [vmem:[#allocation26_spill] sm:$0xff] }
 0x48e   :  { %v8714_v36 = vsel %vm4262_vm14, 1.0, %v15253_v54  ;;  %vm2758_vm10 = vcmp.gt.f32.partialorder %v15403_v32, %v15394_v19  ;;  %vm4278_vm15 = vcmp.eq.f32.partialorder %v15401_v47, %v15394_v19  ;;  %vm2766_vm12 = vcmp.gt.f32.partialorder %v15404_v33, %v15394_v19 }
 0x48f   :  { %v7239_v7 = vadd.f32 %v7238_v34, %v7237_v26  ;;  %v6302_v26 = vadd.f32 %v8706_v24, %v8194_v6  ;;  %v7242_v34 = vsel %vm6545_vm13, %v6286_v49, 0.0  ;;  %v8210_v35 = vsel %vm2734_vm8, 1.0, %v15253_v54  ;;  %v15406_v24 = vld [vmem:[#allocation28_spill] sm:$0xff] }
 0x490   :  { %v8722_v45 = vsel %vm4270_vm3, 1.0, %v15253_v54  ;;  %vm4286_vm7 = vcmp.eq.f32.partialorder %v15402_v44, %v15394_v19  ;;  %v6310_v6 = vadd.f32 %v8714_v36, %v8202_v57  ;;  %v7244_v49 = vsel %vm6545_vm13, %v6294_v31, 0.0  ;;  %v15407_v36 = vld [vmem:[#allocation29_spill] sm:$0xff] }
 0x491   :  { %v7241_v40 = vadd.f32 %v7240_v1, %v7239_v7  ;;  %v15405_v1 = vld [vmem:[#allocation27_spill] sm:$0xff]  ;;  %vm2782_vm0 = vcmp.gt.f32.partialorder %v15406_v24, %v15394_v19  ;;  %v8218_v3 = vsel %vm2742_vm2, 1.0, %v15253_v54  ;;  %v8730_v2 = vsel %vm4278_vm15, 1.0, %v15253_v54 }
 0x492   :  { %vm2774_vm6 = vcmp.gt.f32.partialorder %v15405_v1, %v15394_v19  ;;  %vm4294_vm9 = vcmp.eq.f32.partialorder %v15403_v32, %v15394_v19  ;;  %vm4310_vm11 = vcmp.eq.f32.partialorder %v15405_v1, %v15394_v19  ;;  %v6318_v57 = vadd.f32 %v8722_v45, %v8210_v35  ;;  %v15414_v1 = vld [vmem:[#allocation38_spill] sm:$0xff] }
 0x493   :  { %v7243_v7 = vadd.f32 %v7242_v34, %v7241_v40  ;;  %v7246_v31 = vsel %vm6545_vm13, %v6302_v26, 0.0  ;;  %vm2790_vm4 = vcmp.gt.f32.partialorder %v15407_v36, %v15394_v19  ;;  %v8226_v34 = vsel %vm2750_vm5, 1.0, %v15253_v54 }
 0x494   :  { %v8738_v47 = vsel %vm4286_vm7, 1.0, %v15253_v54  ;;  %vm2806_vm14 = vcmp.gt.f32.partialorder %v15409_v53, %v15394_v19  ;;  %vm4302_vm8 = vcmp.eq.f32.partialorder %v15404_v33, %v15394_v19  ;;  %vm4318_vm2 = vcmp.eq.f32.partialorder %v15406_v24, %v15394_v19  ;;  %v15416_v24 = vld [vmem:[#allocation40_spill] sm:$0xff] }
 0x495   :  { %v7245_v40 = vadd.f32 %v7244_v49, %v7243_v7  ;;  %v15408_v49 = vld [vmem:[#allocation30_spill] sm:$0xff]  ;;  %v6326_v26 = vadd.f32 %v8730_v2, %v8218_v3  ;;  %v7248_v35 = vsel %vm6545_vm13, %v6310_v6, 0.0  ;;  %v8234_v45 = vsel %vm2758_vm10, 1.0, %v15253_v54 }
 0x496   :  { %vm2798_vm1 = vcmp.gt.f32.partialorder %v15408_v49, %v15394_v19  ;;  %vm2814_vm3 = vcmp.gt.f32.partialorder %v15410_v28, %v15394_v19  ;;  %vm2822_vm5 = vcmp.gt.f32.partialorder %v15411_v58, %v15394_v19  ;;  %vm4326_vm15 = vcmp.eq.f32.partialorder %v15407_v36, %v15394_v19 }
 0x497   :  { %v7247_v7 = vadd.f32 %v7246_v31, %v7245_v40  ;;  %v8746_v40 = vsel %vm4294_vm9, 1.0, %v15253_v54  ;;  %v8762_v31 = vsel %vm4310_vm11, 1.0, %v15253_v54  ;;  %v6334_v2 = vadd.f32 %v8738_v47, %v8226_v34 }
 0x498   :  { %v7250_v3 = vsel %vm6545_vm13, %v6318_v57, 0.0  ;;  %v8242_v6 = vsel %vm2766_vm12, 1.0, %v15253_v54  ;;  %v8754_v32 = vsel %vm4302_vm8, 1.0, %v15253_v54  ;;  %vm2830_vm10 = vcmp.gt.f32.partialorder %v15381_v13, %v15394_v19 }
 0x499   :  { %v7249_v44 = vadd.f32 %v7248_v35, %v7247_v7  ;;  %v8770_v7 = vsel %vm4318_vm2, 1.0, %v15253_v54  ;;  %vm4334_vm7 = vcmp.eq.f32.partialorder %v15408_v49, %v15394_v19  ;;  %v5846_v47 = vmul.f32 %v8762_v31, %v13131_v9 }
 0x49a   :  { %v6342_v34 = vadd.f32 %v8746_v40, %v8234_v45  ;;  %v7252_v57 = vsel %vm6545_vm13, %v6326_v26, 0.0  ;;  %vm2838_vm9 = vcmp.gt.f32.partialorder %v15382_v10, %v15394_v19  ;;  %v8250_v33 = vsel %vm2774_vm6, 1.0, %v15253_v54  ;;  %v15413_v40 = vld [vmem:[#allocation37_spill] sm:$0xff] }
 0x49b   :  { %v7251_v35 = vadd.f32 %v7250_v3, %v7249_v44  ;;  %v8778_v44 = vsel %vm4326_vm15, 1.0, %v15253_v54  ;;  %vm2846_vm12 = vcmp.gt.f32.partialorder %v15412_v18, %v15394_v19  ;;  %vm4342_vm11 = vcmp.eq.f32.partialorder %v15409_v53, %v15394_v19 }
 0x49c   :  { %v5854_v9 = vmul.f32 %v8770_v7, %v13144_v59  ;;  %v6350_v26 = vadd.f32 %v8754_v32, %v8242_v6  ;;  %v7254_v45 = vsel %vm6545_vm13, %v6334_v2, 0.0  ;;  %vm2854_vm8 = vcmp.gt.f32.partialorder %v15413_v40, %v15394_v19  ;;  %v15415_v6 = vld [vmem:[#allocation39_spill] sm:$0xff] }
 0x49d   :  { %v7253_v3 = vadd.f32 %v7252_v57, %v7251_v35  ;;  %v8258_v31 = vsel %vm2782_vm0, 1.0, %v15253_v54  ;;  %v8786_v35 = vsel %vm4334_vm7, 1.0, %v15253_v54  ;;  %vm4350_vm2 = vcmp.eq.f32.partialorder %v15410_v28, %v15394_v19 }
 0x49e   :  { %v5862_v59 = vmul.f32 %v8778_v44, %v13156_v29  ;;  %v6358_v32 = vadd.f32 %v8250_v33, %v5846_v47  ;;  %v7256_v2 = vsel %vm6545_vm13, %v6342_v34, 0.0  ;;  %vm2870_vm15 = vcmp.gt.f32.partialorder %v15415_v6, %v15394_v19 }
 0x49f   :  { %v7255_v57 = vadd.f32 %v7254_v45, %v7253_v3  ;;  %v8266_v7 = vsel %vm2790_vm4, 1.0, %v15253_v54  ;;  %v8794_v3 = vsel %vm4342_vm11, 1.0, %v15253_v54  ;;  %vm2878_vm0 = vcmp.gt.f32.partialorder %v15416_v24, %v15394_v19 }
 0x4a0   :  { %vm2886_vm7 = vcmp.gt.f32.partialorder %v15417_v62, %v15394_v19  ;;  %vm4358_vm6 = vcmp.eq.f32.partialorder %v15411_v58, %v15394_v19  ;;  %v5870_v29 = vmul.f32 %v8786_v35, %v13168_v30  ;;  %v6366_v33 = vadd.f32 %v8258_v31, %v5854_v9  ;;  %v15418_v30 = vld [vmem:[#allocation42_spill] sm:$0xff]  ;;  %v15419_v9 = vld [vmem:[#allocation43_spill] sm:$0xff] }
 0x4a1   :  { %v7257_v45 = vadd.f32 %v7256_v2, %v7255_v57  ;;  %v7258_v47 = vsel %vm6545_vm13, %v6350_v26, 0.0  ;;  %v8274_v34 = vsel %vm2798_vm1, 1.0, %v15253_v54  ;;  %v8282_v44 = vsel %vm2806_vm14, 1.0, %v15253_v54 }
 0x4a2   :  { %v8802_v57 = vsel %vm4350_vm2, 1.0, %v15253_v54  ;;  %vm2894_vm4 = vcmp.gt.f32.partialorder %v15418_v30, %v15394_v19  ;;  %vm2902_vm11 = vcmp.gt.f32.partialorder %v15419_v9, %v15394_v19  ;;  %vm4366_vm1 = vcmp.eq.f32.partialorder %v15381_v13, %v15394_v19 }
 0x4a3   :  { %v7259_v2 = vadd.f32 %v7258_v47, %v7257_v45  ;;  %v5878_v26 = vmul.f32 %v8794_v3, %v13180_v51  ;;  %v6374_v31 = vadd.f32 %v8266_v7, %v5862_v59  ;;  %v7260_v35 = vsel %vm6545_vm13, %v6358_v32, 0.0  ;;  %v15420_v51 = vld [vmem:[#allocation44_spill] sm:$0xff]  ;;  %v15421_v59 = vld [vmem:[#allocation45_spill] sm:$0xff] }
 0x4a4   :  { %v8290_v53 = vsel %vm2814_vm3, 1.0, %v15253_v54  ;;  %v8298_v45 = vsel %vm2822_vm5, 1.0, %v15253_v54  ;;  %v8810_v47 = vsel %vm4358_vm6, 1.0, %v15253_v54  ;;  %vm2910_vm14 = vcmp.gt.f32.partialorder %v15420_v51, %v15394_v19 }
 0x4a5   :  { %v7261_v49 = vadd.f32 %v7260_v35, %v7259_v2  ;;  %vm2918_vm2 = vcmp.gt.f32.partialorder %v15421_v59, %v15394_v19  ;;  %vm4374_vm3 = vcmp.eq.f32.partialorder %v15382_v10, %v15394_v19  ;;  %v5886_v32 = vmul.f32 %v8802_v57, %v13192_v37  ;;  %v15422_v37 = vld [vmem:[#allocation46_spill] sm:$0xff] }
 0x4a6   :  { %v6382_v7 = vadd.f32 %v8274_v34, %v5870_v29  ;;  %v7262_v3 = vsel %vm6545_vm13, %v6366_v33, 0.0  ;;  %v8306_v58 = vsel %vm2830_vm10, 1.0, %v15253_v54  ;;  %v8314_v2 = vsel %vm2838_vm9, 1.0, %v15253_v54 }
 0x4a7   :  { %v8818_v35 = vsel %vm4366_vm1, 1.0, %v15253_v54  ;;  %v7263_v28 = vadd.f32 %v7262_v3, %v7261_v49  ;;  %vm2926_vm5 = vcmp.gt.f32.partialorder %v15422_v37, %v15394_v19  ;;  %vm4382_vm6 = vcmp.eq.f32.partialorder %v15412_v18, %v15394_v19 }
 0x4a8   :  { %v5894_v29 = vmul.f32 %v8810_v47, %v13204_v8  ;;  %v6390_v33 = vadd.f32 %v8282_v44, %v5878_v26  ;;  %v7264_v34 = vsel %vm6545_vm13, %v6374_v31, 0.0  ;;  %v8322_v57 = vsel %vm2846_vm12, 1.0, %v15253_v54 }
 0x4a9   :  { %v8330_v49 = vsel %vm2854_vm8, 1.0, %v15253_v54  ;;  %v8826_v3 = vsel %vm4374_vm3, 1.0, %v15253_v54  ;;  %v7265_v10 = vadd.f32 %v7264_v34, %v7263_v28  ;;  %vm4390_vm10 = vcmp.eq.f32.partialorder %v15413_v40, %v15394_v19 }
 0x4aa   :  { %v5902_v8 = vmul.f32 0.0, %v8818_v35  ;;  %v6398_v44 = vadd.f32 %v8290_v53, %v5886_v32  ;;  %v7266_v26 = vsel %vm6545_vm13, %v6382_v7, 0.0  ;;  %vm15423_vm9 = vcmp.gt.f32.partialorder %v15414_v1, %v15394_v19 }
 0x4ab   :  { %v8338_v31 = vsel %vm15423_vm9, 1.0, %v15253_v54  ;;  %v8346_v47 = vsel %vm2870_vm15, 1.0, %v15253_v54  ;;  %v8834_v18 = vsel %vm4382_vm6, 1.0, %v15253_v54  ;;  %v7267_v28 = vadd.f32 %v7266_v26, %v7265_v10 }
 0x4ac   :  { %vm4398_vm12 = vcmp.eq.f32.partialorder %v15414_v1, %v15394_v19  ;;  %v5910_v35 = vmul.f32 0.0, %v8826_v3  ;;  %v6406_v53 = vadd.f32 %v8298_v45, %v5894_v29  ;;  %v7268_v32 = vsel %vm6545_vm13, %v6390_v33, 0.0 }
 0x4ad   :  { %v8354_v7 = vsel %vm2878_vm0, 1.0, %v15253_v54  ;;  %v13427_v34 = vsel %vm2886_vm7, 1.0, %v15253_v54  ;;  %v8842_v10 = vsel %vm4390_vm10, 1.0, %v15253_v54  ;;  %v7269_v26 = vadd.f32 %v7268_v32, %v7267_v28 }
 0x4ae   :  { %vm4406_vm8 = vcmp.eq.f32.partialorder %v15415_v6, %v15394_v19  ;;  %v5918_v45 = vmul.f32 0.0, %v8834_v18  ;;  %v6414_v29 = vadd.f32 %v8306_v58, %v5902_v8  ;;  %v7270_v33 = vsel %vm6545_vm13, %v6398_v44, 0.0 }
 0x4af   :  { %v13437_v3 = vsel %vm2894_vm4, 1.0, %v15253_v54  ;;  %v13443_v1 = vsel %vm2902_vm11, 1.0, %v15253_v54  ;;  %v8850_v28 = vsel %vm4398_vm12, 1.0, %v15253_v54  ;;  %v7271_v32 = vadd.f32 %v7270_v33, %v7269_v26 }
 0x4b0   :  { %vm4414_vm15 = vcmp.eq.f32.partialorder %v15416_v24, %v15394_v19  ;;  %v5926_v58 = vmul.f32 0.0, %v8842_v10  ;;  %v6422_v18 = vadd.f32 %v8314_v2, %v5910_v35  ;;  %v7272_v8 = vsel %vm6545_vm13, %v6406_v53, 0.0 }
 0x4b1   :  { %v13453_v44 = vsel %vm2910_vm14, 1.0, %v15253_v54  ;;  %v13459_v6 = vsel %vm2918_vm2, 1.0, %v15253_v54  ;;  %v8858_v26 = vsel %vm4406_vm8, 1.0, %v15253_v54  ;;  %v7273_v33 = vadd.f32 %v7272_v8, %v7271_v32 }
 0x4b2   :  { %vm4422_vm0 = vcmp.eq.f32.partialorder %v15417_v62, %v15394_v19  ;;  %v5934_v2 = vmul.f32 0.0, %v8850_v28  ;;  %v6430_v35 = vadd.f32 %v8322_v57, %v5918_v45  ;;  %v7274_v53 = vsel %vm6545_vm13, %v6414_v29, 0.0 }
 0x4b3   :  { %v13469_v10 = vsel %vm2926_vm5, 1.0, %v15253_v54  ;;  %vm4430_vm7 = vcmp.eq.f32.partialorder %v15418_v30, %v15394_v19  ;;  %v8866_v24 = vsel %vm4414_vm15, 1.0, %v15253_v54  ;;  %v7275_v40 = vadd.f32 %v7274_v53, %v7273_v33 }
 0x4b4   :  { %vm2934_vm4 = vcmp.gt.f32.partialorder %v15392_v43, %v15394_v19  ;;  %vm2942_vm11 = vcmp.gt.f32.partialorder %v15393_v48, %v15394_v19  ;;  %vm4438_vm1 = vcmp.eq.f32.partialorder %v15419_v9, %v15394_v19  ;;  %v5942_v57 = vmul.f32 0.0, %v8858_v26 }
 0x4b5   :  { %v6438_v45 = vadd.f32 %v8330_v49, %v5926_v58  ;;  %v7276_v29 = vsel %vm6545_vm13, %v6422_v18, 0.0  ;;  %vm2950_vm14 = vcmp.gt.f32.partialorder %v15365_v39, %v15394_v19  ;;  %vm4446_vm2 = vcmp.eq.f32.partialorder %v15420_v51, %v15394_v19 }
 0x4b6   :  { %vm4454_vm3 = vcmp.eq.f32.partialorder %v15421_v59, %v15394_v19  ;;  %v8874_v28 = vsel %vm4422_vm0, 1.0, %v15253_v54  ;;  %v7277_v32 = vadd.f32 %v7276_v29, %v7275_v40  ;;  %vm4462_vm5 = vcmp.eq.f32.partialorder %v15422_v37, %v15394_v19 }
 0x4b7   :  { %v5950_v49 = vmul.f32 0.0, %v8866_v24  ;;  %v6446_v58 = vadd.f32 %v8338_v31, %v5934_v2  ;;  %v7278_v18 = vsel %vm6545_vm13, %v6430_v35, 0.0  ;;  %vm2958_vm6 = vcmp.gt.f32.partialorder %v15366_v38, %v15394_v19 }
 0x4b8   :  { %vm4470_vm10 = vcmp.eq.f32.partialorder %v15392_v43, %v15394_v19  ;;  %vm4478_vm9 = vcmp.eq.f32.partialorder %v15393_v48, %v15394_v19  ;;  %v8882_v40 = vsel %vm4430_vm7, 1.0, %v15253_v54  ;;  %v7279_v8 = vadd.f32 %v7278_v18, %v7277_v32 }
 0x4b9   :  { %vm4486_vm12 = vcmp.eq.f32.partialorder %v15365_v39, %v15394_v19  ;;  %v5958_v24 = vmul.f32 0.0, %v8874_v28  ;;  %v6454_v31 = vadd.f32 %v8346_v47, %v5942_v57  ;;  %v7280_v26 = vsel %vm6545_vm13, %v6438_v45, 0.0 }
 0x4ba   :  { %vm4494_vm8 = vcmp.eq.f32.partialorder %v15366_v38, %v15394_v19  ;;  %v8890_v33 = vsel %vm4438_vm1, 1.0, %v15253_v54  ;;  %v8898_v2 = vsel %vm4446_vm2, 1.0, %v15253_v54  ;;  %v7281_v35 = vadd.f32 %v7280_v26, %v7279_v8 }
 0x4bb   :  { %v8906_v47 = vsel %vm4454_vm3, 1.0, %v15253_v54  ;;  %v5966_v53 = vmul.f32 0.0, %v8882_v40  ;;  %v6462_v57 = vadd.f32 %v8354_v7, %v5950_v49  ;;  %v7282_v45 = vsel %vm6545_vm13, %v6446_v58, 0.0 }
 0x4bc   :  { %v8914_v29 = vsel %vm4462_vm5, 1.0, %v15253_v54  ;;  %v8922_v28 = vsel %vm4470_vm10, 1.0, %v15253_v54  ;;  %v8930_v32 = vsel %vm4478_vm9, 1.0, %v15253_v54  ;;  %v7283_v18 = vadd.f32 %v7282_v45, %v7281_v35 }
 0x4bd   :  { %v8938_v7 = vsel %vm4486_vm12, 1.0, %v15253_v54  ;;  %v5974_v49 = vmul.f32 0.0, %v8890_v33  ;;  %v6470_v58 = vadd.f32 %v13427_v34, %v5958_v24  ;;  %v7284_v40 = vsel %vm6545_vm13, %v6454_v31, 0.0 }
 0x4be   :  { %v8946_v8 = vsel %vm4494_vm8, 1.0, %v15253_v54  ;;  %v5982_v26 = vmul.f32 0.0, %v8898_v2  ;;  %v5990_v37 = vmul.f32 0.0, %v8906_v47  ;;  %v7285_v59 = vadd.f32 %v7284_v40, %v7283_v18 }
 0x4bf   :  { %v5998_v51 = vmul.f32 0.0, %v8914_v29  ;;  %v6006_v35 = vmul.f32 0.0, %v8922_v28  ;;  %v6478_v45 = vadd.f32 %v13437_v3, %v5966_v53  ;;  %v7286_v9 = vsel %vm6545_vm13, %v6462_v57, 0.0 }
 0x4c0   :  { %v8410_v34 = vsel %vm2934_vm4, 1.0, %v15253_v54  ;;  %v8418_v24 = vsel %vm2942_vm11, 1.0, %v15253_v54  ;;  %v6014_v31 = vmul.f32 0.0, %v8930_v32  ;;  %v7287_v33 = vadd.f32 %v7286_v9, %v7285_v59 }
 0x4c1   :  { %v8426_v2 = vsel %vm2950_vm14, 1.0, %v15253_v54  ;;  %v6022_v3 = vmul.f32 0.0, %v8938_v7  ;;  %v6486_v47 = vadd.f32 %v13443_v1, %v5974_v49  ;;  %v7288_v53 = vsel %vm6545_vm13, %v6470_v58, 0.0  ;;  %v15424_v49 = vld [vmem:[#allocation18_spill] sm:$0xff] }
 0x4c2   :  { %v6030_v57 = vmul.f32 0.0, %v8946_v8  ;;  %v6494_v29 = vadd.f32 %v13453_v44, %v5982_v26  ;;  %v6502_v28 = vadd.f32 %v13459_v6, %v5990_v37  ;;  %v7289_v18 = vadd.f32 %v7288_v53, %v7287_v33 }
 0x4c3   :  { %v8434_v9 = vsel %vm2958_vm6, 1.0, %v15253_v54  ;;  %v6510_v59 = vadd.f32 %v13469_v10, %v5998_v51  ;;  %v6518_v32 = vadd.f32 %v8410_v34, %v6006_v35  ;;  %v7290_v7 = vsel %vm6545_vm13, %v6478_v45, 0.0 }
 0x4c4   :  { %v6526_v40 = vadd.f32 %v8418_v24, %v6014_v31  ;;  %v7291_v1 = vadd.f32 %v7290_v7, %v7289_v18  ;;  %vm2455_vm15 = vcmp.gt.f32.partialorder %v9507_v20, %v15424_v49  ;;  %vm3991_vm0 = vcmp.eq.f32.partialorder %v9507_v20, %v15424_v49 }
 0x4c5   :  { %v6534_v6 = vadd.f32 %v8426_v2, %v6022_v3  ;;  %v7292_v37 = vsel %vm6545_vm13, %v6486_v47, 0.0  ;;  %vm2463_vm7 = vcmp.gt.f32.partialorder %v9511_v63, %v15424_v49  ;;  %vm3999_vm4 = vcmp.eq.f32.partialorder %v9511_v63, %v15424_v49 }
 0x4c6   :  { %v6542_v19 = vadd.f32 %v8434_v9, %v6030_v57  ;;  %v7293_v51 = vadd.f32 %v7292_v37, %v7291_v1  ;;  %v7294_v44 = vsel %vm6545_vm13, %v6494_v29, 0.0  ;;  %v7296_v10 = vsel %vm6545_vm13, %v6502_v28, 0.0 }
 0x4c7   :  { %vm2471_vm11 = vcmp.gt.f32.partialorder %v9516_v61, %v15424_v49  ;;  %v7931_v58 = vsel %vm2455_vm15, 1.0, %v15253_v54  ;;  %vm4007_vm1 = vcmp.eq.f32.partialorder %v9516_v61, %v15424_v49  ;;  %v8443_v8 = vsel %vm3991_vm0, 1.0, %v15253_v54 }
 0x4c8   :  { %v7295_v26 = vadd.f32 %v7294_v44, %v7293_v51  ;;  %v7298_v35 = vsel %vm6545_vm13, %v6510_v59, 0.0  ;;  %v7939_v45 = vsel %vm2463_vm7, 1.0, %v15253_v54  ;;  %v8451_v34 = vsel %vm3999_vm4, 1.0, %v15253_v54 }
 0x4c9   :  { %v7300_v24 = vsel %vm6545_vm13, %v6518_v32, 0.0  ;;  %v7302_v31 = vsel %vm6545_vm13, %v6526_v40, 0.0  ;;  %vm2479_vm14 = vcmp.gt.f32.partialorder %v9523_v16, %v15424_v49  ;;  %vm4015_vm2 = vcmp.eq.f32.partialorder %v9523_v16, %v15424_v49 }
 0x4ca   :  { %v7297_v33 = vadd.f32 %v7296_v10, %v7295_v26  ;;  %v7947_v2 = vsel %vm2471_vm11, 1.0, %v15253_v54  ;;  %v8459_v3 = vsel %vm4007_vm1, 1.0, %v15253_v54  ;;  %v6039_v47 = vadd.f32 %v8443_v8, %v7931_v58 }
 0x4cb   :  { %v7304_v53 = vsel %vm6545_vm13, %v6534_v6, 0.0  ;;  %vm2487_vm3 = vcmp.gt.f32.partialorder %v9526_v4, %v15424_v49  ;;  %vm4023_vm5 = vcmp.eq.f32.partialorder %v9526_v4, %v15424_v49  ;;  %v6047_v57 = vadd.f32 %v8451_v34, %v7939_v45 }
 0x4cc   :  { %v7299_v29 = vadd.f32 %v7298_v35, %v7297_v33  ;;  %v7306_v28 = vsel %vm6545_vm13, %v6542_v19, 0.0  ;;  %v7955_v18 = vsel %vm2479_vm14, 1.0, %v15253_v54  ;;  %v8467_v9 = vsel %vm4015_vm2, 1.0, %v15253_v54 }
 0x4cd   :  { %vm2495_vm6 = vcmp.gt.f32.partialorder %v9533_v55, %v15424_v49  ;;  %vm2503_vm10 = vcmp.gt.f32.partialorder %v9536_v22, %v15424_v49  ;;  %vm4031_vm9 = vcmp.eq.f32.partialorder %v9533_v55, %v15424_v49  ;;  %v6055_v59 = vadd.f32 %v8459_v3, %v7947_v2 }
 0x4ce   :  { %v7301_v32 = vadd.f32 %v7300_v24, %v7299_v29  ;;  %v7963_v7 = vsel %vm2487_vm3, 1.0, %v15253_v54  ;;  %v8475_v40 = vsel %vm4023_vm5, 1.0, %v15253_v54  ;;  %v7308_v1 = vsel %vm6545_vm13, %v6039_v47, 0.0 }
 0x4cf   :  { %vm2511_vm12 = vcmp.gt.f32.partialorder %v9539_v23, %v15424_v49  ;;  %vm4039_vm8 = vcmp.eq.f32.partialorder %v9536_v22, %v15424_v49  ;;  %v6063_v6 = vadd.f32 %v8467_v9, %v7955_v18  ;;  %v7309_v37 = vsel %vm6545_vm13, %v6047_v57, 0.0 }
 0x4d0   :  { %v7303_v19 = vadd.f32 %v7302_v31, %v7301_v32  ;;  %v7971_v51 = vsel %vm2495_vm6, 1.0, %v15253_v54  ;;  %v8483_v44 = vsel %vm4031_vm9, 1.0, %v15253_v54  ;;  %v7310_v10 = vadd.f32 %v7309_v37, %v7308_v1 }
 0x4d1   :  { %vm2519_vm15 = vcmp.gt.f32.partialorder %v9542_v5, %v15424_v49  ;;  %vm4047_vm0 = vcmp.eq.f32.partialorder %v9539_v23, %v15424_v49  ;;  %v6071_v58 = vadd.f32 %v8475_v40, %v7963_v7  ;;  %v7311_v8 = vsel %vm6545_vm13, %v6055_v59, 0.0 }
 0x4d2   :  { %v7305_v26 = vadd.f32 %v7304_v53, %v7303_v19  ;;  %v7979_v35 = vsel %vm2503_vm10, 1.0, %v15253_v54  ;;  %v8491_v45 = vsel %vm4039_vm8, 1.0, %v15253_v54  ;;  %v7312_v34 = vadd.f32 %v7311_v8, %v7310_v10 }
 0x4d3   :  { %vm2527_vm7 = vcmp.gt.f32.partialorder %v9545_v0, %v15424_v49  ;;  %vm4055_vm4 = vcmp.eq.f32.partialorder %v9542_v5, %v15424_v49  ;;  %v6079_v24 = vadd.f32 %v8483_v44, %v7971_v51  ;;  %v7313_v31 = vsel %vm6545_vm13, %v6063_v6, 0.0 }
 0x4d4   :  { %v7307_v33 = vadd.f32 %v7306_v28, %v7305_v26  ;;  %v7987_v2 = vsel %vm2511_vm12, 1.0, %v15253_v54  ;;  %v8499_v3 = vsel %vm4047_vm0, 1.0, %v15253_v54  ;;  %v7314_v47 = vadd.f32 %v7313_v31, %v7312_v34 }
 0x4d5   :  { %vm2535_vm11 = vcmp.gt.f32.partialorder %v9548_v52, %v15424_v49  ;;  %vm4063_vm1 = vcmp.eq.f32.partialorder %v9545_v0, %v15424_v49  ;;  %v6087_v53 = vadd.f32 %v8491_v45, %v7979_v35  ;;  %v7315_v57 = vsel %vm6545_vm13, %v6071_v58, 0.0 }
 0x4d6   :  { %vm7567_vm14 = vcmp.lt.f32.partialorder %v7307_v33, 32.0  ;;  %v7995_v29 = vsel %vm2519_vm15, 1.0, %v15253_v54  ;;  %v8507_v28 = vsel %vm4055_vm4, 1.0, %v15253_v54  ;;  %v7316_v18 = vadd.f32 %v7315_v57, %v7314_v47 }
 0x4d7   :  { %v8954_v9 = vsel %vm7567_vm14, 1.0, %v15253_v54  ;;  %vm4071_vm2 = vcmp.eq.f32.partialorder %v9548_v52, %v15424_v49  ;;  %v6095_v59 = vadd.f32 %v8499_v3, %v7987_v2  ;;  %v7317_v32 = vsel %vm6545_vm13, %v6079_v24, 0.0 }
 0x4d8   :  { %7591 = vxpose.xlu1.b32.cont [6/8] (short) (narrow) %v8954_v9, 16  ;;  %v8003_v7 = vsel %vm2527_vm7, 1.0, %v15253_v54  ;;  %v8515_v40 = vsel %vm4063_vm1, 1.0, %v15253_v54  ;;  %v7318_v1 = vadd.f32 %v7317_v32, %v7316_v18  ;;  %vm2543_vm3 = vcmp.gt.f32.partialorder %v9551_v27, %v15424_v49 }
 0x4d9   :  { %vm4079_vm5 = vcmp.eq.f32.partialorder %v9551_v27, %v15424_v49  ;;  %v6103_v6 = vadd.f32 %v8507_v28, %v7995_v29  ;;  %v7319_v37 = vsel %vm6545_vm13, %v6087_v53, 0.0  ;;  %v8011_v19 = vsel %vm2535_vm11, 1.0, %v15253_v54 }
 0x4da   :  { %v8523_v51 = vsel %vm4071_vm2, 1.0, %v15253_v54  ;;  %v7320_v44 = vadd.f32 %v7319_v37, %v7318_v1  ;;  %vm2551_vm6 = vcmp.gt.f32.partialorder %v9554_v50, %v15424_v49  ;;  %vm4087_vm10 = vcmp.eq.f32.partialorder %v9554_v50, %v15424_v49 }
 0x4db   :  { %v6111_v10 = vadd.f32 %v8515_v40, %v8003_v7  ;;  %v7321_v58 = vsel %vm6545_vm13, %v6095_v59, 0.0  ;;  %v8019_v8 = vsel %vm2543_vm3, 1.0, %v15253_v54  ;;  %v8531_v26 = vsel %vm4079_vm5, 1.0, %v15253_v54 }
 0x4dc   :  { %v7322_v35 = vadd.f32 %v7321_v58, %v7320_v44  ;;  %vm2559_vm9 = vcmp.gt.f32.partialorder %v9557_v11, %v15424_v49  ;;  %vm4095_vm12 = vcmp.eq.f32.partialorder %v9557_v11, %v15424_v49  ;;  %v6119_v45 = vadd.f32 %v8523_v51, %v8011_v19 }
 0x4dd   :  { %v7323_v34 = vsel %vm6545_vm13, %v6103_v6, 0.0  ;;  %v8027_v24 = vsel %vm2551_vm6, 1.0, %v15253_v54  ;;  %v8539_v31 = vsel %vm4087_vm10, 1.0, %v15253_v54  ;;  %vm2567_vm8 = vcmp.gt.f32.partialorder %v9560_v25, %v15424_v49 }
 0x4de   :  { %v7324_v33 = vadd.f32 %v7323_v34, %v7322_v35  ;;  %vm4103_vm15 = vcmp.eq.f32.partialorder %v9560_v25, %v15424_v49  ;;  %v6127_v2 = vadd.f32 %v8531_v26, %v8019_v8  ;;  %v7325_v3 = vsel %vm6545_vm13, %v6111_v10, 0.0 }
 0x4df   :  { %v8035_v47 = vsel %vm2559_vm9, 1.0, %v15253_v54  ;;  %v8547_v53 = vsel %vm4095_vm12, 1.0, %v15253_v54  ;;  %vm2575_vm0 = vcmp.gt.f32.partialorder %v15341_v41, %v15424_v49  ;;  %vm4111_vm7 = vcmp.eq.f32.partialorder %v15341_v41, %v15424_v49 }
 0x4e0   :  { %v7326_v57 = vadd.f32 %v7325_v3, %v7324_v33  ;;  %v6135_v29 = vadd.f32 %v8539_v31, %v8027_v24  ;;  %v7327_v28 = vsel %vm6545_vm13, %v6119_v45, 0.0  ;;  %v8043_v18 = vsel %vm2567_vm8, 1.0, %v15253_v54 }
 0x4e1   :  { %v8555_v9 = vsel %vm4103_vm15, 1.0, %v15253_v54  ;;  %vm2583_vm4 = vcmp.gt.f32.partialorder %v9570_v56, %v15424_v49  ;;  %vm4119_vm11 = vcmp.eq.f32.partialorder %v9570_v56, %v15424_v49  ;;  %v6143_v32 = vadd.f32 %v8547_v53, %v8035_v47 }
 0x4e2   :  { %v7328_v59 = vadd.f32 %v7327_v28, %v7326_v57  ;;  %v7329_v7 = vsel %vm6545_vm13, %v6127_v2, 0.0  ;;  %v13703_v40 = vadd.s32 48, %v15281_v46  ;;  %v8051_v1 = vsel %vm2575_vm0, 1.0, %v15253_v54  ;;  %v15433_v46 = vld [vmem:[#allocation73_spill] sm:$0xff] }
 0x4e3   :  { %v8563_v6 = vsel %vm4111_vm7, 1.0, %v15253_v54  ;;  %vm2591_vm1 = vcmp.gt.f32.partialorder %v9573_v12, %v15424_v49  ;;  %vm4127_vm14 = vcmp.eq.f32.partialorder %v9573_v12, %v15424_v49  ;;  %v6151_v19 = vadd.f32 %v8555_v9, %v8043_v18 }
 0x4e4   :  { %v7330_v37 = vadd.f32 %v7329_v7, %v7328_v59  ;;  %v7331_v51 = vsel %vm6545_vm13, %v6135_v29, 0.0  ;;  %v8059_v44 = vsel %vm2583_vm4, 1.0, %v15253_v54  ;;  %v8571_v10 = vsel %vm4119_vm11, 1.0, %v15253_v54 }
 0x4e5   :  { %vm2599_vm2 = vcmp.gt.f32.partialorder %v9576_v60, %v15424_v49  ;;  %vm4135_vm3 = vcmp.eq.f32.partialorder %v9576_v60, %v15424_v49  ;;  %v6159_v8 = vadd.f32 %v8563_v6, %v8051_v1  ;;  %v7333_v26 = vsel %vm6545_vm13, %v6143_v32, 0.0 }
 0x4e6   :  { %v7332_v58 = vadd.f32 %v7331_v51, %v7330_v37  ;;  %vm983_vm5 = vcmp.gt.s32.totalorder %v13703_v40, 48  ;;  %v8067_v35 = vsel %vm2591_vm1, 1.0, %v15253_v54  ;;  %v8579_v45 = vsel %vm4127_vm14, 1.0, %v15253_v54 }
 0x4e7   :  { %vm2607_vm6 = vcmp.gt.f32.partialorder %v9579_v14, %v15424_v49  ;;  %vm4143_vm10 = vcmp.eq.f32.partialorder %v9579_v14, %v15424_v49  ;;  %v6167_v24 = vadd.f32 %v8571_v10, %v8059_v44  ;;  %v7335_v31 = vsel %vm6545_vm13, %v6151_v19, 0.0 }
 0x4e8   :  { %v7334_v34 = vadd.f32 %v7333_v26, %v7332_v58  ;;  %vm991_vm9 = vcmp.gt.s32.totalorder %v13703_v40, 49  ;;  %v8075_v33 = vsel %vm2599_vm2, 1.0, %v15253_v54  ;;  %v8587_v2 = vsel %vm4135_vm3, 1.0, %v15253_v54 }
 0x4e9   :  { %vm2615_vm12 = vcmp.gt.f32.partialorder %v9582_v15, %v15424_v49  ;;  %vm4151_vm8 = vcmp.eq.f32.partialorder %v9582_v15, %v15424_v49  ;;  %v6175_v47 = vadd.f32 %v8579_v45, %v8067_v35  ;;  %v7337_v53 = vsel %vm6545_vm13, %v6159_v8, 0.0  ;;  %v15425_v45 = vld [vmem:[#allocation65_spill] sm:$0xff]  ;;  %v15452_v15 = vld [vmem:[#allocation40_spill] sm:$0xff] }
 0x4ea   :  { %v7336_v3 = vadd.f32 %v7335_v31, %v7334_v34  ;;  %vm999_vm15 = vcmp.gt.s32.totalorder %v13703_v40, 50  ;;  %v8083_v57 = vsel %vm2607_vm6, 1.0, %v15253_v54  ;;  %v8595_v29 = vsel %vm4143_vm10, 1.0, %v15253_v54 }
 0x4eb   :  { %vm2623_vm0 = vcmp.gt.f32.partialorder %v9585_v21, %v15424_v49  ;;  %vm4159_vm7 = vcmp.eq.f32.partialorder %v9585_v21, %v15424_v49  ;;  %v6183_v18 = vadd.f32 %v8587_v2, %v8075_v33  ;;  %v7339_v9 = vsel %vm6545_vm13, %v6167_v24, 0.0  ;;  %v15450_v21 = vld [vmem:[#allocation38_spill] sm:$0xff] }
 0x4ec   :  { %v7338_v28 = vadd.f32 %v7337_v53, %v7336_v3  ;;  %vm1007_vm4 = vcmp.gt.s32.totalorder %v13703_v40, 51  ;;  %v8091_v59 = vsel %vm2615_vm12, 1.0, %v15253_v54  ;;  %v8603_v32 = vsel %vm4151_vm8, 1.0, %v15253_v54 }
 0x4ed   :  { %vm2631_vm11 = vcmp.gt.f32.partialorder %v15368_v42, %v15424_v49  ;;  %vm4167_vm1 = vcmp.eq.f32.partialorder %v15368_v42, %v15424_v49  ;;  %v6191_v1 = vadd.f32 %v8595_v29, %v8083_v57  ;;  %v7341_v6 = vsel %vm6545_vm13, %v6175_v47, 0.0  ;;  %v15426_v47 = vld [vmem:[#allocation66_spill] sm:$0xff]  ;;  %v15449_v42 = vld [vmem:[#allocation37_spill] sm:$0xff] }
 0x4ee   :  { %v7340_v7 = vadd.f32 %v7339_v9, %v7338_v28  ;;  %vm1015_vm14 = vcmp.gt.s32.totalorder %v13703_v40, 52  ;;  %v8099_v37 = vsel %vm2623_vm0, 1.0, %v15253_v54  ;;  %v8611_v19 = vsel %vm4159_vm7, 1.0, %v15253_v54 }
 0x4ef   :  { %vm1023_vm2 = vcmp.gt.s32.totalorder %v13703_v40, 53  ;;  %vm2639_vm3 = vcmp.gt.f32.partialorder %v15369_v17, %v15424_v49  ;;  %vm4175_vm6 = vcmp.eq.f32.partialorder %v15369_v17, %v15424_v49  ;;  %v6199_v44 = vadd.f32 %v8603_v32, %v8091_v59  ;;  %v15427_v59 = vld [vmem:[#allocation67_spill] sm:$0xff] }
 0x4f0   :  { %v7342_v51 = vadd.f32 %v7341_v6, %v7340_v7  ;;  %v7343_v10 = vsel %vm6545_vm13, %v6183_v18, 0.0  ;;  %v13763_v58 = vsel %vm983_vm5, 1.0, %v15253_v54  ;;  %v8107_v8 = vsel %vm2631_vm11, 1.0, %v15253_v54  ;;  %v15447_v17 = vld [vmem:[#allocation35_spill] sm:$0xff] }
 0x4f1   :  { %v8619_v26 = vsel %vm4167_vm1, 1.0, %v15253_v54  ;;  %vm1031_vm10 = vcmp.gt.s32.totalorder %v13703_v40, 54  ;;  %vm2647_vm12 = vcmp.gt.f32.partialorder %v15425_v45, %v15424_v49  ;;  %vm4183_vm8 = vcmp.eq.f32.partialorder %v15425_v45, %v15424_v49  ;;  %v15445_v45 = vld [vmem:[#allocation32_spill] sm:$0xff] }
 0x4f2   :  { %v7344_v35 = vadd.f32 %v7343_v10, %v7342_v51  ;;  %v6207_v34 = vadd.f32 %v8611_v19, %v8099_v37  ;;  %v7345_v24 = vsel %vm6545_vm13, %v6191_v1, 0.0  ;;  %v13776_v31 = vsel %vm991_vm9, 1.0, %v15253_v54  ;;  %v15428_v51 = vld [vmem:[#allocation68_spill] sm:$0xff] }
 0x4f3   :  { %v8115_v33 = vsel %vm2639_vm3, 1.0, %v15253_v54  ;;  %v8627_v2 = vsel %vm4175_vm6, 1.0, %v15253_v54  ;;  %vm2655_vm5 = vcmp.gt.f32.partialorder %v15426_v47, %v15424_v49  ;;  %vm4191_vm0 = vcmp.eq.f32.partialorder %v15426_v47, %v15424_v49  ;;  %v15444_v47 = vld [vmem:[#allocation31_spill] sm:$0xff] }
 0x4f4   :  { %v7346_v3 = vadd.f32 %v7345_v24, %v7344_v35  ;;  %v6215_v53 = vadd.f32 %v8619_v26, %v8107_v8  ;;  %v7347_v57 = vsel %vm6545_vm13, %v6199_v44, 0.0  ;;  %v13788_v29 = vsel %vm999_vm15, 1.0, %v15253_v54  ;;  %v15429_v24 = vld [vmem:[#allocation69_spill] sm:$0xff] }
 0x4f5   :  { %v8123_v28 = vsel %vm2647_vm12, 1.0, %v15253_v54  ;;  %v8635_v18 = vsel %vm4183_vm8, 1.0, %v15253_v54  ;;  %vm2663_vm9 = vcmp.gt.f32.partialorder %v15427_v59, %v15424_v49  ;;  %vm4199_vm7 = vcmp.eq.f32.partialorder %v15427_v59, %v15424_v49  ;;  %v15442_v59 = vld [vmem:[#allocation28_spill] sm:$0xff] }
 0x4f6   :  { %v7348_v9 = vadd.f32 %v7347_v57, %v7346_v3  ;;  %v6223_v32 = vadd.f32 %v8627_v2, %v8115_v33  ;;  %v7349_v7 = vsel %vm6545_vm13, %v6207_v34, 0.0  ;;  %v13800_v1 = vsel %vm1007_vm4, 1.0, %v15253_v54 }
 0x4f7   :  { %v8131_v6 = vsel %vm2655_vm5, 1.0, %v15253_v54  ;;  %v8643_v37 = vsel %vm4191_vm0, 1.0, %v15253_v54  ;;  %vm2671_vm15 = vcmp.gt.f32.partialorder %v15428_v51, %v15424_v49  ;;  %vm4207_vm11 = vcmp.eq.f32.partialorder %v15428_v51, %v15424_v49  ;;  %v15440_v51 = vld [vmem:[#allocation26_spill] sm:$0xff] }
 0x4f8   :  { %v7350_v19 = vadd.f32 %v7349_v7, %v7348_v9  ;;  %v6231_v44 = vadd.f32 %v8635_v18, %v8123_v28  ;;  %v7351_v10 = vsel %vm6545_vm13, %v6215_v53, 0.0  ;;  %v13812_v8 = vsel %vm1015_vm14, 1.0, %v15253_v54  ;;  %v15430_v18 = vld [vmem:[#allocation70_spill] sm:$0xff] }
 0x4f9   :  { %v8139_v26 = vsel %vm2663_vm9, 1.0, %v15253_v54  ;;  %v8651_v35 = vsel %vm4199_vm7, 1.0, %v15253_v54  ;;  %vm2679_vm4 = vcmp.gt.f32.partialorder %v15429_v24, %v15424_v49  ;;  %vm4215_vm1 = vcmp.eq.f32.partialorder %v15429_v24, %v15424_v49 }
 0x4fa   :  { %v7352_v34 = vadd.f32 %v7351_v10, %v7350_v19  ;;  %v6239_v33 = vadd.f32 %v8643_v37, %v8131_v6  ;;  %v7353_v2 = vsel %vm6545_vm13, %v6223_v32, 0.0  ;;  %v13824_v3 = vsel %vm1023_vm2, 1.0, %v15253_v54  ;;  %v15431_v10 = vld [vmem:[#allocation71_spill] sm:$0xff] }
 0x4fb   :  { %v8147_v53 = vsel %vm2671_vm15, 1.0, %v15253_v54  ;;  %v8659_v57 = vsel %vm4207_vm11, 1.0, %v15253_v54  ;;  %vm2687_vm14 = vcmp.gt.f32.partialorder %v15430_v18, %v15424_v49  ;;  %vm4223_vm3 = vcmp.eq.f32.partialorder %v15430_v18, %v15424_v49  ;;  %v15435_v18 = vld [vmem:[#allocation21_spill] sm:$0xff] }
 0x4fc   :  { %v7354_v28 = vadd.f32 %v7353_v2, %v7352_v34  ;;  %v6247_v9 = vadd.f32 %v8651_v35, %v8139_v26  ;;  %v7355_v7 = vsel %vm6545_vm13, %v6231_v44, 0.0  ;;  %v13836_v32 = vsel %vm1031_vm10, 1.0, %v15253_v54  ;;  %v15432_v44 = vld [vmem:[#allocation72_spill] sm:$0xff] }
 0x4fd   :  { %v8155_v6 = vsel %vm2679_vm4, 1.0, %v15253_v54  ;;  %v8667_v37 = vsel %vm4215_vm1, 1.0, %v15253_v54  ;;  %vm2695_vm2 = vcmp.gt.f32.partialorder %v15431_v10, %v15424_v49  ;;  %vm4231_vm6 = vcmp.eq.f32.partialorder %v15431_v10, %v15424_v49 }
 0x4fe   :  { %v7356_v19 = vadd.f32 %v7355_v7, %v7354_v28  ;;  %v6255_v34 = vadd.f32 %v8659_v57, %v8147_v53  ;;  %v7357_v26 = vsel %vm6545_vm13, %v6239_v33, 0.0  ;;  %vm2703_vm12 = vcmp.gt.f32.partialorder %v15432_v44, %v15424_v49  ;;  %v15434_v53 = vld [vmem:[#allocation20_spill] sm:$0xff] }
 0x4ff   :  { %v8163_v40 = vsel %vm2687_vm14, 1.0, %v15253_v54  ;;  %v8675_v35 = vsel %vm4223_vm3, 1.0, %v15253_v54  ;;  %vm2711_vm10 = vcmp.gt.f32.partialorder %v15433_v46, %v15424_v49  ;;  %vm4239_vm8 = vcmp.eq.f32.partialorder %v15432_v44, %v15424_v49 }
 0x500   :  { %v7358_v2 = vadd.f32 %v7357_v26, %v7356_v19  ;;  %v6263_v28 = vadd.f32 %v8667_v37, %v8155_v6  ;;  %v7359_v7 = vsel %vm6545_vm13, %v6247_v9, 0.0  ;;  %vm2719_vm5 = vcmp.gt.f32.partialorder %v15434_v53, %v15424_v49  ;;  %v15436_v6 = vld [vmem:[#allocation22_spill] sm:$0xff] }
 0x501   :  { %v8171_v33 = vsel %vm2695_vm2, 1.0, %v15253_v54  ;;  %v8683_v57 = vsel %vm4231_vm6, 1.0, %v15253_v54  ;;  %vm2727_vm0 = vcmp.gt.f32.partialorder %v15435_v18, %v15424_v49  ;;  %vm4247_vm9 = vcmp.eq.f32.partialorder %v15433_v46, %v15424_v49 }
 0x502   :  { %v7360_v10 = vadd.f32 %v7359_v7, %v7358_v2  ;;  %v6271_v19 = vadd.f32 %v8675_v35, %v8163_v40  ;;  %v7361_v26 = vsel %vm6545_vm13, %v6255_v34, 0.0  ;;  %vm2735_vm7 = vcmp.gt.f32.partialorder %v15436_v6, %v15424_v49  ;;  %v15437_v7 = vld [vmem:[#allocation23_spill] sm:$0xff]  ;;  %v15438_v35 = vld [vmem:[#allocation24_spill] sm:$0xff] }
 0x503   :  { %v8179_v9 = vsel %vm2703_vm12, 1.0, %v15253_v54  ;;  %v8691_v37 = vsel %vm4239_vm8, 1.0, %v15253_v54  ;;  %vm2743_vm15 = vcmp.gt.f32.partialorder %v15437_v7, %v15424_v49  ;;  %vm4255_vm11 = vcmp.eq.f32.partialorder %v15434_v53, %v15424_v49 }
 0x504   :  { %v7362_v2 = vadd.f32 %v7361_v26, %v7360_v10  ;;  %v6279_v40 = vadd.f32 %v8683_v57, %v8171_v33  ;;  %v7363_v34 = vsel %vm6545_vm13, %v6263_v28, 0.0  ;;  %vm2751_vm4 = vcmp.gt.f32.partialorder %v15438_v35, %v15424_v49  ;;  %v15439_v26 = vld [vmem:[#allocation25_spill] sm:$0xff]  ;;  %v15441_v57 = vld [vmem:[#allocation27_spill] sm:$0xff] }
 0x505   :  { %v8187_v44 = vsel %vm2711_vm10, 1.0, %v15253_v54  ;;  %v8699_v24 = vsel %vm4247_vm9, 1.0, %v15253_v54  ;;  %vm2759_vm1 = vcmp.gt.f32.partialorder %v15439_v26, %v15424_v49  ;;  %vm2767_vm14 = vcmp.gt.f32.partialorder %v15440_v51, %v15424_v49 }
 0x506   :  { %v7364_v10 = vadd.f32 %v7363_v34, %v7362_v2  ;;  %vm4263_vm3 = vcmp.eq.f32.partialorder %v15435_v18, %v15424_v49  ;;  %v6287_v28 = vadd.f32 %v8691_v37, %v8179_v9  ;;  %v7365_v33 = vsel %vm6545_vm13, %v6271_v19, 0.0  ;;  %v15443_v37 = vld [vmem:[#allocation30_spill] sm:$0xff] }
 0x507   :  { %vm2775_vm2 = vcmp.gt.f32.partialorder %v15441_v57, %v15424_v49  ;;  %v8195_v2 = vsel %vm2719_vm5, 1.0, %v15253_v54  ;;  %v8707_v34 = vsel %vm4255_vm11, 1.0, %v15253_v54  ;;  %vm2783_vm6 = vcmp.gt.f32.partialorder %v15442_v59, %v15424_v49 }
 0x508   :  { %v7366_v46 = vadd.f32 %v7365_v33, %v7364_v10  ;;  %vm2791_vm12 = vcmp.gt.f32.partialorder %v15407_v36, %v15424_v49  ;;  %vm4271_vm10 = vcmp.eq.f32.partialorder %v15436_v6, %v15424_v49  ;;  %v6295_v19 = vadd.f32 %v8699_v24, %v8187_v44 }
 0x509   :  { %v7367_v9 = vsel %vm6545_vm13, %v6279_v40, 0.0  ;;  %v8203_v10 = vsel %vm2727_vm0, 1.0, %v15253_v54  ;;  %v8715_v33 = vsel %vm4263_vm3, 1.0, %v15253_v54  ;;  %vm2807_vm5 = vcmp.gt.f32.partialorder %v15444_v47, %v15424_v49  ;;  %v15446_v40 = vld [vmem:[#allocation33_spill] sm:$0xff] }
 0x50a   :  { %v7368_v53 = vadd.f32 %v7367_v9, %v7366_v46  ;;  %vm4279_vm11 = vcmp.eq.f32.partialorder %v15437_v7, %v15424_v49  ;;  %v6303_v24 = vadd.f32 %v8707_v34, %v8195_v2  ;;  %v7369_v44 = vsel %vm6545_vm13, %v6287_v28, 0.0  ;;  %v15448_v34 = vld [vmem:[#allocation36_spill] sm:$0xff] }
 0x50b   :  { %v8211_v46 = vsel %vm2735_vm7, 1.0, %v15253_v54  ;;  %v8723_v9 = vsel %vm4271_vm10, 1.0, %v15253_v54  ;;  %vm2831_vm0 = vcmp.gt.f32.partialorder %v15381_v13, %v15424_v49  ;;  %vm4287_vm9 = vcmp.eq.f32.partialorder %v15438_v35, %v15424_v49 }
 0x50c   :  { %v7370_v18 = vadd.f32 %v7369_v44, %v7368_v53  ;;  %v6311_v28 = vadd.f32 %v8715_v33, %v8203_v10  ;;  %v7371_v2 = vsel %vm6545_vm13, %v6295_v19, 0.0  ;;  %v8219_v53 = vsel %vm2743_vm15, 1.0, %v15253_v54  ;;  %v15451_v33 = vld [vmem:[#allocation39_spill] sm:$0xff] }
 0x50d   :  { %v8731_v44 = vsel %vm4279_vm11, 1.0, %v15253_v54  ;;  %vm2855_vm7 = vcmp.gt.f32.partialorder %v15449_v42, %v15424_v49  ;;  %vm4295_vm3 = vcmp.eq.f32.partialorder %v15439_v26, %v15424_v49  ;;  %v6319_v19 = vadd.f32 %v8723_v9, %v8211_v46 }
 0x50e   :  { %v7372_v6 = vadd.f32 %v7371_v2, %v7370_v18  ;;  %v7373_v10 = vsel %vm6545_vm13, %v6303_v24, 0.0  ;;  %v8227_v18 = vsel %vm2751_vm4, 1.0, %v15253_v54  ;;  %v8739_v2 = vsel %vm4287_vm9, 1.0, %v15253_v54 }
 0x50f   :  { %vm2879_vm15 = vcmp.gt.f32.partialorder %v15452_v15, %v15424_v49  ;;  %vm2887_vm11 = vcmp.gt.f32.partialorder %v15417_v62, %v15424_v49  ;;  %vm4303_vm10 = vcmp.eq.f32.partialorder %v15440_v51, %v15424_v49  ;;  %v6327_v24 = vadd.f32 %v8731_v44, %v8219_v53  ;;  %v15453_v53 = vld [vmem:[#allocation43_spill] sm:$0xff] }
 0x510   :  { %v7374_v7 = vadd.f32 %v7373_v10, %v7372_v6  ;;  %v7375_v46 = vsel %vm6545_vm13, %v6311_v28, 0.0  ;;  %vm2895_vm8 = vcmp.gt.f32.partialorder %v15418_v30, %v15424_v49  ;;  %v8235_v6 = vsel %vm2759_vm1, 1.0, %v15253_v54  ;;  %v15454_v28 = vld [vmem:[#allocation44_spill] sm:$0xff] }
 0x511   :  { %v8243_v9 = vsel %vm2767_vm14, 1.0, %v15253_v54  ;;  %v8747_v10 = vsel %vm4295_vm3, 1.0, %v15253_v54  ;;  %vm2903_vm4 = vcmp.gt.f32.partialorder %v15453_v53, %v15424_v49  ;;  %vm2911_vm9 = vcmp.gt.f32.partialorder %v15454_v28, %v15424_v49 }
 0x512   :  { %v7376_v35 = vadd.f32 %v7375_v46, %v7374_v7  ;;  %v8251_v44 = vsel %vm2775_vm2, 1.0, %v15253_v54  ;;  %vm4311_vm1 = vcmp.eq.f32.partialorder %v15441_v57, %v15424_v49  ;;  %v6335_v26 = vadd.f32 %v8739_v2, %v8227_v18  ;;  %v15455_v18 = vld [vmem:[#allocation45_spill] sm:$0xff] }
 0x513   :  { %v7377_v14 = vsel %vm6545_vm13, %v6319_v19, 0.0  ;;  %v8259_v7 = vsel %vm2783_vm6, 1.0, %v15253_v54  ;;  %v8267_v46 = vsel %vm2791_vm12, 1.0, %v15253_v54  ;;  %v8755_v60 = vsel %vm4303_vm10, 1.0, %v15253_v54  ;;  %v15456_v19 = vld [vmem:[#allocation46_spill] sm:$0xff] }
 0x514   :  { %v7378_v12 = vadd.f32 %v7377_v14, %v7376_v35  ;;  %vm2919_vm14 = vcmp.gt.f32.partialorder %v15455_v18, %v15424_v49  ;;  %vm15457_vm6 = vcmp.gt.f32.partialorder %v15443_v37, %v15424_v49  ;;  %vm4319_vm12 = vcmp.eq.f32.partialorder %v15442_v59, %v15424_v49 }
 0x515   :  { %v8275_v2 = vsel %vm15457_vm6, 1.0, %v15253_v54  ;;  %v6343_v57 = vadd.f32 %v8747_v10, %v8235_v6  ;;  %v7379_v56 = vsel %vm6545_vm13, %v6327_v24, 0.0  ;;  %v8283_v14 = vsel %vm2807_vm5, 1.0, %v15253_v54 }
 0x516   :  { %vm15458_vm3 = vcmp.gt.f32.partialorder %v15445_v45, %v15424_v49  ;;  %v8763_v51 = vsel %vm4311_vm1, 1.0, %v15253_v54  ;;  %v7380_v41 = vadd.f32 %v7379_v56, %v7378_v12  ;;  %vm2935_vm10 = vcmp.gt.f32.partialorder %v15392_v43, %v15424_v49 }
 0x517   :  { %v8291_v35 = vsel %vm15458_vm3, 1.0, %v15253_v54  ;;  %vm15459_vm6 = vcmp.gt.f32.partialorder %v15446_v40, %v15424_v49  ;;  %vm4327_vm2 = vcmp.eq.f32.partialorder %v15407_v36, %v15424_v49  ;;  %v6351_v6 = vadd.f32 %v8755_v60, %v8243_v9 }
 0x518   :  { %v8299_v24 = vsel %vm15459_vm6, 1.0, %v15253_v54  ;;  %v7381_v10 = vsel %vm6545_vm13, %v6335_v26, 0.0  ;;  %vm2943_vm5 = vcmp.gt.f32.partialorder %v15393_v48, %v15424_v49  ;;  %v8307_v56 = vsel %vm2831_vm0, 1.0, %v15253_v54 }
 0x519   :  { %vm15460_vm1 = vcmp.gt.f32.partialorder %v15447_v17, %v15424_v49  ;;  %v8771_v59 = vsel %vm4319_vm12, 1.0, %v15253_v54  ;;  %v7382_v36 = vadd.f32 %v7381_v10, %v7380_v41  ;;  %vm15461_vm3 = vcmp.gt.f32.partialorder %v15448_v34, %v15424_v49 }
 0x51a   :  { %v14032_v12 = vsel %vm15460_vm1, 1.0, %v15253_v54  ;;  %v14039_v60 = vsel %vm15461_vm3, 1.0, %v15253_v54  ;;  %vm4335_vm6 = vcmp.eq.f32.partialorder %v15443_v37, %v15424_v49  ;;  %v6359_v26 = vadd.f32 %v8763_v51, %v8251_v44 }
 0x51b   :  { %v7383_v9 = vsel %vm6545_vm13, %v6343_v57, 0.0  ;;  %v14048_v25 = vsel %vm2855_vm7, 1.0, %v15253_v54  ;;  %vm15462_vm0 = vcmp.gt.f32.partialorder %v15450_v21, %v15424_v49  ;;  %v8779_v10 = vsel %vm4327_vm2, 1.0, %v15253_v54 }
 0x51c   :  { %v14054_v41 = vsel %vm15462_vm0, 1.0, %v15253_v54  ;;  %v7384_v11 = vadd.f32 %v7383_v9, %v7382_v36  ;;  %vm15463_vm12 = vcmp.gt.f32.partialorder %v15451_v33, %v15424_v49  ;;  %vm4343_vm1 = vcmp.eq.f32.partialorder %v15444_v47, %v15424_v49 }
 0x51d   :  { %v14061_v51 = vsel %vm15463_vm12, 1.0, %v15253_v54  ;;  %v6367_v57 = vadd.f32 %v8771_v59, %v8259_v7  ;;  %v7385_v44 = vsel %vm6545_vm13, %v6351_v6, 0.0  ;;  %v14070_v37 = vsel %vm2879_vm15, 1.0, %v15253_v54 }
 0x51e   :  { %v14076_v36 = vsel %vm2887_vm11, 1.0, %v15253_v54  ;;  %v8787_v9 = vsel %vm4335_vm6, 1.0, %v15253_v54  ;;  %v7386_v50 = vadd.f32 %v7385_v44, %v7384_v11  ;;  %v14083_v59 = vsel %vm2895_vm8, 1.0, %v15253_v54 }
 0x51f   :  { %vm4351_vm7 = vcmp.eq.f32.partialorder %v15445_v45, %v15424_v49  ;;  %v6375_v7 = vadd.f32 %v8779_v10, %v8267_v46  ;;  %v7387_v6 = vsel %vm6545_vm13, %v6359_v26, 0.0  ;;  %v14092_v47 = vsel %vm2903_vm4, 1.0, %v15253_v54 }
 0x520   :  { %v14098_v11 = vsel %vm2911_vm9, 1.0, %v15253_v54  ;;  %v8795_v44 = vsel %vm4343_vm1, 1.0, %v15253_v54  ;;  %v7388_v27 = vadd.f32 %v7387_v6, %v7386_v50  ;;  %vm4359_vm8 = vcmp.eq.f32.partialorder %v15446_v40, %v15424_v49 }
 0x521   :  { %vm4375_vm15 = vcmp.eq.f32.partialorder %v15447_v17, %v15424_v49  ;;  %v6383_v46 = vadd.f32 %v8787_v9, %v8275_v2  ;;  %v7389_v26 = vsel %vm6545_vm13, %v6367_v57, 0.0  ;;  %v14110_v10 = vsel %vm2919_vm14, 1.0, %v15253_v54 }
 0x522   :  { %vm15464_vm11 = vcmp.gt.f32.partialorder %v15456_v19, %v15424_v49  ;;  %v8803_v6 = vsel %vm4351_vm7, 1.0, %v15253_v54  ;;  %v7390_v40 = vadd.f32 %v7389_v26, %v7388_v27  ;;  %vm4367_vm4 = vcmp.eq.f32.partialorder %v15381_v13, %v15424_v49 }
 0x523   :  { %v14116_v50 = vsel %vm15464_vm11, 1.0, %v15253_v54  ;;  %vm4383_vm9 = vcmp.eq.f32.partialorder %v15448_v34, %v15424_v49  ;;  %v6391_v2 = vadd.f32 %v8795_v44, %v8283_v14  ;;  %v7391_v57 = vsel %vm6545_vm13, %v6375_v7, 0.0 }
 0x524   :  { %v14128_v9 = vsel %vm2935_vm10, 1.0, %v15253_v54  ;;  %v8811_v17 = vsel %vm4359_vm8, 1.0, %v15253_v54  ;;  %v8827_v45 = vsel %vm4375_vm15, 1.0, %v15253_v54  ;;  %v7392_v27 = vadd.f32 %v7391_v57, %v7390_v40 }
 0x525   :  { %v14136_v26 = vsel %vm2943_vm5, 1.0, %v15253_v54  ;;  %vm4391_vm14 = vcmp.eq.f32.partialorder %v15449_v42, %v15424_v49  ;;  %v6399_v14 = vadd.f32 %v8803_v6, %v8291_v35  ;;  %v7393_v7 = vsel %vm6545_vm13, %v6383_v46, 0.0 }
 0x526   :  { %vm4399_vm2 = vcmp.eq.f32.partialorder %v15450_v21, %v15424_v49  ;;  %v8819_v44 = vsel %vm4367_vm4, 1.0, %v15253_v54  ;;  %v8835_v34 = vsel %vm4383_vm9, 1.0, %v15253_v54  ;;  %v7394_v40 = vadd.f32 %v7393_v7, %v7392_v27 }
 0x527   :  { %vm4407_vm10 = vcmp.eq.f32.partialorder %v15451_v33, %v15424_v49  ;;  %v5911_v57 = vmul.f32 %v8827_v45, %v13763_v58  ;;  %v6407_v13 = vadd.f32 %v8811_v17, %v8299_v24  ;;  %v7395_v52 = vsel %vm6545_vm13, %v6391_v2, 0.0 }
 0x528   :  { %vm4415_vm5 = vcmp.eq.f32.partialorder %v15452_v15, %v15424_v49  ;;  %vm4423_vm3 = vcmp.eq.f32.partialorder %v15417_v62, %v15424_v49  ;;  %v8843_v35 = vsel %vm4391_vm14, 1.0, %v15253_v54  ;;  %v7396_v46 = vadd.f32 %v7395_v52, %v7394_v40 }
 0x529   :  { %vm4431_vm6 = vcmp.eq.f32.partialorder %v15418_v30, %v15424_v49  ;;  %v5919_v6 = vmul.f32 %v8835_v34, %v13776_v31  ;;  %v6415_v27 = vadd.f32 %v8819_v44, %v8307_v56  ;;  %v7397_v58 = vsel %vm6545_vm13, %v6399_v14, 0.0 }
 0x52a   :  { %vm4439_vm0 = vcmp.eq.f32.partialorder %v15453_v53, %v15424_v49  ;;  %vm4447_vm12 = vcmp.eq.f32.partialorder %v15454_v28, %v15424_v49  ;;  %v8851_v17 = vsel %vm4399_vm2, 1.0, %v15253_v54  ;;  %v7398_v52 = vadd.f32 %v7397_v58, %v7396_v46 }
 0x52b   :  { %vm4455_vm1 = vcmp.eq.f32.partialorder %v15455_v18, %v15424_v49  ;;  %v5927_v45 = vmul.f32 %v8843_v35, %v13788_v29  ;;  %v6423_v31 = vadd.f32 %v14032_v12, %v5911_v57  ;;  %v7399_v34 = vsel %vm6545_vm13, %v6407_v13, 0.0 }
 0x52c   :  { %vm4463_vm7 = vcmp.eq.f32.partialorder %v15456_v19, %v15424_v49  ;;  %vm4471_vm8 = vcmp.eq.f32.partialorder %v15392_v43, %v15424_v49  ;;  %v8859_v24 = vsel %vm4407_vm10, 1.0, %v15253_v54  ;;  %v7400_v56 = vadd.f32 %v7399_v34, %v7398_v52 }
 0x52d   :  { %vm2951_vm15 = vcmp.gt.f32.partialorder %v15365_v39, %v15424_v49  ;;  %vm2959_vm11 = vcmp.gt.f32.partialorder %v15366_v38, %v15424_v49  ;;  %vm4479_vm4 = vcmp.eq.f32.partialorder %v15393_v48, %v15424_v49  ;;  %v5935_v13 = vmul.f32 %v8851_v17, %v13800_v1 }
 0x52e   :  { %v6431_v29 = vadd.f32 %v14039_v60, %v5919_v6  ;;  %v7401_v12 = vsel %vm6545_vm13, %v6415_v27, 0.0  ;;  %vm4487_vm9 = vcmp.eq.f32.partialorder %v15365_v39, %v15424_v49  ;;  %vm4495_vm14 = vcmp.eq.f32.partialorder %v15366_v38, %v15424_v49 }
 0x52f   :  { %v8867_v2 = vsel %vm4415_vm5, 1.0, %v15253_v54  ;;  %v7402_v14 = vadd.f32 %v7401_v12, %v7400_v56  ;;  %v8875_v1 = vsel %vm4423_vm3, 1.0, %v15253_v54  ;;  %v5943_v60 = vmul.f32 %v8859_v24, %v13812_v8 }
 0x530   :  { %v6439_v7 = vadd.f32 %v14048_v25, %v5927_v45  ;;  %v7403_v44 = vsel %vm6545_vm13, %v6423_v31, 0.0  ;;  %v8883_v40 = vsel %vm4431_vm6, 1.0, %v15253_v54  ;;  %v8891_v57 = vsel %vm4439_vm0, 1.0, %v15253_v54 }
 0x531   :  { %v8899_v35 = vsel %vm4447_vm12, 1.0, %v15253_v54  ;;  %v7404_v8 = vadd.f32 %v7403_v44, %v7402_v14  ;;  %v8907_v25 = vsel %vm4455_vm1, 1.0, %v15253_v54  ;;  %v5951_v46 = vmul.f32 %v8867_v2, %v13824_v3 }
 0x532   :  { %v6447_v6 = vadd.f32 %v14054_v41, %v5935_v13  ;;  %v7405_v27 = vsel %vm6545_vm13, %v6431_v29, 0.0  ;;  %v8915_v58 = vsel %vm4463_vm7, 1.0, %v15253_v54  ;;  %v8923_v17 = vsel %vm4471_vm8, 1.0, %v15253_v54 }
 0x533   :  { %v8931_v52 = vsel %vm4479_vm4, 1.0, %v15253_v54  ;;  %v7406_v3 = vadd.f32 %v7405_v27, %v7404_v8  ;;  %v8939_v41 = vsel %vm4487_vm9, 1.0, %v15253_v54  ;;  %v5959_v45 = vmul.f32 %v8875_v1, %v13836_v32 }
 0x534   :  { %v6455_v31 = vadd.f32 %v14061_v51, %v5943_v60  ;;  %v7407_v34 = vsel %vm6545_vm13, %v6439_v7, 0.0  ;;  %v8947_v24 = vsel %vm4495_vm14, 1.0, %v15253_v54  ;;  %v5967_v56 = vmul.f32 0.0, %v8883_v40 }
 0x535   :  { %v5975_v13 = vmul.f32 0.0, %v8891_v57  ;;  %v7408_v29 = vadd.f32 %v7407_v34, %v7406_v3  ;;  %v5983_v12 = vmul.f32 0.0, %v8899_v35  ;;  %v5991_v2 = vmul.f32 0.0, %v8907_v25 }
 0x536   :  { %v6463_v14 = vadd.f32 %v14070_v37, %v5951_v46  ;;  %v7409_v44 = vsel %vm6545_vm13, %v6447_v6, 0.0  ;;  %v5999_v8 = vmul.f32 0.0, %v8915_v58  ;;  %v6007_v32 = vmul.f32 0.0, %v8923_v17 }
 0x537   :  { %v6015_v1 = vmul.f32 0.0, %v8931_v52  ;;  %v7410_v51 = vadd.f32 %v7409_v44, %v7408_v29  ;;  %v6023_v60 = vmul.f32 0.0, %v8939_v41  ;;  %v6031_v7 = vmul.f32 0.0, %v8947_v24 }
 0x538   :  { %v6471_v27 = vadd.f32 %v14076_v36, %v5959_v45  ;;  %v7411_v48 = vsel %vm6545_vm13, %v6455_v31, 0.0  ;;  %v8427_v40 = vsel %vm2951_vm15, 1.0, %v15253_v54  ;;  %v8435_v37 = vsel %vm2959_vm11, 1.0, %v15253_v54 }
 0x539   :  { %v6479_v57 = vadd.f32 %v14083_v59, %v5967_v56  ;;  %v7412_v35 = vadd.f32 %v7411_v48, %v7410_v51  ;;  %v6487_v25 = vadd.f32 %v14092_v47, %v5975_v13  ;;  %v6495_v46 = vadd.f32 %v14098_v11, %v5983_v12  ;;  %v15465_v48 = vld [vmem:[#allocation19_spill] sm:$0xff] }
 0x53a   :  { %v6503_v36 = vadd.f32 %v14110_v10, %v5991_v2  ;;  %v7413_v6 = vsel %vm6545_vm13, %v6463_v14, 0.0  ;;  %v6511_v58 = vadd.f32 %v14116_v50, %v5999_v8  ;;  %v6519_v17 = vadd.f32 %v14128_v9, %v6007_v32 }
 0x53b   :  { %v6527_v52 = vadd.f32 %v14136_v26, %v6015_v1  ;;  %v7414_v3 = vadd.f32 %v7413_v6, %v7412_v35  ;;  %v6535_v49 = vadd.f32 %v8427_v40, %v6023_v60  ;;  %v6543_v41 = vadd.f32 %v8435_v37, %v6031_v7 }
 0x53c   :  { %v7415_v59 = vsel %vm6545_vm13, %v6471_v27, 0.0  ;;  %vm2456_vm2 = vcmp.gt.f32.partialorder %v9507_v20, %v15465_v48  ;;  %vm2464_vm10 = vcmp.gt.f32.partialorder %v9511_v63, %v15465_v48  ;;  %vm3992_vm5 = vcmp.eq.f32.partialorder %v9507_v20, %v15465_v48 }
 0x53d   :  { %v7416_v47 = vadd.f32 %v7415_v59, %v7414_v3  ;;  %vm4000_vm3 = vcmp.eq.f32.partialorder %v9511_v63, %v15465_v48  ;;  %v7417_v11 = vsel %vm6545_vm13, %v6479_v57, 0.0  ;;  %v7419_v10 = vsel %vm6545_vm13, %v6487_v25, 0.0 }
 0x53e   :  { %v7421_v50 = vsel %vm6545_vm13, %v6495_v46, 0.0  ;;  %v7423_v9 = vsel %vm6545_vm13, %v6503_v36, 0.0  ;;  %v7425_v45 = vsel %vm6545_vm13, %v6511_v58, 0.0  ;;  %vm2472_vm6 = vcmp.gt.f32.partialorder %v9516_v61, %v15465_v48 }
 0x53f   :  { %v7418_v26 = vadd.f32 %v7417_v11, %v7416_v47  ;;  %vm4008_vm0 = vcmp.eq.f32.partialorder %v9516_v61, %v15465_v48  ;;  %v7932_v20 = vsel %vm2456_vm2, 1.0, %v15253_v54  ;;  %v7940_v63 = vsel %vm2464_vm10, 1.0, %v15253_v54 }
 0x540   :  { %v8444_v31 = vsel %vm3992_vm5, 1.0, %v15253_v54  ;;  %v8452_v34 = vsel %vm4000_vm3, 1.0, %v15253_v54  ;;  %v7427_v56 = vsel %vm6545_vm13, %v6519_v17, 0.0  ;;  %vm2480_vm12 = vcmp.gt.f32.partialorder %v9523_v16, %v15465_v48 }
 0x541   :  { %v7420_v24 = vadd.f32 %v7419_v10, %v7418_v26  ;;  %vm4016_vm1 = vcmp.eq.f32.partialorder %v9523_v16, %v15465_v48  ;;  %v7429_v13 = vsel %vm6545_vm13, %v6527_v52, 0.0  ;;  %vm2488_vm7 = vcmp.gt.f32.partialorder %v9526_v4, %v15465_v48 }
 0x542   :  { %v7948_v61 = vsel %vm2472_vm6, 1.0, %v15253_v54  ;;  %v8460_v29 = vsel %vm4008_vm0, 1.0, %v15253_v54  ;;  %vm4024_vm8 = vcmp.eq.f32.partialorder %v9526_v4, %v15465_v48  ;;  %v6040_v2 = vadd.f32 %v8444_v31, %v7932_v20  ;;  %v15467_v31 = vld [vmem:[#allocation52_spill] sm:$0xff] }
 0x543   :  { %v7422_v12 = vadd.f32 %v7421_v50, %v7420_v24  ;;  %v6048_v14 = vadd.f32 %v8452_v34, %v7940_v63  ;;  %v7431_v44 = vsel %vm6545_vm13, %v6535_v49, 0.0  ;;  %v7433_v8 = vsel %vm6545_vm13, %v6543_v41, 0.0  ;;  %v15466_v50 = vld [vmem:[#allocation51_spill] sm:$0xff] }
 0x544   :  { %v7956_v16 = vsel %vm2480_vm12, 1.0, %v15253_v54  ;;  %v8468_v32 = vsel %vm4016_vm1, 1.0, %v15253_v54  ;;  %vm2496_vm15 = vcmp.gt.f32.partialorder %v9533_v55, %v15465_v48  ;;  %vm4032_vm11 = vcmp.eq.f32.partialorder %v9533_v55, %v15465_v48 }
 0x545   :  { %v7424_v1 = vadd.f32 %v7423_v9, %v7422_v12  ;;  %v6056_v51 = vadd.f32 %v8460_v29, %v7948_v61  ;;  %vm2504_vm4 = vcmp.gt.f32.partialorder %v9536_v22, %v15465_v48  ;;  %v7964_v60 = vsel %vm2488_vm7, 1.0, %v15253_v54 }
 0x546   :  { %vm4040_vm9 = vcmp.eq.f32.partialorder %v9536_v22, %v15465_v48  ;;  %v8476_v7 = vsel %vm4024_vm8, 1.0, %v15253_v54  ;;  %v6064_v40 = vadd.f32 %v8468_v32, %v7956_v16  ;;  %v7435_v37 = vsel %vm6545_vm13, %v6040_v2, 0.0  ;;  %v15468_v2 = vld [vmem:[#allocation53_spill] sm:$0xff] }
 0x547   :  { %v7426_v27 = vadd.f32 %v7425_v45, %v7424_v1  ;;  %v7436_v55 = vsel %vm6545_vm13, %v6048_v14, 0.0  ;;  %vm2512_vm14 = vcmp.gt.f32.partialorder %v9539_v23, %v15465_v48  ;;  %v7972_v57 = vsel %vm2496_vm15, 1.0, %v15253_v54  ;;  %v15469_v1 = vld [vmem:[#allocation54_spill] sm:$0xff] }
 0x548   :  { %v8484_v35 = vsel %vm4032_vm11, 1.0, %v15253_v54  ;;  %v7437_v4 = vadd.f32 %v7436_v55, %v7435_v37  ;;  %vm4048_vm2 = vcmp.eq.f32.partialorder %v9539_v23, %v15465_v48  ;;  %v6072_v46 = vadd.f32 %v8476_v7, %v7964_v60  ;;  %v15470_v37 = vld [vmem:[#allocation55_spill] sm:$0xff] }
 0x549   :  { %v7428_v25 = vadd.f32 %v7427_v56, %v7426_v27  ;;  %v7438_v36 = vsel %vm6545_vm13, %v6056_v51, 0.0  ;;  %vm2520_vm10 = vcmp.gt.f32.partialorder %v9542_v5, %v15465_v48  ;;  %v7980_v6 = vsel %vm2504_vm4, 1.0, %v15253_v54 }
 0x54a   :  { %v8492_v58 = vsel %vm4040_vm9, 1.0, %v15253_v54  ;;  %v7439_v17 = vadd.f32 %v7438_v36, %v7437_v4  ;;  %vm4056_vm5 = vcmp.eq.f32.partialorder %v9542_v5, %v15465_v48  ;;  %v6080_v3 = vadd.f32 %v8484_v35, %v7972_v57  ;;  %v7620_v35 = vld [vmem:[#allocation6] sm:$0xff]  ;;  %v15471_v4 = vld [vmem:[#allocation56_spill] sm:$0xff] }
 0x54b   :  { %v7430_v52 = vadd.f32 %v7429_v13, %v7428_v25  ;;  %v7440_v49 = vsel %vm6545_vm13, %v6064_v40, 0.0  ;;  %vm2528_vm3 = vcmp.gt.f32.partialorder %v9545_v0, %v15465_v48  ;;  %v7988_v41 = vsel %vm2512_vm14, 1.0, %v15253_v54 }
 0x54c   :  { %v8500_v59 = vsel %vm4048_vm2, 1.0, %v15253_v54  ;;  %v7441_v22 = vadd.f32 %v7440_v49, %v7439_v17  ;;  %vm4064_vm6 = vcmp.eq.f32.partialorder %v9545_v0, %v15465_v48  ;;  %v6088_v11 = vadd.f32 %v8492_v58, %v7980_v6  ;;  %v7621_v6 = vld [vmem:[#allocation6 + $0x8] sm:$0xff]  ;;  %v7622_v58 = vld [vmem:[#allocation6 + $0x10] sm:$0xff]  ;;  %v7623_v17 = vld [vmem:[#allocation6 + $0x18] sm:$0xff] }
 0x54d   :  { %v7432_v47 = vadd.f32 %v7431_v44, %v7430_v52  ;;  %v7442_v10 = vsel %vm6545_vm13, %v6072_v46, 0.0  ;;  %vm2536_vm0 = vcmp.gt.f32.partialorder %v15466_v50, %v15465_v48  ;;  %v7996_v9 = vsel %vm2520_vm10, 1.0, %v15253_v54  ;;  %v15472_v52 = vld [vmem:[#allocation57_spill] sm:$0xff] }
 0x54e   :  { %v8508_v23 = vsel %vm4056_vm5, 1.0, %v15253_v54  ;;  %v7443_v26 = vadd.f32 %v7442_v10, %v7441_v22  ;;  %vm4072_vm12 = vcmp.eq.f32.partialorder %v15466_v50, %v15465_v48  ;;  %v6096_v20 = vadd.f32 %v8500_v59, %v7988_v41 }
 0x54f   :  { %v7434_v45 = vadd.f32 %v7433_v8, %v7432_v47  ;;  %v7444_v63 = vsel %vm6545_vm13, %v6080_v3, 0.0  ;;  %vm2544_vm1 = vcmp.gt.f32.partialorder %v15467_v31, %v15465_v48  ;;  %v8004_v34 = vsel %vm2528_vm3, 1.0, %v15253_v54 }
 0x550   :  { %v8516_v5 = vsel %vm4064_vm6, 1.0, %v15253_v54  ;;  %v7445_v24 = vadd.f32 %v7444_v63, %v7443_v26  ;;  %vm4080_vm8 = vcmp.eq.f32.partialorder %v15467_v31, %v15465_v48  ;;  %v6104_v56 = vadd.f32 %v8508_v23, %v7996_v9  ;;  %v15473_v63 = vld [vmem:[#allocation58_spill] sm:$0xff] }
 0x551   :  { %vm7568_vm7 = vcmp.lt.f32.partialorder %v7434_v45, 32.0  ;;  %v7446_v13 = vsel %vm6545_vm13, %v6088_v11, 0.0  ;;  %v8012_v29 = vsel %vm2536_vm0, 1.0, %v15253_v54  ;;  %v8524_v0 = vsel %vm4072_vm12, 1.0, %v15253_v54  ;;  %v7624_v45 = vld [vmem:[#allocation6 + $0x20] sm:$0xff] }
 0x552   :  { %v8955_v61 = vsel %vm7568_vm7, 1.0, %v15253_v54  ;;  %v7447_v12 = vadd.f32 %v7446_v13, %v7445_v24  ;;  %vm2552_vm15 = vcmp.gt.f32.partialorder %v15468_v2, %v15465_v48  ;;  %vm4088_vm11 = vcmp.eq.f32.partialorder %v15468_v2, %v15465_v48 }
 0x553   :  { %7592 = vxpose.xlu1.b32.cont [7/8] (short) (narrow) %v8955_v61, 16  ;;  %v6112_v14 = vadd.f32 %v8516_v5, %v8004_v34  ;;  %v7448_v44 = vsel %vm6545_vm13, %v6096_v20, 0.0  ;;  %v8020_v8 = vsel %vm2544_vm1, 1.0, %v15253_v54  ;;  %v8532_v16 = vsel %vm4080_vm8, 1.0, %v15253_v54  ;;  %v7625_v20 = vld [vmem:[#allocation6 + $0x28] sm:$0xff] }
 0x554   :  { %v7449_v32 = vadd.f32 %v7448_v44, %v7447_v12  ;;  %vm2560_vm4 = vcmp.gt.f32.partialorder %v15469_v1, %v15465_v48  ;;  %vm4096_vm9 = vcmp.eq.f32.partialorder %v15469_v1, %v15465_v48  ;;  %v6120_v51 = vadd.f32 %v8524_v0, %v8012_v29  ;;  %v15474_v5 = vld [vmem:[#allocation59_spill] sm:$0xff]  ;;  %v15475_v44 = vld [vmem:[#allocation60_spill] sm:$0xff] }
 0x555   :  { %v7450_v60 = vsel %vm6545_vm13, %v6104_v56, 0.0  ;;  %v8028_v7 = vsel %vm2552_vm15, 1.0, %v15253_v54  ;;  %v8540_v27 = vsel %vm4088_vm11, 1.0, %v15253_v54  ;;  %vm2568_vm14 = vcmp.gt.f32.partialorder %v15470_v37, %v15465_v48 }
 0x556   :  { %v7451_v40 = vadd.f32 %v7450_v60, %v7449_v32  ;;  %vm4104_vm2 = vcmp.eq.f32.partialorder %v15470_v37, %v15465_v48  ;;  %v6128_v55 = vadd.f32 %v8532_v16, %v8020_v8  ;;  %v7452_v57 = vsel %vm6545_vm13, %v6112_v14, 0.0  ;;  %v15476_v60 = vld [vmem:[#allocation61_spill] sm:$0xff] }
 0x557   :  { %vm2576_vm10 = vcmp.gt.f32.partialorder %v15471_v4, %v15465_v48  ;;  %v8036_v25 = vsel %vm2560_vm4, 1.0, %v15253_v54  ;;  %v8548_v46 = vsel %vm4096_vm9, 1.0, %v15253_v54  ;;  %vm2584_vm5 = vcmp.gt.f32.partialorder %v15472_v52, %v15465_v48 }
 0x558   :  { %v7453_v36 = vadd.f32 %v7452_v57, %v7451_v40  ;;  %vm4112_vm3 = vcmp.eq.f32.partialorder %v15471_v4, %v15465_v48  ;;  %v6136_v3 = vadd.f32 %v8540_v27, %v8028_v7  ;;  %v7454_v49 = vsel %vm6545_vm13, %v6120_v51, 0.0  ;;  %v15477_v57 = vld [vmem:[#allocation62_spill] sm:$0xff] }
 0x559   :  { %v8044_v41 = vsel %vm2568_vm14, 1.0, %v15253_v54  ;;  %vm4120_vm6 = vcmp.eq.f32.partialorder %v15472_v52, %v15465_v48  ;;  %v8556_v59 = vsel %vm4104_vm2, 1.0, %v15253_v54  ;;  %v6144_v47 = vadd.f32 %v8548_v46, %v8036_v25 }
 0x55a   :  { %v7455_v22 = vadd.f32 %v7454_v49, %v7453_v36  ;;  %v7456_v11 = vsel %vm6545_vm13, %v6128_v55, 0.0  ;;  %v9066_v10 = vpack.c.bf16 %v7621_v6, %v7620_v35  ;;  %v9070_v50 = vpack.c.bf16 %v7623_v17, %v7622_v58  ;;  %v15478_v6 = vld [vmem:[#allocation63_spill] sm:$0xff] }
 0x55b   :  { %v8052_v9 = vsel %vm2576_vm10, 1.0, %v15253_v54  ;;  %v8564_v23 = vsel %vm4112_vm3, 1.0, %v15253_v54  ;;  %vm2592_vm0 = vcmp.gt.f32.partialorder %v15473_v63, %v15465_v48  ;;  %vm4128_vm12 = vcmp.eq.f32.partialorder %v15473_v63, %v15465_v48  ;;  %v15481_v63 = vld [vmem:[#allocation66_spill] sm:$0xff] }
 0x55c   :  { %v7457_v26 = vadd.f32 %v7456_v11, %v7455_v22  ;;  %v6152_v31 = vadd.f32 %v8556_v59, %v8044_v41  ;;  %v7458_v34 = vsel %vm6545_vm13, %v6136_v3, 0.0  ;;  %9067 = vmatprep.subr.bf16.mxu1 %v9066_v10  ;;  %vm2600_vm1 = vcmp.gt.f32.partialorder %v15474_v5, %v15465_v48  ;;  %v15479_v41 = vld [vmem:[#allocation64_spill] sm:$0xff] }
 0x55d   :  { %v8060_v24 = vsel %vm2584_vm5, 1.0, %v15253_v54  ;;  %v8572_v56 = vsel %vm4120_vm6, 1.0, %v15253_v54  ;;  %9069 = vmatpush3.bf16.msra.mxu1 %v9066_v10  ;;  %vm4136_vm7 = vcmp.eq.f32.partialorder %v15474_v5, %v15465_v48  ;;  %v6160_v61 = vadd.f32 %v8564_v23, %v8052_v9 }
 0x55e   :  { %v7459_v13 = vadd.f32 %v7458_v34, %v7457_v26  ;;  %v7460_v29 = vsel %vm6545_vm13, %v6144_v47, 0.0  ;;  %9071 = vmatprep.subr.bf16.mxu1 %v9070_v50  ;;  %v9074_v0 = vpack.c.bf16 %v7625_v20, %v7624_v45  ;;  %v8068_v12 = vsel %vm2592_vm0, 1.0, %v15253_v54 }
 0x55f   :  { %v8580_v2 = vsel %vm4128_vm12, 1.0, %v15253_v54  ;;  %vm2608_vm8 = vcmp.gt.f32.partialorder %v15475_v44, %v15465_v48  ;;  %vm4144_vm15 = vcmp.eq.f32.partialorder %v15475_v44, %v15465_v48  ;;  %v6168_v8 = vadd.f32 %v8572_v56, %v8060_v24 }
 0x560   :  { %v7461_v14 = vadd.f32 %v7460_v29, %v7459_v13  ;;  %v7462_v16 = vsel %vm6545_vm13, %v6152_v31, 0.0  ;;  %v8076_v32 = vsel %vm2600_vm1, 1.0, %v15253_v54  ;;  %v8588_v1 = vsel %vm4136_vm7, 1.0, %v15253_v54  ;;  %v15482_v13 = vld [vmem:[#allocation67_spill] sm:$0xff] }
 0x561   :  { %9073 = vmatpush3.bf16.msra.mxu1 %v9070_v50  ;;  %vm2616_vm11 = vcmp.gt.f32.partialorder %v15476_v60, %v15465_v48  ;;  %vm4152_vm4 = vcmp.eq.f32.partialorder %v15476_v60, %v15465_v48  ;;  %v6176_v7 = vadd.f32 %v8580_v2, %v8068_v12  ;;  %v7464_v27 = vsel %vm6545_vm13, %v6160_v61, 0.0  ;;  %v15480_v50 = vld [vmem:[#allocation65_spill] sm:$0xff] }
 0x562   :  { %v7463_v51 = vadd.f32 %v7462_v16, %v7461_v14  ;;  %9075 = vmatprep.subr.bf16.mxu1 %v9074_v0  ;;  %v8084_v40 = vsel %vm2608_vm8, 1.0, %v15253_v54  ;;  %v8596_v37 = vsel %vm4144_vm15, 1.0, %v15253_v54  ;;  %vm2624_vm9 = vcmp.gt.f32.partialorder %v15477_v57, %v15465_v48  ;;  %v15483_v14 = vld [vmem:[#allocation68_spill] sm:$0xff] }
 0x563   :  { %vm4160_vm14 = vcmp.eq.f32.partialorder %v15477_v57, %v15465_v48  ;;  %v6184_v35 = vadd.f32 %v8588_v1, %v8076_v32  ;;  %v7466_v4 = vsel %vm6545_vm13, %v6168_v8, 0.0  ;;  %v8092_v25 = vsel %vm2616_vm11, 1.0, %v15253_v54 }
 0x564   :  { %v7465_v55 = vadd.f32 %v7464_v27, %v7463_v51  ;;  %v8604_v46 = vsel %vm4152_vm4, 1.0, %v15253_v54  ;;  %vm2632_vm2 = vcmp.gt.f32.partialorder %v15478_v6, %v15465_v48  ;;  %vm4168_vm10 = vcmp.eq.f32.partialorder %v15478_v6, %v15465_v48  ;;  %v15484_v51 = vld [vmem:[#allocation69_spill] sm:$0xff] }
 0x565   :  { %9077 = vmatpush3.bf16.msra.mxu1 %v9074_v0  ;;  %v6192_v58 = vadd.f32 %v8596_v37, %v8084_v40  ;;  %v7468_v17 = vsel %vm6545_vm13, %v6176_v7, 0.0  ;;  %v8100_v52 = vsel %vm2624_vm9, 1.0, %v15253_v54  ;;  %v8612_v3 = vsel %vm4160_vm14, 1.0, %v15253_v54 }
 0x566   :  { %v7467_v36 = vadd.f32 %v7466_v4, %v7465_v55  ;;  %vm2640_vm5 = vcmp.gt.f32.partialorder %v15479_v41, %v15465_v48  ;;  %vm4176_vm3 = vcmp.eq.f32.partialorder %v15479_v41, %v15465_v48  ;;  %v6200_v59 = vadd.f32 %v8604_v46, %v8092_v25  ;;  %v15485_v55 = vld [vmem:[#allocation70_spill] sm:$0xff] }
 0x567   :  { %v7470_v22 = vsel %vm6545_vm13, %v6184_v35, 0.0  ;;  %v8108_v47 = vsel %vm2632_vm2, 1.0, %v15253_v54  ;;  %v8620_v11 = vsel %vm4168_vm10, 1.0, %v15253_v54  ;;  %vm2648_vm6 = vcmp.gt.f32.partialorder %v15480_v50, %v15465_v48 }
 0x568   :  { %v7469_v49 = vadd.f32 %v7468_v17, %v7467_v36  ;;  %vm4184_vm0 = vcmp.eq.f32.partialorder %v15480_v50, %v15465_v48  ;;  %v6208_v9 = vadd.f32 %v8612_v3, %v8100_v52  ;;  %v7472_v23 = vsel %vm6545_vm13, %v6192_v58, 0.0  ;;  %v15486_v36 = vld [vmem:[#allocation71_spill] sm:$0xff] }
 0x569   :  { %v8116_v26 = vsel %vm2640_vm5, 1.0, %v15253_v54  ;;  %v8628_v45 = vsel %vm4176_vm3, 1.0, %v15253_v54  ;;  %vm2656_vm12 = vcmp.gt.f32.partialorder %v15481_v63, %v15465_v48  ;;  %vm4192_vm1 = vcmp.eq.f32.partialorder %v15481_v63, %v15465_v48 }
 0x56a   :  { %v7471_v10 = vadd.f32 %v7470_v22, %v7469_v49  ;;  %v6216_v31 = vadd.f32 %v8620_v11, %v8108_v47  ;;  %v7474_v34 = vsel %vm6545_vm13, %v6200_v59, 0.0  ;;  %v8124_v5 = vsel %vm2648_vm6, 1.0, %v15253_v54  ;;  %v15487_v49 = vld [vmem:[#allocation72_spill] sm:$0xff] }
 0x56b   :  { %v8636_v24 = vsel %vm4184_vm0, 1.0, %v15253_v54  ;;  %vm2664_vm7 = vcmp.gt.f32.partialorder %v15482_v13, %v15465_v48  ;;  %vm4200_vm8 = vcmp.eq.f32.partialorder %v15482_v13, %v15465_v48  ;;  %v6224_v61 = vadd.f32 %v8628_v45, %v8116_v26 }
 0x56c   :  { %v7473_v20 = vadd.f32 %v7472_v23, %v7471_v10  ;;  %v7476_v29 = vsel %vm6545_vm13, %v6208_v9, 0.0  ;;  %v8132_v0 = vsel %vm2656_vm12, 1.0, %v15253_v54  ;;  %v8644_v12 = vsel %vm4192_vm1, 1.0, %v15253_v54  ;;  %v15488_v10 = vld [vmem:[#allocation73_spill] sm:$0xff] }
 0x56d   :  { %vm2672_vm15 = vcmp.gt.f32.partialorder %v15483_v14, %v15465_v48  ;;  %vm4208_vm11 = vcmp.eq.f32.partialorder %v15483_v14, %v15465_v48  ;;  %v6232_v44 = vadd.f32 %v8636_v24, %v8124_v5  ;;  %v7478_v8 = vsel %vm6545_vm13, %v6216_v31, 0.0 }
 0x56e   :  { %v7475_v56 = vadd.f32 %v7474_v34, %v7473_v20  ;;  %v8140_v16 = vsel %vm2664_vm7, 1.0, %v15253_v54  ;;  %v8652_v32 = vsel %vm4200_vm8, 1.0, %v15253_v54  ;;  %vm2680_vm4 = vcmp.gt.f32.partialorder %v15484_v51, %v15465_v48  ;;  %v15489_v20 = vld [vmem:[#allocation20_spill] sm:$0xff] }
 0x56f   :  { %vm4216_vm9 = vcmp.eq.f32.partialorder %v15484_v51, %v15465_v48  ;;  %v6240_v60 = vadd.f32 %v8644_v12, %v8132_v0  ;;  %v7480_v7 = vsel %vm6545_vm13, %v6224_v61, 0.0  ;;  %v8148_v27 = vsel %vm2672_vm15, 1.0, %v15253_v54 }
 0x570   :  { %v7477_v2 = vadd.f32 %v7476_v29, %v7475_v56  ;;  %v8660_v40 = vsel %vm4208_vm11, 1.0, %v15253_v54  ;;  %vm2688_vm14 = vcmp.gt.f32.partialorder %v15485_v55, %v15465_v48  ;;  %vm4224_vm2 = vcmp.eq.f32.partialorder %v15485_v55, %v15465_v48  ;;  %v15490_v56 = vld [vmem:[#allocation21_spill] sm:$0xff] }
 0x571   :  { %v6248_v57 = vadd.f32 %v8652_v32, %v8140_v16  ;;  %v7482_v35 = vsel %vm6545_vm13, %v6232_v44, 0.0  ;;  %v8156_v4 = vsel %vm2680_vm4, 1.0, %v15253_v54  ;;  %v8668_v25 = vsel %vm4216_vm9, 1.0, %v15253_v54 }
 0x572   :  { %v7479_v1 = vadd.f32 %v7478_v8, %v7477_v2  ;;  %vm2696_vm10 = vcmp.gt.f32.partialorder %v15486_v36, %v15465_v48  ;;  %vm4232_vm5 = vcmp.eq.f32.partialorder %v15486_v36, %v15465_v48  ;;  %v6256_v6 = vadd.f32 %v8660_v40, %v8148_v27  ;;  %v15491_v2 = vld [vmem:[#allocation22_spill] sm:$0xff] }
 0x573   :  { %v7484_v58 = vsel %vm6545_vm13, %v6240_v60, 0.0  ;;  %v8164_v17 = vsel %vm2688_vm14, 1.0, %v15253_v54  ;;  %v8676_v52 = vsel %vm4224_vm2, 1.0, %v15253_v54  ;;  %vm2704_vm3 = vcmp.gt.f32.partialorder %v15487_v49, %v15465_v48 }
 0x574   :  { %v7481_v37 = vadd.f32 %v7480_v7, %v7479_v1  ;;  %vm4240_vm6 = vcmp.eq.f32.partialorder %v15487_v49, %v15465_v48  ;;  %v6264_v41 = vadd.f32 %v8668_v25, %v8156_v4  ;;  %v7486_v59 = vsel %vm6545_vm13, %v6248_v57, 0.0  ;;  %v15492_v1 = vld [vmem:[#allocation23_spill] sm:$0xff] }
 0x575   :  { %v8172_v22 = vsel %vm2696_vm10, 1.0, %v15253_v54  ;;  %v8684_v47 = vsel %vm4232_vm5, 1.0, %v15253_v54  ;;  %vm2712_vm0 = vcmp.gt.f32.partialorder %v15488_v10, %v15465_v48  ;;  %vm4248_vm12 = vcmp.eq.f32.partialorder %v15488_v10, %v15465_v48 }
 0x576   :  { %v7483_v46 = vadd.f32 %v7482_v35, %v7481_v37  ;;  %v6272_v50 = vadd.f32 %v8676_v52, %v8164_v17  ;;  %v7488_v9 = vsel %vm6545_vm13, %v6256_v6, 0.0  ;;  %v8180_v23 = vsel %vm2704_vm3, 1.0, %v15253_v54  ;;  %v15493_v37 = vld [vmem:[#allocation24_spill] sm:$0xff]  ;;  %v15494_v35 = vld [vmem:[#allocation15_spill] sm:$0xff]  ;;  %v15495_v6 = vld [vmem:[#allocation25_spill] sm:$0xff] }
 0x577   :  { %v8692_v26 = vsel %vm4240_vm6, 1.0, %v15253_v54  ;;  %vm2720_vm1 = vcmp.gt.f32.partialorder %v15489_v20, %v15465_v48  ;;  %vm4256_vm7 = vcmp.eq.f32.partialorder %v15489_v20, %v15465_v48  ;;  %v6280_v63 = vadd.f32 %v8684_v47, %v8172_v22 }
 0x578   :  { %v7485_v3 = vadd.f32 %v7484_v58, %v7483_v46  ;;  %v7490_v31 = vsel %vm6545_vm13, %v6264_v41, 0.0  ;;  %v8188_v34 = vsel %vm2712_vm0, 1.0, %v15253_v54  ;;  %v8700_v5 = vsel %vm4248_vm12, 1.0, %v15253_v54  ;;  %v15496_v41 = vld [vmem:[#allocation26_spill] sm:$0xff] }
 0x579   :  { %vm2728_vm8 = vcmp.gt.f32.partialorder %v15490_v56, %v15465_v48  ;;  %vm4264_vm15 = vcmp.eq.f32.partialorder %v15490_v56, %v15465_v48  ;;  %v6288_v13 = vadd.f32 %v8692_v26, %v8180_v23  ;;  %v7492_v61 = vsel %vm6545_vm13, %v6272_v50, 0.0  ;;  %v15497_v50 = vld [vmem:[#allocation27_spill] sm:$0xff] }
 0x57a   :  { %v7487_v11 = vadd.f32 %v7486_v59, %v7485_v3  ;;  %v8196_v29 = vsel %vm2720_vm1, 1.0, %v15253_v54  ;;  %v8708_v0 = vsel %vm4256_vm7, 1.0, %v15253_v54  ;;  %vm2736_vm11 = vcmp.gt.f32.partialorder %v15491_v2, %v15465_v48 }
 0x57b   :  { %vm4272_vm4 = vcmp.eq.f32.partialorder %v15491_v2, %v15465_v48  ;;  %v6296_v14 = vadd.f32 %v8700_v5, %v8188_v34  ;;  %v7494_v44 = vsel %vm6545_vm13, %v6280_v63, 0.0  ;;  %v8204_v8 = vsel %vm2728_vm8, 1.0, %v15253_v54  ;;  %v15498_v63 = vld [vmem:[#allocation28_spill] sm:$0xff] }
 0x57c   :  { %v7489_v45 = vadd.f32 %v7488_v9, %v7487_v11  ;;  %v8716_v16 = vsel %vm4264_vm15, 1.0, %v15253_v54  ;;  %vm2744_vm9 = vcmp.gt.f32.partialorder %v15492_v1, %v15465_v48  ;;  %vm4280_vm14 = vcmp.eq.f32.partialorder %v15492_v1, %v15465_v48 }
 0x57d   :  { %v6304_v51 = vadd.f32 %v8708_v0, %v8196_v29  ;;  %v7496_v60 = vsel %vm6545_vm13, %v6288_v13, 0.0  ;;  %v8212_v7 = vsel %vm2736_vm11, 1.0, %v15253_v54  ;;  %v8724_v27 = vsel %vm4272_vm4, 1.0, %v15253_v54  ;;  %v15499_v13 = vld [vmem:[#allocation29_spill] sm:$0xff] }
 0x57e   :  { %v7491_v24 = vadd.f32 %v7490_v31, %v7489_v45  ;;  %vm2752_vm2 = vcmp.gt.f32.partialorder %v15493_v37, %v15465_v48  ;;  %vm4288_vm10 = vcmp.eq.f32.partialorder %v15493_v37, %v15465_v48  ;;  %v6312_v55 = vadd.f32 %v8716_v16, %v8204_v8 }
 0x57f   :  { %v7498_v57 = vsel %vm6545_vm13, %v6296_v14, 0.0  ;;  %v14576_v4 = vadd.s32 56, %v15494_v35  ;;  %v8220_v25 = vsel %vm2744_vm9, 1.0, %v15253_v54  ;;  %v8732_v46 = vsel %vm4280_vm14, 1.0, %v15253_v54  ;;  %v15500_v14 = vld [vmem:[#allocation30_spill] sm:$0xff] }
 0x580   :  { %v7493_v12 = vadd.f32 %v7492_v61, %v7491_v24  ;;  %vm2760_vm5 = vcmp.gt.f32.partialorder %v15495_v6, %v15465_v48  ;;  %vm4296_vm3 = vcmp.eq.f32.partialorder %v15495_v6, %v15465_v48  ;;  %v6320_v58 = vadd.f32 %v8724_v27, %v8212_v7 }
 0x581   :  { %v7500_v17 = vsel %vm6545_vm13, %v6304_v51, 0.0  ;;  %v8228_v52 = vsel %vm2752_vm2, 1.0, %v15253_v54  ;;  %v8740_v3 = vsel %vm4288_vm10, 1.0, %v15253_v54  ;;  %vm2768_vm6 = vcmp.gt.f32.partialorder %v15496_v41, %v15465_v48  ;;  %v15501_v51 = vld [vmem:[#allocation31_spill] sm:$0xff] }
 0x582   :  { %v7495_v32 = vadd.f32 %v7494_v44, %v7493_v12  ;;  %vm4304_vm0 = vcmp.eq.f32.partialorder %v15496_v41, %v15465_v48  ;;  %v6328_v59 = vadd.f32 %v8732_v46, %v8220_v25  ;;  %v7502_v22 = vsel %vm6545_vm13, %v6312_v55, 0.0 }
 0x583   :  { %vm1048_vm12 = vcmp.gt.s32.totalorder %v14576_v4, 56  ;;  %v8236_v47 = vsel %vm2760_vm5, 1.0, %v15253_v54  ;;  %v8748_v11 = vsel %vm4296_vm3, 1.0, %v15253_v54  ;;  %vm2776_vm1 = vcmp.gt.f32.partialorder %v15497_v50, %v15465_v48 }
 0x584   :  { %v7497_v40 = vadd.f32 %v7496_v60, %v7495_v32  ;;  %vm4312_vm7 = vcmp.eq.f32.partialorder %v15497_v50, %v15465_v48  ;;  %v6336_v9 = vadd.f32 %v8740_v3, %v8228_v52  ;;  %v7504_v23 = vsel %vm6545_vm13, %v6320_v58, 0.0 }
 0x585   :  { %vm1056_vm8 = vcmp.gt.s32.totalorder %v14576_v4, 57  ;;  %v8244_v26 = vsel %vm2768_vm6, 1.0, %v15253_v54  ;;  %v8756_v45 = vsel %vm4304_vm0, 1.0, %v15253_v54  ;;  %vm2784_vm15 = vcmp.gt.f32.partialorder %v15498_v63, %v15465_v48 }
 0x586   :  { %v7499_v36 = vadd.f32 %v7498_v57, %v7497_v40  ;;  %vm4320_vm11 = vcmp.eq.f32.partialorder %v15498_v63, %v15465_v48  ;;  %v6344_v31 = vadd.f32 %v8748_v11, %v8236_v47  ;;  %v7506_v34 = vsel %vm6545_vm13, %v6328_v59, 0.0  ;;  %v15502_v57 = vld [vmem:[#allocation32_spill] sm:$0xff]  ;;  %v15504_v47 = vld [vmem:[#allocation34_spill] sm:$0xff] }
 0x587   :  { %vm1064_vm4 = vcmp.gt.s32.totalorder %v14576_v4, 58  ;;  %v8252_v5 = vsel %vm2776_vm1, 1.0, %v15253_v54  ;;  %v8764_v24 = vsel %vm4312_vm7, 1.0, %v15253_v54  ;;  %vm2792_vm9 = vcmp.gt.f32.partialorder %v15499_v13, %v15465_v48 }
 0x588   :  { %v7501_v49 = vadd.f32 %v7500_v17, %v7499_v36  ;;  %vm4328_vm14 = vcmp.eq.f32.partialorder %v15499_v13, %v15465_v48  ;;  %v6352_v61 = vadd.f32 %v8756_v45, %v8244_v26  ;;  %v7508_v29 = vsel %vm6545_vm13, %v6336_v9, 0.0  ;;  %v15503_v17 = vld [vmem:[#allocation33_spill] sm:$0xff]  ;;  %v15505_v45 = vld [vmem:[#allocation35_spill] sm:$0xff] }
 0x589   :  { %vm1072_vm2 = vcmp.gt.s32.totalorder %v14576_v4, 59  ;;  %v8260_v0 = vsel %vm2784_vm15, 1.0, %v15253_v54  ;;  %v8772_v12 = vsel %vm4320_vm11, 1.0, %v15253_v54  ;;  %vm2800_vm10 = vcmp.gt.f32.partialorder %v15500_v14, %v15465_v48 }
 0x58a   :  { %v7503_v10 = vadd.f32 %v7502_v22, %v7501_v49  ;;  %vm4336_vm5 = vcmp.eq.f32.partialorder %v15500_v14, %v15465_v48  ;;  %v6360_v44 = vadd.f32 %v8764_v24, %v8252_v5  ;;  %v7510_v8 = vsel %vm6545_vm13, %v6344_v31, 0.0 }
 0x58b   :  { %vm1080_vm3 = vcmp.gt.s32.totalorder %v14576_v4, 60  ;;  %v8268_v16 = vsel %vm2792_vm9, 1.0, %v15253_v54  ;;  %v8780_v32 = vsel %vm4328_vm14, 1.0, %v15253_v54  ;;  %vm1088_vm6 = vcmp.gt.s32.totalorder %v14576_v4, 61 }
 0x58c   :  { %v7505_v20 = vadd.f32 %v7504_v23, %v7503_v10  ;;  %vm2808_vm0 = vcmp.gt.f32.partialorder %v15501_v51, %v15465_v48  ;;  %vm4344_vm1 = vcmp.eq.f32.partialorder %v15501_v51, %v15465_v48  ;;  %v6368_v60 = vadd.f32 %v8772_v12, %v8260_v0 }
 0x58d   :  { %v7512_v7 = vsel %vm6545_vm13, %v6352_v61, 0.0  ;;  %v14636_v27 = vsel %vm1048_vm12, 1.0, %v15253_v54  ;;  %v8276_v40 = vsel %vm2800_vm10, 1.0, %v15253_v54  ;;  %v8788_v37 = vsel %vm4336_vm5, 1.0, %v15253_v54 }
 0x58e   :  { %v7507_v56 = vadd.f32 %v7506_v34, %v7505_v20  ;;  %vm1096_vm7 = vcmp.gt.s32.totalorder %v14576_v4, 62  ;;  %vm2816_vm15 = vcmp.gt.f32.partialorder %v15502_v57, %v15465_v48  ;;  %vm4352_vm11 = vcmp.eq.f32.partialorder %v15502_v57, %v15465_v48 }
 0x58f   :  { %v6376_v35 = vadd.f32 %v8780_v32, %v8268_v16  ;;  %v7514_v25 = vsel %vm6545_vm13, %v6360_v44, 0.0  ;;  %v14649_v46 = vsel %vm1056_vm8, 1.0, %v15253_v54  ;;  %v8284_v36 = vsel %vm2808_vm0, 1.0, %v15253_v54 }
 0x590   :  { %v7509_v2 = vadd.f32 %v7508_v29, %v7507_v56  ;;  %v8796_v6 = vsel %vm4344_vm1, 1.0, %v15253_v54  ;;  %vm2824_vm12 = vcmp.gt.f32.partialorder %v15503_v17, %v15465_v48  ;;  %vm4360_vm9 = vcmp.eq.f32.partialorder %v15503_v17, %v15465_v48  ;;  %v15506_v56 = vld [vmem:[#allocation36_spill] sm:$0xff] }
 0x591   :  { %v6384_v52 = vadd.f32 %v8788_v37, %v8276_v40  ;;  %v7516_v3 = vsel %vm6545_vm13, %v6368_v60, 0.0  ;;  %v14661_v49 = vsel %vm1064_vm4, 1.0, %v15253_v54  ;;  %v8292_v41 = vsel %vm2816_vm15, 1.0, %v15253_v54 }
 0x592   :  { %v7511_v1 = vadd.f32 %v7510_v8, %v7509_v2  ;;  %v8804_v59 = vsel %vm4352_vm11, 1.0, %v15253_v54  ;;  %vm2832_vm8 = vcmp.gt.f32.partialorder %v15504_v47, %v15465_v48  ;;  %vm4368_vm14 = vcmp.eq.f32.partialorder %v15504_v47, %v15465_v48 }
 0x593   :  { %v6392_v11 = vadd.f32 %v8796_v6, %v8284_v36  ;;  %v7518_v10 = vsel %vm6545_vm13, %v6376_v35, 0.0  ;;  %v14673_v50 = vsel %vm1072_vm2, 1.0, %v15253_v54  ;;  %v8300_v9 = vsel %vm2824_vm12, 1.0, %v15253_v54 }
 0x594   :  { %v7513_v55 = vadd.f32 %v7512_v7, %v7511_v1  ;;  %v8812_v23 = vsel %vm4360_vm9, 1.0, %v15253_v54  ;;  %vm2840_vm4 = vcmp.gt.f32.partialorder %v15505_v45, %v15465_v48  ;;  %vm4376_vm10 = vcmp.eq.f32.partialorder %v15505_v45, %v15465_v48 }
 0x595   :  { %v6400_v20 = vadd.f32 %v8804_v59, %v8292_v41  ;;  %v7520_v63 = vsel %vm6545_vm13, %v6384_v52, 0.0  ;;  %v14685_v31 = vsel %vm1080_vm3, 1.0, %v15253_v54  ;;  %v8308_v34 = vsel %vm2832_vm8, 1.0, %v15253_v54 }
 0x596   :  { %v7515_v58 = vadd.f32 %v7514_v25, %v7513_v55  ;;  %v8820_v5 = vsel %vm4368_vm14, 1.0, %v15253_v54  ;;  %vm2848_vm2 = vcmp.gt.f32.partialorder %v15506_v56, %v15465_v48  ;;  %vm4384_vm5 = vcmp.eq.f32.partialorder %v15506_v56, %v15465_v48  ;;  %v7627_v56 = vld [vmem:[#allocation6 + $0x38] sm:$0xff] }
 0x597   :  { %v6408_v13 = vadd.f32 %v8812_v23, %v8300_v9  ;;  %v7522_v61 = vsel %vm6545_vm13, %v6392_v11, 0.0  ;;  %v14697_v29 = vsel %vm1088_vm6, 1.0, %v15253_v54  ;;  %v8316_v0 = vsel %vm2840_vm4, 1.0, %v15253_v54 }
 0x598   :  { %v7517_v22 = vadd.f32 %v7516_v3, %v7515_v58  ;;  %v8828_v12 = vsel %vm4376_vm10, 1.0, %v15253_v54  ;;  %vm2856_vm3 = vcmp.gt.f32.partialorder %v15449_v42, %v15465_v48  ;;  %vm4392_vm0 = vcmp.eq.f32.partialorder %v15449_v42, %v15465_v48 }
 0x599   :  { %v6416_v14 = vadd.f32 %v8820_v5, %v8308_v34  ;;  %v7524_v44 = vsel %vm6545_vm13, %v6400_v20, 0.0  ;;  %v14709_v8 = vsel %vm1096_vm7, 1.0, %v15253_v54  ;;  %v8324_v16 = vsel %vm2848_vm2, 1.0, %v15253_v54 }
 0x59a   :  { %v7519_v26 = vadd.f32 %v7518_v10, %v7517_v22  ;;  %v8836_v32 = vsel %vm4384_vm5, 1.0, %v15253_v54  ;;  %vm2864_vm6 = vcmp.gt.f32.partialorder %v15450_v21, %v15465_v48  ;;  %vm4400_vm1 = vcmp.eq.f32.partialorder %v15450_v21, %v15465_v48 }
 0x59b   :  { %v6424_v42 = vadd.f32 %v8828_v12, %v8316_v0  ;;  %v7526_v51 = vsel %vm6545_vm13, %v6408_v13, 0.0  ;;  %vm2872_vm15 = vcmp.gt.f32.partialorder %v15451_v33, %v15465_v48  ;;  %v8332_v4 = vsel %vm2856_vm3, 1.0, %v15253_v54 }
 0x59c   :  { %v7521_v24 = vadd.f32 %v7520_v63, %v7519_v26  ;;  %v8844_v60 = vsel %vm4392_vm0, 1.0, %v15253_v54  ;;  %vm2880_vm7 = vcmp.gt.f32.partialorder %v15452_v15, %v15465_v48  ;;  %vm4408_vm11 = vcmp.eq.f32.partialorder %v15451_v33, %v15465_v48 }
 0x59d   :  { %v6432_v40 = vadd.f32 %v8836_v32, %v8324_v16  ;;  %v7528_v21 = vsel %vm6545_vm13, %v6416_v14, 0.0  ;;  %vm2888_vm12 = vcmp.gt.f32.partialorder %v15417_v62, %v15465_v48  ;;  %v8340_v37 = vsel %vm2864_vm6, 1.0, %v15253_v54 }
 0x59e   :  { %v7523_v2 = vadd.f32 %v7522_v61, %v7521_v24  ;;  %v8852_v55 = vsel %vm4400_vm1, 1.0, %v15253_v54  ;;  %vm2896_vm9 = vcmp.gt.f32.partialorder %v15418_v30, %v15465_v48  ;;  %vm4416_vm8 = vcmp.eq.f32.partialorder %v15452_v15, %v15465_v48  ;;  %v7626_v24 = vld [vmem:[#allocation6 + $0x30] sm:$0xff] }
 0x59f   :  { %v6440_v35 = vadd.f32 %v8844_v60, %v8332_v4  ;;  %v7530_v25 = vsel %vm6545_vm13, %v6424_v42, 0.0  ;;  %vm2904_vm14 = vcmp.gt.f32.partialorder %v15453_v53, %v15465_v48  ;;  %v8348_v36 = vsel %vm2872_vm15, 1.0, %v15253_v54 }
 0x5a0   :  { %v7525_v1 = vadd.f32 %v7524_v44, %v7523_v2  ;;  %v8860_v6 = vsel %vm4408_vm11, 1.0, %v15253_v54  ;;  %vm4424_vm4 = vcmp.eq.f32.partialorder %v15417_v62, %v15465_v48  ;;  %vm4440_vm10 = vcmp.eq.f32.partialorder %v15453_v53, %v15465_v48 }
 0x5a1   :  { %v6448_v17 = vadd.f32 %v8852_v55, %v8340_v37  ;;  %v7532_v52 = vsel %vm6545_vm13, %v6432_v40, 0.0  ;;  %vm2912_vm2 = vcmp.gt.f32.partialorder %v15454_v28, %v15465_v48  ;;  %v8356_v33 = vsel %vm2880_vm7, 1.0, %v15253_v54  ;;  %v7717_v40 = vld [vmem:[%s14913_s4 + $0x10] sm:$0xff]  ;;  %v7718_v55 = vld [vmem:[%s14913_s4 + $0x18] sm:$0xff] }
 0x5a2   :  { %v7527_v7 = vadd.f32 %v7526_v51, %v7525_v1  ;;  %v8868_v3 = vsel %vm4416_vm8, 1.0, %v15253_v54  ;;  %vm4432_vm5 = vcmp.eq.f32.partialorder %v15418_v30, %v15465_v48  ;;  %vm4448_vm3 = vcmp.eq.f32.partialorder %v15454_v28, %v15465_v48 }
 0x5a3   :  { %v6456_v59 = vadd.f32 %v8860_v6, %v8348_v36  ;;  %v7534_v22 = vsel %vm6545_vm13, %v6440_v35, 0.0  ;;  %v8364_v47 = vsel %vm2888_vm12, 1.0, %v15253_v54  ;;  %v8876_v15 = vsel %vm4424_vm4, 1.0, %v15253_v54 }
 0x5a4   :  { %v7529_v57 = vadd.f32 %v7528_v21, %v7527_v7  ;;  %v8892_v11 = vsel %vm4440_vm10, 1.0, %v15253_v54  ;;  %vm2920_vm0 = vcmp.gt.f32.partialorder %v15455_v18, %v15465_v48  ;;  %vm4456_vm6 = vcmp.eq.f32.partialorder %v15455_v18, %v15465_v48  ;;  %v7715_v7 = vld [vmem:[%s14913_s4] sm:$0xff]  ;;  %v7716_v18 = vld [vmem:[%s14913_s4 + $0x8] sm:$0xff] }
 0x5a5   :  { %v6464_v9 = vadd.f32 %v8868_v3, %v8356_v33  ;;  %v7536_v23 = vsel %vm6545_vm13, %v6448_v17, 0.0  ;;  %v8372_v62 = vsel %vm2896_vm9, 1.0, %v15253_v54  ;;  %v8884_v26 = vsel %vm4432_vm5, 1.0, %v15253_v54 }
 0x5a6   :  { %v7531_v58 = vadd.f32 %v7530_v25, %v7529_v57  ;;  %v8900_v45 = vsel %vm4448_vm3, 1.0, %v15253_v54  ;;  %vm4464_vm1 = vcmp.eq.f32.partialorder %v15456_v19, %v15465_v48  ;;  %v5976_v63 = vmul.f32 %v8892_v11, %v14636_v27 }
 0x5a7   :  { %v6472_v34 = vadd.f32 %v8876_v15, %v8364_v47  ;;  %v7538_v5 = vsel %vm6545_vm13, %v6456_v59, 0.0  ;;  %v8380_v30 = vsel %vm2904_vm14, 1.0, %v15253_v54  ;;  %v8908_v13 = vsel %vm4456_vm6, 1.0, %v15253_v54 }
 0x5a8   :  { %v7533_v41 = vadd.f32 %v7532_v52, %v7531_v58  ;;  %v9078_v0 = vpack.c.bf16 %v7627_v56, %v7626_v24  ;;  %vm4472_vm15 = vcmp.eq.f32.partialorder %v15392_v43, %v15465_v48  ;;  %v5984_v12 = vmul.f32 %v8900_v45, %v14649_v46  ;;  %v15507_v46 = vld [vmem:[#allocation48_spill] sm:$0xff] }
 0x5a9   :  { %v6480_v27 = vadd.f32 %v8884_v26, %v8372_v62  ;;  %v7540_v2 = vsel %vm6545_vm13, %v6464_v9, 0.0  ;;  %vm2928_vm7 = vcmp.gt.f32.partialorder %v15456_v19, %v15465_v48  ;;  %v8388_v53 = vsel %vm2912_vm2, 1.0, %v15253_v54 }
 0x5aa   :  { %v7535_v10 = vadd.f32 %v7534_v22, %v7533_v41  ;;  %v8916_v14 = vsel %vm4464_vm1, 1.0, %v15253_v54  ;;  %9079 = vmatprep.subr.bf16.mxu1 %v9078_v0  ;;  %vm4480_vm11 = vcmp.eq.f32.partialorder %v15507_v46, %v15465_v48  ;;  %v5992_v16 = vmul.f32 %v8908_v13, %v14661_v49 }
 0x5ab   :  { %v6488_v32 = vadd.f32 %v8380_v30, %v5976_v63  ;;  %v7542_v1 = vsel %vm6545_vm13, %v6472_v34, 0.0  ;;  %9081 = vmatpush3.bf16.msra.mxu1 %v9078_v0  ;;  %vm2936_vm12 = vcmp.gt.f32.partialorder %v15392_v43, %v15465_v48  ;;  %v8396_v28 = vsel %vm2920_vm0, 1.0, %v15253_v54  ;;  %v9116_v30 = vld [vmem:[#allocation3] sm:$0xff]  ;;  %v9117_v0 = vld [vmem:[#allocation3 + $0x8] sm:$0xff] }
 0x5ac   :  { %v7537_v20 = vadd.f32 %v7536_v23, %v7535_v10  ;;  %v8924_v42 = vsel %vm4472_vm15, 1.0, %v15253_v54  ;;  %vm4488_vm9 = vcmp.eq.f32.partialorder %v15365_v39, %v15465_v48  ;;  %v6000_v49 = vmul.f32 %v8916_v14, %v14673_v50  ;;  %v7722_v14 = vld [vmem:[%s14913_s4 + $0x38] sm:$0xff] }
 0x5ad   :  { %v6496_v4 = vadd.f32 %v8388_v53, %v5984_v12  ;;  %v7544_v60 = vsel %vm6545_vm13, %v6480_v27, 0.0  ;;  %vm4496_vm8 = vcmp.eq.f32.partialorder %v15366_v38, %v15465_v48  ;;  %v8932_v50 = vsel %vm4480_vm11, 1.0, %v15253_v54  ;;  %v7719_v27 = vld [vmem:[%s14913_s4 + $0x20] sm:$0xff] }
 0x5ae   :  { %v7539_v61 = vadd.f32 %v7538_v5, %v7537_v20  ;;  %v9082_v37 = vpack.c.bf16 %v7716_v18, %v7715_v7  ;;  %v6008_v57 = vmul.f32 %v8924_v42, %v14685_v31  ;;  %v6504_v35 = vadd.f32 %v8396_v28, %v5992_v16 }
 0x5af   :  { %v7546_v25 = vsel %vm6545_vm13, %v6488_v32, 0.0  ;;  %v9086_v36 = vpack.c.bf16 %v7718_v55, %v7717_v40  ;;  %v8404_v6 = vsel %vm2928_vm7, 1.0, %v15253_v54  ;;  %v8412_v58 = vsel %vm2936_vm12, 1.0, %v15253_v54 }
 0x5b0   :  { %v7541_v44 = vadd.f32 %v7540_v2, %v7539_v61  ;;  %v8940_v17 = vsel %vm4488_vm9, 1.0, %v15253_v54  ;;  %9083 = vmatprep.subr.bf16.mxu0 %v9082_v37  ;;  %vm2944_vm14 = vcmp.gt.f32.partialorder %v15507_v46, %v15465_v48  ;;  %v6016_v52 = vmul.f32 %v8932_v50, %v14697_v29  ;;  %v7720_v2 = vld [vmem:[%s14913_s4 + $0x28] sm:$0xff] }
 0x5b1   :  { %v6512_v33 = vadd.f32 %v8404_v6, %v6000_v49  ;;  %v7548_v19 = vsel %vm6545_vm13, %v6496_v4, 0.0  ;;  %9085 = vmatpush3.bf16.msra.mxu0 %v9082_v37  ;;  %v8948_v43 = vsel %vm4496_vm8, 1.0, %v15253_v54  ;;  %vm2952_vm4 = vcmp.gt.f32.partialorder %v15365_v39, %v15465_v48 }
 0x5b2   :  { %v7543_v51 = vadd.f32 %v7542_v1, %v7541_v44  ;;  %9087 = vmatprep.subr.bf16.mxu0 %v9086_v36  ;;  %v6024_v41 = vmul.f32 %v8940_v17, %v14709_v8  ;;  %v6520_v59 = vadd.f32 %v8412_v58, %v6008_v57  ;;  %v7550_v22 = vsel %vm6545_vm13, %v6504_v35, 0.0 }
 0x5b3   :  { %v8420_v29 = vsel %vm2944_vm14, 1.0, %v15253_v54  ;;  %vm2960_vm10 = vcmp.gt.f32.partialorder %v15366_v38, %v15465_v48  ;;  %v6032_v15 = vmul.f32 0.0, %v8948_v43  ;;  %v7552_v10 = vsel %vm6545_vm13, %v6512_v33, 0.0 }
 0x5b4   :  { %v7545_v21 = vadd.f32 %v7544_v60, %v7543_v51  ;;  %v6528_v11 = vadd.f32 %v8420_v29, %v6016_v52  ;;  %v8428_v9 = vsel %vm2952_vm4, 1.0, %v15253_v54  ;;  %v7554_v8 = vsel %vm6545_vm13, %v6520_v59, 0.0 }
 0x5b5   :  { %9089 = vmatpush3.bf16.msra.mxu0 %v9086_v36  ;;  %v6536_v39 = vadd.f32 %v8428_v9, %v6024_v41  ;;  %v8436_v62 = vsel %vm2960_vm10, 1.0, %v15253_v54  ;;  %vm15508_vm5 = vcmask 523264   ;;  %v9090_v53 = vpack.c.bf16 %v7720_v2, %v7719_v27 }
 0x5b6   :  { %v7547_v31 = vadd.f32 %v7546_v25, %v7545_v21  ;;  %v6544_v45 = vadd.f32 %v8436_v62, %v6032_v15  ;;  %v7556_v20 = vsel %vm6545_vm13, %v6528_v11, 0.0  ;;  %vm15509_vm3 = vmmov %vm15508_vm5  ;;  %v9196_v4 = vmov 0  }
 0x5b7   :  { %v7558_v38 = vsel %vm6545_vm13, %v6536_v39, 0.0  ;;  %9091 = vmatprep.subr.bf16.mxu0 %v9090_v53  ;;  %vm15511_vm0 = vmmov %vm15509_vm3  ;;  %9106 = vset.pattern.permute.xlu0 %v9196_v4  ;;  %v7724_v60 = vstv %s14914_s5  ;;  %s9197_s5 = smov [#allocation8]  }
 0x5b8   :  { %v7549_v3 = vadd.f32 %v7548_v19, %v7547_v31  ;;  %v7560_v34 = vsel %vm6545_vm13, %v6544_v45, 0.0  ;;  %vm15510_vm13 = vmmov %vm15509_vm3  ;;  %s7853_s30 = sshll.u32 %s9197_s5, 4  ;;  %s7854_s30 = int_to_ptr.vmem [resolvable:$true] %s7853_s30 }
 0x5b9   :  { %9093 = vmatpush3.bf16.msra.mxu0 %v9090_v53  ;;  %vm15512_vm6 = vmmov %vm15511_vm0  ;;  %s9162_s9 = scalar_lea.vmem %s7854_s30, 256  ;;  %p9167_p3 = scmp.lt.s32.totalorder %s7854_s30, %s7854_s30 }
 0x5ba   :  { %v7551_v47 = vadd.f32 %v7550_v22, %v7549_v3  ;;  %vm15513_vm1 = vmmov %vm15511_vm0  ;;  %p9163_p2 = scmp.ne.s32.totalorder %s7854_s30, %s9162_s9  ;;  %p9168_p4 = scmp.lt.s32.totalorder %s9162_s9, %s9162_s9 }
 0x5bc   :  { %v7553_v23 = vadd.f32 %v7552_v10, %v7551_v47  ;;  %p9169_p5 = por %p9168_p4, %p9167_p3 }
 0x5be   :  { %v7555_v26 = vadd.f32 %v7554_v8, %v7553_v23  ;;  %p9170_p6 = pnand %p9169_p5, %p9163_p2 }
 0x5c0   :  { %v7557_v63 = vadd.f32 %v7556_v20, %v7555_v26 }
 0x5c2   :  { %v7559_v48 = vadd.f32 %v7558_v38, %v7557_v63 }
 0x5c4   :  { %v7561_v5 = vadd.f32 %v7560_v34, %v7559_v48 }
 0x5c6   :  { %vm7569_vm2 = vcmp.lt.f32.partialorder %v7561_v5, 32.0 }
 0x5c7   :  { %v8956_v24 = vsel %vm7569_vm2, 1.0, %v15253_v54  ;;  %v7721_v54 = vld [vmem:[%s14913_s4 + $0x30] sm:$0xff] }
 0x5c8   :  { %7593 = vxpose.xlu1.b32.end [8/8] (short) (narrow) %v8956_v24, 16  ;;  %v9094_v44 = vpack.c.bf16 %v7722_v14, %v7721_v54 }
 0x5ca   :  { %9095 = vmatprep.subr.bf16.mxu0 %v9094_v44 }
 0x5cb   :  { %9097 = vmatpush3.bf16.msra.mxu0 %v9094_v44 }
 0x5e6   :  { %9107 = vset.pattern.permute.xlu1 %v9196_v4 }
 0x62c   :  { %v7602_v56 = vpop.trf.xlu1 }
 0x62d   :  { %v7618_v13 = vmul.f32 %v9116_v30, %v7602_v56 }
 0x62f   :  { %9028 = vmatprep.mubr.msk.f32.mxu1 %vm15508_vm5, %v7618_v13 }
 0x630   :  { %v7603_v61 = vpop.trf.xlu1 }
 0x631   :  { %v7619_v12 = vmul.f32 %v9117_v0, %v7603_v61 }
 0x633   :  { %9029 = vmatmul.mubr.msk.f32.vlgmr.msra.gmra.mrb[0].mxu1 %vm15509_vm3, %v7619_v12 }
 0x706   :  { %v9030_v46 = vpop.f32.mrb[0].mxu1 }
 0x707   :  { %v7710_v16 = vmul.f32 %v9030_v46, %v7619_v12  ;;  %v7700_v32 = vpop.f32.mrb[1].mxu1 }
 0x708   :  { %v7709_v1 = vmul.f32 %v7700_v32, %v7618_v13 }
 0x709   :  { %v7712_v28 = vmul.f32 0.4082483, %v7710_v16 }
 0x70a   :  { %v7711_v42 = vmul.f32 0.4082483, %v7709_v1 }
 0x70b   :  { %v7714_v49 = vadd.f32 %v7712_v28, %v7619_v12 }
 0x70c   :  { %v7713_v51 = vadd.f32 %v7711_v42, %v7618_v13 }
 0x70e   :  { %9047 = vmatprep.mubr.msk.f32.mxu0 %vm15510_vm13, %v7713_v51 }
 0x70f   :  { %9048 = vmatmul.mubr.msk.f32.vlgmr.msra.gmra.mrb[2].mxu0 %vm15511_vm0, %v7714_v49 }
 0x7e2   :  { %v9049_v7 = vpop.f32.mrb[2].mxu0 }
 0x7e3   :  { %v7803_v18 = vadd.f32 %v9049_v7, %v7724_v60  ;;  %v7797_v40 = vpop.f32.mrb[3].mxu0 }
 0x7e4   :  { %v7798_v50 = vadd.f32 %v7797_v40, %v7724_v60 }
 0x7e5   :  { %v8962_v21 = vmul.f32 -1.442695, %v7803_v18 }
 0x7e6   :  { %v8961_v37 = vmul.f32 -1.442695, %v7798_v50 }
 0x7e7   :  { %9108 = vpow2.f32 %v8962_v21 }
 0x7e8   :  { %9110 = vpow2.f32 %v8961_v37 }
 0x7f1   :  { %v9109_v55 = vpop.eup %9108 }
 0x7f2   :  { %v9111_v57 = vpop.eup %9110  ;;  %v7813_v35 = vadd.f32 1.0, %v9109_v55 }
 0x7f3   :  { %v7812_v25 = vadd.f32 1.0, %v9111_v57 }
 0x7f4   :  { %9112 = vrcp.f32 %v7813_v35 }
 0x7f5   :  { %9114 = vrcp.f32 %v7812_v25 }
 0x7fe   :  { %v9113_v36 = vpop.eup %9112 }
 0x7ff   :  { %v9115_v6 = vpop.eup %9114  ;;  %7825 = vperm.xlu1 %9107, %v9113_v36   ;;  %v7831_v17 = vsub.f32 1.0, %v9113_v36 }
 0x800   :  { %7820 = vperm.xlu0 %9106, %v9115_v6   ;;  %v7830_v58 = vsub.f32 1.0, %v9115_v6 }
 0x803   :  { %7834 = vperm.xlu1 %9107, %v7830_v58  }
 0x807   :  { %7839 = vperm.xlu1 %9107, %v7831_v17  }
 0x87e   :  { %v7826_v31 = vpop.permute.xlu1 %7825 }
 0x87f   :  { %v7821_v52 = vpop.permute.xlu0 %7820  ;;  %v7829_v59 = vmul.f32 %v7826_v31, %v7714_v49 }
 0x880   :  { %v7828_v19 = vmul.f32 %v7821_v52, %v7713_v51 }
 0x882   :  { %v7835_v33 = vpop.permute.xlu1 %7834 }
 0x883   :  { %v7842_v43 = vmul.f32 %v7835_v33, %v7618_v13 }
 0x885   :  { %v7844_v3 = vadd.f32 %v7842_v43, %v7828_v19 }
 0x886   :  { %v7840_v41 = vpop.permute.xlu1 %7839 }
 0x887   :  { %7846 = vst.msk [vmem:[#allocation8] sm:$0xff] %vm15512_vm6, %v7844_v3  ;;  %v7843_v22 = vmul.f32 %v7840_v41, %v7619_v12 }
 0x889   :  { %v7845_v29 = vadd.f32 %v7843_v22, %v7829_v59 }
 0x88b   :  { %7847 = vst.msk [vmem:[#allocation8 + $0x8] sm:$0xff] %vm15513_vm1, %v7845_v29 }
 0x88c   :  { %9173 = shalt.err (!%p9170_p6)
}
 0x88d   :  { %s9174_s12 = scalar_lea.hbm %s14915_s6, 256 }
 0x88e   :  { %p9175_p7 = scmp.ne.s32.totalorder %s14915_s6, %s9174_s12  ;;  %p9178_p8 = scmp.lt.u32.totalorder %s9174_s12, %s14915_s6 }
 0x890   :  { %p9180_p9 = pnand %p9178_p8, %p9175_p7 }
 0x892   :  { %9183 = shalt.err (!%p9180_p9)
}
 0x893   :  { %7859 = dma.vmem_to_hbm [thread:$0]  %s7854_s30, 256, %s14915_s6, [#allocation5], %s9191_s7, %s9191_s7, %s9192_s8  }
 0x894   :  { %9188 = dma.done.wait [#allocation5], 256  }
 0x895   :  { %9189 = vsyncadd [#allocation5], 4294967040 }
 0x896   :  { %7863 = vsyncpa [#allocation4], 1 }
 0x897   :  { %7864 = vsyncpa [#allocation7], 1 }
 0x898   :  { %7865 = vsyncpa [#allocation5], 1 }

</bundles_post_ra>
